<compile_context>
chip_gen: v5e
topology: v5e:2x2
jax: 0.10.0
libtpu: 0.0.40
codegen_flags: <defaults>
</compile_context>

<pallas_src>
import functools

import jax
import jax.numpy as jnp
from jax import lax
from jax.experimental import pallas as pl
from jax.experimental.pallas import tpu as pltpu

IMG_SIZE = 28
IN_DIM = IMG_SIZE * IMG_SIZE          # 784
K_PAD = 896                           # 7 * 128, lane-aligned input feature dim
H1, H2, H3, OUT = 512, 256, 128, 1
LEAKY_SLOPE = 0.2


def _leaky_relu(x, slope=LEAKY_SLOPE):
    return jnp.where(x > 0, x, slope * x)


def _discriminator_kernel(x_ref,
                          w1_ref, b1_ref,
                          w2_ref, b2_ref,
                          w3_ref, b3_ref,
                          w4t_ref, b4_ref,
                          out_ref):
    """Fused 4-layer MLP on one (block_b, K_PAD) batch tile.

    All weights are VMEM-resident across the batch grid (constant index_map).
    Matmuls run in bf16 on the MXU with f32 accumulation; LeakyReLU runs in
    f32 on the VPU.
    """
    x = x_ref[...]                                                  # (bb, 896) bf16

    h = jnp.dot(x, w1_ref[...], preferred_element_type=jnp.float32) + b1_ref[...]
    h = _leaky_relu(h).astype(jnp.bfloat16)                         # (bb, 512)

    h = jnp.dot(h, w2_ref[...], preferred_element_type=jnp.float32) + b2_ref[...]
    h = _leaky_relu(h).astype(jnp.bfloat16)                         # (bb, 256)

    h = jnp.dot(h, w3_ref[...], preferred_element_type=jnp.float32) + b3_ref[...]
    h = _leaky_relu(h).astype(jnp.bfloat16)                         # (bb, 128)

    # Final 128 -> 1 layer as a transposed matmul so the per-sample scalar
    # lands on the lane axis: (1, 128) . (bb, 128)^T -> (1, bb).
    logits = lax.dot_general(
        w4t_ref[...], h,
        dimension_numbers=(((1,), (1,)), ((), ())),
        preferred_element_type=jnp.float32)                         # (1, bb)
    logits = logits + b4_ref[...]                                   # (1, 1) broadcast

    out_ref[...] = logits.astype(out_ref.dtype)


@functools.partial(jax.jit, static_argnames=("block_b",))
def discriminator_forward(x, params, block_b=256):
    """x: (B, 1, 28, 28) or (B, 784) float32. Returns (B, 1) float32."""
    (w1, b1, w2, b2, w3, b3, w4, b4) = params

    x2d = x.reshape(-1, IN_DIM)
    B = x2d.shape[0]
    n_tiles = pl.cdiv(B, block_b)
    B_pad = n_tiles * block_b

    # bf16 inputs / weights, zero-padded to lane-aligned shapes (zero rows /
    # columns do not change the math).
    x_p = jnp.pad(x2d.astype(jnp.bfloat16),
                  ((0, B_pad - B), (0, K_PAD - IN_DIM)))            # (B_pad, 896)
    w1_p = jnp.pad(w1.astype(jnp.bfloat16), ((0, K_PAD - IN_DIM), (0, 0)))
    w2_b = w2.astype(jnp.bfloat16)
    w3_b = w3.astype(jnp.bfloat16)
    w4t = w4.astype(jnp.bfloat16).T                                 # (1, 128)
    b1_f = b1.astype(jnp.float32).reshape(1, H1)
    b2_f = b2.astype(jnp.float32).reshape(1, H2)
    b3_f = b3.astype(jnp.float32).reshape(1, H3)
    b4_f = b4.astype(jnp.float32).reshape(1, OUT)

    def resident(shape):
        # Full-array block with a constant index_map -> stays in VMEM across
        # the whole batch grid.
        return pl.BlockSpec(shape, lambda i: (0,) * len(shape))

    out = pl.pallas_call(
        _discriminator_kernel,
        out_shape=jax.ShapeDtypeStruct((1, B_pad), jnp.float32),
        grid_spec=pltpu.PrefetchScalarGridSpec(
            num_scalar_prefetch=0,
            grid=(n_tiles,),
            in_specs=[
                pl.BlockSpec((block_b, K_PAD), lambda i: (i, 0)),   # x tile
                resident(w1_p.shape), resident(b1_f.shape),
                resident(w2_b.shape), resident(b2_f.shape),
                resident(w3_b.shape), resident(b3_f.shape),
                resident(w4t.shape), resident(b4_f.shape),
            ],
            out_specs=pl.BlockSpec((1, block_b), lambda i: (0, i)), # lane-dense
        ),
        compiler_params=pltpu.CompilerParams(
            dimension_semantics=("parallel",),
            vmem_limit_bytes=32 * 1024 * 1024,
        ),
    )(x_p, w1_p, b1_f, w2_b, b2_f, w3_b, b3_f, w4t, b4_f)

    return out.reshape(B_pad, 1)[:B]


def init_params(key):
    """Deterministic init mirroring nn.Linear default (U[-1/sqrt(fan_in), ...])."""
    dims = [(IN_DIM, H1), (H1, H2), (H2, H3), (H3, OUT)]
    params = []
    for (fan_in, fan_out) in dims:
        key, kw, kb = jax.random.split(key, 3)
        bound = 1.0 / jnp.sqrt(fan_in)
        w = jax.random.uniform(kw, (fan_in, fan_out), jnp.float32, -bound, bound)
        b = jax.random.uniform(kb, (1, fan_out), jnp.float32, -bound, bound)
        params.extend([w, b])
    return tuple(params)


def reference_forward(x, params):
    """Pure-JAX reference mimicking the kernel's bf16-input / f32-accum math."""
    (w1, b1, w2, b2, w3, b3, w4, b4) = params
    bf = jnp.bfloat16
    f32 = jnp.float32
    h = x.reshape(-1, IN_DIM).astype(bf)
    h = _leaky_relu(jnp.dot(h, w1.astype(bf), preferred_element_type=f32) + b1)
    h = _leaky_relu(jnp.dot(h.astype(bf), w2.astype(bf), preferred_element_type=f32) + b2)
    h = _leaky_relu(jnp.dot(h.astype(bf), w3.astype(bf), preferred_element_type=f32) + b3)
    return jnp.dot(h.astype(bf), w4.astype(bf), preferred_element_type=f32) + b4


if __name__ == "__main__":
    key = jax.random.PRNGKey(0)
    key, kx = jax.random.split(key)

    # Deliberately not a multiple of block_b: exercises batch padding and a
    # multi-step (grid=2) parallel batch axis.
    B = 300
    x = jax.random.normal(kx, (B, 1, IMG_SIZE, IMG_SIZE), dtype=jnp.float32)

    params = init_params(key)

    out = discriminator_forward(x, params)   # default block_b=256
    out = jax.block_until_ready(out)

    ref = reference_forward(x, params)
    assert out.shape == (B, OUT), out.shape
    max_err = float(jnp.max(jnp.abs(out - ref)))
    assert jnp.allclose(out, ref, atol=1e-2, rtol=1e-2), (
        f"mismatch vs reference: max abs err {max_err}")

    print("KERNEL_OK")
</pallas_src>

<mosaic_0001>
module attributes {stable_mosaic.version = 11 : i64} {
  func.func @_discriminator_kernel(%arg0: i32, %arg1: memref<256x896xbf16, #tpu.memory_space<vmem>>, %arg2: memref<896x512xbf16, #tpu.memory_space<vmem>>, %arg3: memref<1x512xf32, #tpu.memory_space<vmem>>, %arg4: memref<512x256xbf16, #tpu.memory_space<vmem>>, %arg5: memref<1x256xf32, #tpu.memory_space<vmem>>, %arg6: memref<256x128xbf16, #tpu.memory_space<vmem>>, %arg7: memref<1x128xf32, #tpu.memory_space<vmem>>, %arg8: memref<1x128xbf16, #tpu.memory_space<vmem>>, %arg9: memref<1x1xf32, #tpu.memory_space<vmem>>, %arg10: memref<1x256xf32, #tpu.memory_space<vmem>>) attributes {dimension_semantics = [#tpu.dimension_semantics<parallel>], iteration_bounds = array<i64: 2>, scalar_prefetch = 0 : i64, scratch_operands = 0 : i64, tpu.core_type = #tpu.core_type<tc>, window_params = [{transform_indices = @transform_0, window_bounds = array<i64: 256, 896>}, {pipeline_mode = #tpu.pipeline_mode<synchronous>, transform_indices = @transform_1, window_bounds = array<i64: 896, 512>}, {pipeline_mode = #tpu.pipeline_mode<synchronous>, transform_indices = @transform_2, window_bounds = array<i64: 1, 512>}, {pipeline_mode = #tpu.pipeline_mode<synchronous>, transform_indices = @transform_3, window_bounds = array<i64: 512, 256>}, {pipeline_mode = #tpu.pipeline_mode<synchronous>, transform_indices = @transform_4, window_bounds = array<i64: 1, 256>}, {pipeline_mode = #tpu.pipeline_mode<synchronous>, transform_indices = @transform_5, window_bounds = array<i64: 256, 128>}, {pipeline_mode = #tpu.pipeline_mode<synchronous>, transform_indices = @transform_6, window_bounds = array<i64: 1, 128>}, {pipeline_mode = #tpu.pipeline_mode<synchronous>, transform_indices = @transform_7, window_bounds = array<i64: 1, 128>}, {pipeline_mode = #tpu.pipeline_mode<synchronous>, transform_indices = @transform_8, window_bounds = array<i64: 1, 1>}, {transform_indices = @transform_9, window_bounds = array<i64: 1, 256>}]} {
    %c0 = arith.constant 0 : index
    %c0_0 = arith.constant 0 : index
    %0 = vector.load %arg1[%c0, %c0_0] : memref<256x896xbf16, #tpu.memory_space<vmem>>, vector<256x896xbf16>
    %c0_1 = arith.constant 0 : index
    %c0_2 = arith.constant 0 : index
    %1 = vector.load %arg2[%c0_1, %c0_2] : memref<896x512xbf16, #tpu.memory_space<vmem>>, vector<896x512xbf16>
    %cst = arith.constant dense<0.000000e+00> : vector<256x512xf32>
    %2 = tpu.matmul %0, %1, %cst {dimension_numbers = #tpu.dot_dimension_numbers<[1], [0], [0], [1], [0, 0, 1, 1], [], []>} : vector<256x896xbf16>, vector<896x512xbf16>, vector<256x512xf32> -> vector<256x512xf32>
    %c0_3 = arith.constant 0 : index
    %c0_4 = arith.constant 0 : index
    %3 = vector.load %arg3[%c0_3, %c0_4] : memref<1x512xf32, #tpu.memory_space<vmem>>, vector<1x512xf32>
    %4 = vector.broadcast %3 : vector<1x512xf32> to vector<256x512xf32>
    %5 = arith.addf %2, %4 : vector<256x512xf32>
    %cst_5 = arith.constant 0.000000e+00 : f32
    %6 = vector.broadcast %cst_5 : f32 to vector<256x512xf32>
    %7 = arith.cmpf ogt, %5, %6 : vector<256x512xf32>
    %cst_6 = arith.constant 2.000000e-01 : f32
    %8 = vector.broadcast %cst_6 : f32 to vector<256x512xf32>
    %9 = arith.mulf %8, %5 : vector<256x512xf32>
    %10 = arith.select %7, %5, %9 : vector<256x512xi1>, vector<256x512xf32>
    %11 = arith.truncf %10 : vector<256x512xf32> to vector<256x512xbf16>
    %c0_7 = arith.constant 0 : index
    %c0_8 = arith.constant 0 : index
    %12 = vector.load %arg4[%c0_7, %c0_8] : memref<512x256xbf16, #tpu.memory_space<vmem>>, vector<512x256xbf16>
    %cst_9 = arith.constant dense<0.000000e+00> : vector<256x256xf32>
    %13 = tpu.matmul %11, %12, %cst_9 {dimension_numbers = #tpu.dot_dimension_numbers<[1], [0], [0], [1], [0, 0, 1, 1], [], []>} : vector<256x512xbf16>, vector<512x256xbf16>, vector<256x256xf32> -> vector<256x256xf32>
    %c0_10 = arith.constant 0 : index
    %c0_11 = arith.constant 0 : index
    %14 = vector.load %arg5[%c0_10, %c0_11] : memref<1x256xf32, #tpu.memory_space<vmem>>, vector<1x256xf32>
    %15 = vector.broadcast %14 : vector<1x256xf32> to vector<256x256xf32>
    %16 = arith.addf %13, %15 : vector<256x256xf32>
    %cst_12 = arith.constant 0.000000e+00 : f32
    %17 = vector.broadcast %cst_12 : f32 to vector<256x256xf32>
    %18 = arith.cmpf ogt, %16, %17 : vector<256x256xf32>
    %cst_13 = arith.constant 2.000000e-01 : f32
    %19 = vector.broadcast %cst_13 : f32 to vector<256x256xf32>
    %20 = arith.mulf %19, %16 : vector<256x256xf32>
    %21 = arith.select %18, %16, %20 : vector<256x256xi1>, vector<256x256xf32>
    %22 = arith.truncf %21 : vector<256x256xf32> to vector<256x256xbf16>
    %c0_14 = arith.constant 0 : index
    %c0_15 = arith.constant 0 : index
    %23 = vector.load %arg6[%c0_14, %c0_15] : memref<256x128xbf16, #tpu.memory_space<vmem>>, vector<256x128xbf16>
    %cst_16 = arith.constant dense<0.000000e+00> : vector<256x128xf32>
    %24 = tpu.matmul %22, %23, %cst_16 {dimension_numbers = #tpu.dot_dimension_numbers<[1], [0], [0], [1], [0, 0, 1, 1], [], []>} : vector<256x256xbf16>, vector<256x128xbf16>, vector<256x128xf32> -> vector<256x128xf32>
    %c0_17 = arith.constant 0 : index
    %c0_18 = arith.constant 0 : index
    %25 = vector.load %arg7[%c0_17, %c0_18] : memref<1x128xf32, #tpu.memory_space<vmem>>, vector<1x128xf32>
    %26 = vector.broadcast %25 : vector<1x128xf32> to vector<256x128xf32>
    %27 = arith.addf %24, %26 : vector<256x128xf32>
    %cst_19 = arith.constant 0.000000e+00 : f32
    %28 = vector.broadcast %cst_19 : f32 to vector<256x128xf32>
    %29 = arith.cmpf ogt, %27, %28 : vector<256x128xf32>
    %cst_20 = arith.constant 2.000000e-01 : f32
    %30 = vector.broadcast %cst_20 : f32 to vector<256x128xf32>
    %31 = arith.mulf %30, %27 : vector<256x128xf32>
    %32 = arith.select %29, %27, %31 : vector<256x128xi1>, vector<256x128xf32>
    %33 = arith.truncf %32 : vector<256x128xf32> to vector<256x128xbf16>
    %c0_21 = arith.constant 0 : index
    %c0_22 = arith.constant 0 : index
    %34 = vector.load %arg8[%c0_21, %c0_22] : memref<1x128xbf16, #tpu.memory_space<vmem>>, vector<1x128xbf16>
    %cst_23 = arith.constant dense<0.000000e+00> : vector<1x256xf32>
    %35 = tpu.matmul %34, %33, %cst_23 {dimension_numbers = #tpu.dot_dimension_numbers<[1], [1], [0], [0], [0, 0, 1, 0], [], []>} : vector<1x128xbf16>, vector<256x128xbf16>, vector<1x256xf32> -> vector<1x256xf32>
    %c0_24 = arith.constant 0 : index
    %c0_25 = arith.constant 0 : index
    %36 = vector.load %arg9[%c0_24, %c0_25] : memref<1x1xf32, #tpu.memory_space<vmem>>, vector<1x1xf32>
    %37 = vector.broadcast %36 : vector<1x1xf32> to vector<1x256xf32>
    %38 = arith.addf %35, %37 : vector<1x256xf32>
    %c0_26 = arith.constant 0 : index
    %c0_27 = arith.constant 0 : index
    %39 = vector.load %arg10[%c0_26, %c0_27] : memref<1x256xf32, #tpu.memory_space<vmem>>, vector<1x256xf32>
    tpu.vector_store %arg10[%c0_26, %c0_27], %38 {strides = array<i32>} : memref<1x256xf32, #tpu.memory_space<vmem>>, vector<1x256xf32>,
    return
  }
  func.func @transform_0(%arg0: i32) -> (i32, i32) {
    %c0_i32 = arith.constant 0 : i32
    %c0_i32_0 = arith.constant 0 : i32
    return %arg0, %c0_i32 : i32, i32
  }
  func.func @transform_1(%arg0: i32) -> (i32, i32) {
    %c0_i32 = arith.constant 0 : i32
    %c0_i32_0 = arith.constant 0 : i32
    %c0_i32_1 = arith.constant 0 : i32
    return %c0_i32, %c0_i32_0 : i32, i32
  }
  func.func @transform_2(%arg0: i32) -> (i32, i32) {
    %c0_i32 = arith.constant 0 : i32
    %c0_i32_0 = arith.constant 0 : i32
    %c0_i32_1 = arith.constant 0 : i32
    return %c0_i32, %c0_i32_0 : i32, i32
  }
  func.func @transform_3(%arg0: i32) -> (i32, i32) {
    %c0_i32 = arith.constant 0 : i32
    %c0_i32_0 = arith.constant 0 : i32
    %c0_i32_1 = arith.constant 0 : i32
    return %c0_i32, %c0_i32_0 : i32, i32
  }
  func.func @transform_4(%arg0: i32) -> (i32, i32) {
    %c0_i32 = arith.constant 0 : i32
    %c0_i32_0 = arith.constant 0 : i32
    %c0_i32_1 = arith.constant 0 : i32
    return %c0_i32, %c0_i32_0 : i32, i32
  }
  func.func @transform_5(%arg0: i32) -> (i32, i32) {
    %c0_i32 = arith.constant 0 : i32
    %c0_i32_0 = arith.constant 0 : i32
    %c0_i32_1 = arith.constant 0 : i32
    return %c0_i32, %c0_i32_0 : i32, i32
  }
  func.func @transform_6(%arg0: i32) -> (i32, i32) {
    %c0_i32 = arith.constant 0 : i32
    %c0_i32_0 = arith.constant 0 : i32
    %c0_i32_1 = arith.constant 0 : i32
    return %c0_i32, %c0_i32_0 : i32, i32
  }
  func.func @transform_7(%arg0: i32) -> (i32, i32) {
    %c0_i32 = arith.constant 0 : i32
    %c0_i32_0 = arith.constant 0 : i32
    %c0_i32_1 = arith.constant 0 : i32
    return %c0_i32, %c0_i32_0 : i32, i32
  }
  func.func @transform_8(%arg0: i32) -> (i32, i32) {
    %c0_i32 = arith.constant 0 : i32
    %c0_i32_0 = arith.constant 0 : i32
    %c0_i32_1 = arith.constant 0 : i32
    return %c0_i32, %c0_i32_0 : i32, i32
  }
  func.func @transform_9(%arg0: i32) -> (i32, i32) {
    %c0_i32 = arith.constant 0 : i32
    %c0_i32_0 = arith.constant 0 : i32
    return %c0_i32, %arg0 : i32, i32
  }
}

</mosaic_0001>

<bundles_post_ra>
// kernel: discriminator_forward.1
= control target key start
LH: loop header
LB: loop body
LE: loop exit
PB: predicated region body
PF: predicated region fallthrough
CT: control target
= control target key end

     0   :  { %s9364_s11 = smov 0   ;;  %s13800_s0 = inlined_call_operand.vmem [shape: bf16[512,896], index: 0, kind: input, shape index: {}]   ;;  %s13801_s1 = inlined_call_operand.vmem [shape: bf16[896,512], index: 1, kind: input, shape index: {}]   ;;  %s13802_s2 = inlined_call_operand.vmem [shape: f32[1,512], index: 2, kind: input, shape index: {}]   ;;  %s13803_s3 = inlined_call_operand.vmem [shape: bf16[512,256], index: 3, kind: input, shape index: {}]   ;;  %s13804_s4 = inlined_call_operand.vmem [shape: f32[1,256], index: 4, kind: input, shape index: {}]   ;;  %s13805_s5 = inlined_call_operand.vmem [shape: bf16[256,128], index: 5, kind: input, shape index: {}]   ;;  %s13806_s6 = inlined_call_operand.vmem [shape: f32[1,128], index: 6, kind: input, shape index: {}]   ;;  %s13807_s7 = inlined_call_operand.vmem [shape: bf16[1,128], index: 7, kind: input, shape index: {}]   ;;  %s13808_s8 = inlined_call_operand.<no memory space> [shape: f32[1,1], index: 8, kind: input, shape index: {}]   ;;  %s13809_s9 = inlined_call_operand.vmem [shape: f32[1,512], index: 9, kind: output, shape index: {}]  }
   0x1   :  { %v14_v0 = vstv %s13808_s8 }
   0x2   :  { %15 = vst [vmem:[#allocation2] sm:$0x1] %v14_v0 }
   0x3 LB: > { %s7180_s12 = sadd.s32 4294967295, %s9308_s11   ;;  %p7184_p0 = scmp.ge.s32.totalorder %s9308_s11, 1  ;;  %s9308_s11 = sphi %s9364_s11, %s21_s11  }
   0x4   : > { %p291_p1 = scmp.lt.s32.totalorder %s9308_s11, 3 }
   0x6   : > { %p292_p2 = pnand %p7184_p0, %p291_p1 }
   0x8   : > { %295 = sbr.rel (%p292_p2) target bundleno = 2940 (0xb7c), region = 56 }
   0xd   : > { %v7750_v1 = vld [vmem:[%s13801_s1 + $0xe0] sm:$0xf]  ;;  %v8996_v2 = vld [vmem:[%s13801_s1 + $0xec] sm:$0xf0]  ;;  %s7185_s24 = sshll.u32 %s7180_s12, 5  ;;  %s7187_s15 = sshll.u32 %s7180_s12, 1 }
   0xe   : > { %v7878_v3 = vld [vmem:[%s13801_s1 + $0x1e0] sm:$0xf]  ;;  %v7751_v4 = vor.u32 %v8996_v2, %v7750_v1  ;;  %v9028_v5 = vld [vmem:[%s13801_s1 + $0x1ec] sm:$0xf0]  ;;  %p328_p3 = scmp.lt.s32.totalorder %s7185_s24, 63  ;;  %p335_p4 = scmp.lt.s32.totalorder %s7187_s15, 3 }
   0xf   : > { %v7734_v6 = vld [vmem:[%s13801_s1 + $0xc0] sm:$0xf]  ;;  %v8992_v7 = vld [vmem:[%s13801_s1 + $0xcc] sm:$0xf0]  ;;  %v7879_v8 = vor.u32 %v9028_v5, %v7878_v3 }
  0x10   : > { %v7862_v9 = vld [vmem:[%s13801_s1 + $0x1c0] sm:$0xf]  ;;  %v9024_v10 = vld [vmem:[%s13801_s1 + $0x1cc] sm:$0xf0]  ;;  %2397 = vmatpush.bf16.msra.mxu0 %v7751_v4  ;;  %9270 = vmatpush.bf16.msra.mxu2 %v7751_v4  ;;  %v7735_v11 = vor.u32 %v8992_v7, %v7734_v6  ;;  %s14703_s24 = smov (!%p328_p3, %s7185_s24), 63  ;;  %s14705_s15 = smov (!%p335_p4, %s7187_s15), 3 }
  0x11   : > { %2486 = vmatpush.bf16.msra.mxu1 %v7879_v8  ;;  %9278 = vmatpush.bf16.msra.mxu3 %v7879_v8  ;;  %v7863_v12 = vor.u32 %v9024_v10, %v7862_v9  ;;  %v7718_v13 = vld [vmem:[%s13801_s1 + $0xa0] sm:$0xf]  ;;  %v8988_v14 = vld [vmem:[%s13801_s1 + $0xac] sm:$0xf0]  ;;  %s9286_s21 = smul.u32 28, %s14703_s24  ;;  %s337_s18 = scalar_lea.vmem %s13809_s9, %s14705_s15 }
  0x12   : > { %v7846_v15 = vld [vmem:[%s13801_s1 + $0x1a0] sm:$0xf]  ;;  %v9020_v16 = vld [vmem:[%s13801_s1 + $0x1ac] sm:$0xf0]  ;;  %v7719_v17 = vor.u32 %v8988_v14, %v7718_v13 }
  0x13   : > { %v7847_v18 = vor.u32 %v9020_v16, %v7846_v15  ;;  %v7702_v19 = vld [vmem:[%s13801_s1 + $0x80] sm:$0xf]  ;;  %v8984_v20 = vld [vmem:[%s13801_s1 + $0x8c] sm:$0xf0]  ;;  %s9461_s13 = scalar_lea.vmem %s13800_s0, %s9286_s21 }
  0x14   : > { %2398 = vmatpush.bf16.msra.mxu0 %v7735_v11  ;;  %9271 = vmatpush.bf16.msra.mxu2 %v7735_v11  ;;  %v7830_v21 = vld [vmem:[%s13801_s1 + $0x180] sm:$0xf]  ;;  %v9016_v22 = vld [vmem:[%s13801_s1 + $0x18c] sm:$0xf0]  ;;  %v7703_v23 = vor.u32 %v8984_v20, %v7702_v19  ;;  %v8857_v48 = vld [vmem:[%s9461_s13 + $0x18] sm:$0xf0] }
  0x15   : > { %2487 = vmatpush.bf16.msra.mxu1 %v7863_v12  ;;  %9279 = vmatpush.bf16.msra.mxu3 %v7863_v12  ;;  %v7831_v24 = vor.u32 %v9016_v22, %v7830_v21  ;;  %v7686_v25 = vld [vmem:[%s13801_s1 + $0x60] sm:$0xf]  ;;  %v8980_v26 = vld [vmem:[%s13801_s1 + $0x6c] sm:$0xf0]  ;;  %v7442_v50 = vld [vmem:[%s9461_s13 + $0x1f8] sm:$0xf] }
  0x16   : > { %v7814_v27 = vld [vmem:[%s13801_s1 + $0x160] sm:$0xf]  ;;  %v9012_v28 = vld [vmem:[%s13801_s1 + $0x16c] sm:$0xf0]  ;;  %v7687_v29 = vor.u32 %v8980_v26, %v7686_v25  ;;  %v8920_v51 = vld [vmem:[%s9461_s13 + $0x210] sm:$0xf0] }
  0x17   : > { %v7815_v30 = vor.u32 %v9012_v28, %v7814_v27  ;;  %v7670_v31 = vld [vmem:[%s13801_s1 + $0x40] sm:$0xf]  ;;  %v8976_v32 = vld [vmem:[%s13801_s1 + $0x4c] sm:$0xf0]  ;;  %v8854_v52 = vld [vmem:[%s9461_s13 + $0x4] sm:$0xf]  ;;  %v9485_v58 = vor.u32 %v8920_v51, %v7442_v50 }
  0x18   : > { %2399 = vmatpush.bf16.msra.mxu0 %v7719_v17  ;;  %9272 = vmatpush.bf16.msra.mxu2 %v7719_v17  ;;  %v7798_v33 = vld [vmem:[%s13801_s1 + $0x140] sm:$0xf]  ;;  %v9008_v34 = vld [vmem:[%s13801_s1 + $0x14c] sm:$0xf0]  ;;  %v7671_v35 = vor.u32 %v8976_v32, %v7670_v31  ;;  %v8917_v55 = vld [vmem:[%s9461_s13 + $0x1fc] sm:$0xf] }
  0x19   : > { %2488 = vmatpush.bf16.msra.mxu1 %v7847_v18  ;;  %9280 = vmatpush.bf16.msra.mxu3 %v7847_v18  ;;  %v7799_v36 = vor.u32 %v9008_v34, %v7798_v33  ;;  %v7654_v37 = vld [vmem:[%s13801_s1 + $0x20] sm:$0xf]  ;;  %v8972_v38 = vld [vmem:[%s13801_s1 + $0x2c] sm:$0xf0]  ;;  %v7444_v56 = vld [vmem:[%s9461_s13 + $0x214] sm:$0xf0] }
  0x1a   : > { %v7782_v39 = vld [vmem:[%s13801_s1 + $0x120] sm:$0xf]  ;;  %v9004_v40 = vld [vmem:[%s13801_s1 + $0x12c] sm:$0xf0]  ;;  %v7655_v41 = vor.u32 %v8972_v38, %v7654_v37  ;;  %14114 = vst [vmem:[#allocation4_spill] sm:$0xff] %v9485_v58  ;;  %v9489_v60 = vor.u32 %v8917_v55, %v7444_v56 }
  0x1b   : > { %v7783_v42 = vor.u32 %v9004_v40, %v7782_v39  ;;  %v7638_v43 = vld [vmem:[%s13801_s1] sm:$0xf]  ;;  %v8968_v44 = vld [vmem:[%s13801_s1 + $0xc] sm:$0xf0]  ;;  %v7218_v61 = vld [vmem:[%s9461_s13 + $0x38] sm:$0xf] }
  0x1c   : > { %2400 = vmatpush.bf16.msra.mxu0 %v7703_v23  ;;  %9273 = vmatpush.bf16.msra.mxu2 %v7703_v23  ;;  %v7766_v45 = vld [vmem:[%s13801_s1 + $0x100] sm:$0xf]  ;;  %v9000_v46 = vld [vmem:[%s13801_s1 + $0x10c] sm:$0xf0]  ;;  %v7639_v49 = vor.u32 %v8968_v44, %v7638_v43  ;;  %14116 = vst [vmem:[#allocation6_spill] sm:$0xff] %v9489_v60 }
  0x1d   : > { %2489 = vmatpush.bf16.msra.mxu1 %v7831_v24  ;;  %9281 = vmatpush.bf16.msra.mxu3 %v7831_v24  ;;  %v7190_v47 = vld [vmem:[%s9461_s13] sm:$0xf]  ;;  %v7767_v53 = vor.u32 %v9000_v46, %v7766_v45  ;;  %v8864_v62 = vld [vmem:[%s9461_s13 + $0x50] sm:$0xf0]  ;;  %v7470_v63 = vld [vmem:[%s9461_s13 + $0x230] sm:$0xf] }
  0x1e   : > { %v7192_v54 = vld [vmem:[%s9461_s13 + $0x1c] sm:$0xf0]  ;;  %v9483_v57 = vor.u32 %v8857_v48, %v7190_v47  ;;  %v8927_v0 = vld [vmem:[%s9461_s13 + $0x248] sm:$0xf0]  ;;  %v8861_v1 = vld [vmem:[%s9461_s13 + $0x3c] sm:$0xf]  ;;  %v9503_v5 = vor.u32 %v8864_v62, %v7218_v61 }
  0x1f   : > { %v9487_v59 = vor.u32 %v8854_v52, %v7192_v54  ;;  %v7220_v2 = vld [vmem:[%s9461_s13 + $0x54] sm:$0xf0]  ;;  %v8924_v3 = vld [vmem:[%s9461_s13 + $0x234] sm:$0xf]  ;;  %v7472_v4 = vld [vmem:[%s9461_s13 + $0x24c] sm:$0xf0]  ;;  %v9505_v6 = vor.u32 %v8927_v0, %v7470_v63 }
  0x20   : > { %2401 = vmatpush.bf16.msra.mxu0 %v7687_v29  ;;  %9274 = vmatpush.bf16.msra.mxu2 %v7687_v29  ;;  %14113 = vst [vmem:[#allocation3_spill] sm:$0xff] %v9483_v57  ;;  %v9507_v7 = vor.u32 %v8861_v1, %v7220_v2  ;;  %v9509_v8 = vor.u32 %v8924_v3, %v7472_v4  ;;  %v7246_v9 = vld [vmem:[%s9461_s13 + $0x70] sm:$0xf]  ;;  %v8871_v10 = vld [vmem:[%s9461_s13 + $0x88] sm:$0xf0] }
  0x21   : > { %2490 = vmatpush.bf16.msra.mxu1 %v7815_v30  ;;  %9282 = vmatpush.bf16.msra.mxu3 %v7815_v30  ;;  %14115 = vst [vmem:[#allocation5_spill] sm:$0xff] %v9487_v59  ;;  %v7498_v11 = vld [vmem:[%s9461_s13 + $0x268] sm:$0xf]  ;;  %v8934_v12 = vld [vmem:[%s9461_s13 + $0x280] sm:$0xf0]  ;;  %v9523_v17 = vor.u32 %v8871_v10, %v7246_v9 }
  0x22   : > { %14117 = vst [vmem:[#allocation7_spill] sm:$0xff] %v9503_v5  ;;  %v8868_v13 = vld [vmem:[%s9461_s13 + $0x74] sm:$0xf]  ;;  %v7248_v14 = vld [vmem:[%s9461_s13 + $0x8c] sm:$0xf0]  ;;  %v9525_v18 = vor.u32 %v8934_v12, %v7498_v11 }
  0x23   : > { %14118 = vst [vmem:[#allocation8_spill] sm:$0xff] %v9505_v6  ;;  %v8931_v15 = vld [vmem:[%s9461_s13 + $0x26c] sm:$0xf]  ;;  %v7500_v16 = vld [vmem:[%s9461_s13 + $0x284] sm:$0xf0]  ;;  %v9527_v19 = vor.u32 %v8868_v13, %v7248_v14 }
  0x24   : > { %2402 = vmatpush.bf16.msra.mxu0 %v7671_v35  ;;  %9275 = vmatpush.bf16.msra.mxu2 %v7671_v35  ;;  %14119 = vst [vmem:[#allocation9_spill] sm:$0xff] %v9507_v7  ;;  %v9529_v20 = vor.u32 %v8931_v15, %v7500_v16  ;;  %v7274_v21 = vld [vmem:[%s9461_s13 + $0xa8] sm:$0xf]  ;;  %v8878_v22 = vld [vmem:[%s9461_s13 + $0xc0] sm:$0xf0] }
  0x25   : > { %2491 = vmatpush.bf16.msra.mxu1 %v7799_v36  ;;  %9283 = vmatpush.bf16.msra.mxu3 %v7799_v36  ;;  %14120 = vst [vmem:[#allocation10_spill] sm:$0xff] %v9509_v8  ;;  %v7526_v23 = vld [vmem:[%s9461_s13 + $0x2a0] sm:$0xf]  ;;  %v8941_v24 = vld [vmem:[%s9461_s13 + $0x2b8] sm:$0xf0]  ;;  %v9543_v29 = vor.u32 %v8878_v22, %v7274_v21 }
  0x26   : > { %14121 = vst [vmem:[#allocation11_spill] sm:$0xff] %v9523_v17  ;;  %v8875_v25 = vld [vmem:[%s9461_s13 + $0xac] sm:$0xf]  ;;  %v7276_v26 = vld [vmem:[%s9461_s13 + $0xc4] sm:$0xf0]  ;;  %v9545_v30 = vor.u32 %v8941_v24, %v7526_v23 }
  0x27   : > { %14122 = vst [vmem:[#allocation12_spill] sm:$0xff] %v9525_v18  ;;  %v8938_v27 = vld [vmem:[%s9461_s13 + $0x2a4] sm:$0xf]  ;;  %v7528_v28 = vld [vmem:[%s9461_s13 + $0x2bc] sm:$0xf0]  ;;  %v9547_v31 = vor.u32 %v8875_v25, %v7276_v26 }
  0x28   : > { %2403 = vmatpush.bf16.msra.mxu0 %v7655_v41  ;;  %9276 = vmatpush.bf16.msra.mxu2 %v7655_v41  ;;  %14123 = vst [vmem:[#allocation13_spill] sm:$0xff] %v9527_v19  ;;  %v9549_v32 = vor.u32 %v8938_v27, %v7528_v28  ;;  %v8006_v33 = vld [vmem:[%s13801_s1 + $0x2e0] sm:$0xf]  ;;  %v9060_v34 = vld [vmem:[%s13801_s1 + $0x2ec] sm:$0xf0] }
  0x29   : > { %2492 = vmatpush.bf16.msra.mxu1 %v7783_v42  ;;  %9284 = vmatpush.bf16.msra.mxu3 %v7783_v42  ;;  %14124 = vst [vmem:[#allocation14_spill] sm:$0xff] %v9529_v20  ;;  %v8134_v35 = vld [vmem:[%s13801_s1 + $0x3e0] sm:$0xf]  ;;  %v8007_v36 = vor.u32 %v9060_v34, %v8006_v33  ;;  %v9092_v37 = vld [vmem:[%s13801_s1 + $0x3ec] sm:$0xf0] }
  0x2a   : > { %14125 = vst [vmem:[#allocation15_spill] sm:$0xff] %v9543_v29  ;;  %v7990_v38 = vld [vmem:[%s13801_s1 + $0x2c0] sm:$0xf]  ;;  %v9056_v39 = vld [vmem:[%s13801_s1 + $0x2cc] sm:$0xf0]  ;;  %v8135_v40 = vor.u32 %v9092_v37, %v8134_v35 }
  0x2b   : > { %14126 = vst [vmem:[#allocation16_spill] sm:$0xff] %v9545_v30  ;;  %v8118_v41 = vld [vmem:[%s13801_s1 + $0x3c0] sm:$0xf]  ;;  %v9088_v42 = vld [vmem:[%s13801_s1 + $0x3cc] sm:$0xf0]  ;;  %v7991_v43 = vor.u32 %v9056_v39, %v7990_v38 }
  0x2c   : > { %2404 = vmatpush.bf16.msra.mxu0 %v7639_v49  ;;  %9277 = vmatpush.bf16.msra.mxu2 %v7639_v49  ;;  %14127 = vst [vmem:[#allocation17_spill] sm:$0xff] %v9547_v31  ;;  %v8119_v44 = vor.u32 %v9088_v42, %v8118_v41  ;;  %v7974_v45 = vld [vmem:[%s13801_s1 + $0x2a0] sm:$0xf]  ;;  %v9052_v46 = vld [vmem:[%s13801_s1 + $0x2ac] sm:$0xf0] }
  0x2d   : > { %2493 = vmatpush.bf16.msra.mxu1 %v7767_v53  ;;  %9285 = vmatpush.bf16.msra.mxu3 %v7767_v53  ;;  %14128 = vst [vmem:[#allocation18_spill] sm:$0xff] %v9549_v32  ;;  %v8102_v47 = vld [vmem:[%s13801_s1 + $0x3a0] sm:$0xf]  ;;  %v9084_v48 = vld [vmem:[%s13801_s1 + $0x3ac] sm:$0xf0]  ;;  %v7975_v50 = vor.u32 %v9052_v46, %v7974_v45 }
  0x2e   : > { %v7302_v49 = vld [vmem:[%s9461_s13 + $0xe0] sm:$0xf]  ;;  %v8885_v51 = vld [vmem:[%s9461_s13 + $0xf8] sm:$0xf0]  ;;  %v8103_v52 = vor.u32 %v9084_v48, %v8102_v47  ;;  %v9048_v54 = vld [vmem:[%s13801_s1 + $0x28c] sm:$0xf0] }
  0x2f   : > { %2405 = vmatmul.bf16.vlgmr.msra.gmra.mxu0 %v9483_v57  ;;  %2450 = vmatmul.bf16.vlgmr.msra.gmra.mxu2 %v9485_v58  ;;  %v7958_v53 = vld [vmem:[%s13801_s1 + $0x280] sm:$0xf]  ;;  %v7554_v55 = vld [vmem:[%s9461_s13 + $0x2d8] sm:$0xf]  ;;  %v8948_v56 = vld [vmem:[%s9461_s13 + $0x2f0] sm:$0xf0]  ;;  %v9611_v4 = vor.u32 %v8885_v51, %v7302_v49 }
  0x30   : > { %2494 = vmatmul.bf16.vlgmr.msra.gmra.mxu1 %v9487_v59  ;;  %2539 = vmatmul.bf16.vlgmr.msra.gmra.mxu3 %v9489_v60  ;;  %v8882_v61 = vld [vmem:[%s9461_s13 + $0xe4] sm:$0xf]  ;;  %v7304_v62 = vld [vmem:[%s9461_s13 + $0xfc] sm:$0xf0]  ;;  %v8945_v63 = vld [vmem:[%s9461_s13 + $0x2dc] sm:$0xf]  ;;  %v7959_v1 = vor.u32 %v9048_v54, %v7958_v53  ;;  %v9613_v9 = vor.u32 %v8948_v56, %v7554_v55 }
  0x31   : > { %2575 = vmatpush.bf16.msrb.mxu2 %v8007_v36  ;;  %2664 = vmatpush.bf16.msrb.mxu3 %v8135_v40  ;;  %v7556_v0 = vld [vmem:[%s9461_s13 + $0x2f4] sm:$0xf0]  ;;  %v8086_v2 = vld [vmem:[%s13801_s1 + $0x380] sm:$0xf]  ;;  %v9080_v3 = vld [vmem:[%s13801_s1 + $0x38c] sm:$0xf0]  ;;  %v9615_v10 = vor.u32 %v8882_v61, %v7304_v62 }
  0x32   : > { %14129 = vst [vmem:[#allocation19_spill] sm:$0xff] %v9611_v4  ;;  %v9617_v11 = vor.u32 %v8945_v63, %v7556_v0  ;;  %v8087_v12 = vor.u32 %v9080_v3, %v8086_v2  ;;  %v7942_v13 = vld [vmem:[%s13801_s1 + $0x260] sm:$0xf]  ;;  %v9044_v14 = vld [vmem:[%s13801_s1 + $0x26c] sm:$0xf0] }
  0x33   : > { %14130 = vst [vmem:[#allocation20_spill] sm:$0xff] %v9613_v9  ;;  %v8070_v15 = vld [vmem:[%s13801_s1 + $0x360] sm:$0xf]  ;;  %v7943_v16 = vor.u32 %v9044_v14, %v7942_v13  ;;  %v9076_v21 = vld [vmem:[%s13801_s1 + $0x36c] sm:$0xf0] }
  0x34   : > { %14131 = vst [vmem:[#allocation21_spill] sm:$0xff] %v9615_v10  ;;  %v7926_v22 = vld [vmem:[%s13801_s1 + $0x240] sm:$0xf]  ;;  %v9040_v23 = vld [vmem:[%s13801_s1 + $0x24c] sm:$0xf0]  ;;  %v8071_v24 = vor.u32 %v9076_v21, %v8070_v15 }
  0x35   : > { %2576 = vmatpush.bf16.msrb.mxu2 %v7991_v43  ;;  %2665 = vmatpush.bf16.msrb.mxu3 %v8119_v44  ;;  %14132 = vst [vmem:[#allocation22_spill] sm:$0xff] %v9617_v11  ;;  %v7927_v25 = vor.u32 %v9040_v23, %v7926_v22  ;;  %v8054_v26 = vld [vmem:[%s13801_s1 + $0x340] sm:$0xf]  ;;  %v9072_v27 = vld [vmem:[%s13801_s1 + $0x34c] sm:$0xf0] }
  0x36   : > { %v7910_v28 = vld [vmem:[%s13801_s1 + $0x220] sm:$0xf]  ;;  %v9036_v33 = vld [vmem:[%s13801_s1 + $0x22c] sm:$0xf0]  ;;  %v8055_v34 = vor.u32 %v9072_v27, %v8054_v26  ;;  %v7330_v35 = vld [vmem:[%s9461_s13 + $0x118] sm:$0xf] }
  0x37   : > { %v7911_v36 = vor.u32 %v9036_v33, %v7910_v28  ;;  %v8038_v37 = vld [vmem:[%s13801_s1 + $0x320] sm:$0xf]  ;;  %v9068_v38 = vld [vmem:[%s13801_s1 + $0x32c] sm:$0xf0]  ;;  %v8892_v39 = vld [vmem:[%s9461_s13 + $0x130] sm:$0xf0] }
  0x38   : > { %v7894_v40 = vld [vmem:[%s13801_s1 + $0x200] sm:$0xf]  ;;  %v9032_v41 = vld [vmem:[%s13801_s1 + $0x20c] sm:$0xf0]  ;;  %v8955_v43 = vld [vmem:[%s9461_s13 + $0x328] sm:$0xf0]  ;;  %v8039_v48 = vor.u32 %v9068_v38, %v8038_v37 }
  0x39   : > { %2577 = vmatpush.bf16.msrb.mxu2 %v7975_v50  ;;  %2666 = vmatpush.bf16.msrb.mxu3 %v8103_v52  ;;  %v7582_v42 = vld [vmem:[%s9461_s13 + $0x310] sm:$0xf]  ;;  %v8889_v44 = vld [vmem:[%s9461_s13 + $0x11c] sm:$0xf]  ;;  %v7332_v45 = vld [vmem:[%s9461_s13 + $0x134] sm:$0xf0]  ;;  %v7895_v49 = vor.u32 %v9032_v41, %v7894_v40  ;;  %v9679_v52 = vor.u32 %v8892_v39, %v7330_v35 }
  0x3a   : > { %v8952_v46 = vld [vmem:[%s9461_s13 + $0x314] sm:$0xf]  ;;  %v7584_v47 = vld [vmem:[%s9461_s13 + $0x32c] sm:$0xf0]  ;;  %v8022_v50 = vld [vmem:[%s13801_s1 + $0x300] sm:$0xf]  ;;  %v9681_v53 = vor.u32 %v8955_v43, %v7582_v42  ;;  %v9683_v54 = vor.u32 %v8889_v44, %v7332_v45 }
  0x3b   : > { %v9064_v51 = vld [vmem:[%s13801_s1 + $0x30c] sm:$0xf0]  ;;  %14133 = vst [vmem:[#allocation23_spill] sm:$0xff] %v9679_v52  ;;  %v9685_v55 = vor.u32 %v8952_v46, %v7584_v47  ;;  %v8262_v61 = vld [vmem:[%s13801_s1 + $0x4e0] sm:$0xf] }
  0x3c   : > { %14134 = vst [vmem:[#allocation24_spill] sm:$0xff] %v9681_v53  ;;  %v8023_v56 = vor.u32 %v9064_v51, %v8022_v50  ;;  %v9124_v62 = vld [vmem:[%s13801_s1 + $0x4ec] sm:$0xf0]  ;;  %v8390_v63 = vld [vmem:[%s13801_s1 + $0x5e0] sm:$0xf] }
  0x3d   : > { %2578 = vmatpush.bf16.msrb.mxu2 %v7959_v1  ;;  %2667 = vmatpush.bf16.msrb.mxu3 %v8087_v12  ;;  %14135 = vst [vmem:[#allocation25_spill] sm:$0xff] %v9683_v54  ;;  %v8263_v0 = vor.u32 %v9124_v62, %v8262_v61  ;;  %v9156_v1 = vld [vmem:[%s13801_s1 + $0x5ec] sm:$0xf0]  ;;  %v8246_v2 = vld [vmem:[%s13801_s1 + $0x4c0] sm:$0xf] }
  0x3e   : > { %14136 = vst [vmem:[#allocation26_spill] sm:$0xff] %v9685_v55  ;;  %v9120_v3 = vld [vmem:[%s13801_s1 + $0x4cc] sm:$0xf0]  ;;  %v8391_v12 = vor.u32 %v9156_v1, %v8390_v63  ;;  %v8374_v13 = vld [vmem:[%s13801_s1 + $0x5c0] sm:$0xf] }
  0x3f   : > { %2410 = vmatmul.bf16.gmra.mxu0 %v9503_v5  ;;  %2455 = vmatmul.bf16.gmra.mxu2 %v9505_v6  ;;  %v9152_v14 = vld [vmem:[%s13801_s1 + $0x5cc] sm:$0xf0]  ;;  %v8247_v15 = vor.u32 %v9120_v3, %v8246_v2  ;;  %v8230_v21 = vld [vmem:[%s13801_s1 + $0x4a0] sm:$0xf]  ;;  %v8899_v27 = vld [vmem:[%s9461_s13 + $0x168] sm:$0xf0] }
  0x40   : > { %2499 = vmatmul.bf16.gmra.mxu1 %v9507_v7  ;;  %2544 = vmatmul.bf16.gmra.mxu3 %v9509_v8  ;;  %v9116_v22 = vld [vmem:[%s13801_s1 + $0x4ac] sm:$0xf0]  ;;  %v8358_v23 = vld [vmem:[%s13801_s1 + $0x5a0] sm:$0xf]  ;;  %v7610_v33 = vld [vmem:[%s9461_s13 + $0x348] sm:$0xf] }
  0x41   : > { %2579 = vmatpush.bf16.msrb.mxu2 %v7943_v16  ;;  %2668 = vmatpush.bf16.msrb.mxu3 %v8071_v24  ;;  %v8375_v16 = vor.u32 %v9152_v14, %v8374_v13  ;;  %v9148_v24 = vld [vmem:[%s13801_s1 + $0x5ac] sm:$0xf0]  ;;  %v8896_v35 = vld [vmem:[%s9461_s13 + $0x154] sm:$0xf]  ;;  %v8959_v37 = vld [vmem:[%s9461_s13 + $0x34c] sm:$0xf] }
  0x42   : > { %2753 = vmatpush.bf16.msrb.mxu0 %v8263_v0  ;;  %2842 = vmatpush.bf16.msrb.mxu1 %v8391_v12  ;;  %v7358_v26 = vld [vmem:[%s9461_s13 + $0x150] sm:$0xf]  ;;  %v8359_v28 = vor.u32 %v9148_v24, %v8358_v23  ;;  %v7612_v38 = vld [vmem:[%s9461_s13 + $0x364] sm:$0xf0]  ;;  %v8214_v39 = vld [vmem:[%s13801_s1 + $0x480] sm:$0xf] }
  0x43   : > { %v9112_v40 = vld [vmem:[%s13801_s1 + $0x48c] sm:$0xf0]  ;;  %v8342_v41 = vld [vmem:[%s13801_s1 + $0x580] sm:$0xf]  ;;  %v9744_v42 = vor.u32 %v8899_v27, %v7358_v26  ;;  %v9753_v47 = vor.u32 %v8959_v37, %v7612_v38  ;;  %v8903_v24 = vld [vmem:[%s9461_s13 + $0x18c] sm:$0xf] }
  0x44   : > { %v8215_v44 = vor.u32 %v9112_v40, %v8214_v39  ;;  %v9144_v45 = vld [vmem:[%s13801_s1 + $0x58c] sm:$0xf0]  ;;  %v8326_v51 = vld [vmem:[%s13801_s1 + $0x560] sm:$0xf]  ;;  %v8858_v26 = vld [vmem:[%s9461_s13 + $0x20] sm:$0xf0] }
  0x45   : > { %2580 = vmatpush.bf16.msrb.mxu2 %v7927_v25  ;;  %2669 = vmatpush.bf16.msrb.mxu3 %v8055_v34  ;;  %v8231_v25 = vor.u32 %v9116_v22, %v8230_v21  ;;  %v8962_v34 = vld [vmem:[%s9461_s13 + $0x360] sm:$0xf0]  ;;  %14137 = vst [vmem:[#allocation27_spill] sm:$0xff] %v9744_v42  ;;  %v9108_v50 = vld [vmem:[%s13801_s1 + $0x46c] sm:$0xf0] }
  0x46   : > { %2754 = vmatpush.bf16.msrb.mxu0 %v8247_v15  ;;  %2843 = vmatpush.bf16.msrb.mxu1 %v8375_v16  ;;  %v9746_v43 = vor.u32 %v8962_v34, %v7610_v33  ;;  %14140 = vst [vmem:[#allocation30_spill] sm:$0xff] %v9753_v47  ;;  %v8182_v63 = vld [vmem:[%s13801_s1 + $0x440] sm:$0xf]  ;;  %v9104_v0 = vld [vmem:[%s13801_s1 + $0x44c] sm:$0xf0] }
  0x47   : > { %v8310_v1 = vld [vmem:[%s13801_s1 + $0x540] sm:$0xf]  ;;  %v8183_v2 = vor.u32 %v9104_v0, %v8182_v63  ;;  %v9136_v3 = vld [vmem:[%s13801_s1 + $0x54c] sm:$0xf0]  ;;  %v7386_v16 = vld [vmem:[%s9461_s13 + $0x188] sm:$0xf] }
  0x48   : > { %14138 = vst [vmem:[#allocation28_spill] sm:$0xff] %v9746_v43  ;;  %v8311_v12 = vor.u32 %v9136_v3, %v8310_v1  ;;  %v8166_v13 = vld [vmem:[%s13801_s1 + $0x420] sm:$0xf]  ;;  %v9100_v14 = vld [vmem:[%s13801_s1 + $0x42c] sm:$0xf0] }
  0x49   : > { %2581 = vmatpush.bf16.msrb.mxu2 %v7911_v36  ;;  %2670 = vmatpush.bf16.msrb.mxu3 %v8039_v48  ;;  %v7360_v36 = vld [vmem:[%s9461_s13 + $0x16c] sm:$0xf0]  ;;  %v8343_v48 = vor.u32 %v9144_v45, %v8342_v41  ;;  %v8294_v15 = vld [vmem:[%s13801_s1 + $0x520] sm:$0xf]  ;;  %v8906_v21 = vld [vmem:[%s9461_s13 + $0x1a0] sm:$0xf0]  ;;  %v8167_v22 = vor.u32 %v9100_v14, %v8166_v13 }
  0x4a   : > { %2755 = vmatpush.bf16.msrb.mxu0 %v8231_v25  ;;  %2844 = vmatpush.bf16.msrb.mxu1 %v8359_v28  ;;  %v9751_v46 = vor.u32 %v8896_v35, %v7360_v36  ;;  %v9132_v23 = vld [vmem:[%s13801_s1 + $0x52c] sm:$0xf0]  ;;  %v7198_v25 = vld [vmem:[%s9461_s13 + $0x8] sm:$0xf]  ;;  %v8855_v28 = vld [vmem:[%s9461_s13 + $0xc] sm:$0xf]  ;;  %v9812_v38 = vor.u32 %v8906_v21, %v7386_v16 }
  0x4b   : > { %v7388_v27 = vld [vmem:[%s9461_s13 + $0x1a4] sm:$0xf0]  ;;  %v8295_v34 = vor.u32 %v9132_v23, %v8294_v15  ;;  %v8150_v35 = vld [vmem:[%s13801_s1 + $0x400] sm:$0xf]  ;;  %v9096_v36 = vld [vmem:[%s13801_s1 + $0x40c] sm:$0xf0]  ;;  %v9814_v39 = vor.u32 %v8858_v26, %v7198_v25 }
  0x4c   : > { %14139 = vst [vmem:[#allocation29_spill] sm:$0xff] %v9751_v46  ;;  %v7200_v33 = vld [vmem:[%s9461_s13 + $0x24] sm:$0xf0]  ;;  %v8278_v37 = vld [vmem:[%s13801_s1 + $0x500] sm:$0xf]  ;;  %v9819_v41 = vor.u32 %v8903_v24, %v7388_v27  ;;  %v8151_v45 = vor.u32 %v9096_v36, %v8150_v35 }
  0x4d   : > { %2582 = vmatpush.bf16.msrb.mxu2 %v7895_v49  ;;  %2671 = vmatpush.bf16.msrb.mxu3 %v8023_v56  ;;  %v8198_v49 = vld [vmem:[%s13801_s1 + $0x460] sm:$0xf]  ;;  %v9140_v56 = vld [vmem:[%s13801_s1 + $0x56c] sm:$0xf0]  ;;  %14141 = vst [vmem:[#allocation31_spill] sm:$0xff] %v9812_v38 }
  0x4e   : > { %2756 = vmatpush.bf16.msrb.mxu0 %v8215_v44  ;;  %2845 = vmatpush.bf16.msrb.mxu1 %v8343_v48  ;;  %v8199_v61 = vor.u32 %v9108_v50, %v8198_v49  ;;  %v8327_v62 = vor.u32 %v9140_v56, %v8326_v51  ;;  %14142 = vst [vmem:[#allocation32_spill] sm:$0xff] %v9814_v39  ;;  %v9128_v40 = vld [vmem:[%s13801_s1 + $0x50c] sm:$0xf0]  ;;  %v691_v49 = vld [vmem:[%s13802_s2] sm:$0xf] }
  0x4f   : > { %2415 = vmatmul.bf16.gmra.mxu0 %v9523_v17  ;;  %2460 = vmatmul.bf16.gmra.mxu2 %v9525_v18  ;;  %14143 = vst [vmem:[#allocation33_spill] sm:$0xff] %v9819_v41  ;;  %v9821_v44 = vor.u32 %v8855_v28, %v7200_v33  ;;  %v8279_v48 = vor.u32 %v9128_v40, %v8278_v37  ;;  %v7414_v50 = vld [vmem:[%s9461_s13 + $0x1c0] sm:$0xf]  ;;  %v8913_v51 = vld [vmem:[%s9461_s13 + $0x1d8] sm:$0xf0] }
  0x50   : > { %2504 = vmatmul.bf16.gmra.mxu1 %v9527_v19  ;;  %2549 = vmatmul.bf16.gmra.mxu3 %v9529_v20  ;;  %v8910_v56 = vld [vmem:[%s9461_s13 + $0x1c4] sm:$0xf]  ;;  %v7416_v63 = vld [vmem:[%s9461_s13 + $0x1dc] sm:$0xf0]  ;;  %v9840_v3 = vor.u32 %v8913_v51, %v7414_v50  ;;  %v7254_v35 = vld [vmem:[%s9461_s13 + $0x78] sm:$0xf] }
  0x51   : > { %14144 = vst [vmem:[#allocation34_spill] sm:$0xff] %v9821_v44  ;;  %v8862_v0 = vld [vmem:[%s9461_s13 + $0x44] sm:$0xf]  ;;  %v7228_v1 = vld [vmem:[%s9461_s13 + $0x5c] sm:$0xf0]  ;;  %v9844_v14 = vor.u32 %v8910_v56, %v7416_v63 }
  0x52   : > { %2757 = vmatpush.bf16.msrb.mxu0 %v8199_v61  ;;  %2846 = vmatpush.bf16.msrb.mxu1 %v8327_v62  ;;  %v7226_v61 = vld [vmem:[%s9461_s13 + $0x40] sm:$0xf]  ;;  %v8865_v62 = vld [vmem:[%s9461_s13 + $0x58] sm:$0xf0]  ;;  %14145 = vst [vmem:[#allocation35_spill] sm:$0xff] %v9840_v3  ;;  %v9846_v15 = vor.u32 %v8862_v0, %v7228_v1 }
  0x53   : > { %14147 = vst [vmem:[#allocation37_spill] sm:$0xff] %v9844_v14  ;;  %v8872_v36 = vld [vmem:[%s9461_s13 + $0x90] sm:$0xf0]  ;;  %v8869_v37 = vld [vmem:[%s9461_s13 + $0x7c] sm:$0xf] }
  0x54   : > { %14148 = vst [vmem:[#allocation38_spill] sm:$0xff] %v9846_v15  ;;  %v7206_v40 = vld [vmem:[%s9461_s13 + $0x10] sm:$0xf] }
  0x55   : > { %v7208_v50 = vld [vmem:[%s9461_s13 + $0x2c] sm:$0xf0] }
  0x56   : > { %2758 = vmatpush.bf16.msrb.mxu0 %v8183_v2  ;;  %2847 = vmatpush.bf16.msrb.mxu1 %v8311_v12  ;;  %v9838_v2 = vperm.slane %v691_v49, 0  ;;  %v9842_v12 = vor.u32 %v8865_v62, %v7226_v61  ;;  %v8856_v49 = vld [vmem:[%s9461_s13 + $0x14] sm:$0xf]  ;;  %v9870_v62 = vor.u32 %v8872_v36, %v7254_v35 }
  0x58   : > { %14146 = vst [vmem:[#allocation36_spill] sm:$0xff] %v9842_v12 }
  0x59   : > { %14149 = vst [vmem:[#allocation39_spill] sm:$0xff] %v9870_v62 }
  0x5a   : > { %2759 = vmatpush.bf16.msrb.mxu0 %v8167_v22  ;;  %2848 = vmatpush.bf16.msrb.mxu1 %v8295_v34 }
  0x5e   : > { %2760 = vmatpush.bf16.msrb.mxu0 %v8151_v45  ;;  %2849 = vmatpush.bf16.msrb.mxu1 %v8279_v48  ;;  %v8859_v45 = vld [vmem:[%s9461_s13 + $0x28] sm:$0xf0]  ;;  %v7256_v48 = vld [vmem:[%s9461_s13 + $0x94] sm:$0xf0] }
  0x5f   : > { %2420 = vmatmul.bf16.gmra.mxu0 %v9543_v29  ;;  %2465 = vmatmul.bf16.gmra.mxu2 %v9545_v30  ;;  %v9872_v63 = vor.u32 %v8859_v45, %v7206_v40  ;;  %v9874_v1 = vor.u32 %v8869_v37, %v7256_v48  ;;  %v7282_v45 = vld [vmem:[%s9461_s13 + $0xb0] sm:$0xf]  ;;  %v8879_v48 = vld [vmem:[%s9461_s13 + $0xc8] sm:$0xf0] }
  0x60   : > { %2509 = vmatmul.bf16.gmra.mxu1 %v9547_v31  ;;  %2554 = vmatmul.bf16.gmra.mxu3 %v9549_v32 }
  0x61   : > { %14150 = vst [vmem:[#allocation40_spill] sm:$0xff] %v9872_v63 }
  0x62   : > { %14151 = vst [vmem:[#allocation41_spill] sm:$0xff] %v9874_v1 }
  0x6f   : > { %2425 = vmatmul.bf16.gmra.mxu0 %v9611_v4  ;;  %2470 = vmatmul.bf16.gmra.mxu2 %v9613_v9 }
  0x70   : > { %2514 = vmatmul.bf16.gmra.mxu1 %v9615_v10  ;;  %2559 = vmatmul.bf16.gmra.mxu3 %v9617_v11 }
  0x7f   : > { %2430 = vmatmul.bf16.gmra.mxu0 %v9679_v52  ;;  %2475 = vmatmul.bf16.gmra.mxu2 %v9681_v53 }
  0x80   : > { %2519 = vmatmul.bf16.gmra.mxu1 %v9683_v54  ;;  %2564 = vmatmul.bf16.gmra.mxu3 %v9685_v55 }
  0x8f   : > { %2435 = vmatmul.bf16.gmra.mxu0 %v9744_v42  ;;  %2480 = vmatmul.bf16.gmra.mxu2 %v9746_v43 }
  0x90   : > { %2524 = vmatmul.bf16.gmra.mxu1 %v9751_v46  ;;  %2569 = vmatmul.bf16.gmra.mxu3 %v9753_v47 }
  0x9f   : > { %2440 = vmatmul.bf16.gmra.mxu0 %v9812_v38  ;;  %2583 = vmatmul.bf16.vlgmr.msrb.gmra.mxu2 %v9814_v39 }
  0xa0   : > { %2529 = vmatmul.bf16.gmra.mxu1 %v9819_v41  ;;  %2672 = vmatmul.bf16.vlgmr.msrb.gmra.mxu3 %v9821_v44 }
  0xac   : > { %v2406_v13 = vpop.f32.mrf.mxu0 }
  0xad   : > { %v2407_v16 = vadd.f32 %v2406_v13, %v9838_v2  ;;  %v2495_v21 = vpop.f32.mrf.mxu1  ;;  %v9876_v13 = vor.u32 %v8856_v49, %v7208_v50  ;;  %v8876_v49 = vld [vmem:[%s9461_s13 + $0xb4] sm:$0xf]  ;;  %v7234_v50 = vld [vmem:[%s9461_s13 + $0x48] sm:$0xf] }
  0xaf   : > { %v9849_v22 = vadd.f32 %v2495_v21, %v2407_v16  ;;  %2445 = vmatmul.bf16.gmra.mxu0 %v9840_v3  ;;  %2588 = vmatmul.bf16.gmra.mxu2 %v9842_v12  ;;  %14152 = vst [vmem:[#allocation42_spill] sm:$0xff] %v9876_v13 }
  0xb0   : > { %2534 = vmatmul.bf16.gmra.mxu1 %v9844_v14  ;;  %2677 = vmatmul.bf16.gmra.mxu3 %v9846_v15 }
  0xb2   : > { %v2451_v23 = vpop.f32.mrf.mxu2 }
  0xb3   : > { %v2452_v24 = vadd.f32 %v2451_v23, %v9838_v2  ;;  %v2540_v25 = vpop.f32.mrf.mxu3 }
  0xb4   : > { %v2408_v26 = vpop.f32.mrf.mxu0 }
  0xb5   : > { %v9856_v27 = vadd.f32 %v2540_v25, %v2452_v24  ;;  %v2409_v28 = vadd.f32 %v2408_v26, %v9838_v2  ;;  %v2497_v33 = vpop.f32.mrf.mxu1 }
  0xb7   : > { %v9859_v34 = vadd.f32 %v2497_v33, %v2409_v28 }
  0xba   : > { %v2453_v51 = vpop.f32.mrf.mxu2 }
  0xbb   : > { %v2454_v56 = vadd.f32 %v2453_v51, %v9838_v2  ;;  %v2542_v61 = vpop.f32.mrf.mxu3  ;;  %v8866_v51 = vld [vmem:[%s9461_s13 + $0x60] sm:$0xf0] }
  0xbc   : > { %v2411_v0 = vpop.f32.mrf.mxu0 }
  0xbd   : > { %v9878_v16 = vadd.f32 %v2542_v61, %v2454_v56  ;;  %v2412_v21 = vadd.f32 %v2411_v0, %v9838_v2  ;;  %v2500_v23 = vpop.f32.mrf.mxu1  ;;  %v7284_v56 = vld [vmem:[%s9461_s13 + $0xcc] sm:$0xf0]  ;;  %v8863_v61 = vld [vmem:[%s9461_s13 + $0x4c] sm:$0xf]  ;;  %v7236_v0 = vld [vmem:[%s9461_s13 + $0x64] sm:$0xf0] }
  0xbf   : > { %v9881_v24 = vadd.f32 %v2500_v23, %v2412_v21  ;;  %2593 = vmatmul.bf16.gmra.mxu2 %v9870_v62  ;;  %2761 = vmatmul.bf16.vlgmr.msrb.gmra.mxu0 %v9872_v63 }
  0xc0   : > { %2682 = vmatmul.bf16.gmra.mxu3 %v9874_v1  ;;  %2850 = vmatmul.bf16.vlgmr.msrb.gmra.mxu1 %v9876_v13  ;;  %v9902_v13 = vor.u32 %v8879_v48, %v7282_v45 }
  0xc2   : > { %v2456_v25 = vpop.f32.mrf.mxu2  ;;  %14153 = vst [vmem:[#allocation43_spill] sm:$0xff] %v9902_v13 }
  0xc3   : > { %v2457_v26 = vadd.f32 %v2456_v25, %v9838_v2  ;;  %v2545_v28 = vpop.f32.mrf.mxu3 }
  0xc4   : > { %v2413_v33 = vpop.f32.mrf.mxu0 }
  0xc5   : > { %v9888_v35 = vadd.f32 %v2545_v28, %v2457_v26  ;;  %v2414_v36 = vadd.f32 %v2413_v33, %v9838_v2  ;;  %v2502_v37 = vpop.f32.mrf.mxu1  ;;  %v9904_v26 = vor.u32 %v8866_v51, %v7234_v50  ;;  %v9906_v33 = vor.u32 %v8876_v49, %v7284_v56 }
  0xc7   : > { %v9891_v40 = vadd.f32 %v2502_v37, %v2414_v36  ;;  %14154 = vst [vmem:[#allocation44_spill] sm:$0xff] %v9904_v26  ;;  %v9908_v36 = vor.u32 %v8863_v61, %v7236_v0  ;;  %v7310_v61 = vld [vmem:[%s9461_s13 + $0xe8] sm:$0xf]  ;;  %v8886_v0 = vld [vmem:[%s9461_s13 + $0x100] sm:$0xf0] }
  0xc8   : > { %14155 = vst [vmem:[#allocation45_spill] sm:$0xff] %v9906_v33  ;;  %v9934_v44 = vor.u32 %v8886_v0, %v7310_v61 }
  0xc9   : > { %14156 = vst [vmem:[#allocation46_spill] sm:$0xff] %v9908_v36 }
  0xca   : > { %v2458_v21 = vpop.f32.mrf.mxu2  ;;  %14157 = vst [vmem:[#allocation47_spill] sm:$0xff] %v9934_v44 }
  0xcb   : > { %v2459_v23 = vadd.f32 %v2458_v21, %v9838_v2  ;;  %v2547_v25 = vpop.f32.mrf.mxu3  ;;  %v8883_v21 = vld [vmem:[%s9461_s13 + $0xec] sm:$0xf] }
  0xcc   : > { %v2416_v28 = vpop.f32.mrf.mxu0 }
  0xcd   : > { %v9910_v37 = vadd.f32 %v2547_v25, %v2459_v23  ;;  %v2417_v1 = vadd.f32 %v2416_v28, %v9838_v2  ;;  %v2505_v15 = vpop.f32.mrf.mxu1  ;;  %v7262_v23 = vld [vmem:[%s9461_s13 + $0x80] sm:$0xf]  ;;  %v8873_v25 = vld [vmem:[%s9461_s13 + $0x98] sm:$0xf0]  ;;  %v7312_v28 = vld [vmem:[%s9461_s13 + $0x104] sm:$0xf0] }
  0xcf   : > { %v9913_v47 = vadd.f32 %v2505_v15, %v2417_v1  ;;  %2598 = vmatmul.bf16.gmra.mxu2 %v9902_v13  ;;  %2766 = vmatmul.bf16.gmra.mxu0 %v9904_v26 }
  0xd0   : > { %2687 = vmatmul.bf16.gmra.mxu3 %v9906_v33  ;;  %2855 = vmatmul.bf16.gmra.mxu1 %v9908_v36  ;;  %v8870_v36 = vld [vmem:[%s9461_s13 + $0x84] sm:$0xf]  ;;  %v7264_v33 = vld [vmem:[%s9461_s13 + $0x9c] sm:$0xf0] }
  0xd2   : > { %v2461_v45 = vpop.f32.mrf.mxu2 }
  0xd3   : > { %v2462_v48 = vadd.f32 %v2461_v45, %v9838_v2  ;;  %v2550_v49 = vpop.f32.mrf.mxu3 }
  0xd4   : > { %v2418_v50 = vpop.f32.mrf.mxu0 }
  0xd5   : > { %v9920_v15 = vadd.f32 %v2550_v49, %v2462_v48  ;;  %v2419_v1 = vadd.f32 %v2418_v50, %v9838_v2  ;;  %v2507_v51 = vpop.f32.mrf.mxu1  ;;  %v9936_v48 = vor.u32 %v8873_v25, %v7262_v23  ;;  %v9938_v50 = vor.u32 %v8883_v21, %v7312_v28  ;;  %v7338_v21 = vld [vmem:[%s9461_s13 + $0x120] sm:$0xf]  ;;  %v8893_v23 = vld [vmem:[%s9461_s13 + $0x138] sm:$0xf0]  ;;  %v8890_v25 = vld [vmem:[%s9461_s13 + $0x124] sm:$0xf] }
  0xd6   : > { %v7290_v28 = vld [vmem:[%s9461_s13 + $0xb8] sm:$0xf]  ;;  %v9966_v32 = vor.u32 %v8893_v23, %v7338_v21 }
  0xd7   : > { %v9923_v56 = vadd.f32 %v2507_v51, %v2419_v1  ;;  %14158 = vst [vmem:[#allocation48_spill] sm:$0xff] %v9936_v48  ;;  %v9940_v1 = vor.u32 %v8870_v36, %v7264_v33 }
  0xd8   : > { %14159 = vst [vmem:[#allocation49_spill] sm:$0xff] %v9938_v50 }
  0xd9   : > { %14160 = vst [vmem:[#allocation50_spill] sm:$0xff] %v9940_v1 }
  0xda   : > { %v2463_v26 = vpop.f32.mrf.mxu2  ;;  %14161 = vst [vmem:[#allocation51_spill] sm:$0xff] %v9966_v32 }
  0xdb   : > { %v2464_v45 = vadd.f32 %v2463_v26, %v9838_v2  ;;  %v2552_v63 = vpop.f32.mrf.mxu3 }
  0xdc   : > { %v2421_v49 = vpop.f32.mrf.mxu0 }
  0xdd   : > { %v9942_v51 = vadd.f32 %v2552_v63, %v2464_v45  ;;  %v2422_v55 = vadd.f32 %v2421_v49, %v9838_v2  ;;  %v2510_v43 = vpop.f32.mrf.mxu1  ;;  %v8880_v45 = vld [vmem:[%s9461_s13 + $0xd0] sm:$0xf0]  ;;  %v7340_v49 = vld [vmem:[%s9461_s13 + $0x13c] sm:$0xf0] }
  0xdf   : > { %v9945_v11 = vadd.f32 %v2510_v43, %v2422_v55  ;;  %2603 = vmatmul.bf16.gmra.mxu2 %v9934_v44  ;;  %2771 = vmatmul.bf16.gmra.mxu0 %v9936_v48 }
  0xe0   : > { %2692 = vmatmul.bf16.gmra.mxu3 %v9938_v50  ;;  %2860 = vmatmul.bf16.gmra.mxu1 %v9940_v1  ;;  %v8877_v1 = vld [vmem:[%s9461_s13 + $0xbc] sm:$0xf]  ;;  %v7292_v50 = vld [vmem:[%s9461_s13 + $0xd4] sm:$0xf0] }
  0xe2   : > { %v2466_v63 = vpop.f32.mrf.mxu2 }
  0xe3   : > { %v2467_v26 = vadd.f32 %v2466_v63, %v9838_v2  ;;  %v2555_v33 = vpop.f32.mrf.mxu3 }
  0xe4   : > { %v2423_v36 = vpop.f32.mrf.mxu0 }
  0xe5   : > { %v9952_v55 = vadd.f32 %v2555_v33, %v2467_v26  ;;  %v2424_v43 = vadd.f32 %v2423_v36, %v9838_v2  ;;  %v2512_v61 = vpop.f32.mrf.mxu1  ;;  %v9968_v26 = vor.u32 %v8880_v45, %v7290_v28  ;;  %v9970_v36 = vor.u32 %v8890_v25, %v7340_v49  ;;  %v7366_v25 = vld [vmem:[%s9461_s13 + $0x158] sm:$0xf]  ;;  %v8900_v28 = vld [vmem:[%s9461_s13 + $0x170] sm:$0xf0]  ;;  %v8897_v45 = vld [vmem:[%s9461_s13 + $0x15c] sm:$0xf] }
  0xe6   : > { %v7318_v49 = vld [vmem:[%s9461_s13 + $0xf0] sm:$0xf]  ;;  %v9998_v18 = vor.u32 %v8900_v28, %v7366_v25 }
  0xe7   : > { %v9955_v0 = vadd.f32 %v2512_v61, %v2424_v43  ;;  %14162 = vst [vmem:[#allocation52_spill] sm:$0xff] %v9968_v26  ;;  %v9972_v43 = vor.u32 %v8877_v1, %v7292_v50 }
  0xe8   : > { %14163 = vst [vmem:[#allocation53_spill] sm:$0xff] %v9970_v36 }
  0xe9   : > { %14164 = vst [vmem:[#allocation54_spill] sm:$0xff] %v9972_v43 }
  0xea   : > { %v2468_v48 = vpop.f32.mrf.mxu2  ;;  %14165 = vst [vmem:[#allocation55_spill] sm:$0xff] %v9998_v18 }
  0xeb   : > { %v2469_v63 = vadd.f32 %v2468_v48, %v9838_v2  ;;  %v2557_v53 = vpop.f32.mrf.mxu3 }
  0xec   : > { %v2426_v33 = vpop.f32.mrf.mxu0 }
  0xed   : > { %v9974_v61 = vadd.f32 %v2557_v53, %v2469_v63  ;;  %v2427_v9 = vadd.f32 %v2426_v33, %v9838_v2  ;;  %v2515_v20 = vpop.f32.mrf.mxu1  ;;  %v8887_v63 = vld [vmem:[%s9461_s13 + $0x108] sm:$0xf0]  ;;  %v7368_v33 = vld [vmem:[%s9461_s13 + $0x174] sm:$0xf0] }
  0xef   : > { %v9977_v30 = vadd.f32 %v2515_v20, %v2427_v9  ;;  %2608 = vmatmul.bf16.gmra.mxu2 %v9966_v32  ;;  %2776 = vmatmul.bf16.gmra.mxu0 %v9968_v26 }
  0xf0   : > { %2697 = vmatmul.bf16.gmra.mxu3 %v9970_v36  ;;  %2865 = vmatmul.bf16.gmra.mxu1 %v9972_v43  ;;  %v8884_v43 = vld [vmem:[%s9461_s13 + $0xf4] sm:$0xf]  ;;  %v7320_v36 = vld [vmem:[%s9461_s13 + $0x10c] sm:$0xf0] }
  0xf2   : > { %v2471_v53 = vpop.f32.mrf.mxu2 }
  0xf3   : > { %v2472_v48 = vadd.f32 %v2471_v53, %v9838_v2  ;;  %v2560_v50 = vpop.f32.mrf.mxu3 }
  0xf4   : > { %v2428_v1 = vpop.f32.mrf.mxu0 }
  0xf5   : > { %v9984_v20 = vadd.f32 %v2560_v50, %v2472_v48  ;;  %v2429_v9 = vadd.f32 %v2428_v1, %v9838_v2  ;;  %v2517_v21 = vpop.f32.mrf.mxu1  ;;  %v10000_v48 = vor.u32 %v8887_v63, %v7318_v49  ;;  %v10002_v1 = vor.u32 %v8897_v45, %v7368_v33  ;;  %v7394_v45 = vld [vmem:[%s9461_s13 + $0x190] sm:$0xf]  ;;  %v8907_v49 = vld [vmem:[%s9461_s13 + $0x1a8] sm:$0xf0]  ;;  %v8904_v63 = vld [vmem:[%s9461_s13 + $0x194] sm:$0xf] }
  0xf6   : > { %v7346_v33 = vld [vmem:[%s9461_s13 + $0x128] sm:$0xf]  ;;  %v10030_v41 = vor.u32 %v8907_v49, %v7394_v45 }
  0xf7   : > { %v9987_v23 = vadd.f32 %v2517_v21, %v2429_v9  ;;  %14166 = vst [vmem:[#allocation56_spill] sm:$0xff] %v10000_v48  ;;  %v10004_v9 = vor.u32 %v8884_v43, %v7320_v36 }
  0xf8   : > { %14167 = vst [vmem:[#allocation57_spill] sm:$0xff] %v10002_v1 }
  0xf9   : > { %14168 = vst [vmem:[#allocation58_spill] sm:$0xff] %v10004_v9 }
  0xfa   : > { %v2473_v26 = vpop.f32.mrf.mxu2  ;;  %14170 = vst [vmem:[#allocation60_spill] sm:$0xff] %v10030_v41 }
  0xfb   : > { %v2474_v53 = vadd.f32 %v2473_v26, %v9838_v2  ;;  %v2562_v8 = vpop.f32.mrf.mxu3 }
  0xfc   : > { %v2431_v50 = vpop.f32.mrf.mxu0 }
  0xfd   : > { %v10006_v21 = vadd.f32 %v2562_v8, %v2474_v53  ;;  %v2432_v60 = vadd.f32 %v2431_v50, %v9838_v2  ;;  %v2520_v6 = vpop.f32.mrf.mxu1  ;;  %v8894_v53 = vld [vmem:[%s9461_s13 + $0x140] sm:$0xf0]  ;;  %v7396_v50 = vld [vmem:[%s9461_s13 + $0x1ac] sm:$0xf0] }
  0xff   : > { %v10009_v14 = vadd.f32 %v2520_v6, %v2432_v60  ;;  %2613 = vmatmul.bf16.gmra.mxu2 %v9998_v18  ;;  %2781 = vmatmul.bf16.gmra.mxu0 %v10000_v48 }
 0x100   : > { %2702 = vmatmul.bf16.gmra.mxu3 %v10002_v1  ;;  %2870 = vmatmul.bf16.gmra.mxu1 %v10004_v9  ;;  %v8891_v9 = vld [vmem:[%s9461_s13 + $0x12c] sm:$0xf]  ;;  %v7348_v1 = vld [vmem:[%s9461_s13 + $0x144] sm:$0xf0] }
 0x102   : > { %v2476_v8 = vpop.f32.mrf.mxu2 }
 0x103   : > { %v2477_v26 = vadd.f32 %v2476_v8, %v9838_v2  ;;  %v2565_v36 = vpop.f32.mrf.mxu3 }
 0x104   : > { %v2433_v43 = vpop.f32.mrf.mxu0 }
 0x105   : > { %v10016_v60 = vadd.f32 %v2565_v36, %v2477_v26  ;;  %v2434_v6 = vadd.f32 %v2433_v43, %v9838_v2  ;;  %v2522_v25 = vpop.f32.mrf.mxu1  ;;  %v10032_v26 = vor.u32 %v8894_v53, %v7346_v33  ;;  %v10034_v43 = vor.u32 %v8904_v63, %v7396_v50  ;;  %v7422_v63 = vld [vmem:[%s9461_s13 + $0x1c8] sm:$0xf]  ;;  %v8914_v33 = vld [vmem:[%s9461_s13 + $0x1e0] sm:$0xf0]  ;;  %v8911_v53 = vld [vmem:[%s9461_s13 + $0x1cc] sm:$0xf] }
 0x106   : > { %v7374_v50 = vld [vmem:[%s9461_s13 + $0x160] sm:$0xf]  ;;  %v10062_v32 = vor.u32 %v8914_v33, %v7422_v63 }
 0x107   : > { %14169 = vst [vmem:[#allocation59_spill] sm:$0xff] %v10016_v60  ;;  %v10019_v28 = vadd.f32 %v2522_v25, %v2434_v6  ;;  %v10036_v6 = vor.u32 %v8891_v9, %v7348_v1 }
 0x108   : > { %14171 = vst [vmem:[#allocation61_spill] sm:$0xff] %v10032_v26 }
 0x109   : > { %14172 = vst [vmem:[#allocation62_spill] sm:$0xff] %v10034_v43 }
 0x10a   : > { %v2478_v48 = vpop.f32.mrf.mxu2  ;;  %14173 = vst [vmem:[#allocation63_spill] sm:$0xff] %v10036_v6 }
 0x10b   : > { %v2479_v8 = vadd.f32 %v2478_v48, %v9838_v2  ;;  %v2567_v58 = vpop.f32.mrf.mxu3  ;;  %14176 = vst [vmem:[#allocation66_spill] sm:$0xff] %v10062_v32 }
 0x10c   : > { %v2436_v36 = vpop.f32.mrf.mxu0 }
 0x10d   : > { %v10038_v25 = vadd.f32 %v2567_v58, %v2479_v8  ;;  %v2437_v18 = vadd.f32 %v2436_v36, %v9838_v2  ;;  %v2525_v3 = vpop.f32.mrf.mxu1  ;;  %v8901_v8 = vld [vmem:[%s9461_s13 + $0x178] sm:$0xf0]  ;;  %v7424_v36 = vld [vmem:[%s9461_s13 + $0x1e4] sm:$0xf0] }
 0x10f   : > { %14174 = vst [vmem:[#allocation64_spill] sm:$0xff] %v10038_v25  ;;  %v10041_v46 = vadd.f32 %v2525_v3, %v2437_v18  ;;  %2618 = vmatmul.bf16.gmra.mxu2 %v10030_v41  ;;  %2786 = vmatmul.bf16.gmra.mxu0 %v10032_v26 }
 0x110   : > { %2707 = vmatmul.bf16.gmra.mxu3 %v10034_v43  ;;  %2875 = vmatmul.bf16.gmra.mxu1 %v10036_v6  ;;  %v8898_v6 = vld [vmem:[%s9461_s13 + $0x164] sm:$0xf]  ;;  %v7376_v43 = vld [vmem:[%s9461_s13 + $0x17c] sm:$0xf0] }
 0x112   : > { %v2481_v58 = vpop.f32.mrf.mxu2 }
 0x113   : > { %v2482_v48 = vadd.f32 %v2481_v58, %v9838_v2  ;;  %v2570_v1 = vpop.f32.mrf.mxu3 }
 0x114   : > { %v2438_v9 = vpop.f32.mrf.mxu0 }
 0x115   : > { %v10048_v18 = vadd.f32 %v2570_v1, %v2482_v48  ;;  %v2439_v3 = vadd.f32 %v2438_v9, %v9838_v2  ;;  %v2527_v45 = vpop.f32.mrf.mxu1  ;;  %v10064_v48 = vor.u32 %v8901_v8, %v7374_v50  ;;  %v10066_v9 = vor.u32 %v8911_v53, %v7424_v36  ;;  %v7450_v53 = vld [vmem:[%s9461_s13 + $0x200] sm:$0xf]  ;;  %v8921_v50 = vld [vmem:[%s9461_s13 + $0x218] sm:$0xf0]  ;;  %v8918_v8 = vld [vmem:[%s9461_s13 + $0x204] sm:$0xf] }
 0x116   : > { %v7402_v36 = vld [vmem:[%s9461_s13 + $0x198] sm:$0xf] }
 0x117   : > { %14175 = vst [vmem:[#allocation65_spill] sm:$0xff] %v10048_v18  ;;  %v10051_v49 = vadd.f32 %v2527_v45, %v2439_v3  ;;  %v10068_v3 = vor.u32 %v8898_v6, %v7376_v43 }
 0x118   : > { %14177 = vst [vmem:[#allocation67_spill] sm:$0xff] %v10064_v48 }
 0x119   : > { %14178 = vst [vmem:[#allocation68_spill] sm:$0xff] %v10066_v9 }
 0x11a   : > { %v2483_v26 = vpop.f32.mrf.mxu2  ;;  %14179 = vst [vmem:[#allocation69_spill] sm:$0xff] %v10068_v3 }
 0x11b   : > { %v2484_v58 = vadd.f32 %v2483_v26, %v9838_v2  ;;  %v2572_v41 = vpop.f32.mrf.mxu3 }
 0x11c   : > { %v2441_v1 = vpop.f32.mrf.mxu0 }
 0x11d   : > { %v10070_v45 = vadd.f32 %v2572_v41, %v2484_v58  ;;  %v2442_v18 = vadd.f32 %v2441_v1, %v9838_v2  ;;  %v2530_v38 = vpop.f32.mrf.mxu1  ;;  %v8908_v58 = vld [vmem:[%s9461_s13 + $0x1b0] sm:$0xf0]  ;;  %v7452_v1 = vld [vmem:[%s9461_s13 + $0x21c] sm:$0xf0] }
 0x11f   : > { %14180 = vst [vmem:[#allocation70_spill] sm:$0xff] %v10070_v45  ;;  %v10073_v54 = vadd.f32 %v2530_v38, %v2442_v18  ;;  %2623 = vmatmul.bf16.gmra.mxu2 %v10062_v32  ;;  %2791 = vmatmul.bf16.gmra.mxu0 %v10064_v48 }
 0x120   : > { %2712 = vmatmul.bf16.gmra.mxu3 %v10066_v9  ;;  %2880 = vmatmul.bf16.gmra.mxu1 %v10068_v3  ;;  %v8905_v9 = vld [vmem:[%s9461_s13 + $0x19c] sm:$0xf]  ;;  %v7404_v3 = vld [vmem:[%s9461_s13 + $0x1b4] sm:$0xf0] }
 0x122   : > { %v2584_v41 = vpop.f32.mrf.mxu2 }
 0x123   : > { %v2585_v26 = vadd.f32 %v2584_v41, %v9849_v22  ;;  %v2673_v43 = vpop.f32.mrf.mxu3  ;;  %v10092_v41 = vor.u32 %v8921_v50, %v7450_v53  ;;  %v7478_v50 = vld [vmem:[%s9461_s13 + $0x238] sm:$0xf] }
 0x124   : > { %v2443_v6 = vpop.f32.mrf.mxu0 }
 0x125   : > { %v2674_v38 = vadd.f32 %v2673_v43, %v2585_v26  ;;  %v2444_v18 = vadd.f32 %v2443_v6, %v9838_v2  ;;  %v2532_v63 = vpop.f32.mrf.mxu1  ;;  %14181 = vst [vmem:[#allocation71_spill] sm:$0xff] %v10092_v41  ;;  %v10094_v26 = vor.u32 %v8908_v58, %v7402_v36  ;;  %v10096_v6 = vor.u32 %v8918_v8, %v7452_v1  ;;  %v8928_v8 = vld [vmem:[%s9461_s13 + $0x250] sm:$0xf0]  ;;  %v8925_v36 = vld [vmem:[%s9461_s13 + $0x23c] sm:$0xf] }
 0x126   : > { %v7430_v58 = vld [vmem:[%s9461_s13 + $0x1d0] sm:$0xf]  ;;  %v8915_v1 = vld [vmem:[%s9461_s13 + $0x1e8] sm:$0xf0] }
 0x127   : > { %v10081_v33 = vadd.f32 %v2532_v63, %v2444_v18  ;;  %14182 = vst [vmem:[#allocation72_spill] sm:$0xff] %v10094_v26  ;;  %v10098_v18 = vor.u32 %v8905_v9, %v7404_v3 }
 0x128   : > { %14183 = vst [vmem:[#allocation73_spill] sm:$0xff] %v10096_v6 }
 0x129   : > { %14184 = vst [vmem:[#allocation74_spill] sm:$0xff] %v10098_v18 }
 0x12a   : > { %v2586_v48 = vpop.f32.mrf.mxu2 }
 0x12b   : > { %v2587_v32 = vadd.f32 %v2586_v48, %v9859_v34  ;;  %v2675_v22 = vpop.f32.mrf.mxu3 }
 0x12c   : > { %v2446_v43 = vpop.f32.mrf.mxu0 }
 0x12d   : > { %v2676_v63 = vadd.f32 %v2675_v22, %v2587_v32  ;;  %v2447_v45 = vadd.f32 %v2446_v43, %v9838_v2  ;;  %v2535_v25 = vpop.f32.mrf.mxu1  ;;  %v7480_v22 = vld [vmem:[%s9461_s13 + $0x254] sm:$0xf0]  ;;  %v8912_v43 = vld [vmem:[%s9461_s13 + $0x1d4] sm:$0xf] }
 0x12f   : > { %v10101_v60 = vadd.f32 %v2535_v25, %v2447_v45  ;;  %2628 = vmatmul.bf16.gmra.mxu2 %v10092_v41  ;;  %2796 = vmatmul.bf16.gmra.mxu0 %v10094_v26 }
 0x130   : > { %2717 = vmatmul.bf16.gmra.mxu3 %v10096_v6  ;;  %2885 = vmatmul.bf16.gmra.mxu1 %v10098_v18  ;;  %v7432_v18 = vld [vmem:[%s9461_s13 + $0x1ec] sm:$0xf0] }
 0x132   : > { %v2589_v32 = vpop.f32.mrf.mxu2 }
 0x133   : > { %v2590_v34 = vadd.f32 %v2589_v32, %v9881_v24  ;;  %v2678_v48 = vpop.f32.mrf.mxu3  ;;  %v10120_v32 = vor.u32 %v8928_v8, %v7478_v50 }
 0x134   : > { %v2448_v9 = vpop.f32.mrf.mxu0 }
 0x135   : > { %v2679_v25 = vadd.f32 %v2678_v48, %v2590_v34  ;;  %v2449_v3 = vadd.f32 %v2448_v9, %v9838_v2  ;;  %v2537_v45 = vpop.f32.mrf.mxu1  ;;  %14185 = vst [vmem:[#allocation75_spill] sm:$0xff] %v10120_v32  ;;  %v10122_v34 = vor.u32 %v8915_v1, %v7430_v58  ;;  %v10124_v48 = vor.u32 %v8925_v36, %v7480_v22  ;;  %v8994_v1 = vld [vmem:[%s13801_s1 + $0xe4] sm:$0xf]  ;;  %v7752_v22 = vld [vmem:[%s13801_s1 + $0xf0] sm:$0xf0] }
 0x136   : > { %v10126_v9 = vor.u32 %v8912_v43, %v7432_v18  ;;  %v7755_v43 = vor.u32 %v8994_v1, %v7752_v22 }
 0x137   : > { %v10109_v53 = vadd.f32 %v2537_v45, %v2449_v3  ;;  %14186 = vst [vmem:[#allocation76_spill] sm:$0xff] %v10122_v34 }
 0x138   : > { %14187 = vst [vmem:[#allocation77_spill] sm:$0xff] %v10124_v48  ;;  %3020 = vmatpush.bf16.msra.mxu3 %v7755_v43 }
 0x139   : > { %14188 = vst [vmem:[#allocation78_spill] sm:$0xff] %v10126_v9 }
 0x13a   : > { %v2591_v6 = vpop.f32.mrf.mxu2 }
 0x13b   : > { %v2592_v26 = vadd.f32 %v2591_v6, %v9891_v40  ;;  %v2680_v24 = vpop.f32.mrf.mxu3  ;;  %v8518_v40 = vld [vmem:[%s13801_s1 + $0x6e0] sm:$0xf] }
 0x13c   : > { %v2762_v2 = vpop.f32.mrf.mxu0 }
 0x13d   : > { %v2681_v3 = vadd.f32 %v2680_v24, %v2592_v26  ;;  %v2763_v45 = vadd.f32 %v2762_v2, %v2674_v38  ;;  %v2851_v41 = vpop.f32.mrf.mxu1  ;;  %v9188_v38 = vld [vmem:[%s13801_s1 + $0x6ec] sm:$0xf0]  ;;  %v8935_v2 = vld [vmem:[%s9461_s13 + $0x288] sm:$0xf0] }
 0x13f   : > { %v10128_v44 = vadd.f32 %v2851_v41, %v2763_v45  ;;  %2633 = vmatmul.bf16.gmra.mxu2 %v10120_v32  ;;  %2801 = vmatmul.bf16.gmra.mxu0 %v10122_v34  ;;  %v8519_v41 = vor.u32 %v9188_v38, %v8518_v40  ;;  %v8932_v45 = vld [vmem:[%s9461_s13 + $0x274] sm:$0xf]  ;;  %v7458_v40 = vld [vmem:[%s9461_s13 + $0x208] sm:$0xf]  ;;  %v8922_v38 = vld [vmem:[%s9461_s13 + $0x220] sm:$0xf0] }
 0x140   : > { %2722 = vmatmul.bf16.gmra.mxu3 %v10124_v48  ;;  %2890 = vmatmul.bf16.gmra.mxu1 %v10126_v9  ;;  %v10160_v48 = vor.u32 %v8922_v38, %v7458_v40 }
 0x141   : > { %2931 = vmatpush.bf16.msra.mxu2 %v8519_v41  ;;  %v7508_v41 = vld [vmem:[%s9461_s13 + $0x28c] sm:$0xf0] }
 0x142   : > { %v2594_v26 = vpop.f32.mrf.mxu2  ;;  %14190 = vst [vmem:[#allocation80_spill] sm:$0xff] %v10160_v48 }
 0x143   : > { %v2595_v6 = vadd.f32 %v2594_v26, %v9913_v47  ;;  %v2683_v18 = vpop.f32.mrf.mxu3  ;;  %v7506_v47 = vld [vmem:[%s9461_s13 + $0x270] sm:$0xf]  ;;  %v7460_v26 = vld [vmem:[%s9461_s13 + $0x224] sm:$0xf0] }
 0x144   : > { %v2764_v50 = vpop.f32.mrf.mxu0  ;;  %v10158_v9 = vor.u32 %v8935_v2, %v7506_v47 }
 0x145   : > { %v2684_v8 = vadd.f32 %v2683_v18, %v2595_v6  ;;  %v2765_v36 = vadd.f32 %v2764_v50, %v2676_v63  ;;  %v2853_v58 = vpop.f32.mrf.mxu1  ;;  %v8919_v63 = vld [vmem:[%s9461_s13 + $0x20c] sm:$0xf] }
 0x146   : > { %14189 = vst [vmem:[#allocation79_spill] sm:$0xff] %v10158_v9 }
 0x147   : > { %v10147_v24 = vadd.f32 %v2853_v58, %v2765_v36  ;;  %v10162_v36 = vor.u32 %v8932_v45, %v7508_v41  ;;  %v10164_v58 = vor.u32 %v8919_v63, %v7460_v26  ;;  %v7534_v41 = vld [vmem:[%s9461_s13 + $0x2a8] sm:$0xf]  ;;  %v8942_v63 = vld [vmem:[%s9461_s13 + $0x2c0] sm:$0xf0]  ;;  %v8939_v26 = vld [vmem:[%s9461_s13 + $0x2ac] sm:$0xf] }
 0x149   : > { %14191 = vst [vmem:[#allocation81_spill] sm:$0xff] %v10162_v36 }
 0x14a   : > { %v2596_v6 = vpop.f32.mrf.mxu2  ;;  %14192 = vst [vmem:[#allocation82_spill] sm:$0xff] %v10164_v58 }
 0x14b   : > { %v2597_v18 = vadd.f32 %v2596_v6, %v9923_v56  ;;  %v2685_v50 = vpop.f32.mrf.mxu3  ;;  %v7486_v6 = vld [vmem:[%s9461_s13 + $0x240] sm:$0xf] }
 0x14c   : > { %v2767_v1 = vpop.f32.mrf.mxu0 }
 0x14d   : > { %v2686_v22 = vadd.f32 %v2685_v50, %v2597_v18  ;;  %v2768_v34 = vadd.f32 %v2767_v1, %v2679_v25  ;;  %v2856_v43 = vpop.f32.mrf.mxu1  ;;  %v8929_v18 = vld [vmem:[%s9461_s13 + $0x258] sm:$0xf0]  ;;  %v7536_v50 = vld [vmem:[%s9461_s13 + $0x2c4] sm:$0xf0]  ;;  %v8926_v1 = vld [vmem:[%s9461_s13 + $0x244] sm:$0xf] }
 0x14f   : > { %v10166_v32 = vadd.f32 %v2856_v43, %v2768_v34  ;;  %2638 = vmatmul.bf16.gmra.mxu2 %v10158_v9  ;;  %2806 = vmatmul.bf16.gmra.mxu0 %v10160_v48  ;;  %v7488_v43 = vld [vmem:[%s9461_s13 + $0x25c] sm:$0xf0] }
 0x150   : > { %2727 = vmatmul.bf16.gmra.mxu3 %v10162_v36  ;;  %2895 = vmatmul.bf16.gmra.mxu1 %v10164_v58 }
 0x152   : > { %v2599_v56 = vpop.f32.mrf.mxu2 }
 0x153   : > { %v2600_v25 = vadd.f32 %v2599_v56, %v9945_v11  ;;  %v2688_v47 = vpop.f32.mrf.mxu3  ;;  %v10186_v56 = vor.u32 %v8942_v63, %v7534_v41  ;;  %v7736_v41 = vld [vmem:[%s13801_s1 + $0xd0] sm:$0xf0] }
 0x154   : > { %v2769_v2 = vpop.f32.mrf.mxu0 }
 0x155   : > { %v10173_v34 = vadd.f32 %v2688_v47, %v2600_v25  ;;  %v2770_v45 = vadd.f32 %v2769_v2, %v2681_v3  ;;  %v2858_v40 = vpop.f32.mrf.mxu1  ;;  %14194 = vst [vmem:[#allocation84_spill] sm:$0xff] %v10186_v56  ;;  %v10188_v25 = vor.u32 %v8929_v18, %v7486_v6  ;;  %v10190_v47 = vor.u32 %v8939_v26, %v7536_v50 }
 0x156   : > { %v10192_v2 = vor.u32 %v8926_v1, %v7488_v43 }
 0x157   : > { %v10175_v38 = vadd.f32 %v2858_v40, %v2770_v45  ;;  %14195 = vst [vmem:[#allocation85_spill] sm:$0xff] %v10188_v25 }
 0x158   : > { %14196 = vst [vmem:[#allocation86_spill] sm:$0xff] %v10190_v47 }
 0x159   : > { %14193 = vst [vmem:[#allocation83_spill] sm:$0xff] %v10175_v38 }
 0x15a   : > { %v2601_v58 = vpop.f32.mrf.mxu2  ;;  %14197 = vst [vmem:[#allocation87_spill] sm:$0xff] %v10192_v2 }
 0x15b   : > { %v2602_v36 = vadd.f32 %v2601_v58, %v9955_v0  ;;  %v2690_v11 = vpop.f32.mrf.mxu3  ;;  %v8502_v0 = vld [vmem:[%s13801_s1 + $0x6c0] sm:$0xf] }
 0x15c   : > { %v2772_v3 = vpop.f32.mrf.mxu0 }
 0x15d   : > { %v10194_v45 = vadd.f32 %v2690_v11, %v2602_v36  ;;  %v2773_v40 = vadd.f32 %v2772_v3, %v2684_v8  ;;  %v2861_v48 = vpop.f32.mrf.mxu1  ;;  %v9184_v36 = vld [vmem:[%s13801_s1 + $0x6cc] sm:$0xf0]  ;;  %v8486_v11 = vld [vmem:[%s13801_s1 + $0x6a0] sm:$0xf]  ;;  %v8986_v3 = vld [vmem:[%s13801_s1 + $0xa4] sm:$0xf] }
 0x15e   : > { %v8503_v8 = vor.u32 %v9184_v36, %v8502_v0  ;;  %v7562_v0 = vld [vmem:[%s9461_s13 + $0x2e0] sm:$0xf] }
 0x15f   : > { %v10196_v9 = vadd.f32 %v2861_v48, %v2773_v40  ;;  %2643 = vmatmul.bf16.gmra.mxu2 %v10186_v56  ;;  %2811 = vmatmul.bf16.gmra.mxu0 %v10188_v25  ;;  %v8990_v48 = vld [vmem:[%s13801_s1 + $0xc4] sm:$0xf] }
 0x160   : > { %2732 = vmatmul.bf16.gmra.mxu3 %v10190_v47  ;;  %2900 = vmatmul.bf16.gmra.mxu1 %v10192_v2  ;;  %v7739_v6 = vor.u32 %v8990_v48, %v7736_v41  ;;  %v7514_v48 = vld [vmem:[%s9461_s13 + $0x278] sm:$0xf]  ;;  %v8936_v41 = vld [vmem:[%s9461_s13 + $0x290] sm:$0xf0] }
 0x161   : > { %14198 = vst [vmem:[#allocation88_spill] sm:$0xff] %v10196_v9  ;;  %2932 = vmatpush.bf16.msra.mxu2 %v8503_v8  ;;  %v7720_v8 = vld [vmem:[%s13801_s1 + $0xb0] sm:$0xf0] }
 0x162   : > { %v2604_v58 = vpop.f32.mrf.mxu2  ;;  %3021 = vmatpush.bf16.msra.mxu3 %v7739_v6  ;;  %v8933_v6 = vld [vmem:[%s9461_s13 + $0x27c] sm:$0xf]  ;;  %v7704_v47 = vld [vmem:[%s13801_s1 + $0x90] sm:$0xf0] }
 0x163   : > { %v2605_v63 = vadd.f32 %v2604_v58, %v9977_v30  ;;  %v2693_v26 = vpop.f32.mrf.mxu3  ;;  %v9180_v30 = vld [vmem:[%s13801_s1 + $0x6ac] sm:$0xf0]  ;;  %v8946_v58 = vld [vmem:[%s9461_s13 + $0x2e4] sm:$0xf] }
 0x164   : > { %v2774_v18 = vpop.f32.mrf.mxu0  ;;  %v8487_v36 = vor.u32 %v9180_v30, %v8486_v11  ;;  %v8982_v11 = vld [vmem:[%s13801_s1 + $0x84] sm:$0xf] }
 0x165   : > { %v10215_v50 = vadd.f32 %v2693_v26, %v2605_v63  ;;  %v2775_v1 = vadd.f32 %v2774_v18, %v2686_v22  ;;  %v2863_v43 = vpop.f32.mrf.mxu1  ;;  %v8949_v22 = vld [vmem:[%s9461_s13 + $0x2f8] sm:$0xf0]  ;;  %v7723_v63 = vor.u32 %v8986_v3, %v7720_v8  ;;  %v7564_v26 = vld [vmem:[%s9461_s13 + $0x2fc] sm:$0xf0]  ;;  %v7516_v18 = vld [vmem:[%s9461_s13 + $0x294] sm:$0xf0]  ;;  %v7707_v9 = vor.u32 %v8982_v11, %v7704_v47 }
 0x166   : > { %2933 = vmatpush.bf16.msra.mxu2 %v8487_v36  ;;  %v10249_v8 = vor.u32 %v8949_v22, %v7562_v0  ;;  %v10251_v36 = vor.u32 %v8936_v41, %v7514_v48  ;;  %v10256_v56 = vor.u32 %v8946_v58, %v7564_v26  ;;  %v8454_v22 = vld [vmem:[%s13801_s1 + $0x660] sm:$0xf]  ;;  %v9168_v26 = vld [vmem:[%s13801_s1 + $0x64c] sm:$0xf0]  ;;  %v7672_v11 = vld [vmem:[%s13801_s1 + $0x50] sm:$0xf0] }
 0x167   : > { %v10226_v40 = vadd.f32 %v2863_v43, %v2775_v1  ;;  %3022 = vmatpush.bf16.msra.mxu3 %v7723_v63  ;;  %v8470_v1 = vld [vmem:[%s13801_s1 + $0x680] sm:$0xf]  ;;  %v9176_v43 = vld [vmem:[%s13801_s1 + $0x68c] sm:$0xf0] }
 0x168   : > { %14200 = vst [vmem:[#allocation90_spill] sm:$0xff] %v10249_v8  ;;  %v8471_v63 = vor.u32 %v9176_v43, %v8470_v1  ;;  %v8438_v41 = vld [vmem:[%s13801_s1 + $0x640] sm:$0xf] }
 0x169   : > { %14199 = vst [vmem:[#allocation89_spill] sm:$0xff] %v10226_v40  ;;  %v10258_v40 = vor.u32 %v8933_v6, %v7516_v18  ;;  %v8974_v6 = vld [vmem:[%s13801_s1 + $0x44] sm:$0xf]  ;;  %v8439_v43 = vor.u32 %v9168_v26, %v8438_v41  ;;  %v7542_v41 = vld [vmem:[%s9461_s13 + $0x2b0] sm:$0xf] }
 0x16a   : > { %v2606_v2 = vpop.f32.mrf.mxu2  ;;  %14201 = vst [vmem:[#allocation91_spill] sm:$0xff] %v10251_v36  ;;  %2934 = vmatpush.bf16.msra.mxu2 %v8471_v63  ;;  %v8943_v26 = vld [vmem:[%s9461_s13 + $0x2c8] sm:$0xf0] }
 0x16b   : > { %v2607_v30 = vadd.f32 %v2606_v2, %v9987_v23  ;;  %v2695_v3 = vpop.f32.mrf.mxu3  ;;  %14202 = vst [vmem:[#allocation92_spill] sm:$0xff] %v10256_v56  ;;  %3023 = vmatpush.bf16.msra.mxu3 %v7707_v9  ;;  %v8978_v9 = vld [vmem:[%s13801_s1 + $0x64] sm:$0xf] }
 0x16c   : > { %v2777_v25 = vpop.f32.mrf.mxu0  ;;  %14203 = vst [vmem:[#allocation93_spill] sm:$0xff] %v10258_v40 }
 0x16d   : > { %v10260_v38 = vadd.f32 %v2695_v3, %v2607_v30  ;;  %v2778_v23 = vadd.f32 %v2777_v25, %v10173_v34  ;;  %v2866_v2 = vpop.f32.mrf.mxu1  ;;  %v9172_v34 = vld [vmem:[%s13801_s1 + $0x66c] sm:$0xf0]  ;;  %v7688_v25 = vld [vmem:[%s13801_s1 + $0x70] sm:$0xf0]  ;;  %v7675_v3 = vor.u32 %v8974_v6, %v7672_v11 }
 0x16e   : > { %v8455_v47 = vor.u32 %v9172_v34, %v8454_v22  ;;  %v7691_v58 = vor.u32 %v8978_v9, %v7688_v25  ;;  %v9164_v22 = vld [vmem:[%s13801_s1 + $0x62c] sm:$0xf0]  ;;  %v8970_v34 = vld [vmem:[%s13801_s1 + $0x24] sm:$0xf]  ;;  %v7590_v25 = vld [vmem:[%s9461_s13 + $0x318] sm:$0xf] }
 0x16f   : > { %v10263_v0 = vadd.f32 %v2866_v2, %v2778_v23  ;;  %2648 = vmatmul.bf16.gmra.mxu2 %v10249_v8  ;;  %2816 = vmatmul.bf16.gmra.mxu0 %v10251_v36  ;;  %v8422_v2 = vld [vmem:[%s13801_s1 + $0x620] sm:$0xf]  ;;  %v7544_v11 = vld [vmem:[%s9461_s13 + $0x2cc] sm:$0xf0] }
 0x170   : > { %2737 = vmatmul.bf16.gmra.mxu3 %v10256_v56  ;;  %2905 = vmatmul.bf16.gmra.mxu1 %v10258_v40 }
 0x171   : > { %2935 = vmatpush.bf16.msra.mxu2 %v8455_v47  ;;  %3024 = vmatpush.bf16.msra.mxu3 %v7691_v58  ;;  %v8423_v47 = vor.u32 %v9164_v22, %v8422_v2  ;;  %v7656_v58 = vld [vmem:[%s13801_s1 + $0x30] sm:$0xf0] }
 0x172   : > { %v2609_v48 = vpop.f32.mrf.mxu2  ;;  %v7659_v6 = vor.u32 %v8970_v34, %v7656_v58  ;;  %v10331_v34 = vor.u32 %v8943_v26, %v7542_v41  ;;  %v7640_v58 = vld [vmem:[%s13801_s1 + $0x10] sm:$0xf0] }
 0x173   : > { %v2610_v18 = vadd.f32 %v2609_v48, %v10009_v14  ;;  %v2698_v1 = vpop.f32.mrf.mxu3  ;;  %v8953_v48 = vld [vmem:[%s9461_s13 + $0x31c] sm:$0xf]  ;;  %v8008_v26 = vld [vmem:[%s13801_s1 + $0x2f0] sm:$0xf0] }
 0x174   : > { %v2779_v30 = vpop.f32.mrf.mxu0  ;;  %14205 = vst [vmem:[#allocation95_spill] sm:$0xff] %v10331_v34 }
 0x175   : > { %v10294_v63 = vadd.f32 %v2698_v1, %v2610_v18  ;;  %v2780_v23 = vadd.f32 %v2779_v30, %v10194_v45  ;;  %v2868_v14 = vpop.f32.mrf.mxu1  ;;  %v8956_v45 = vld [vmem:[%s9461_s13 + $0x330] sm:$0xf0]  ;;  %2936 = vmatpush.bf16.msra.mxu2 %v8439_v43  ;;  %3025 = vmatpush.bf16.msra.mxu3 %v7675_v3  ;;  %v7592_v18 = vld [vmem:[%s9461_s13 + $0x334] sm:$0xf0]  ;;  %v9160_v43 = vld [vmem:[%s13801_s1 + $0x60c] sm:$0xf0] }
 0x176   : > { %v8940_v1 = vld [vmem:[%s9461_s13 + $0x2b4] sm:$0xf]  ;;  %v8966_v3 = vld [vmem:[%s13801_s1 + $0x4] sm:$0xf]  ;;  %v10329_v22 = vor.u32 %v8956_v45, %v7590_v25  ;;  %v10336_v56 = vor.u32 %v8953_v48, %v7592_v18 }
 0x177   : > { %v10306_v9 = vadd.f32 %v2868_v14, %v2780_v23  ;;  %v8406_v23 = vld [vmem:[%s13801_s1 + $0x600] sm:$0xf]  ;;  %v10338_v36 = vor.u32 %v8940_v1, %v7544_v11  ;;  %v7643_v45 = vor.u32 %v8966_v3, %v7640_v58  ;;  %v7880_v48 = vld [vmem:[%s13801_s1 + $0x1f0] sm:$0xf0]  ;;  %v9022_v1 = vld [vmem:[%s13801_s1 + $0x1c4] sm:$0xf] }
 0x178   : > { %14204 = vst [vmem:[#allocation94_spill] sm:$0xff] %v10329_v22  ;;  %v8407_v25 = vor.u32 %v9160_v43, %v8406_v23  ;;  %v7864_v11 = vld [vmem:[%s13801_s1 + $0x1d0] sm:$0xf0]  ;;  %v9054_v23 = vld [vmem:[%s13801_s1 + $0x2c4] sm:$0xf] }
 0x179   : > { %2937 = vmatpush.bf16.msra.mxu2 %v8423_v47  ;;  %3026 = vmatpush.bf16.msra.mxu3 %v7659_v6  ;;  %14206 = vst [vmem:[#allocation96_spill] sm:$0xff] %v10336_v56  ;;  %v9026_v47 = vld [vmem:[%s13801_s1 + $0x1e4] sm:$0xf] }
 0x17a   : > { %v2611_v30 = vpop.f32.mrf.mxu2  ;;  %14207 = vst [vmem:[#allocation97_spill] sm:$0xff] %v10338_v36 }
 0x17b   : > { %v2612_v14 = vadd.f32 %v2611_v30, %v10019_v28  ;;  %v2700_v2 = vpop.f32.mrf.mxu3 }
 0x17c   : > { %v2782_v40 = vpop.f32.mrf.mxu0 }
 0x17d   : > { %v10340_v8 = vadd.f32 %v2700_v2, %v2612_v14  ;;  %v2783_v28 = vadd.f32 %v2782_v40, %v10215_v50  ;;  %v2871_v30 = vpop.f32.mrf.mxu1  ;;  %v9058_v50 = vld [vmem:[%s13801_s1 + $0x2e4] sm:$0xf]  ;;  %v7883_v40 = vor.u32 %v9026_v47, %v7880_v48  ;;  %2938 = vmatpush.bf16.msra.mxu2 %v8407_v25  ;;  %3027 = vmatpush.bf16.msra.mxu3 %v7643_v45  ;;  %v7992_v2 = vld [vmem:[%s13801_s1 + $0x2d0] sm:$0xf0] }
 0x17e   : > { %v8011_v6 = vor.u32 %v9058_v50, %v8008_v26  ;;  %v7867_v14 = vor.u32 %v9022_v1, %v7864_v11  ;;  %v7848_v47 = vld [vmem:[%s13801_s1 + $0x1b0] sm:$0xf0]  ;;  %v9050_v48 = vld [vmem:[%s13801_s1 + $0x2a4] sm:$0xf]  ;;  %v7570_v1 = vld [vmem:[%s9461_s13 + $0x2e8] sm:$0xf] }
 0x17f   : > { %v10343_v41 = vadd.f32 %v2871_v30, %v2783_v28  ;;  %2653 = vmatmul.bf16.gmra.mxu2 %v10329_v22  ;;  %2821 = vmatmul.bf16.gmra.mxu0 %v10331_v34  ;;  %v7995_v28 = vor.u32 %v9054_v23, %v7992_v2  ;;  %v8950_v11 = vld [vmem:[%s9461_s13 + $0x300] sm:$0xf0] }
 0x180   : > { %2742 = vmatmul.bf16.gmra.mxu3 %v10336_v56  ;;  %2910 = vmatmul.bf16.gmra.mxu1 %v10338_v36 }
 0x181   : > { %3109 = vmatpush.bf16.msra.mxu0 %v7883_v40  ;;  %3198 = vmatpush.bf16.msra.mxu1 %v8011_v6  ;;  %v8963_v40 = vld [vmem:[%s9461_s13 + $0x368] sm:$0xf0]  ;;  %v7976_v6 = vld [vmem:[%s13801_s1 + $0x2b0] sm:$0xf0] }
 0x182   : > { %v2614_v18 = vpop.f32.mrf.mxu2  ;;  %v7979_v23 = vor.u32 %v9050_v48, %v7976_v6  ;;  %v10411_v48 = vor.u32 %v8950_v11, %v7570_v1  ;;  %v7960_v6 = vld [vmem:[%s13801_s1 + $0x290] sm:$0xf0] }
 0x183   : > { %v2615_v43 = vadd.f32 %v2614_v18, %v10041_v46  ;;  %v2703_v3 = vpop.f32.mrf.mxu3  ;;  %v9018_v46 = vld [vmem:[%s13801_s1 + $0x1a4] sm:$0xf]  ;;  %v8960_v18 = vld [vmem:[%s9461_s13 + $0x354] sm:$0xf] }
 0x184   : > { %v2784_v58 = vpop.f32.mrf.mxu0  ;;  %v7851_v26 = vor.u32 %v9018_v46, %v7848_v47  ;;  %14209 = vst [vmem:[#allocation99_spill] sm:$0xff] %v10411_v48  ;;  %v7816_v1 = vld [vmem:[%s13801_s1 + $0x170] sm:$0xf0] }
 0x185   : > { %v10374_v30 = vadd.f32 %v2703_v3, %v2615_v43  ;;  %v2785_v25 = vadd.f32 %v2784_v58, %v10260_v38  ;;  %v2873_v45 = vpop.f32.mrf.mxu1  ;;  %3110 = vmatpush.bf16.msra.mxu0 %v7867_v14  ;;  %v7618_v38 = vld [vmem:[%s9461_s13 + $0x350] sm:$0xf]  ;;  %3199 = vmatpush.bf16.msra.mxu1 %v7995_v28  ;;  %v8947_v3 = vld [vmem:[%s9461_s13 + $0x2ec] sm:$0xf]  ;;  %v7572_v14 = vld [vmem:[%s9461_s13 + $0x304] sm:$0xf0] }
 0x186   : > { %v7620_v43 = vld [vmem:[%s9461_s13 + $0x36c] sm:$0xf0]  ;;  %v9014_v58 = vld [vmem:[%s13801_s1 + $0x184] sm:$0xf]  ;;  %v7832_v28 = vld [vmem:[%s13801_s1 + $0x190] sm:$0xf0]  ;;  %v10409_v47 = vor.u32 %v8963_v40, %v7618_v38  ;;  %v10418_v34 = vor.u32 %v8947_v3, %v7572_v14 }
 0x187   : > { %v10386_v50 = vadd.f32 %v2873_v45, %v2785_v25  ;;  %v9046_v25 = vld [vmem:[%s13801_s1 + $0x284] sm:$0xf]  ;;  %v10416_v56 = vor.u32 %v8960_v18, %v7620_v43  ;;  %v7944_v11 = vld [vmem:[%s13801_s1 + $0x270] sm:$0xf0] }
 0x188   : > { %14208 = vst [vmem:[#allocation98_spill] sm:$0xff] %v10409_v47  ;;  %v7963_v38 = vor.u32 %v9046_v25, %v7960_v6  ;;  %v9010_v18 = vld [vmem:[%s13801_s1 + $0x164] sm:$0xf]  ;;  %v7800_v14 = vld [vmem:[%s13801_s1 + $0x150] sm:$0xf0] }
 0x189   : > { %3111 = vmatpush.bf16.msra.mxu0 %v7851_v26  ;;  %3200 = vmatpush.bf16.msra.mxu1 %v7979_v23  ;;  %v7835_v26 = vor.u32 %v9014_v58, %v7832_v28  ;;  %14210 = vst [vmem:[#allocation100_spill] sm:$0xff] %v10416_v56  ;;  %v9006_v3 = vld [vmem:[%s13801_s1 + $0x144] sm:$0xf] }
 0x18a   : > { %v2616_v2 = vpop.f32.mrf.mxu2  ;;  %14211 = vst [vmem:[#allocation101_spill] sm:$0xff] %v10418_v34  ;;  %v9038_v58 = vld [vmem:[%s13801_s1 + $0x244] sm:$0xf] }
 0x18b   : > { %v2617_v45 = vadd.f32 %v2616_v2, %v10051_v49  ;;  %v2705_v46 = vpop.f32.mrf.mxu3 }
 0x18c   : > { %v2787_v36 = vpop.f32.mrf.mxu0 }
 0x18d   : > { %v10420_v22 = vadd.f32 %v2705_v46, %v2617_v45  ;;  %v2788_v49 = vadd.f32 %v2787_v36, %v10294_v63  ;;  %v2876_v2 = vpop.f32.mrf.mxu1  ;;  %3112 = vmatpush.bf16.msra.mxu0 %v7835_v26  ;;  %v9042_v36 = vld [vmem:[%s13801_s1 + $0x264] sm:$0xf]  ;;  %v7819_v63 = vor.u32 %v9010_v18, %v7816_v1  ;;  %3201 = vmatpush.bf16.msra.mxu1 %v7963_v38  ;;  %v7928_v46 = vld [vmem:[%s13801_s1 + $0x250] sm:$0xf0] }
 0x18e   : > { %v7947_v23 = vor.u32 %v9042_v36, %v7944_v11  ;;  %v7803_v45 = vor.u32 %v9006_v3, %v7800_v14  ;;  %v7931_v38 = vor.u32 %v9038_v58, %v7928_v46  ;;  %v7784_v18 = vld [vmem:[%s13801_s1 + $0x130] sm:$0xf0]  ;;  %v9034_v1 = vld [vmem:[%s13801_s1 + $0x224] sm:$0xf]  ;;  %v7600_v58 = vld [vmem:[%s9461_s13 + $0x33c] sm:$0xf0] }
 0x18f   : > { %v10423_v40 = vadd.f32 %v2876_v2, %v2788_v49  ;;  %2658 = vmatmul.bf16.gmra.mxu2 %v10409_v47  ;;  %2826 = vmatmul.bf16.gmra.mxu0 %v10411_v48  ;;  %v7912_v11 = vld [vmem:[%s13801_s1 + $0x230] sm:$0xf0]  ;;  %v8954_v14 = vld [vmem:[%s9461_s13 + $0x324] sm:$0xf] }
 0x190   : > { %2747 = vmatmul.bf16.gmra.mxu3 %v10416_v56  ;;  %2915 = vmatmul.bf16.gmra.mxu1 %v10418_v34  ;;  %v8860_v3 = vld [vmem:[%s9461_s13 + $0x30] sm:$0xf0] }
 0x191   : > { %3113 = vmatpush.bf16.msra.mxu0 %v7819_v63  ;;  %3202 = vmatpush.bf16.msra.mxu1 %v7947_v23  ;;  %v8957_v23 = vld [vmem:[%s9461_s13 + $0x338] sm:$0xf0]  ;;  %v7768_v46 = vld [vmem:[%s13801_s1 + $0x110] sm:$0xf0] }
 0x192   : > { %v2619_v43 = vpop.f32.mrf.mxu2 }
 0x193   : > { %v2620_v28 = vadd.f32 %v2619_v43, %v10073_v54  ;;  %v2708_v25 = vpop.f32.mrf.mxu3  ;;  %v9002_v54 = vld [vmem:[%s13801_s1 + $0x124] sm:$0xf]  ;;  %v7214_v43 = vld [vmem:[%s9461_s13 + $0x18] sm:$0xf] }
 0x194   : > { %v2789_v26 = vpop.f32.mrf.mxu0  ;;  %v7787_v63 = vor.u32 %v9002_v54, %v7784_v18 }
 0x195   : > { %v10454_v6 = vadd.f32 %v2708_v25, %v2620_v28  ;;  %v2790_v49 = vadd.f32 %v2789_v26, %v10340_v8  ;;  %v2878_v2 = vpop.f32.mrf.mxu1  ;;  %3114 = vmatpush.bf16.msra.mxu0 %v7803_v45  ;;  %v7598_v8 = vld [vmem:[%s9461_s13 + $0x320] sm:$0xf]  ;;  %3203 = vmatpush.bf16.msra.mxu1 %v7931_v38  ;;  %v7915_v28 = vor.u32 %v9034_v1, %v7912_v11  ;;  %v8998_v45 = vld [vmem:[%s13801_s1 + $0x104] sm:$0xf]  ;;  %v7896_v1 = vld [vmem:[%s13801_s1 + $0x210] sm:$0xf0] }
 0x196   : > { %v9030_v26 = vld [vmem:[%s13801_s1 + $0x204] sm:$0xf]  ;;  %v10487_v54 = vor.u32 %v8957_v23, %v7598_v8  ;;  %v10489_v38 = vor.u32 %v8860_v3, %v7214_v43  ;;  %v7771_v18 = vor.u32 %v8998_v45, %v7768_v46  ;;  %v10494_v11 = vor.u32 %v8954_v14, %v7600_v58  ;;  %v7626_v58 = vld [vmem:[%s9461_s13 + $0x358] sm:$0xf]  ;;  %v8867_v45 = vld [vmem:[%s9461_s13 + $0x68] sm:$0xf0] }
 0x197   : > { %v10466_v36 = vadd.f32 %v2878_v2, %v2790_v49  ;;  %v7899_v47 = vor.u32 %v9030_v26, %v7896_v1  ;;  %v8961_v46 = vld [vmem:[%s9461_s13 + $0x35c] sm:$0xf]  ;;  %v7628_v26 = vld [vmem:[%s9461_s13 + $0x374] sm:$0xf0] }
 0x198   : > { %14212 = vst [vmem:[#allocation102_spill] sm:$0xff] %v10487_v54 }
 0x199   : > { %3115 = vmatpush.bf16.msra.mxu0 %v7787_v63  ;;  %14213 = vst [vmem:[#allocation103_spill] sm:$0xff] %v10489_v38  ;;  %3204 = vmatpush.bf16.msra.mxu1 %v7915_v28  ;;  %v8964_v28 = vld [vmem:[%s9461_s13 + $0x370] sm:$0xf0] }
 0x19a   : > { %v2621_v25 = vpop.f32.mrf.mxu2  ;;  %14214 = vst [vmem:[#allocation104_spill] sm:$0xff] %v10494_v11 }
 0x19b   : > { %v2622_v49 = vadd.f32 %v2621_v25, %v10081_v33  ;;  %v2710_v2 = vpop.f32.mrf.mxu3  ;;  %v7242_v25 = vld [vmem:[%s9461_s13 + $0x50] sm:$0xf] }
 0x19c   : > { %v2792_v63 = vpop.f32.mrf.mxu0 }
 0x19d   : > { %v2711_v34 = vadd.f32 %v2710_v2, %v2622_v49  ;;  %v2793_v56 = vadd.f32 %v2792_v63, %v10374_v30  ;;  %v2881_v48 = vpop.f32.mrf.mxu1  ;;  %3116 = vmatpush.bf16.msra.mxu0 %v7771_v18  ;;  %3205 = vmatpush.bf16.msra.mxu1 %v7899_v47  ;;  %v10514_v18 = vor.u32 %v8964_v28, %v7626_v58 }
 0x19e   : > { %v10518_v63 = vor.u32 %v8961_v46, %v7628_v26  ;;  %v8874_v46 = vld [vmem:[%s9461_s13 + $0xa0] sm:$0xf0] }
 0x19f   : > { %v10497_v33 = vadd.f32 %v2881_v48, %v2793_v56  ;;  %2831 = vmatmul.bf16.gmra.mxu0 %v10487_v54  ;;  %2939 = vmatmul.bf16.vlgmr.msra.gmra.mxu2 %v10489_v38  ;;  %14215 = vst [vmem:[#allocation105_spill] sm:$0xff] %v10514_v18 }
 0x1a0   : > { %2920 = vmatmul.bf16.gmra.mxu1 %v10494_v11  ;;  %3028 = vmatmul.bf16.vlgmr.msra.gmra.mxu3 %v9483_v57  ;;  %14217 = vst [vmem:[#allocation107_spill] sm:$0xff] %v10518_v63 }
 0x1a2   : > { %v2624_v30 = vpop.f32.mrf.mxu2 }
 0x1a3   : > { %v2625_v8 = vadd.f32 %v2624_v30, %v10101_v60  ;;  %v2713_v23 = vpop.f32.mrf.mxu3  ;;  %v10516_v60 = vor.u32 %v8867_v45, %v7242_v25  ;;  %v7270_v45 = vld [vmem:[%s9461_s13 + $0x88] sm:$0xf] }
 0x1a4   : > { %v2794_v43 = vpop.f32.mrf.mxu0 }
 0x1a5   : > { %v2714_v56 = vadd.f32 %v2713_v23, %v2625_v8  ;;  %v2795_v48 = vadd.f32 %v2794_v43, %v10420_v22  ;;  %v2883_v3 = vpop.f32.mrf.mxu1  ;;  %14216 = vst [vmem:[#allocation106_spill] sm:$0xff] %v10516_v60 }
 0x1a7   : > { %v10505_v14 = vadd.f32 %v2883_v3, %v2795_v48 }
 0x1aa   : > { %v2626_v49 = vpop.f32.mrf.mxu2 }
 0x1ab   : > { %v2627_v47 = vadd.f32 %v2626_v49, %v10109_v53  ;;  %v2715_v2 = vpop.f32.mrf.mxu3 }
 0x1ac   : > { %v2797_v1 = vpop.f32.mrf.mxu0 }
 0x1ad   : > { %v2716_v22 = vadd.f32 %v2715_v2, %v2627_v47  ;;  %v2798_v30 = vadd.f32 %v2797_v1, %v10454_v6  ;;  %v2886_v8 = vpop.f32.mrf.mxu1  ;;  %v10533_v2 = vor.u32 %v8874_v46, %v7270_v45  ;;  %v7298_v45 = vld [vmem:[%s9461_s13 + $0xc0] sm:$0xf]  ;;  %v8881_v46 = vld [vmem:[%s9461_s13 + $0xd8] sm:$0xf0] }
 0x1af   : > { %v10521_v23 = vadd.f32 %v2886_v8, %v2798_v30  ;;  %2836 = vmatmul.bf16.gmra.mxu0 %v10514_v18  ;;  %2944 = vmatmul.bf16.gmra.mxu2 %v10516_v60  ;;  %14218 = vst [vmem:[#allocation108_spill] sm:$0xff] %v10533_v2 }
 0x1b0   : > { %2925 = vmatmul.bf16.gmra.mxu1 %v10518_v63  ;;  %3033 = vmatmul.bf16.gmra.mxu3 %v9503_v5  ;;  %v14243_v5 = vld [vmem:[#allocation8_spill] sm:$0xff] }
 0x1b2   : > { %v2629_v53 = vpop.f32.mrf.mxu2 }
 0x1b3   : > { %v2630_v43 = vadd.f32 %v2629_v53, %v9856_v27  ;;  %v2718_v48 = vpop.f32.mrf.mxu3 }
 0x1b4   : > { %v2799_v3 = vpop.f32.mrf.mxu0 }
 0x1b5   : > { %v2719_v58 = vadd.f32 %v2718_v48, %v2630_v43  ;;  %v2800_v28 = vadd.f32 %v2799_v3, %v2711_v34  ;;  %v2888_v6 = vpop.f32.mrf.mxu1 }
 0x1b7   : > { %v10528_v25 = vadd.f32 %v2888_v6, %v2800_v28 }
 0x1ba   : > { %v2631_v26 = vpop.f32.mrf.mxu2 }
 0x1bb   : > { %v2632_v49 = vadd.f32 %v2631_v26, %v9878_v16  ;;  %v2720_v47 = vpop.f32.mrf.mxu3 }
 0x1bc   : > { %v2802_v1 = vpop.f32.mrf.mxu0 }
 0x1bd   : > { %v2721_v30 = vadd.f32 %v2720_v47, %v2632_v49  ;;  %v2803_v8 = vadd.f32 %v2802_v1, %v2714_v56  ;;  %v2891_v27 = vpop.f32.mrf.mxu1  ;;  %v10547_v1 = vor.u32 %v8881_v46, %v7298_v45  ;;  %v8888_v45 = vld [vmem:[%s9461_s13 + $0x110] sm:$0xf0] }
 0x1bf   : > { %v10535_v53 = vadd.f32 %v2891_v27, %v2803_v8  ;;  %2949 = vmatmul.bf16.gmra.mxu2 %v10533_v2  ;;  %3117 = vmatmul.bf16.vlgmr.msra.gmra.mxu0 %v9487_v59  ;;  %14219 = vst [vmem:[#allocation109_spill] sm:$0xff] %v10547_v1 }
 0x1c0   : > { %3038 = vmatmul.bf16.gmra.mxu3 %v9523_v17  ;;  %3206 = vmatmul.bf16.vlgmr.msra.gmra.mxu1 %v9814_v39 }
 0x1c2   : > { %v2634_v16 = vpop.f32.mrf.mxu2 }
 0x1c3   : > { %v2635_v34 = vadd.f32 %v2634_v16, %v9888_v35  ;;  %v2723_v43 = vpop.f32.mrf.mxu3 }
 0x1c4   : > { %v2804_v48 = vpop.f32.mrf.mxu0 }
 0x1c5   : > { %v2724_v3 = vadd.f32 %v2723_v43, %v2635_v34  ;;  %v2805_v28 = vadd.f32 %v2804_v48, %v2716_v22  ;;  %v2893_v56 = vpop.f32.mrf.mxu1 }
 0x1c7   : > { %v10542_v6 = vadd.f32 %v2893_v56, %v2805_v28 }
 0x1ca   : > { %v2636_v26 = vpop.f32.mrf.mxu2 }
 0x1cb   : > { %v2637_v49 = vadd.f32 %v2636_v26, %v9910_v37  ;;  %v2725_v47 = vpop.f32.mrf.mxu3 }
 0x1cc   : > { %v2807_v8 = vpop.f32.mrf.mxu0 }
 0x1cd   : > { %v2726_v27 = vadd.f32 %v2725_v47, %v2637_v49  ;;  %v2808_v39 = vadd.f32 %v2807_v8, %v2719_v58  ;;  %v2896_v35 = vpop.f32.mrf.mxu1 }
 0x1cf   : > { %v10549_v16 = vadd.f32 %v2896_v35, %v2808_v39  ;;  %2954 = vmatmul.bf16.gmra.mxu2 %v10547_v1  ;;  %3122 = vmatmul.bf16.gmra.mxu0 %v9507_v7  ;;  %v7326_v39 = vld [vmem:[%s9461_s13 + $0xf8] sm:$0xf] }
 0x1d0   : > { %3043 = vmatmul.bf16.gmra.mxu3 %v9543_v29  ;;  %3211 = vmatmul.bf16.gmra.mxu1 %v9842_v12  ;;  %v10561_v47 = vor.u32 %v8888_v45, %v7326_v39  ;;  %v8895_v39 = vld [vmem:[%s9461_s13 + $0x148] sm:$0xf0] }
 0x1d2   : > { %v2639_v37 = vpop.f32.mrf.mxu2  ;;  %14220 = vst [vmem:[#allocation110_spill] sm:$0xff] %v10561_v47 }
 0x1d3   : > { %v2640_v22 = vadd.f32 %v2639_v37, %v9920_v15  ;;  %v2728_v34 = vpop.f32.mrf.mxu3 }
 0x1d4   : > { %v2809_v43 = vpop.f32.mrf.mxu0 }
 0x1d5   : > { %v2729_v48 = vadd.f32 %v2728_v34, %v2640_v22  ;;  %v2810_v28 = vadd.f32 %v2809_v43, %v2721_v30  ;;  %v2898_v58 = vpop.f32.mrf.mxu1 }
 0x1d7   : > { %v10556_v56 = vadd.f32 %v2898_v58, %v2810_v28 }
 0x1da   : > { %v2641_v46 = vpop.f32.mrf.mxu2 }
 0x1db   : > { %v2642_v26 = vadd.f32 %v2641_v46, %v9942_v51  ;;  %v2730_v49 = vpop.f32.mrf.mxu3 }
 0x1dc   : > { %v2812_v8 = vpop.f32.mrf.mxu0 }
 0x1dd   : > { %v2731_v35 = vadd.f32 %v2730_v49, %v2642_v26  ;;  %v2813_v12 = vadd.f32 %v2812_v8, %v2724_v3  ;;  %v2901_v15 = vpop.f32.mrf.mxu1 }
 0x1df   : > { %v10563_v37 = vadd.f32 %v2901_v15, %v2813_v12  ;;  %2959 = vmatmul.bf16.gmra.mxu2 %v10561_v47  ;;  %3127 = vmatmul.bf16.gmra.mxu0 %v9527_v19  ;;  %v7354_v12 = vld [vmem:[%s9461_s13 + $0x130] sm:$0xf] }
 0x1e0   : > { %3048 = vmatmul.bf16.gmra.mxu3 %v9611_v4  ;;  %3216 = vmatmul.bf16.gmra.mxu1 %v9870_v62  ;;  %v10575_v49 = vor.u32 %v8895_v39, %v7354_v12  ;;  %v8902_v12 = vld [vmem:[%s9461_s13 + $0x180] sm:$0xf0] }
 0x1e2   : > { %v2644_v51 = vpop.f32.mrf.mxu2  ;;  %14221 = vst [vmem:[#allocation111_spill] sm:$0xff] %v10575_v49 }
 0x1e3   : > { %v2645_v30 = vadd.f32 %v2644_v51, %v9952_v55  ;;  %v2733_v22 = vpop.f32.mrf.mxu3 }
 0x1e4   : > { %v2814_v34 = vpop.f32.mrf.mxu0 }
 0x1e5   : > { %v2734_v43 = vadd.f32 %v2733_v22, %v2645_v30  ;;  %v2815_v28 = vadd.f32 %v2814_v34, %v2726_v27  ;;  %v2903_v3 = vpop.f32.mrf.mxu1 }
 0x1e7   : > { %v10570_v58 = vadd.f32 %v2903_v3, %v2815_v28 }
 0x1ea   : > { %v2646_v45 = vpop.f32.mrf.mxu2 }
 0x1eb   : > { %v2647_v46 = vadd.f32 %v2646_v45, %v9974_v61  ;;  %v2735_v26 = vpop.f32.mrf.mxu3 }
 0x1ec   : > { %v2817_v8 = vpop.f32.mrf.mxu0 }
 0x1ed   : > { %v2736_v15 = vadd.f32 %v2735_v26, %v2647_v46  ;;  %v2818_v62 = vadd.f32 %v2817_v8, %v2729_v48  ;;  %v2906_v55 = vpop.f32.mrf.mxu1 }
 0x1ef   : > { %v10577_v51 = vadd.f32 %v2906_v55, %v2818_v62  ;;  %2964 = vmatmul.bf16.gmra.mxu2 %v10575_v49  ;;  %3132 = vmatmul.bf16.gmra.mxu0 %v9547_v31  ;;  %v7382_v62 = vld [vmem:[%s9461_s13 + $0x168] sm:$0xf] }
 0x1f0   : > { %3053 = vmatmul.bf16.gmra.mxu3 %v9679_v52  ;;  %3221 = vmatmul.bf16.gmra.mxu1 %v9902_v13  ;;  %v10589_v26 = vor.u32 %v8902_v12, %v7382_v62 }
 0x1f2   : > { %v2649_v61 = vpop.f32.mrf.mxu2  ;;  %14222 = vst [vmem:[#allocation112_spill] sm:$0xff] %v10589_v26 }
 0x1f3   : > { %v2650_v27 = vadd.f32 %v2649_v61, %v9984_v20  ;;  %v2738_v30 = vpop.f32.mrf.mxu3 }
 0x1f4   : > { %v2819_v22 = vpop.f32.mrf.mxu0 }
 0x1f5   : > { %v2739_v34 = vadd.f32 %v2738_v30, %v2650_v27  ;;  %v2820_v28 = vadd.f32 %v2819_v22, %v2731_v35  ;;  %v2908_v48 = vpop.f32.mrf.mxu1  ;;  %v14223_v35 = vld [vmem:[#allocation47_spill] sm:$0xff] }
 0x1f6   : > { %v14224_v27 = vld [vmem:[#allocation59_spill] sm:$0xff] }
 0x1f7   : > { %v10584_v3 = vadd.f32 %v2908_v48, %v2820_v28 }
 0x1fa   : > { %v2651_v39 = vpop.f32.mrf.mxu2 }
 0x1fb   : > { %v2652_v45 = vadd.f32 %v2651_v39, %v10006_v21  ;;  %v2740_v46 = vpop.f32.mrf.mxu3  ;;  %v8909_v39 = vld [vmem:[%s9461_s13 + $0x1b8] sm:$0xf0] }
 0x1fc   : > { %v2822_v8 = vpop.f32.mrf.mxu0 }
 0x1fd   : > { %v2741_v55 = vadd.f32 %v2740_v46, %v2652_v45  ;;  %v2823_v13 = vadd.f32 %v2822_v8, %v2734_v43  ;;  %v2911_v20 = vpop.f32.mrf.mxu1  ;;  %v14225_v46 = vld [vmem:[#allocation64_spill] sm:$0xff] }
 0x1ff   : > { %v10591_v61 = vadd.f32 %v2911_v20, %v2823_v13  ;;  %2969 = vmatmul.bf16.gmra.mxu2 %v10589_v26  ;;  %3137 = vmatmul.bf16.gmra.mxu0 %v9615_v10  ;;  %v7410_v13 = vld [vmem:[%s9461_s13 + $0x1a0] sm:$0xf] }
 0x200   : > { %3058 = vmatmul.bf16.gmra.mxu3 %v9744_v42  ;;  %3226 = vmatmul.bf16.gmra.mxu1 %v14223_v35  ;;  %v10603_v52 = vor.u32 %v8909_v39, %v7410_v13 }
 0x202   : > { %v2654_v21 = vpop.f32.mrf.mxu2  ;;  %14226 = vst [vmem:[#allocation59_spill] sm:$0xff] %v10603_v52 }
 0x203   : > { %v2655_v30 = vadd.f32 %v2654_v21, %v14224_v27  ;;  %v2743_v22 = vpop.f32.mrf.mxu3 }
 0x204   : > { %v2824_v28 = vpop.f32.mrf.mxu0 }
 0x205   : > { %v2744_v48 = vadd.f32 %v2743_v22, %v2655_v30  ;;  %v2825_v62 = vadd.f32 %v2824_v28, %v2736_v15  ;;  %v2913_v43 = vpop.f32.mrf.mxu1  ;;  %v14227_v15 = vld [vmem:[#allocation25_spill] sm:$0xff]  ;;  %v14228_v30 = vld [vmem:[#allocation31_spill] sm:$0xff] }
 0x206   : > { %v14229_v22 = vld [vmem:[#allocation51_spill] sm:$0xff] }
 0x207   : > { %v10598_v12 = vadd.f32 %v2913_v43, %v2825_v62  ;;  %v14230_v62 = vld [vmem:[#allocation65_spill] sm:$0xff] }
 0x20a   : > { %v2656_v45 = vpop.f32.mrf.mxu2 }
 0x20b   : > { %v2657_v8 = vadd.f32 %v2656_v45, %v14225_v46  ;;  %v2745_v20 = vpop.f32.mrf.mxu3 }
 0x20c   : > { %v2827_v42 = vpop.f32.mrf.mxu0 }
 0x20d   : > { %v2746_v35 = vadd.f32 %v2745_v20, %v2657_v8  ;;  %v2828_v10 = vadd.f32 %v2827_v42, %v2739_v34  ;;  %v2916_v21 = vpop.f32.mrf.mxu1  ;;  %v8916_v8 = vld [vmem:[%s9461_s13 + $0x1f0] sm:$0xf0] }
 0x20f   : > { %v10605_v27 = vadd.f32 %v2916_v21, %v2828_v10  ;;  %2974 = vmatmul.bf16.gmra.mxu2 %v10603_v52  ;;  %3142 = vmatmul.bf16.gmra.mxu0 %v14227_v15  ;;  %v7438_v10 = vld [vmem:[%s9461_s13 + $0x1d8] sm:$0xf] }
 0x210   : > { %3063 = vmatmul.bf16.gmra.mxu3 %v14228_v30  ;;  %3231 = vmatmul.bf16.gmra.mxu1 %v14229_v22  ;;  %v14231_v21 = vld [vmem:[#allocation70_spill] sm:$0xff]  ;;  %v10617_v31 = vor.u32 %v8916_v8, %v7438_v10 }
 0x212   : > { %v2659_v28 = vpop.f32.mrf.mxu2  ;;  %14232 = vst [vmem:[#allocation64_spill] sm:$0xff] %v10617_v31 }
 0x213   : > { %v2660_v43 = vadd.f32 %v2659_v28, %v14230_v62  ;;  %v2748_v13 = vpop.f32.mrf.mxu3 }
 0x214   : > { %v2829_v39 = vpop.f32.mrf.mxu0 }
 0x215   : > { %v2749_v45 = vadd.f32 %v2748_v13, %v2660_v43  ;;  %v2830_v46 = vadd.f32 %v2829_v39, %v2741_v55  ;;  %v2918_v42 = vpop.f32.mrf.mxu1  ;;  %v14233_v55 = vld [vmem:[#allocation29_spill] sm:$0xff]  ;;  %v14234_v43 = vld [vmem:[#allocation35_spill] sm:$0xff] }
 0x216   : > { %v14235_v13 = vld [vmem:[#allocation55_spill] sm:$0xff] }
 0x217   : > { %v10612_v34 = vadd.f32 %v2918_v42, %v2830_v46 }
 0x21a   : > { %v2661_v20 = vpop.f32.mrf.mxu2 }
 0x21b   : > { %v2662_v4 = vadd.f32 %v2661_v20, %v14231_v21  ;;  %v2750_v15 = vpop.f32.mrf.mxu3 }
 0x21c   : > { %v2832_v30 = vpop.f32.mrf.mxu0 }
 0x21d   : > { %v2751_v22 = vadd.f32 %v2750_v15, %v2662_v4  ;;  %v2833_v28 = vadd.f32 %v2832_v30, %v2744_v48  ;;  %v2921_v62 = vpop.f32.mrf.mxu1  ;;  %v7466_v48 = vld [vmem:[%s9461_s13 + $0x210] sm:$0xf]  ;;  %v8923_v30 = vld [vmem:[%s9461_s13 + $0x228] sm:$0xf0] }
 0x21f   : > { %v10619_v29 = vadd.f32 %v2921_v62, %v2833_v28  ;;  %2979 = vmatmul.bf16.gmra.mxu2 %v10617_v31  ;;  %3147 = vmatmul.bf16.gmra.mxu0 %v14233_v55  ;;  %v10631_v55 = vor.u32 %v8923_v30, %v7466_v48  ;;  %v14239_v48 = vld [vmem:[#allocation60_spill] sm:$0xff] }
 0x220   : > { %3068 = vmatmul.bf16.gmra.mxu3 %v14234_v43  ;;  %3236 = vmatmul.bf16.gmra.mxu1 %v14235_v13 }
 0x222   : > { %v2940_v39 = vpop.f32.mrf.mxu2 }
 0x223   : > { %v2941_v46 = vadd.f32 %v2940_v39, %v10128_v44  ;;  %v3029_v42 = vpop.f32.mrf.mxu3 }
 0x224   : > { %v2834_v10 = vpop.f32.mrf.mxu0 }
 0x225   : > { %v2835_v8 = vadd.f32 %v2834_v10, %v2746_v35  ;;  %v2923_v4 = vpop.f32.mrf.mxu1  ;;  %v5017_v21 = vmul.f32 0.2, %v2941_v46  ;;  %vm4889_vm0 = vcmp.gt.f32.partialorder %v2941_v46, 0.0 }
 0x227   : > { %v10626_v15 = vadd.f32 %v2923_v4, %v2835_v8  ;;  %v5145_v19 = vsel %vm4889_vm0, %v2941_v46, %v5017_v21  ;;  %v14236_v8 = vld [vmem:[#allocation33_spill] sm:$0xff]  ;;  %v14238_v4 = vld [vmem:[#allocation4_spill] sm:$0xff]  ;;  %v9298_v21 = vld [vmem:[%s13802_s2] sm:$0xf] }
 0x22a   : > { %v2942_v20 = vpop.f32.mrf.mxu2 }
 0x22b   : > { %v2943_v28 = vadd.f32 %v2942_v20, %v10147_v24  ;;  %v3031_v62 = vpop.f32.mrf.mxu3 }
 0x22c   : > { %v2837_v13 = vpop.f32.mrf.mxu0 }
 0x22d   : > { %vm4893_vm1 = vcmp.gt.f32.partialorder %v2943_v28, 0.0  ;;  %v5021_v43 = vmul.f32 0.2, %v2943_v28  ;;  %v2838_v44 = vadd.f32 %v2837_v13, %v2749_v45  ;;  %v2926_v39 = vpop.f32.mrf.mxu1 }
 0x22f   : > { %v5149_v35 = vsel %vm4893_vm1, %v2943_v28, %v5021_v43  ;;  %v10633_v10 = vadd.f32 %v2926_v39, %v2838_v44  ;;  %2984 = vmatmul.bf16.gmra.mxu2 %v10631_v55  ;;  %3152 = vmatmul.bf16.gmra.mxu0 %v14236_v8  ;;  %v10645_v28 = vperm.slane %v9298_v21, 1  ;;  %v8930_v39 = vld [vmem:[%s9461_s13 + $0x260] sm:$0xf0] }
 0x230   : > { %v10637_v24 = vpack.c.bf16 %v5149_v35, %v5145_v19  ;;  %3073 = vmatmul.bf16.gmra.mxu3 %v14238_v4  ;;  %3241 = vmatmul.bf16.gmra.mxu1 %v14239_v48  ;;  %v7494_v19 = vld [vmem:[%s9461_s13 + $0x248] sm:$0xf] }
 0x231   : > { %v14240_v4 = vld [vmem:[#allocation83_spill] sm:$0xff]  ;;  %v10653_v8 = vor.u32 %v8930_v39, %v7494_v19 }
 0x232   : > { %14237 = vst [vmem:[#allocation65_spill] sm:$0xff] %v10637_v24  ;;  %v2945_v30 = vpop.f32.mrf.mxu2  ;;  %v3030_v24 = vadd.f32 %v3029_v42, %v10645_v28  ;;  %v9090_v19 = vld [vmem:[%s13801_s1 + $0x3e4] sm:$0xf] }
 0x233   : > { %v2946_v45 = vadd.f32 %v2945_v30, %v10166_v32  ;;  %v3034_v13 = vpop.f32.mrf.mxu3  ;;  %14241 = vst [vmem:[#allocation70_spill] sm:$0xff] %v10653_v8 }
 0x234   : > { %v2839_v46 = vpop.f32.mrf.mxu0 }
 0x235   : > { %v2840_v43 = vadd.f32 %v2839_v46, %v2751_v22  ;;  %v2928_v20 = vpop.f32.mrf.mxu1  ;;  %v5025_v48 = vmul.f32 0.2, %v2946_v45  ;;  %vm4897_vm2 = vcmp.gt.f32.partialorder %v2946_v45, 0.0 }
 0x237   : > { %v10647_v44 = vadd.f32 %v2928_v20, %v2840_v43  ;;  %v14242_v43 = vld [vmem:[#allocation37_spill] sm:$0xff]  ;;  %v5153_v20 = vsel %vm4897_vm2, %v2946_v45, %v5025_v48  ;;  %v3032_v48 = vadd.f32 %v3031_v62, %v10645_v28  ;;  %v14246_v45 = vld [vmem:[#allocation88_spill] sm:$0xff]  ;;  %v8937_v62 = vld [vmem:[%s9461_s13 + $0x298] sm:$0xf0] }
 0x23a   : > { %v2947_v35 = vpop.f32.mrf.mxu2 }
 0x23b   : > { %v2948_v32 = vadd.f32 %v2947_v35, %v14240_v4  ;;  %v3036_v30 = vpop.f32.mrf.mxu3  ;;  %v14244_v4 = vld [vmem:[#allocation66_spill] sm:$0xff] }
 0x23c   : > { %v3118_v22 = vpop.f32.mrf.mxu0 }
 0x23d   : > { %vm4901_vm3 = vcmp.gt.f32.partialorder %v2948_v32, 0.0  ;;  %v5029_v46 = vmul.f32 0.2, %v2948_v32  ;;  %v3119_v17 = vadd.f32 %v3118_v22, %v3030_v24  ;;  %v3207_v21 = vpop.f32.mrf.mxu1 }
 0x23f   : > { %v10655_v7 = vadd.f32 %v3207_v21, %v3119_v17  ;;  %2989 = vmatmul.bf16.gmra.mxu2 %v10653_v8  ;;  %3157 = vmatmul.bf16.gmra.mxu0 %v14242_v43  ;;  %v5157_v42 = vsel %vm4901_vm3, %v2948_v32, %v5029_v46  ;;  %v8136_v17 = vld [vmem:[%s13801_s1 + $0x3f0] sm:$0xf0] }
 0x240   : > { %3078 = vmatmul.bf16.gmra.mxu3 %v14243_v5  ;;  %3246 = vmatmul.bf16.gmra.mxu1 %v14244_v4  ;;  %v10667_v24 = vpack.c.bf16 %v5157_v42, %v5153_v20  ;;  %v8139_v39 = vor.u32 %v9090_v19, %v8136_v17  ;;  %v9122_v5 = vld [vmem:[%s13801_s1 + $0x4e4] sm:$0xf]  ;;  %v8264_v20 = vld [vmem:[%s13801_s1 + $0x4f0] sm:$0xf0]  ;;  %v7522_v17 = vld [vmem:[%s9461_s13 + $0x280] sm:$0xf] }
 0x241   : > { %v8267_v19 = vor.u32 %v9122_v5, %v8264_v20  ;;  %v10683_v43 = vor.u32 %v8937_v62, %v7522_v17  ;;  %v14249_v5 = vld [vmem:[#allocation6_spill] sm:$0xff]  ;;  %v14251_v17 = vld [vmem:[#allocation71_spill] sm:$0xff] }
 0x242   : > { %14245 = vst [vmem:[#allocation83_spill] sm:$0xff] %v10667_v24  ;;  %v2950_v35 = vpop.f32.mrf.mxu2  ;;  %3287 = vmatpush.bf16.msrb.mxu2 %v8139_v39  ;;  %v3035_v39 = vadd.f32 %v3034_v13, %v10645_v28 }
 0x243   : > { %v2951_v32 = vadd.f32 %v2950_v35, %v14246_v45  ;;  %v3039_v22 = vpop.f32.mrf.mxu3  ;;  %3376 = vmatpush.bf16.msrb.mxu3 %v8267_v19  ;;  %14248 = vst [vmem:[#allocation88_spill] sm:$0xff] %v10683_v43  ;;  %v14250_v19 = vld [vmem:[#allocation12_spill] sm:$0xff] }
 0x244   : > { %v3120_v46 = vpop.f32.mrf.mxu0 }
 0x245   : > { %v3121_v21 = vadd.f32 %v3120_v46, %v3032_v48  ;;  %v3209_v4 = vpop.f32.mrf.mxu1  ;;  %v5033_v45 = vmul.f32 0.2, %v2951_v32  ;;  %v14247_v48 = vld [vmem:[#allocation89_spill] sm:$0xff]  ;;  %vm4905_vm4 = vcmp.gt.f32.partialorder %v2951_v32, 0.0 }
 0x247   : > { %v10677_v42 = vadd.f32 %v3209_v4, %v3121_v21  ;;  %v5161_v13 = vsel %vm4905_vm4, %v2951_v32, %v5033_v45  ;;  %v8944_v32 = vld [vmem:[%s9461_s13 + $0x2d0] sm:$0xf0]  ;;  %v3040_v45 = vadd.f32 %v3039_v22, %v10645_v28 }
 0x24a   : > { %v2952_v35 = vpop.f32.mrf.mxu2 }
 0x24b   : > { %v2953_v46 = vadd.f32 %v2952_v35, %v14247_v48  ;;  %v3041_v24 = vpop.f32.mrf.mxu3 }
 0x24c   : > { %v3123_v63 = vpop.f32.mrf.mxu0 }
 0x24d   : > { %vm4909_vm5 = vcmp.gt.f32.partialorder %v2953_v46, 0.0  ;;  %v5037_v59 = vmul.f32 0.2, %v2953_v46  ;;  %v3124_v57 = vadd.f32 %v3123_v63, %v3035_v39  ;;  %v3212_v4 = vpop.f32.mrf.mxu1  ;;  %v3037_v63 = vadd.f32 %v3036_v30, %v10645_v28 }
 0x24f   : > { %v10685_v21 = vadd.f32 %v3212_v4, %v3124_v57  ;;  %2994 = vmatmul.bf16.gmra.mxu2 %v10683_v43  ;;  %3162 = vmatmul.bf16.gmra.mxu0 %v14249_v5  ;;  %v5165_v20 = vsel %vm4909_vm5, %v2953_v46, %v5037_v59  ;;  %v7550_v5 = vld [vmem:[%s9461_s13 + $0x2b8] sm:$0xf] }
 0x250   : > { %3083 = vmatmul.bf16.gmra.mxu3 %v14250_v19  ;;  %3251 = vmatmul.bf16.gmra.mxu1 %v14251_v17  ;;  %v10691_v62 = vpack.c.bf16 %v5165_v20, %v5161_v13  ;;  %v14255_v17 = vld [vmem:[#allocation16_spill] sm:$0xff] }
 0x252   : > { %14252 = vst [vmem:[#allocation89_spill] sm:$0xff] %v10691_v62  ;;  %v2955_v35 = vpop.f32.mrf.mxu2  ;;  %v10703_v62 = vor.u32 %v8944_v32, %v7550_v5  ;;  %v9086_v5 = vld [vmem:[%s13801_s1 + $0x3c4] sm:$0xf]  ;;  %v8120_v32 = vld [vmem:[%s13801_s1 + $0x3d0] sm:$0xf0] }
 0x253   : > { %v2956_v57 = vadd.f32 %v2955_v35, %v10263_v0  ;;  %v3044_v39 = vpop.f32.mrf.mxu3 }
 0x254   : > { %v3125_v48 = vpop.f32.mrf.mxu0  ;;  %14253 = vst [vmem:[#allocation113_spill] sm:$0xff] %v10703_v62 }
 0x255   : > { %v3126_v4 = vadd.f32 %v3125_v48, %v3037_v63  ;;  %v3214_v11 = vpop.f32.mrf.mxu1  ;;  %v5041_v46 = vmul.f32 0.2, %v2956_v57  ;;  %vm4913_vm6 = vcmp.gt.f32.partialorder %v2956_v57, 0.0  ;;  %v14254_v48 = vld [vmem:[#allocation10_spill] sm:$0xff] }
 0x257   : > { %v10695_v18 = vadd.f32 %v3214_v11, %v3126_v4  ;;  %v5169_v22 = vsel %vm4913_vm6, %v2956_v57, %v5041_v46  ;;  %v9118_v57 = vld [vmem:[%s13801_s1 + $0x4c4] sm:$0xf]  ;;  %v8248_v46 = vld [vmem:[%s13801_s1 + $0x4d0] sm:$0xf0] }
 0x25a   : > { %v2957_v59 = vpop.f32.mrf.mxu2 }
 0x25b   : > { %v2958_v13 = vadd.f32 %v2957_v59, %v10306_v9  ;;  %v10701_v20 = vpop.f32.mrf.mxu3  ;;  %v14256_v9 = vld [vmem:[#allocation75_spill] sm:$0xff] }
 0x25c   : > { %v3128_v0 = vpop.f32.mrf.mxu0 }
 0x25d   : > { %vm4917_vm7 = vcmp.gt.f32.partialorder %v2958_v13, 0.0  ;;  %v5045_v30 = vmul.f32 0.2, %v2958_v13  ;;  %v3129_v35 = vadd.f32 %v3128_v0, %v3040_v45  ;;  %v3217_v63 = vpop.f32.mrf.mxu1  ;;  %v8123_v45 = vor.u32 %v9086_v5, %v8120_v32  ;;  %v9082_v32 = vld [vmem:[%s13801_s1 + $0x3a4] sm:$0xf] }
 0x25f   : > { %v10705_v11 = vadd.f32 %v3217_v63, %v3129_v35  ;;  %2999 = vmatmul.bf16.gmra.mxu2 %v10703_v62  ;;  %3167 = vmatmul.bf16.gmra.mxu0 %v14254_v48  ;;  %v5173_v4 = vsel %vm4917_vm7, %v2958_v13, %v5045_v30  ;;  %v3042_v13 = vadd.f32 %v3041_v24, %v10645_v28 }
 0x260   : > { %3088 = vmatmul.bf16.gmra.mxu3 %v14255_v17  ;;  %3256 = vmatmul.bf16.gmra.mxu1 %v14256_v9  ;;  %v10717_v59 = vpack.c.bf16 %v5173_v4, %v5169_v22  ;;  %v8251_v63 = vor.u32 %v9118_v57, %v8248_v46  ;;  %v7578_v57 = vld [vmem:[%s9461_s13 + $0x2f0] sm:$0xf]  ;;  %v8951_v46 = vld [vmem:[%s9461_s13 + $0x308] sm:$0xf0] }
 0x261   : > { %3288 = vmatpush.bf16.msrb.mxu2 %v8123_v45 }
 0x262   : > { %14257 = vst [vmem:[#allocation114_spill] sm:$0xff] %v10717_v59  ;;  %v2960_v0 = vpop.f32.mrf.mxu2  ;;  %3377 = vmatpush.bf16.msrb.mxu3 %v8251_v63  ;;  %v8104_v59 = vld [vmem:[%s13801_s1 + $0x3b0] sm:$0xf0] }
 0x263   : > { %v2961_v30 = vadd.f32 %v2960_v0, %v10343_v41  ;;  %v10727_v35 = vpop.f32.mrf.mxu3  ;;  %v9114_v41 = vld [vmem:[%s13801_s1 + $0x4a4] sm:$0xf]  ;;  %v8107_v45 = vor.u32 %v9082_v32, %v8104_v59  ;;  %v8232_v0 = vld [vmem:[%s13801_s1 + $0x4b0] sm:$0xf0] }
 0x264   : > { %v3130_v22 = vpop.f32.mrf.mxu0  ;;  %v9110_v59 = vld [vmem:[%s13801_s1 + $0x484] sm:$0xf] }
 0x265   : > { %v3131_v4 = vadd.f32 %v3130_v22, %v3042_v13  ;;  %v3219_v5 = vpop.f32.mrf.mxu1  ;;  %v8235_v13 = vor.u32 %v9114_v41, %v8232_v0  ;;  %3289 = vmatpush.bf16.msrb.mxu2 %v8107_v45  ;;  %v9078_v22 = vld [vmem:[%s13801_s1 + $0x384] sm:$0xf]  ;;  %v10758_v45 = vor.u32 %v8951_v46, %v7578_v57  ;;  %v5049_v9 = vmul.f32 0.2, %v2961_v30  ;;  %v14259_v46 = vld [vmem:[#allocation14_spill] sm:$0xff] }
 0x266   : > { %vm4921_vm8 = vcmp.gt.f32.partialorder %v2961_v30, 0.0 }
 0x267   : > { %v10738_v24 = vadd.f32 %v3219_v5, %v3131_v4  ;;  %3378 = vmatpush.bf16.msrb.mxu3 %v8235_v13  ;;  %v8088_v4 = vld [vmem:[%s13801_s1 + $0x390] sm:$0xf0]  ;;  %v3045_v5 = vadd.f32 %v3044_v39, %v10645_v28  ;;  %14258 = vst [vmem:[#allocation115_spill] sm:$0xff] %v10758_v45 }
 0x268   : > { %v8091_v0 = vor.u32 %v9078_v22, %v8088_v4  ;;  %v8216_v13 = vld [vmem:[%s13801_s1 + $0x490] sm:$0xf0]  ;;  %v14260_v22 = vld [vmem:[#allocation20_spill] sm:$0xff]  ;;  %v14261_v4 = vld [vmem:[#allocation79_spill] sm:$0xff] }
 0x269   : > { %v8219_v19 = vor.u32 %v9110_v59, %v8216_v13  ;;  %v8072_v39 = vld [vmem:[%s13801_s1 + $0x370] sm:$0xf0]  ;;  %v9070_v13 = vld [vmem:[%s13801_s1 + $0x344] sm:$0xf] }
 0x26a   : > { %v2962_v63 = vpop.f32.mrf.mxu2  ;;  %3290 = vmatpush.bf16.msrb.mxu2 %v8091_v0 }
 0x26b   : > { %v2963_v32 = vadd.f32 %v2962_v63, %v10386_v50  ;;  %v10756_v41 = vpop.f32.mrf.mxu3  ;;  %3379 = vmatpush.bf16.msrb.mxu3 %v8219_v19  ;;  %v9074_v50 = vld [vmem:[%s13801_s1 + $0x364] sm:$0xf]  ;;  %v8200_v19 = vld [vmem:[%s13801_s1 + $0x470] sm:$0xf0] }
 0x26c   : > { %v3133_v17 = vpop.f32.mrf.mxu0  ;;  %v8075_v63 = vor.u32 %v9074_v50, %v8072_v39  ;;  %v8056_v50 = vld [vmem:[%s13801_s1 + $0x350] sm:$0xf0]  ;;  %v9102_v39 = vld [vmem:[%s13801_s1 + $0x444] sm:$0xf] }
 0x26d   : > { %vm4925_vm9 = vcmp.gt.f32.partialorder %v2963_v32, 0.0  ;;  %v5053_v48 = vmul.f32 0.2, %v2963_v32  ;;  %v3134_v62 = vadd.f32 %v3133_v17, %v3045_v5  ;;  %v3222_v54 = vpop.f32.mrf.mxu1  ;;  %v9106_v17 = vld [vmem:[%s13801_s1 + $0x464] sm:$0xf] }
 0x26e   : > { %v8203_v59 = vor.u32 %v9106_v17, %v8200_v19  ;;  %3291 = vmatpush.bf16.msrb.mxu2 %v8075_v63  ;;  %v8184_v63 = vld [vmem:[%s13801_s1 + $0x450] sm:$0xf0] }
 0x26f   : > { %v10769_v57 = vadd.f32 %v3222_v54, %v3134_v62  ;;  %3004 = vmatmul.bf16.gmra.mxu2 %v10758_v45  ;;  %3172 = vmatmul.bf16.gmra.mxu0 %v14259_v46  ;;  %v5177_v54 = vsel %vm4921_vm8, %v2961_v30, %v5049_v9  ;;  %v5181_v62 = vsel %vm4925_vm9, %v2963_v32, %v5053_v48 }
 0x270   : > { %3093 = vmatmul.bf16.gmra.mxu3 %v14260_v22  ;;  %3261 = vmatmul.bf16.gmra.mxu1 %v14261_v4  ;;  %v10783_v5 = vpack.c.bf16 %v5181_v62, %v5177_v54  ;;  %v3047_v48 = vadd.f32 %v10701_v20, %v10645_v28  ;;  %v8059_v32 = vor.u32 %v9070_v13, %v8056_v50  ;;  %v9066_v20 = vld [vmem:[%s13801_s1 + $0x324] sm:$0xf]  ;;  %v7606_v13 = vld [vmem:[%s9461_s13 + $0x328] sm:$0xf] }
 0x271   : > { %3380 = vmatpush.bf16.msrb.mxu3 %v8203_v59  ;;  %v8187_v19 = vor.u32 %v9102_v39, %v8184_v63  ;;  %v9098_v62 = vld [vmem:[%s13801_s1 + $0x424] sm:$0xf] }
 0x272   : > { %14262 = vst [vmem:[#allocation116_spill] sm:$0xff] %v10783_v5  ;;  %v2965_v0 = vpop.f32.mrf.mxu2  ;;  %3292 = vmatpush.bf16.msrb.mxu2 %v8059_v32  ;;  %v8958_v50 = vld [vmem:[%s9461_s13 + $0x340] sm:$0xf0] }
 0x273   : > { %v2966_v9 = vadd.f32 %v2965_v0, %v10423_v40  ;;  %v10797_v30 = vpop.f32.mrf.mxu3  ;;  %v8040_v40 = vld [vmem:[%s13801_s1 + $0x330] sm:$0xf0]  ;;  %v9062_v5 = vld [vmem:[%s13801_s1 + $0x304] sm:$0xf] }
 0x274   : > { %v3135_v17 = vpop.f32.mrf.mxu0  ;;  %v8043_v39 = vor.u32 %v9066_v20, %v8040_v40  ;;  %v3050_v20 = vadd.f32 %v10727_v35, %v10645_v28  ;;  %v9154_v35 = vld [vmem:[%s13801_s1 + $0x5e4] sm:$0xf] }
 0x275   : > { %v3136_v59 = vadd.f32 %v3135_v17, %v3047_v48  ;;  %v3224_v54 = vpop.f32.mrf.mxu1  ;;  %3381 = vmatpush.bf16.msrb.mxu3 %v8187_v19  ;;  %v8168_v48 = vld [vmem:[%s13801_s1 + $0x430] sm:$0xf0]  ;;  %v5057_v63 = vmul.f32 0.2, %v2966_v9  ;;  %v10818_v19 = vor.u32 %v8958_v50, %v7606_v13  ;;  %vm4929_vm10 = vcmp.gt.f32.partialorder %v2966_v9, 0.0 }
 0x276   : > { %v8171_v32 = vor.u32 %v9098_v62, %v8168_v48  ;;  %3293 = vmatpush.bf16.msrb.mxu2 %v8043_v39  ;;  %v8152_v50 = vld [vmem:[%s13801_s1 + $0x410] sm:$0xf0] }
 0x277   : > { %v10811_v0 = vadd.f32 %v3224_v54, %v3136_v59  ;;  %14263 = vst [vmem:[#allocation117_spill] sm:$0xff] %v10818_v19  ;;  %v8024_v59 = vld [vmem:[%s13801_s1 + $0x310] sm:$0xf0]  ;;  %v9094_v54 = vld [vmem:[%s13801_s1 + $0x404] sm:$0xf] }
 0x278   : > { %v8027_v13 = vor.u32 %v9062_v5, %v8024_v59  ;;  %v8155_v48 = vor.u32 %v9094_v54, %v8152_v50  ;;  %v9186_v5 = vld [vmem:[%s13801_s1 + $0x6e4] sm:$0xf]  ;;  %v14264_v54 = vld [vmem:[#allocation18_spill] sm:$0xff] }
 0x279   : > { %3382 = vmatpush.bf16.msrb.mxu3 %v8171_v32 }
 0x27a   : > { %v2967_v17 = vpop.f32.mrf.mxu2  ;;  %3294 = vmatpush.bf16.msrb.mxu2 %v8027_v13  ;;  %v8520_v13 = vld [vmem:[%s13801_s1 + $0x6f0] sm:$0xf0] }
 0x27b   : > { %v2968_v40 = vadd.f32 %v2967_v17, %v10466_v36  ;;  %v10832_v62 = vpop.f32.mrf.mxu3  ;;  %v8392_v36 = vld [vmem:[%s13801_s1 + $0x5f0] sm:$0xf0]  ;;  %v5185_v17 = vsel %vm4929_vm10, %v2966_v9, %v5057_v63  ;;  %v8523_v46 = vor.u32 %v9186_v5, %v8520_v13  ;;  %v9182_v63 = vld [vmem:[%s13801_s1 + $0x6c4] sm:$0xf] }
 0x27c   : > { %v3138_v39 = vpop.f32.mrf.mxu0  ;;  %v8376_v9 = vld [vmem:[%s13801_s1 + $0x5d0] sm:$0xf0] }
 0x27d   : > { %vm4933_vm11 = vcmp.gt.f32.partialorder %v2968_v40, 0.0  ;;  %v5061_v32 = vmul.f32 0.2, %v2968_v40  ;;  %v3139_v4 = vadd.f32 %v3138_v39, %v3050_v20  ;;  %v3227_v22 = vpop.f32.mrf.mxu1  ;;  %3383 = vmatpush.bf16.msrb.mxu3 %v8155_v48  ;;  %v8395_v20 = vor.u32 %v9154_v35, %v8392_v36  ;;  %v14265_v39 = vld [vmem:[#allocation24_spill] sm:$0xff]  ;;  %3554 = vmatpush.bf16.msrb.mxu1 %v8523_v46  ;;  %v8504_v36 = vld [vmem:[%s13801_s1 + $0x6d0] sm:$0xf0] }
 0x27e   : > { %v14266_v48 = vld [vmem:[#allocation84_spill] sm:$0xff] }
 0x27f   : > { %v10847_v59 = vadd.f32 %v3227_v22, %v3139_v4  ;;  %3009 = vmatmul.bf16.gmra.mxu2 %v10818_v19  ;;  %3177 = vmatmul.bf16.gmra.mxu0 %v14264_v54  ;;  %v5189_v50 = vsel %vm4933_vm11, %v2968_v40, %v5061_v32  ;;  %v9150_v4 = vld [vmem:[%s13801_s1 + $0x5c4] sm:$0xf]  ;;  %v3052_v40 = vadd.f32 %v10756_v41, %v10645_v28 }
 0x280   : > { %3098 = vmatmul.bf16.gmra.mxu3 %v14265_v39  ;;  %3266 = vmatmul.bf16.gmra.mxu1 %v14266_v48  ;;  %v10856_v45 = vpack.c.bf16 %v5189_v50, %v5185_v17  ;;  %v8379_v35 = vor.u32 %v9150_v4, %v8376_v9  ;;  %v8507_v17 = vor.u32 %v9182_v63, %v8504_v36  ;;  %v9146_v41 = vld [vmem:[%s13801_s1 + $0x5a4] sm:$0xf]  ;;  %v7634_v4 = vld [vmem:[%s9461_s13 + $0x360] sm:$0xf]  ;;  %v8965_v9 = vld [vmem:[%s9461_s13 + $0x378] sm:$0xf0] }
 0x281   : > { %3465 = vmatpush.bf16.msrb.mxu0 %v8395_v20  ;;  %v9178_v50 = vld [vmem:[%s13801_s1 + $0x6a4] sm:$0xf] }
 0x282   : > { %14267 = vst [vmem:[#allocation118_spill] sm:$0xff] %v10856_v45  ;;  %v2970_v22 = vpop.f32.mrf.mxu2  ;;  %3555 = vmatpush.bf16.msrb.mxu1 %v8507_v17  ;;  %v10891_v17 = vor.u32 %v8965_v9, %v7634_v4  ;;  %v9142_v45 = vld [vmem:[%s13801_s1 + $0x584] sm:$0xf]  ;;  %v8472_v9 = vld [vmem:[%s13801_s1 + $0x690] sm:$0xf0] }
 0x283   : > { %v2971_v32 = vadd.f32 %v2970_v22, %v10497_v33  ;;  %v10870_v46 = vpop.f32.mrf.mxu3  ;;  %v8360_v33 = vld [vmem:[%s13801_s1 + $0x5b0] sm:$0xf0] }
 0x284   : > { %v3140_v5 = vpop.f32.mrf.mxu0  ;;  %v8363_v63 = vor.u32 %v9146_v41, %v8360_v33  ;;  %14268 = vst [vmem:[#allocation119_spill] sm:$0xff] %v10891_v17  ;;  %v3055_v41 = vadd.f32 %v10797_v30, %v10645_v28  ;;  %v9138_v30 = vld [vmem:[%s13801_s1 + $0x564] sm:$0xf] }
 0x285   : > { %v3141_v20 = vadd.f32 %v3140_v5, %v3052_v40  ;;  %v3229_v13 = vpop.f32.mrf.mxu1  ;;  %3466 = vmatpush.bf16.msrb.mxu0 %v8379_v35  ;;  %v8488_v40 = vld [vmem:[%s13801_s1 + $0x6b0] sm:$0xf0]  ;;  %v5065_v36 = vmul.f32 0.2, %v2971_v32  ;;  %vm4937_vm12 = vcmp.gt.f32.partialorder %v2971_v32, 0.0 }
 0x286   : > { %v8491_v35 = vor.u32 %v9178_v50, %v8488_v40 }
 0x287   : > { %v10884_v22 = vadd.f32 %v3229_v13, %v3141_v20  ;;  %v8344_v20 = vld [vmem:[%s13801_s1 + $0x590] sm:$0xf0]  ;;  %v9174_v13 = vld [vmem:[%s13801_s1 + $0x684] sm:$0xf] }
 0x288   : > { %3556 = vmatpush.bf16.msrb.mxu1 %v8491_v35  ;;  %v8347_v4 = vor.u32 %v9142_v45, %v8344_v20  ;;  %v8475_v40 = vor.u32 %v9174_v13, %v8472_v9  ;;  %v9170_v45 = vld [vmem:[%s13801_s1 + $0x664] sm:$0xf]  ;;  %v14269_v13 = vld [vmem:[#allocation22_spill] sm:$0xff] }
 0x289   : > { %3467 = vmatpush.bf16.msrb.mxu0 %v8363_v63 }
 0x28a   : > { %v2972_v5 = vpop.f32.mrf.mxu2 }
 0x28b   : > { %v2973_v33 = vadd.f32 %v2972_v5, %v10505_v14  ;;  %v10905_v50 = vpop.f32.mrf.mxu3  ;;  %v8328_v14 = vld [vmem:[%s13801_s1 + $0x570] sm:$0xf0]  ;;  %v5193_v5 = vsel %vm4937_vm12, %v2971_v32, %v5065_v36  ;;  %v9166_v36 = vld [vmem:[%s13801_s1 + $0x644] sm:$0xf] }
 0x28c   : > { %v3143_v63 = vpop.f32.mrf.mxu0  ;;  %3557 = vmatpush.bf16.msrb.mxu1 %v8475_v40  ;;  %v14271_v40 = vld [vmem:[#allocation90_spill] sm:$0xff]  ;;  %v8312_v32 = vld [vmem:[%s13801_s1 + $0x550] sm:$0xf0] }
 0x28d   : > { %vm4941_vm13 = vcmp.gt.f32.partialorder %v2973_v33, 0.0  ;;  %v5069_v35 = vmul.f32 0.2, %v2973_v33  ;;  %v3144_v48 = vadd.f32 %v3143_v63, %v3055_v41  ;;  %v3232_v39 = vpop.f32.mrf.mxu1  ;;  %3468 = vmatpush.bf16.msrb.mxu0 %v8347_v4  ;;  %v8331_v41 = vor.u32 %v9138_v30, %v8328_v14  ;;  %v8456_v4 = vld [vmem:[%s13801_s1 + $0x670] sm:$0xf0]  ;;  %v14270_v63 = vld [vmem:[#allocation28_spill] sm:$0xff] }
 0x28e   : > { %v8459_v54 = vor.u32 %v9170_v45, %v8456_v4 }
 0x28f   : > { %v10920_v20 = vadd.f32 %v3232_v39, %v3144_v48  ;;  %3014 = vmatmul.bf16.gmra.mxu2 %v10891_v17  ;;  %3182 = vmatmul.bf16.gmra.mxu0 %v14269_v13  ;;  %v5197_v9 = vsel %vm4941_vm13, %v2973_v33, %v5069_v35  ;;  %v9134_v48 = vld [vmem:[%s13801_s1 + $0x544] sm:$0xf]  ;;  %v3057_v33 = vadd.f32 %v10832_v62, %v10645_v28  ;;  %v14276_v13 = vld [vmem:[#allocation40_spill] sm:$0xff] }
 0x290   : > { %3103 = vmatmul.bf16.gmra.mxu3 %v14270_v63  ;;  %3271 = vmatmul.bf16.gmra.mxu1 %v14271_v40  ;;  %v10929_v19 = vpack.c.bf16 %v5197_v9, %v5193_v5  ;;  %v8315_v14 = vor.u32 %v9134_v48, %v8312_v32  ;;  %v9130_v9 = vld [vmem:[%s13801_s1 + $0x524] sm:$0xf]  ;;  %v8424_v32 = vld [vmem:[%s13801_s1 + $0x630] sm:$0xf0] }
 0x291   : > { %3469 = vmatpush.bf16.msrb.mxu0 %v8331_v41  ;;  %3558 = vmatpush.bf16.msrb.mxu1 %v8459_v54  ;;  %v8440_v54 = vld [vmem:[%s13801_s1 + $0x650] sm:$0xf0]  ;;  %v9162_v62 = vld [vmem:[%s13801_s1 + $0x624] sm:$0xf] }
 0x292   : > { %14272 = vst [vmem:[#allocation120_spill] sm:$0xff] %v10929_v19  ;;  %v2975_v39 = vpop.f32.mrf.mxu2  ;;  %v8443_v5 = vor.u32 %v9166_v36, %v8440_v54  ;;  %v8427_v36 = vor.u32 %v9162_v62, %v8424_v32  ;;  %v8280_v54 = vld [vmem:[%s13801_s1 + $0x510] sm:$0xf0] }
 0x293   : > { %v2976_v35 = vadd.f32 %v2975_v39, %v10521_v23  ;;  %v3064_v30 = vpop.f32.mrf.mxu3  ;;  %v8296_v23 = vld [vmem:[%s13801_s1 + $0x530] sm:$0xf0] }
 0x294   : > { %v3145_v45 = vpop.f32.mrf.mxu0  ;;  %v8299_v48 = vor.u32 %v9130_v9, %v8296_v23  ;;  %v8408_v62 = vld [vmem:[%s13801_s1 + $0x610] sm:$0xf0] }
 0x295   : > { %v3146_v41 = vadd.f32 %v3145_v45, %v3057_v33  ;;  %v3234_v4 = vpop.f32.mrf.mxu1  ;;  %3470 = vmatpush.bf16.msrb.mxu0 %v8315_v14  ;;  %3559 = vmatpush.bf16.msrb.mxu1 %v8443_v5  ;;  %v9126_v14 = vld [vmem:[%s13801_s1 + $0x504] sm:$0xf]  ;;  %v3060_v5 = vadd.f32 %v10870_v46, %v10645_v28  ;;  %vm4945_vm14 = vcmp.gt.f32.partialorder %v2976_v35, 0.0  ;;  %v14273_v46 = vld [vmem:[#allocation26_spill] sm:$0xff] }
 0x296   : > { %v9158_v45 = vld [vmem:[%s13801_s1 + $0x604] sm:$0xf]  ;;  %v8283_v23 = vor.u32 %v9126_v14, %v8280_v54  ;;  %v14275_v54 = vld [vmem:[#allocation94_spill] sm:$0xff] }
 0x297   : > { %v10955_v39 = vadd.f32 %v3234_v4, %v3146_v41  ;;  %v5073_v41 = vmul.f32 0.2, %v2976_v35  ;;  %v8411_v32 = vor.u32 %v9158_v45, %v8408_v62 }
 0x299   : > { %3471 = vmatpush.bf16.msrb.mxu0 %v8299_v48  ;;  %3560 = vmatpush.bf16.msrb.mxu1 %v8427_v36 }
 0x29a   : > { %v2977_v33 = vpop.f32.mrf.mxu2 }
 0x29b   : > { %v2978_v4 = vadd.f32 %v2977_v33, %v10528_v25  ;;  %v3066_v9 = vpop.f32.mrf.mxu3  ;;  %v14274_v25 = vld [vmem:[#allocation34_spill] sm:$0xff]  ;;  %v5201_v33 = vsel %vm4945_vm14, %v2976_v35, %v5073_v41  ;;  %v3065_v41 = vadd.f32 %v3064_v30, %v10645_v28  ;;  %v14281_v30 = vld [vmem:[#allocation44_spill] sm:$0xff] }
 0x29c   : > { %v3148_v48 = vpop.f32.mrf.mxu0 }
 0x29d   : > { %vm4949_vm15 = vcmp.gt.f32.partialorder %v2978_v4, 0.0  ;;  %v5077_v36 = vmul.f32 0.2, %v2978_v4  ;;  %v3149_v19 = vadd.f32 %v3148_v48, %v3060_v5  ;;  %v3237_v40 = vpop.f32.mrf.mxu1  ;;  %3472 = vmatpush.bf16.msrb.mxu0 %v8283_v23  ;;  %3561 = vmatpush.bf16.msrb.mxu1 %v8411_v32  ;;  %v3062_v5 = vadd.f32 %v10905_v50, %v10645_v28 }
 0x29f   : > { %v10975_v63 = vadd.f32 %v3237_v40, %v3149_v19  ;;  %3187 = vmatmul.bf16.gmra.mxu0 %v14273_v46  ;;  %3295 = vmatmul.bf16.vlgmr.msrb.gmra.mxu2 %v14274_v25  ;;  %v5205_v14 = vsel %vm4949_vm15, %v2978_v4, %v5077_v36 }
 0x2a0   : > { %3276 = vmatmul.bf16.gmra.mxu1 %v14275_v54  ;;  %3384 = vmatmul.bf16.vlgmr.msrb.gmra.mxu3 %v14276_v13  ;;  %v10981_v17 = vpack.c.bf16 %v5205_v14, %v5201_v33  ;;  %v3067_v54 = vadd.f32 %v3066_v9, %v10645_v28 }
 0x2a2   : > { %14277 = vst [vmem:[#allocation121_spill] sm:$0xff] %v10981_v17  ;;  %v2980_v45 = vpop.f32.mrf.mxu2 }
 0x2a3   : > { %v2981_v23 = vadd.f32 %v2980_v45, %v10535_v53  ;;  %v3069_v19 = vpop.f32.mrf.mxu3  ;;  %v14278_v45 = vld [vmem:[#allocation30_spill] sm:$0xff] }
 0x2a4   : > { %v3150_v40 = vpop.f32.mrf.mxu0 }
 0x2a5   : > { %v3151_v62 = vadd.f32 %v3150_v40, %v3062_v5  ;;  %v3239_v48 = vpop.f32.mrf.mxu1  ;;  %v5081_v4 = vmul.f32 0.2, %v2981_v23  ;;  %vm4953_vm0 = vcmp.gt.f32.partialorder %v2981_v23, 0.0  ;;  %v14279_v5 = vld [vmem:[#allocation38_spill] sm:$0xff] }
 0x2a7   : > { %v10986_v32 = vadd.f32 %v3239_v48, %v3151_v62  ;;  %v5209_v40 = vsel %vm4953_vm0, %v2981_v23, %v5081_v4  ;;  %v14280_v48 = vld [vmem:[#allocation98_spill] sm:$0xff] }
 0x2aa   : > { %v2982_v35 = vpop.f32.mrf.mxu2 }
 0x2ab   : > { %v2983_v36 = vadd.f32 %v2982_v35, %v10542_v6  ;;  %v3071_v33 = vpop.f32.mrf.mxu3 }
 0x2ac   : > { %v3153_v14 = vpop.f32.mrf.mxu0 }
 0x2ad   : > { %vm4957_vm1 = vcmp.gt.f32.partialorder %v2983_v36, 0.0  ;;  %v5085_v17 = vmul.f32 0.2, %v2983_v36  ;;  %v3154_v50 = vadd.f32 %v3153_v14, %v3065_v41  ;;  %v3242_v13 = vpop.f32.mrf.mxu1 }
 0x2af   : > { %v10990_v53 = vadd.f32 %v3242_v13, %v3154_v50  ;;  %3192 = vmatmul.bf16.gmra.mxu0 %v14278_v45  ;;  %3300 = vmatmul.bf16.gmra.mxu2 %v14279_v5  ;;  %v5213_v62 = vsel %vm4957_vm1, %v2983_v36, %v5085_v17  ;;  %v3070_v17 = vadd.f32 %v3069_v19, %v10645_v28 }
 0x2b0   : > { %3281 = vmatmul.bf16.gmra.mxu1 %v14280_v48  ;;  %3389 = vmatmul.bf16.gmra.mxu3 %v14281_v30  ;;  %v10996_v6 = vpack.c.bf16 %v5213_v62, %v5209_v40 }
 0x2b2   : > { %14282 = vst [vmem:[#allocation122_spill] sm:$0xff] %v10996_v6  ;;  %v2985_v35 = vpop.f32.mrf.mxu2 }
 0x2b3   : > { %v2986_v41 = vadd.f32 %v2985_v35, %v10549_v16  ;;  %v3074_v14 = vpop.f32.mrf.mxu3  ;;  %v14283_v35 = vld [vmem:[#allocation41_spill] sm:$0xff] }
 0x2b4   : > { %v3155_v13 = vpop.f32.mrf.mxu0 }
 0x2b5   : > { %v3156_v50 = vadd.f32 %v3155_v13, %v3067_v54  ;;  %v3244_v46 = vpop.f32.mrf.mxu1  ;;  %v5089_v23 = vmul.f32 0.2, %v2986_v41  ;;  %vm4961_vm2 = vcmp.gt.f32.partialorder %v2986_v41, 0.0  ;;  %v14284_v54 = vld [vmem:[#allocation42_spill] sm:$0xff] }
 0x2b7   : > { %v11000_v45 = vadd.f32 %v3244_v46, %v3156_v50  ;;  %v5217_v46 = vsel %vm4961_vm2, %v2986_v41, %v5089_v23  ;;  %v14285_v50 = vld [vmem:[#allocation48_spill] sm:$0xff]  ;;  %v3075_v41 = vadd.f32 %v3074_v14, %v10645_v28 }
 0x2ba   : > { %v2987_v5 = vpop.f32.mrf.mxu2 }
 0x2bb   : > { %v2988_v4 = vadd.f32 %v2987_v5, %v10556_v56  ;;  %v3076_v36 = vpop.f32.mrf.mxu3  ;;  %v3072_v5 = vadd.f32 %v3071_v33, %v10645_v28 }
 0x2bc   : > { %v3158_v40 = vpop.f32.mrf.mxu0 }
 0x2bd   : > { %vm4965_vm3 = vcmp.gt.f32.partialorder %v2988_v4, 0.0  ;;  %v5093_v62 = vmul.f32 0.2, %v2988_v4  ;;  %v3159_v9 = vadd.f32 %v3158_v40, %v3070_v17  ;;  %v3247_v6 = vpop.f32.mrf.mxu1 }
 0x2bf   : > { %v11004_v16 = vadd.f32 %v3247_v6, %v3159_v9  ;;  %3305 = vmatmul.bf16.gmra.mxu2 %v14283_v35  ;;  %3473 = vmatmul.bf16.vlgmr.msrb.gmra.mxu0 %v14284_v54  ;;  %v5221_v13 = vsel %vm4965_vm3, %v2988_v4, %v5093_v62 }
 0x2c0   : > { %3394 = vmatmul.bf16.gmra.mxu3 %v14285_v50  ;;  %3562 = vmatmul.bf16.vlgmr.msrb.gmra.mxu1 %v10489_v38  ;;  %v11010_v56 = vpack.c.bf16 %v5221_v13, %v5217_v46 }
 0x2c2   : > { %14286 = vst [vmem:[#allocation123_spill] sm:$0xff] %v11010_v56  ;;  %v2990_v19 = vpop.f32.mrf.mxu2 }
 0x2c3   : > { %v2991_v17 = vadd.f32 %v2990_v19, %v10563_v37  ;;  %v3079_v40 = vpop.f32.mrf.mxu3  ;;  %v14287_v19 = vld [vmem:[#allocation45_spill] sm:$0xff] }
 0x2c4   : > { %v3160_v6 = vpop.f32.mrf.mxu0 }
 0x2c5   : > { %v3161_v9 = vadd.f32 %v3160_v6, %v3072_v5  ;;  %v3249_v30 = vpop.f32.mrf.mxu1  ;;  %v5097_v23 = vmul.f32 0.2, %v2991_v17  ;;  %vm4969_vm4 = vcmp.gt.f32.partialorder %v2991_v17, 0.0  ;;  %v14288_v5 = vld [vmem:[#allocation46_spill] sm:$0xff] }
 0x2c7   : > { %v11014_v48 = vadd.f32 %v3249_v30, %v3161_v9  ;;  %v5225_v30 = vsel %vm4969_vm4, %v2991_v17, %v5097_v23  ;;  %v14289_v9 = vld [vmem:[#allocation52_spill] sm:$0xff]  ;;  %v3080_v17 = vadd.f32 %v3079_v40, %v10645_v28 }
 0x2ca   : > { %v2992_v54 = vpop.f32.mrf.mxu2 }
 0x2cb   : > { %v2993_v4 = vadd.f32 %v2992_v54, %v10570_v58  ;;  %v3081_v62 = vpop.f32.mrf.mxu3  ;;  %v3077_v54 = vadd.f32 %v3076_v36, %v10645_v28 }
 0x2cc   : > { %v3163_v46 = vpop.f32.mrf.mxu0 }
 0x2cd   : > { %vm4973_vm5 = vcmp.gt.f32.partialorder %v2993_v4, 0.0  ;;  %v5101_v13 = vmul.f32 0.2, %v2993_v4  ;;  %v3164_v33 = vadd.f32 %v3163_v46, %v3075_v41  ;;  %v3252_v56 = vpop.f32.mrf.mxu1 }
 0x2cf   : > { %v11018_v37 = vadd.f32 %v3252_v56, %v3164_v33  ;;  %3310 = vmatmul.bf16.gmra.mxu2 %v14287_v19  ;;  %3478 = vmatmul.bf16.gmra.mxu0 %v14288_v5  ;;  %v5229_v6 = vsel %vm4973_vm5, %v2993_v4, %v5101_v13 }
 0x2d0   : > { %3399 = vmatmul.bf16.gmra.mxu3 %v14289_v9  ;;  %3567 = vmatmul.bf16.gmra.mxu1 %v10516_v60  ;;  %v11024_v58 = vpack.c.bf16 %v5229_v6, %v5225_v30 }
 0x2d2   : > { %14290 = vst [vmem:[#allocation124_spill] sm:$0xff] %v11024_v58  ;;  %v2995_v14 = vpop.f32.mrf.mxu2 }
 0x2d3   : > { %v2996_v41 = vadd.f32 %v2995_v14, %v10577_v51  ;;  %v3084_v46 = vpop.f32.mrf.mxu3  ;;  %v14291_v14 = vld [vmem:[#allocation49_spill] sm:$0xff] }
 0x2d4   : > { %v3165_v56 = vpop.f32.mrf.mxu0 }
 0x2d5   : > { %v3166_v33 = vadd.f32 %v3165_v56, %v3077_v54  ;;  %v3254_v38 = vpop.f32.mrf.mxu1  ;;  %v5105_v23 = vmul.f32 0.2, %v2996_v41  ;;  %vm4977_vm6 = vcmp.gt.f32.partialorder %v2996_v41, 0.0  ;;  %v14292_v54 = vld [vmem:[#allocation50_spill] sm:$0xff] }
 0x2d7   : > { %v11028_v50 = vadd.f32 %v3254_v38, %v3166_v33  ;;  %v5233_v38 = vsel %vm4977_vm6, %v2996_v41, %v5105_v23  ;;  %v14293_v33 = vld [vmem:[#allocation56_spill] sm:$0xff]  ;;  %v3085_v41 = vadd.f32 %v3084_v46, %v10645_v28 }
 0x2da   : > { %v2997_v5 = vpop.f32.mrf.mxu2 }
 0x2db   : > { %v2998_v4 = vadd.f32 %v2997_v5, %v10584_v3  ;;  %v3086_v13 = vpop.f32.mrf.mxu3  ;;  %v3082_v5 = vadd.f32 %v3081_v62, %v10645_v28 }
 0x2dc   : > { %v3168_v30 = vpop.f32.mrf.mxu0 }
 0x2dd   : > { %vm4981_vm7 = vcmp.gt.f32.partialorder %v2998_v4, 0.0  ;;  %v5109_v6 = vmul.f32 0.2, %v2998_v4  ;;  %v3169_v36 = vadd.f32 %v3168_v30, %v3080_v17  ;;  %v3257_v58 = vpop.f32.mrf.mxu1 }
 0x2df   : > { %v11032_v51 = vadd.f32 %v3257_v58, %v3169_v36  ;;  %3315 = vmatmul.bf16.gmra.mxu2 %v14291_v14  ;;  %3483 = vmatmul.bf16.gmra.mxu0 %v14292_v54  ;;  %v5237_v56 = vsel %vm4981_vm7, %v2998_v4, %v5109_v6 }
 0x2e0   : > { %3404 = vmatmul.bf16.gmra.mxu3 %v14293_v33  ;;  %3572 = vmatmul.bf16.gmra.mxu1 %v10533_v2  ;;  %v11038_v3 = vpack.c.bf16 %v5237_v56, %v5233_v38 }
 0x2e2   : > { %14294 = vst [vmem:[#allocation125_spill] sm:$0xff] %v11038_v3  ;;  %v3000_v40 = vpop.f32.mrf.mxu2 }
 0x2e3   : > { %v3001_v17 = vadd.f32 %v3000_v40, %v10591_v61  ;;  %v3089_v30 = vpop.f32.mrf.mxu3  ;;  %v14295_v40 = vld [vmem:[#allocation53_spill] sm:$0xff] }
 0x2e4   : > { %v3170_v58 = vpop.f32.mrf.mxu0 }
 0x2e5   : > { %v3171_v36 = vadd.f32 %v3170_v58, %v3082_v5  ;;  %v3259_v60 = vpop.f32.mrf.mxu1  ;;  %v5113_v23 = vmul.f32 0.2, %v3001_v17  ;;  %vm4985_vm8 = vcmp.gt.f32.partialorder %v3001_v17, 0.0  ;;  %v14296_v5 = vld [vmem:[#allocation54_spill] sm:$0xff] }
 0x2e7   : > { %v11042_v9 = vadd.f32 %v3259_v60, %v3171_v36  ;;  %v5241_v60 = vsel %vm4985_vm8, %v3001_v17, %v5113_v23  ;;  %v14297_v36 = vld [vmem:[#allocation61_spill] sm:$0xff]  ;;  %v3090_v17 = vadd.f32 %v3089_v30, %v10645_v28 }
 0x2ea   : > { %v3002_v54 = vpop.f32.mrf.mxu2 }
 0x2eb   : > { %v3003_v4 = vadd.f32 %v3002_v54, %v10598_v12  ;;  %v3091_v6 = vpop.f32.mrf.mxu3  ;;  %v3087_v54 = vadd.f32 %v3086_v13, %v10645_v28 }
 0x2ec   : > { %v3173_v38 = vpop.f32.mrf.mxu0 }
 0x2ed   : > { %vm4989_vm9 = vcmp.gt.f32.partialorder %v3003_v4, 0.0  ;;  %v5117_v56 = vmul.f32 0.2, %v3003_v4  ;;  %v3174_v62 = vadd.f32 %v3173_v38, %v3085_v41  ;;  %v3262_v3 = vpop.f32.mrf.mxu1 }
 0x2ef   : > { %v11046_v61 = vadd.f32 %v3262_v3, %v3174_v62  ;;  %3320 = vmatmul.bf16.gmra.mxu2 %v14295_v40  ;;  %3488 = vmatmul.bf16.gmra.mxu0 %v14296_v5  ;;  %v5245_v58 = vsel %vm4989_vm9, %v3003_v4, %v5117_v56 }
 0x2f0   : > { %3409 = vmatmul.bf16.gmra.mxu3 %v14297_v36  ;;  %3577 = vmatmul.bf16.gmra.mxu1 %v10547_v1  ;;  %v11052_v12 = vpack.c.bf16 %v5245_v58, %v5241_v60 }
 0x2f2   : > { %14298 = vst [vmem:[#allocation126_spill] sm:$0xff] %v11052_v12  ;;  %v3005_v46 = vpop.f32.mrf.mxu2 }
 0x2f3   : > { %v3006_v41 = vadd.f32 %v3005_v46, %v10605_v27  ;;  %v3094_v38 = vpop.f32.mrf.mxu3  ;;  %v14299_v46 = vld [vmem:[#allocation57_spill] sm:$0xff] }
 0x2f4   : > { %v3175_v3 = vpop.f32.mrf.mxu0 }
 0x2f5   : > { %v3176_v62 = vadd.f32 %v3175_v3, %v3087_v54  ;;  %v3264_v2 = vpop.f32.mrf.mxu1  ;;  %v5121_v23 = vmul.f32 0.2, %v3006_v41  ;;  %vm4993_vm10 = vcmp.gt.f32.partialorder %v3006_v41, 0.0  ;;  %v14300_v54 = vld [vmem:[#allocation58_spill] sm:$0xff] }
 0x2f7   : > { %v11056_v33 = vadd.f32 %v3264_v2, %v3176_v62  ;;  %v5249_v2 = vsel %vm4993_vm10, %v3006_v41, %v5121_v23  ;;  %v14301_v62 = vld [vmem:[#allocation67_spill] sm:$0xff]  ;;  %v3095_v41 = vadd.f32 %v3094_v38, %v10645_v28 }
 0x2fa   : > { %v3007_v5 = vpop.f32.mrf.mxu2 }
 0x2fb   : > { %v3008_v4 = vadd.f32 %v3007_v5, %v10612_v34  ;;  %v3096_v56 = vpop.f32.mrf.mxu3  ;;  %v3092_v5 = vadd.f32 %v3091_v6, %v10645_v28 }
 0x2fc   : > { %v3178_v60 = vpop.f32.mrf.mxu0 }
 0x2fd   : > { %vm4997_vm11 = vcmp.gt.f32.partialorder %v3008_v4, 0.0  ;;  %v5125_v58 = vmul.f32 0.2, %v3008_v4  ;;  %v3179_v13 = vadd.f32 %v3178_v60, %v3090_v17  ;;  %v3267_v12 = vpop.f32.mrf.mxu1 }
 0x2ff   : > { %v11060_v27 = vadd.f32 %v3267_v12, %v3179_v13  ;;  %3325 = vmatmul.bf16.gmra.mxu2 %v14299_v46  ;;  %3493 = vmatmul.bf16.gmra.mxu0 %v14300_v54  ;;  %v5253_v3 = vsel %vm4997_vm11, %v3008_v4, %v5125_v58 }
 0x300   : > { %3414 = vmatmul.bf16.gmra.mxu3 %v14301_v62  ;;  %3582 = vmatmul.bf16.gmra.mxu1 %v10561_v47  ;;  %v11066_v34 = vpack.c.bf16 %v5253_v3, %v5249_v2 }
 0x302   : > { %14302 = vst [vmem:[#allocation127_spill] sm:$0xff] %v11066_v34  ;;  %v3010_v30 = vpop.f32.mrf.mxu2 }
 0x303   : > { %v3011_v17 = vadd.f32 %v3010_v30, %v10619_v29  ;;  %v3099_v60 = vpop.f32.mrf.mxu3  ;;  %v14303_v30 = vld [vmem:[#allocation62_spill] sm:$0xff] }
 0x304   : > { %v3180_v12 = vpop.f32.mrf.mxu0 }
 0x305   : > { %v3181_v13 = vadd.f32 %v3180_v12, %v3092_v5  ;;  %v3269_v1 = vpop.f32.mrf.mxu1  ;;  %v5129_v23 = vmul.f32 0.2, %v3011_v17  ;;  %vm5001_vm12 = vcmp.gt.f32.partialorder %v3011_v17, 0.0  ;;  %v14304_v5 = vld [vmem:[#allocation63_spill] sm:$0xff] }
 0x307   : > { %v11070_v36 = vadd.f32 %v3269_v1, %v3181_v13  ;;  %v5257_v1 = vsel %vm5001_vm12, %v3011_v17, %v5129_v23  ;;  %v14305_v13 = vld [vmem:[#allocation72_spill] sm:$0xff]  ;;  %v3100_v17 = vadd.f32 %v3099_v60, %v10645_v28 }
 0x30a   : > { %v3012_v54 = vpop.f32.mrf.mxu2 }
 0x30b   : > { %v3013_v4 = vadd.f32 %v3012_v54, %v10626_v15  ;;  %v3101_v58 = vpop.f32.mrf.mxu3  ;;  %v3097_v54 = vadd.f32 %v3096_v56, %v10645_v28 }
 0x30c   : > { %v3183_v2 = vpop.f32.mrf.mxu0 }
 0x30d   : > { %vm5005_vm13 = vcmp.gt.f32.partialorder %v3013_v4, 0.0  ;;  %v5133_v3 = vmul.f32 0.2, %v3013_v4  ;;  %v3184_v6 = vadd.f32 %v3183_v2, %v3095_v41  ;;  %v3272_v34 = vpop.f32.mrf.mxu1 }
 0x30f   : > { %v11074_v29 = vadd.f32 %v3272_v34, %v3184_v6  ;;  %3330 = vmatmul.bf16.gmra.mxu2 %v14303_v30  ;;  %3498 = vmatmul.bf16.gmra.mxu0 %v14304_v5  ;;  %v5261_v12 = vsel %vm5005_vm13, %v3013_v4, %v5133_v3 }
 0x310   : > { %3419 = vmatmul.bf16.gmra.mxu3 %v14305_v13  ;;  %3587 = vmatmul.bf16.gmra.mxu1 %v10575_v49  ;;  %v11080_v15 = vpack.c.bf16 %v5261_v12, %v5257_v1 }
 0x312   : > { %14306 = vst [vmem:[#allocation128_spill] sm:$0xff] %v11080_v15  ;;  %v3015_v38 = vpop.f32.mrf.mxu2 }
 0x313   : > { %v3016_v41 = vadd.f32 %v3015_v38, %v10633_v10  ;;  %v3104_v2 = vpop.f32.mrf.mxu3  ;;  %v14307_v38 = vld [vmem:[#allocation68_spill] sm:$0xff] }
 0x314   : > { %v3185_v34 = vpop.f32.mrf.mxu0 }
 0x315   : > { %v3186_v6 = vadd.f32 %v3185_v34, %v3097_v54  ;;  %v3274_v47 = vpop.f32.mrf.mxu1  ;;  %v5137_v23 = vmul.f32 0.2, %v3016_v41  ;;  %vm5009_vm14 = vcmp.gt.f32.partialorder %v3016_v41, 0.0  ;;  %v14308_v54 = vld [vmem:[#allocation69_spill] sm:$0xff] }
 0x317   : > { %v11084_v62 = vadd.f32 %v3274_v47, %v3186_v6  ;;  %v5265_v47 = vsel %vm5009_vm14, %v3016_v41, %v5137_v23  ;;  %v14309_v6 = vld [vmem:[#allocation76_spill] sm:$0xff]  ;;  %v3105_v23 = vadd.f32 %v3104_v2, %v10645_v28 }
 0x31a   : > { %v3017_v5 = vpop.f32.mrf.mxu2 }
 0x31b   : > { %v3018_v4 = vadd.f32 %v3017_v5, %v10647_v44  ;;  %v3106_v3 = vpop.f32.mrf.mxu3  ;;  %v3102_v5 = vadd.f32 %v3101_v58, %v10645_v28 }
 0x31c   : > { %v3188_v1 = vpop.f32.mrf.mxu0 }
 0x31d   : > { %vm5013_vm15 = vcmp.gt.f32.partialorder %v3018_v4, 0.0  ;;  %v5141_v12 = vmul.f32 0.2, %v3018_v4  ;;  %v3189_v56 = vadd.f32 %v3188_v1, %v3100_v17  ;;  %v3277_v15 = vpop.f32.mrf.mxu1 }
 0x31f   : > { %v11088_v10 = vadd.f32 %v3277_v15, %v3189_v56  ;;  %3335 = vmatmul.bf16.gmra.mxu2 %v14307_v38  ;;  %3503 = vmatmul.bf16.gmra.mxu0 %v14308_v54  ;;  %v5269_v34 = vsel %vm5013_vm15, %v3018_v4, %v5141_v12 }
 0x320   : > { %3424 = vmatmul.bf16.gmra.mxu3 %v14309_v6  ;;  %3592 = vmatmul.bf16.gmra.mxu1 %v10589_v26  ;;  %v11094_v44 = vpack.c.bf16 %v5269_v34, %v5265_v47 }
 0x322   : > { %14310 = vst [vmem:[#allocation129_spill] sm:$0xff] %v11094_v44  ;;  %v3296_v60 = vpop.f32.mrf.mxu2 }
 0x323   : > { %v3297_v17 = vadd.f32 %v3296_v60, %v10655_v7  ;;  %v3385_v1 = vpop.f32.mrf.mxu3  ;;  %v14311_v7 = vld [vmem:[#allocation73_spill] sm:$0xff]  ;;  %v14312_v60 = vld [vmem:[#allocation74_spill] sm:$0xff] }
 0x324   : > { %v3190_v15 = vpop.f32.mrf.mxu0 }
 0x325   : > { %v3386_v56 = vadd.f32 %v3385_v1, %v3297_v17  ;;  %v3191_v49 = vadd.f32 %v3190_v15, %v3102_v5  ;;  %v3279_v13 = vpop.f32.mrf.mxu1  ;;  %v14313_v5 = vld [vmem:[#allocation80_spill] sm:$0xff] }
 0x327   : > { %v11098_v38 = vadd.f32 %v3279_v13, %v3191_v49  ;;  %v3107_v13 = vadd.f32 %v3106_v3, %v10645_v28  ;;  %v14315_v28 = vld [vmem:[#allocation78_spill] sm:$0xff]  ;;  %v7758_v3 = vld [vmem:[%s13801_s1 + $0xe8] sm:$0xf] }
 0x32a   : > { %v3298_v41 = vpop.f32.mrf.mxu2 }
 0x32b   : > { %v3299_v4 = vadd.f32 %v3298_v41, %v10677_v42  ;;  %v3387_v12 = vpop.f32.mrf.mxu3 }
 0x32c   : > { %v3193_v47 = vpop.f32.mrf.mxu0 }
 0x32d   : > { %v3388_v34 = vadd.f32 %v3387_v12, %v3299_v4  ;;  %v3194_v44 = vadd.f32 %v3193_v47, %v3105_v23  ;;  %v3282_v26 = vpop.f32.mrf.mxu1 }
 0x32f   : > { %v11102_v58 = vadd.f32 %v3282_v26, %v3194_v44  ;;  %3340 = vmatmul.bf16.gmra.mxu2 %v14311_v7  ;;  %3508 = vmatmul.bf16.gmra.mxu0 %v14312_v60  ;;  %v14314_v60 = vld [vmem:[#allocation77_spill] sm:$0xff] }
 0x330   : > { %3429 = vmatmul.bf16.gmra.mxu3 %v14313_v5  ;;  %3597 = vmatmul.bf16.gmra.mxu1 %v10603_v52 }
 0x332   : > { %v3301_v49 = vpop.f32.mrf.mxu2 }
 0x333   : > { %v3302_v42 = vadd.f32 %v3301_v49, %v10685_v21  ;;  %v3390_v2 = vpop.f32.mrf.mxu3  ;;  %v14316_v21 = vld [vmem:[#allocation85_spill] sm:$0xff] }
 0x334   : > { %v3195_v17 = vpop.f32.mrf.mxu0 }
 0x335   : > { %v3391_v1 = vadd.f32 %v3390_v2, %v3302_v42  ;;  %v3196_v15 = vadd.f32 %v3195_v17, %v3107_v13  ;;  %v3284_v41 = vpop.f32.mrf.mxu1 }
 0x337   : > { %v11110_v26 = vadd.f32 %v3284_v41, %v3196_v15  ;;  %v7886_v15 = vld [vmem:[%s13801_s1 + $0x1e8] sm:$0xf]  ;;  %v9029_v41 = vld [vmem:[%s13801_s1 + $0x1f4] sm:$0xf0] }
 0x33a   : > { %v3303_v44 = vpop.f32.mrf.mxu2 }
 0x33b   : > { %v3304_v23 = vadd.f32 %v3303_v44, %v10695_v18  ;;  %v3392_v4 = vpop.f32.mrf.mxu3  ;;  %v8997_v18 = vld [vmem:[%s13801_s1 + $0xf4] sm:$0xf0]  ;;  %v7887_v44 = vor.u32 %v9029_v41, %v7886_v15 }
 0x33c   : > { %v3474_v12 = vpop.f32.mrf.mxu0  ;;  %v14318_v15 = vld [vmem:[#allocation81_spill] sm:$0xff] }
 0x33d   : > { %v3393_v47 = vadd.f32 %v3392_v4, %v3304_v23  ;;  %v3475_v5 = vadd.f32 %v3474_v12, %v3386_v56  ;;  %v3563_v52 = vpop.f32.mrf.mxu1  ;;  %3732 = vmatpush.bf16.msra.mxu3 %v7887_v44 }
 0x33f   : > { %v3564_v6 = vadd.f32 %v3563_v52, %v3475_v5  ;;  %3345 = vmatmul.bf16.gmra.mxu2 %v14314_v60  ;;  %3513 = vmatmul.bf16.gmra.mxu0 %v14315_v28  ;;  %v7759_v5 = vor.u32 %v8997_v18, %v7758_v3 }
 0x340   : > { %3434 = vmatmul.bf16.gmra.mxu3 %v14316_v21  ;;  %3602 = vmatmul.bf16.gmra.mxu1 %v10617_v31 }
 0x341   : > { %3643 = vmatpush.bf16.msra.mxu2 %v7759_v5  ;;  %v5018_v23 = vmul.f32 0.2, %v3564_v6  ;;  %vm4890_vm0 = vcmp.gt.f32.partialorder %v3564_v6, 0.0 }
 0x342   : > { %v3306_v49 = vpop.f32.mrf.mxu2 }
 0x343   : > { %v3307_v56 = vadd.f32 %v3306_v49, %v10705_v11  ;;  %v3395_v52 = vpop.f32.mrf.mxu3  ;;  %v5146_v3 = vsel %vm4890_vm0, %v3564_v6, %v5018_v23 }
 0x344   : > { %v3476_v13 = vpop.f32.mrf.mxu0 }
 0x345   : > { %v3396_v42 = vadd.f32 %v3395_v52, %v3307_v56  ;;  %v3477_v2 = vadd.f32 %v3476_v13, %v3388_v34  ;;  %v3565_v17 = vpop.f32.mrf.mxu1 }
 0x347   : > { %v3566_v4 = vadd.f32 %v3565_v17, %v3477_v2  ;;  %v14319_v2 = vld [vmem:[#allocation82_spill] sm:$0xff]  ;;  %v14320_v17 = vld [vmem:[#allocation91_spill] sm:$0xff] }
 0x349   : > { %vm4894_vm1 = vcmp.gt.f32.partialorder %v3566_v4, 0.0  ;;  %v5022_v11 = vmul.f32 0.2, %v3566_v4 }
 0x34a   : > { %v3308_v12 = vpop.f32.mrf.mxu2 }
 0x34b   : > { %v5150_v34 = vsel %vm4894_vm1, %v3566_v4, %v5022_v11  ;;  %v3309_v49 = vadd.f32 %v3308_v12, %v10738_v24  ;;  %v3397_v18 = vpop.f32.mrf.mxu3 }
 0x34c   : > { %v11131_v56 = vpack.c.bf16 %v5150_v34, %v5146_v3  ;;  %v3479_v52 = vpop.f32.mrf.mxu0 }
 0x34d   : > { %v3398_v5 = vadd.f32 %v3397_v18, %v3309_v49  ;;  %v3480_v13 = vadd.f32 %v3479_v52, %v3391_v1  ;;  %v3568_v31 = vpop.f32.mrf.mxu1 }
 0x34e   : > { %14317 = vst [vmem:[#allocation130_spill] sm:$0xff] %v11131_v56 }
 0x34f   : > { %v3569_v21 = vadd.f32 %v3568_v31, %v3480_v13  ;;  %3350 = vmatmul.bf16.gmra.mxu2 %v14318_v15  ;;  %3518 = vmatmul.bf16.gmra.mxu0 %v14319_v2 }
 0x350   : > { %3439 = vmatmul.bf16.gmra.mxu3 %v14320_v17  ;;  %3607 = vmatmul.bf16.gmra.mxu1 %v10631_v55 }
 0x351   : > { %v5026_v1 = vmul.f32 0.2, %v3569_v21  ;;  %vm4898_vm2 = vcmp.gt.f32.partialorder %v3569_v21, 0.0 }
 0x352   : > { %v3311_v6 = vpop.f32.mrf.mxu2 }
 0x353   : > { %v3312_v41 = vadd.f32 %v3311_v6, %v10769_v57  ;;  %v3400_v24 = vpop.f32.mrf.mxu3  ;;  %v5154_v18 = vsel %vm4898_vm2, %v3569_v21, %v5026_v1  ;;  %v9025_v1 = vld [vmem:[%s13801_s1 + $0x1d4] sm:$0xf0] }
 0x354   : > { %v3481_v44 = vpop.f32.mrf.mxu0 }
 0x355   : > { %v11138_v23 = vadd.f32 %v3400_v24, %v3312_v41  ;;  %v3482_v4 = vadd.f32 %v3481_v44, %v3393_v47  ;;  %v3570_v11 = vpop.f32.mrf.mxu1  ;;  %v14322_v24 = vld [vmem:[#allocation86_spill] sm:$0xff]  ;;  %v14323_v44 = vld [vmem:[#allocation87_spill] sm:$0xff] }
 0x357   : > { %v3571_v12 = vadd.f32 %v3570_v11, %v3482_v4  ;;  %v14324_v4 = vld [vmem:[#allocation95_spill] sm:$0xff]  ;;  %v8993_v11 = vld [vmem:[%s13801_s1 + $0xd4] sm:$0xf0] }
 0x359   : > { %vm4902_vm3 = vcmp.gt.f32.partialorder %v3571_v12, 0.0  ;;  %v5030_v31 = vmul.f32 0.2, %v3571_v12 }
 0x35a   : > { %v3313_v3 = vpop.f32.mrf.mxu2 }
 0x35b   : > { %v3314_v34 = vadd.f32 %v3313_v3, %v10811_v0  ;;  %v3402_v49 = vpop.f32.mrf.mxu3  ;;  %v5158_v52 = vsel %vm4902_vm3, %v3571_v12, %v5030_v31  ;;  %v7742_v0 = vld [vmem:[%s13801_s1 + $0xc8] sm:$0xf] }
 0x35c   : > { %v3484_v13 = vpop.f32.mrf.mxu0  ;;  %v11141_v56 = vpack.c.bf16 %v5158_v52, %v5154_v18  ;;  %v7743_v3 = vor.u32 %v8993_v11, %v7742_v0 }
 0x35d   : > { %v11143_v57 = vadd.f32 %v3402_v49, %v3314_v34  ;;  %v3485_v6 = vadd.f32 %v3484_v13, %v3396_v42  ;;  %v3573_v41 = vpop.f32.mrf.mxu1  ;;  %v7870_v42 = vld [vmem:[%s13801_s1 + $0x1c8] sm:$0xf] }
 0x35e   : > { %14321 = vst [vmem:[#allocation91_spill] sm:$0xff] %v11141_v56  ;;  %v7871_v34 = vor.u32 %v9025_v1, %v7870_v42  ;;  %3644 = vmatpush.bf16.msra.mxu2 %v7743_v3  ;;  %v8985_v3 = vld [vmem:[%s13801_s1 + $0x94] sm:$0xf0] }
 0x35f   : > { %v3574_v47 = vadd.f32 %v3573_v41, %v3485_v6  ;;  %3355 = vmatmul.bf16.gmra.mxu2 %v14322_v24  ;;  %3523 = vmatmul.bf16.gmra.mxu0 %v14323_v44  ;;  %v7726_v6 = vld [vmem:[%s13801_s1 + $0xa8] sm:$0xf]  ;;  %v8989_v41 = vld [vmem:[%s13801_s1 + $0xb4] sm:$0xf0] }
 0x360   : > { %3444 = vmatmul.bf16.gmra.mxu3 %v14324_v4  ;;  %3612 = vmatmul.bf16.gmra.mxu1 %v10653_v8  ;;  %v7727_v11 = vor.u32 %v8989_v41, %v7726_v6  ;;  %v9017_v6 = vld [vmem:[%s13801_s1 + $0x194] sm:$0xf0] }
 0x361   : > { %3733 = vmatpush.bf16.msra.mxu3 %v7871_v34  ;;  %v5034_v0 = vmul.f32 0.2, %v3574_v47  ;;  %vm4906_vm4 = vcmp.gt.f32.partialorder %v3574_v47, 0.0  ;;  %v7838_v34 = vld [vmem:[%s13801_s1 + $0x188] sm:$0xf] }
 0x362   : > { %v3316_v21 = vpop.f32.mrf.mxu2  ;;  %3645 = vmatpush.bf16.msra.mxu2 %v7727_v11 }
 0x363   : > { %v3317_v12 = vadd.f32 %v3316_v21, %v10847_v59  ;;  %v3405_v31 = vpop.f32.mrf.mxu3  ;;  %v7854_v59 = vld [vmem:[%s13801_s1 + $0x1a8] sm:$0xf]  ;;  %v5162_v41 = vsel %vm4906_vm4, %v3574_v47, %v5034_v0  ;;  %v8981_v47 = vld [vmem:[%s13801_s1 + $0x74] sm:$0xf0] }
 0x364   : > { %v3486_v49 = vpop.f32.mrf.mxu0  ;;  %v7822_v0 = vld [vmem:[%s13801_s1 + $0x168] sm:$0xf] }
 0x365   : > { %v11162_v18 = vadd.f32 %v3405_v31, %v3317_v12  ;;  %v3487_v52 = vadd.f32 %v3486_v49, %v3398_v5  ;;  %v3575_v13 = vpop.f32.mrf.mxu1  ;;  %v9021_v5 = vld [vmem:[%s13801_s1 + $0x1b4] sm:$0xf0]  ;;  %v7710_v31 = vld [vmem:[%s13801_s1 + $0x88] sm:$0xf] }
 0x366   : > { %v7855_v42 = vor.u32 %v9021_v5, %v7854_v59  ;;  %v7839_v5 = vor.u32 %v9017_v6, %v7838_v34 }
 0x367   : > { %v3576_v21 = vadd.f32 %v3575_v13, %v3487_v52  ;;  %v7711_v13 = vor.u32 %v8985_v3, %v7710_v31  ;;  %v9013_v31 = vld [vmem:[%s13801_s1 + $0x174] sm:$0xf0]  ;;  %v14328_v3 = vld [vmem:[#allocation99_spill] sm:$0xff] }
 0x368   : > { %3734 = vmatpush.bf16.msra.mxu3 %v7855_v42  ;;  %v7823_v34 = vor.u32 %v9013_v31, %v7822_v0  ;;  %v7790_v31 = vld [vmem:[%s13801_s1 + $0x128] sm:$0xf] }
 0x369   : > { %vm4910_vm5 = vcmp.gt.f32.partialorder %v3576_v21, 0.0  ;;  %v5038_v1 = vmul.f32 0.2, %v3576_v21  ;;  %3646 = vmatpush.bf16.msra.mxu2 %v7711_v13 }
 0x36a   : > { %v3318_v12 = vpop.f32.mrf.mxu2 }
 0x36b   : > { %v3319_v49 = vadd.f32 %v3318_v12, %v10884_v22  ;;  %v3407_v52 = vpop.f32.mrf.mxu3  ;;  %v5166_v59 = vsel %vm4910_vm5, %v3576_v21, %v5038_v1  ;;  %v7694_v22 = vld [vmem:[%s13801_s1 + $0x68] sm:$0xf]  ;;  %v14327_v12 = vld [vmem:[#allocation93_spill] sm:$0xff] }
 0x36c   : > { %v3489_v11 = vpop.f32.mrf.mxu0  ;;  %v11189_v42 = vpack.c.bf16 %v5166_v59, %v5162_v41  ;;  %3735 = vmatpush.bf16.msra.mxu3 %v7839_v5  ;;  %v14326_v1 = vld [vmem:[#allocation92_spill] sm:$0xff]  ;;  %v9009_v59 = vld [vmem:[%s13801_s1 + $0x154] sm:$0xf0] }
 0x36d   : > { %v11191_v56 = vadd.f32 %v3407_v52, %v3319_v49  ;;  %v3490_v8 = vadd.f32 %v3489_v11, %v11138_v23  ;;  %v3578_v4 = vpop.f32.mrf.mxu1  ;;  %v7695_v23 = vor.u32 %v8981_v47, %v7694_v22  ;;  %v7806_v52 = vld [vmem:[%s13801_s1 + $0x148] sm:$0xf] }
 0x36e   : > { %14325 = vst [vmem:[#allocation131_spill] sm:$0xff] %v11189_v42  ;;  %v7807_v5 = vor.u32 %v9009_v59, %v7806_v52  ;;  %v7774_v59 = vld [vmem:[%s13801_s1 + $0x108] sm:$0xf] }
 0x36f   : > { %v3579_v21 = vadd.f32 %v3578_v4, %v3490_v8  ;;  %3360 = vmatmul.bf16.gmra.mxu2 %v14326_v1  ;;  %3528 = vmatmul.bf16.gmra.mxu0 %v14327_v12  ;;  %v7678_v8 = vld [vmem:[%s13801_s1 + $0x48] sm:$0xf]  ;;  %v8977_v4 = vld [vmem:[%s13801_s1 + $0x54] sm:$0xf0] }
 0x370   : > { %3449 = vmatmul.bf16.gmra.mxu3 %v14328_v3  ;;  %3617 = vmatmul.bf16.gmra.mxu1 %v10683_v43  ;;  %v7679_v41 = vor.u32 %v8977_v4, %v7678_v8 }
 0x371   : > { %3647 = vmatpush.bf16.msra.mxu2 %v7695_v23  ;;  %3736 = vmatpush.bf16.msra.mxu3 %v7823_v34  ;;  %v7662_v23 = vld [vmem:[%s13801_s1 + $0x28] sm:$0xf]  ;;  %v5042_v34 = vmul.f32 0.2, %v3579_v21  ;;  %vm4914_vm6 = vcmp.gt.f32.partialorder %v3579_v21, 0.0 }
 0x372   : > { %v3321_v49 = vpop.f32.mrf.mxu2 }
 0x373   : > { %v3322_v13 = vadd.f32 %v3321_v49, %v10920_v20  ;;  %v3410_v6 = vpop.f32.mrf.mxu3  ;;  %v8973_v20 = vld [vmem:[%s13801_s1 + $0x34] sm:$0xf0] }
 0x374   : > { %v3491_v11 = vpop.f32.mrf.mxu0  ;;  %v7663_v8 = vor.u32 %v8973_v20, %v7662_v23  ;;  %v5170_v23 = vsel %vm4914_vm6, %v3579_v21, %v5042_v34  ;;  %v9061_v21 = vld [vmem:[%s13801_s1 + $0x2f4] sm:$0xf0]  ;;  %v8142_v34 = vld [vmem:[%s13801_s1 + $0x3e8] sm:$0xf] }
 0x375   : > { %v11223_v22 = vadd.f32 %v3410_v6, %v3322_v13  ;;  %v3492_v47 = vadd.f32 %v3491_v11, %v11143_v57  ;;  %v3580_v0 = vpop.f32.mrf.mxu1  ;;  %3648 = vmatpush.bf16.msra.mxu2 %v7679_v41  ;;  %3737 = vmatpush.bf16.msra.mxu3 %v7807_v5  ;;  %v9005_v57 = vld [vmem:[%s13801_s1 + $0x134] sm:$0xf0]  ;;  %v7646_v6 = vld [vmem:[%s13801_s1 + $0x8] sm:$0xf] }
 0x376   : > { %v7791_v4 = vor.u32 %v9005_v57, %v7790_v31  ;;  %v8969_v41 = vld [vmem:[%s13801_s1 + $0x14] sm:$0xf0] }
 0x377   : > { %v3581_v49 = vadd.f32 %v3580_v0, %v3492_v47  ;;  %v7647_v47 = vor.u32 %v8969_v41, %v7646_v6  ;;  %v9001_v0 = vld [vmem:[%s13801_s1 + $0x114] sm:$0xf0] }
 0x378   : > { %v9093_v6 = vld [vmem:[%s13801_s1 + $0x3f4] sm:$0xf0] }
 0x379   : > { %vm4918_vm7 = vcmp.gt.f32.partialorder %v3581_v49, 0.0  ;;  %v5046_v52 = vmul.f32 0.2, %v3581_v49  ;;  %3649 = vmatpush.bf16.msra.mxu2 %v7663_v8  ;;  %3738 = vmatpush.bf16.msra.mxu3 %v7791_v4  ;;  %v7775_v8 = vor.u32 %v9001_v0, %v7774_v59  ;;  %v14332_v41 = vld [vmem:[#allocation102_spill] sm:$0xff]  ;;  %v14333_v59 = vld [vmem:[#allocation113_spill] sm:$0xff] }
 0x37a   : > { %v3323_v13 = vpop.f32.mrf.mxu2 }
 0x37b   : > { %v3324_v11 = vadd.f32 %v3323_v13, %v10955_v39  ;;  %v3412_v5 = vpop.f32.mrf.mxu3  ;;  %v5174_v20 = vsel %vm4918_vm7, %v3581_v49, %v5046_v52  ;;  %v8014_v39 = vld [vmem:[%s13801_s1 + $0x2e8] sm:$0xf]  ;;  %v14331_v13 = vld [vmem:[#allocation97_spill] sm:$0xff] }
 0x37c   : > { %v3494_v31 = vpop.f32.mrf.mxu0  ;;  %v11251_v57 = vpack.c.bf16 %v5174_v20, %v5170_v23  ;;  %v14330_v52 = vld [vmem:[#allocation96_spill] sm:$0xff] }
 0x37d   : > { %v11253_v4 = vadd.f32 %v3412_v5, %v3324_v11  ;;  %v3495_v42 = vadd.f32 %v3494_v31, %v11162_v18  ;;  %v3583_v43 = vpop.f32.mrf.mxu1  ;;  %3650 = vmatpush.bf16.msra.mxu2 %v7647_v47  ;;  %3739 = vmatpush.bf16.msra.mxu3 %v7775_v8  ;;  %v8015_v18 = vor.u32 %v9061_v21, %v8014_v39  ;;  %v8126_v47 = vld [vmem:[%s13801_s1 + $0x3c8] sm:$0xf]  ;;  %v9089_v31 = vld [vmem:[%s13801_s1 + $0x3d4] sm:$0xf0] }
 0x37e   : > { %14329 = vst [vmem:[#allocation99_spill] sm:$0xff] %v11251_v57  ;;  %v8143_v11 = vor.u32 %v9093_v6, %v8142_v34  ;;  %v8127_v39 = vor.u32 %v9089_v31, %v8126_v47  ;;  %v7982_v6 = vld [vmem:[%s13801_s1 + $0x2a8] sm:$0xf]  ;;  %v9049_v31 = vld [vmem:[%s13801_s1 + $0x294] sm:$0xf0] }
 0x37f   : > { %v3584_v49 = vadd.f32 %v3583_v43, %v3495_v42  ;;  %3365 = vmatmul.bf16.gmra.mxu2 %v14330_v52  ;;  %3533 = vmatmul.bf16.gmra.mxu0 %v14331_v13  ;;  %v7998_v43 = vld [vmem:[%s13801_s1 + $0x2c8] sm:$0xf]  ;;  %v9057_v42 = vld [vmem:[%s13801_s1 + $0x2d4] sm:$0xf0] }
 0x380   : > { %3454 = vmatmul.bf16.gmra.mxu3 %v14332_v41  ;;  %3622 = vmatmul.bf16.gmra.mxu1 %v14333_v59  ;;  %v7999_v20 = vor.u32 %v9057_v42, %v7998_v43 }
 0x381   : > { %3821 = vmatpush.bf16.msra.mxu0 %v8015_v18  ;;  %3910 = vmatpush.bf16.msra.mxu1 %v8143_v11  ;;  %v8110_v11 = vld [vmem:[%s13801_s1 + $0x3a8] sm:$0xf]  ;;  %vm4922_vm8 = vcmp.gt.f32.partialorder %v3584_v49, 0.0 }
 0x382   : > { %v3326_v5 = vpop.f32.mrf.mxu2 }
 0x383   : > { %v3327_v0 = vadd.f32 %v3326_v5, %v10975_v63  ;;  %v3415_v23 = vpop.f32.mrf.mxu3  ;;  %v9053_v63 = vld [vmem:[%s13801_s1 + $0x2b4] sm:$0xf0]  ;;  %v5050_v5 = vmul.f32 0.2, %v3584_v49 }
 0x384   : > { %v3496_v8 = vpop.f32.mrf.mxu0  ;;  %v7983_v42 = vor.u32 %v9053_v63, %v7982_v6  ;;  %v9081_v6 = vld [vmem:[%s13801_s1 + $0x394] sm:$0xf0] }
 0x385   : > { %v11285_v21 = vadd.f32 %v3415_v23, %v3327_v0  ;;  %v3497_v34 = vadd.f32 %v3496_v8, %v11191_v56  ;;  %v3585_v18 = vpop.f32.mrf.mxu1  ;;  %3822 = vmatpush.bf16.msra.mxu0 %v7999_v20  ;;  %3911 = vmatpush.bf16.msra.mxu1 %v8127_v39  ;;  %v9085_v56 = vld [vmem:[%s13801_s1 + $0x3b4] sm:$0xf0]  ;;  %v7966_v20 = vld [vmem:[%s13801_s1 + $0x288] sm:$0xf]  ;;  %v5178_v63 = vsel %vm4922_vm8, %v3584_v49, %v5050_v5 }
 0x386   : > { %v8111_v47 = vor.u32 %v9085_v56, %v8110_v11  ;;  %v8094_v8 = vld [vmem:[%s13801_s1 + $0x388] sm:$0xf]  ;;  %v9045_v49 = vld [vmem:[%s13801_s1 + $0x274] sm:$0xf0] }
 0x387   : > { %v3586_v43 = vadd.f32 %v3585_v18, %v3497_v34  ;;  %v7967_v18 = vor.u32 %v9049_v31, %v7966_v20  ;;  %v8095_v56 = vor.u32 %v9081_v6, %v8094_v8  ;;  %v8078_v5 = vld [vmem:[%s13801_s1 + $0x368] sm:$0xf]  ;;  %v9077_v20 = vld [vmem:[%s13801_s1 + $0x374] sm:$0xf0] }
 0x388   : > { %v14337_v31 = vld [vmem:[#allocation105_spill] sm:$0xff]  ;;  %v14338_v8 = vld [vmem:[#allocation115_spill] sm:$0xff] }
 0x389   : > { %vm4926_vm9 = vcmp.gt.f32.partialorder %v3586_v43, 0.0  ;;  %v5054_v0 = vmul.f32 0.2, %v3586_v43  ;;  %3823 = vmatpush.bf16.msra.mxu0 %v7983_v42  ;;  %3912 = vmatpush.bf16.msra.mxu1 %v8111_v47 }
 0x38a   : > { %v3328_v23 = vpop.f32.mrf.mxu2 }
 0x38b   : > { %v3329_v39 = vadd.f32 %v3328_v23, %v10986_v32  ;;  %v3417_v34 = vpop.f32.mrf.mxu3  ;;  %v5182_v11 = vsel %vm4926_vm9, %v3586_v43, %v5054_v0  ;;  %v7950_v32 = vld [vmem:[%s13801_s1 + $0x268] sm:$0xf]  ;;  %v14336_v23 = vld [vmem:[#allocation101_spill] sm:$0xff] }
 0x38c   : > { %v3499_v42 = vpop.f32.mrf.mxu0  ;;  %v11313_v47 = vpack.c.bf16 %v5182_v11, %v5178_v63  ;;  %v14335_v0 = vld [vmem:[#allocation100_spill] sm:$0xff] }
 0x38d   : > { %v11315_v57 = vadd.f32 %v3417_v34, %v3329_v39  ;;  %v3500_v59 = vadd.f32 %v3499_v42, %v11223_v22  ;;  %v3588_v41 = vpop.f32.mrf.mxu1  ;;  %3824 = vmatpush.bf16.msra.mxu0 %v7967_v18  ;;  %3913 = vmatpush.bf16.msra.mxu1 %v8095_v56  ;;  %v7951_v22 = vor.u32 %v9045_v49, %v7950_v32  ;;  %v8062_v18 = vld [vmem:[%s13801_s1 + $0x348] sm:$0xf]  ;;  %v9073_v42 = vld [vmem:[%s13801_s1 + $0x354] sm:$0xf0] }
 0x38e   : > { %14334 = vst [vmem:[#allocation132_spill] sm:$0xff] %v11313_v47  ;;  %v8079_v39 = vor.u32 %v9077_v20, %v8078_v5  ;;  %v8063_v32 = vor.u32 %v9073_v42, %v8062_v18  ;;  %v7918_v20 = vld [vmem:[%s13801_s1 + $0x228] sm:$0xf]  ;;  %v9033_v42 = vld [vmem:[%s13801_s1 + $0x214] sm:$0xf0] }
 0x38f   : > { %v3589_v43 = vadd.f32 %v3588_v41, %v3500_v59  ;;  %3370 = vmatmul.bf16.gmra.mxu2 %v14335_v0  ;;  %3538 = vmatmul.bf16.gmra.mxu0 %v14336_v23  ;;  %v7934_v41 = vld [vmem:[%s13801_s1 + $0x248] sm:$0xf]  ;;  %v9041_v59 = vld [vmem:[%s13801_s1 + $0x254] sm:$0xf0] }
 0x390   : > { %3459 = vmatmul.bf16.gmra.mxu3 %v14337_v31  ;;  %3627 = vmatmul.bf16.gmra.mxu1 %v14338_v8  ;;  %v7935_v11 = vor.u32 %v9041_v59, %v7934_v41 }
 0x391   : > { %3825 = vmatpush.bf16.msra.mxu0 %v7951_v22  ;;  %3914 = vmatpush.bf16.msra.mxu1 %v8079_v39  ;;  %v8046_v39 = vld [vmem:[%s13801_s1 + $0x328] sm:$0xf]  ;;  %vm4930_vm10 = vcmp.gt.f32.partialorder %v3589_v43, 0.0 }
 0x392   : > { %v3331_v34 = vpop.f32.mrf.mxu2 }
 0x393   : > { %v3332_v6 = vadd.f32 %v3331_v34, %v10990_v53  ;;  %v3420_v63 = vpop.f32.mrf.mxu3  ;;  %v9037_v53 = vld [vmem:[%s13801_s1 + $0x234] sm:$0xf0]  ;;  %v5058_v34 = vmul.f32 0.2, %v3589_v43 }
 0x394   : > { %v3501_v56 = vpop.f32.mrf.mxu0  ;;  %v7919_v59 = vor.u32 %v9037_v53, %v7918_v20  ;;  %v9065_v20 = vld [vmem:[%s13801_s1 + $0x314] sm:$0xf0] }
 0x395   : > { %v3421_v49 = vadd.f32 %v3420_v63, %v3332_v6  ;;  %v3502_v5 = vadd.f32 %v3501_v56, %v11253_v4  ;;  %v3590_v22 = vpop.f32.mrf.mxu1  ;;  %3826 = vmatpush.bf16.msra.mxu0 %v7935_v11  ;;  %3915 = vmatpush.bf16.msra.mxu1 %v8063_v32  ;;  %v9069_v4 = vld [vmem:[%s13801_s1 + $0x334] sm:$0xf0]  ;;  %v7902_v11 = vld [vmem:[%s13801_s1 + $0x208] sm:$0xf]  ;;  %v5186_v53 = vsel %vm4930_vm10, %v3589_v43, %v5058_v34 }
 0x396   : > { %v8047_v18 = vor.u32 %v9069_v4, %v8046_v39  ;;  %v8030_v56 = vld [vmem:[%s13801_s1 + $0x308] sm:$0xf] }
 0x397   : > { %v3591_v41 = vadd.f32 %v3590_v22, %v3502_v5  ;;  %v7903_v22 = vor.u32 %v9033_v42, %v7902_v11  ;;  %v8031_v4 = vor.u32 %v9065_v20, %v8030_v56  ;;  %v14342_v11 = vld [vmem:[#allocation117_spill] sm:$0xff] }
 0x398   : > { %v14343_v42 = vld [vmem:[#allocation5_spill] sm:$0xff] }
 0x399   : > { %vm4934_vm11 = vcmp.gt.f32.partialorder %v3591_v41, 0.0  ;;  %v5062_v6 = vmul.f32 0.2, %v3591_v41  ;;  %3827 = vmatpush.bf16.msra.mxu0 %v7919_v59  ;;  %3916 = vmatpush.bf16.msra.mxu1 %v8047_v18 }
 0x39a   : > { %v3333_v63 = vpop.f32.mrf.mxu2 }
 0x39b   : > { %v3334_v32 = vadd.f32 %v3333_v63, %v11000_v45  ;;  %v3422_v5 = vpop.f32.mrf.mxu3  ;;  %v5190_v39 = vsel %vm4934_vm11, %v3591_v41, %v5062_v6  ;;  %v14340_v45 = vld [vmem:[#allocation104_spill] sm:$0xff]  ;;  %v14341_v63 = vld [vmem:[#allocation3_spill] sm:$0xff] }
 0x39c   : > { %v3504_v59 = vpop.f32.mrf.mxu0  ;;  %v11373_v18 = vpack.c.bf16 %v5190_v39, %v5186_v53 }
 0x39d   : > { %v3423_v47 = vadd.f32 %v3422_v5, %v3334_v32  ;;  %v3505_v8 = vadd.f32 %v3504_v59, %v11285_v21  ;;  %v3593_v31 = vpop.f32.mrf.mxu1  ;;  %3828 = vmatpush.bf16.msra.mxu0 %v7903_v22  ;;  %3917 = vmatpush.bf16.msra.mxu1 %v8031_v4 }
 0x39e   : > { %14339 = vst [vmem:[#allocation133_spill] sm:$0xff] %v11373_v18 }
 0x39f   : > { %v3594_v23 = vadd.f32 %v3593_v31, %v3505_v8  ;;  %3543 = vmatmul.bf16.gmra.mxu0 %v14340_v45  ;;  %3651 = vmatmul.bf16.vlgmr.msra.gmra.mxu2 %v14341_v63 }
 0x3a0   : > { %3632 = vmatmul.bf16.gmra.mxu1 %v14342_v11  ;;  %3740 = vmatmul.bf16.vlgmr.msra.gmra.mxu3 %v14343_v42 }
 0x3a1   : > { %v5066_v5 = vmul.f32 0.2, %v3594_v23  ;;  %vm4938_vm12 = vcmp.gt.f32.partialorder %v3594_v23, 0.0 }
 0x3a2   : > { %v3336_v43 = vpop.f32.mrf.mxu2 }
 0x3a3   : > { %v3337_v34 = vadd.f32 %v3336_v43, %v11004_v16  ;;  %v3425_v41 = vpop.f32.mrf.mxu3  ;;  %v5194_v39 = vsel %vm4938_vm12, %v3594_v23, %v5066_v5 }
 0x3a4   : > { %v3506_v6 = vpop.f32.mrf.mxu0 }
 0x3a5   : > { %v3426_v56 = vadd.f32 %v3425_v41, %v3337_v34  ;;  %v3507_v21 = vadd.f32 %v3506_v6, %v11315_v57  ;;  %v3595_v32 = vpop.f32.mrf.mxu1  ;;  %v14345_v57 = vld [vmem:[#allocation107_spill] sm:$0xff] }
 0x3a6   : > { %v14346_v6 = vld [vmem:[#allocation7_spill] sm:$0xff] }
 0x3a7   : > { %v3596_v22 = vadd.f32 %v3595_v32, %v3507_v21  ;;  %v14347_v21 = vld [vmem:[#allocation119_spill] sm:$0xff]  ;;  %v14348_v32 = vld [vmem:[#allocation9_spill] sm:$0xff] }
 0x3a9   : > { %vm4942_vm13 = vcmp.gt.f32.partialorder %v3596_v22, 0.0  ;;  %v5070_v31 = vmul.f32 0.2, %v3596_v22 }
 0x3aa   : > { %v3338_v8 = vpop.f32.mrf.mxu2 }
 0x3ab   : > { %v3339_v20 = vadd.f32 %v3338_v8, %v11014_v48  ;;  %v3427_v53 = vpop.f32.mrf.mxu3  ;;  %v5198_v59 = vsel %vm4942_vm13, %v3596_v22, %v5070_v31 }
 0x3ac   : > { %v3509_v4 = vpop.f32.mrf.mxu0  ;;  %v11383_v18 = vpack.c.bf16 %v5198_v59, %v5194_v39 }
 0x3ad   : > { %v3428_v16 = vadd.f32 %v3427_v53, %v3339_v20  ;;  %v3510_v43 = vadd.f32 %v3509_v4, %v3421_v49  ;;  %v3598_v34 = vpop.f32.mrf.mxu1 }
 0x3ae   : > { %14344 = vst [vmem:[#allocation3_spill] sm:$0xff] %v11383_v18 }
 0x3af   : > { %v3599_v41 = vadd.f32 %v3598_v34, %v3510_v43  ;;  %3548 = vmatmul.bf16.gmra.mxu0 %v14345_v57  ;;  %3656 = vmatmul.bf16.gmra.mxu2 %v14346_v6 }
 0x3b0   : > { %3637 = vmatmul.bf16.gmra.mxu1 %v14347_v21  ;;  %3745 = vmatmul.bf16.gmra.mxu3 %v14348_v32 }
 0x3b1   : > { %v5074_v20 = vmul.f32 0.2, %v3599_v41  ;;  %vm4946_vm14 = vcmp.gt.f32.partialorder %v3599_v41, 0.0 }
 0x3b2   : > { %v3341_v42 = vpop.f32.mrf.mxu2 }
 0x3b3   : > { %v3342_v48 = vadd.f32 %v3341_v42, %v11018_v37  ;;  %v3430_v23 = vpop.f32.mrf.mxu3  ;;  %v5202_v43 = vsel %vm4946_vm14, %v3599_v41, %v5074_v20 }
 0x3b4   : > { %v3511_v5 = vpop.f32.mrf.mxu0 }
 0x3b5   : > { %v3431_v22 = vadd.f32 %v3430_v23, %v3342_v48  ;;  %v3512_v31 = vadd.f32 %v3511_v5, %v3423_v47  ;;  %v3600_v8 = vpop.f32.mrf.mxu1  ;;  %v14350_v47 = vld [vmem:[#allocation11_spill] sm:$0xff]  ;;  %v14351_v23 = vld [vmem:[#allocation32_spill] sm:$0xff]  ;;  %v14352_v5 = vld [vmem:[#allocation13_spill] sm:$0xff] }
 0x3b7   : > { %v3601_v49 = vadd.f32 %v3600_v8, %v3512_v31 }
 0x3b9   : > { %vm4950_vm15 = vcmp.gt.f32.partialorder %v3601_v49, 0.0  ;;  %v5078_v53 = vmul.f32 0.2, %v3601_v49 }
 0x3ba   : > { %v3343_v39 = vpop.f32.mrf.mxu2 }
 0x3bb   : > { %v3344_v59 = vadd.f32 %v3343_v39, %v11028_v50  ;;  %v3432_v4 = vpop.f32.mrf.mxu3  ;;  %v5206_v34 = vsel %vm4950_vm15, %v3601_v49, %v5078_v53 }
 0x3bc   : > { %v3514_v18 = vpop.f32.mrf.mxu0  ;;  %v11391_v32 = vpack.c.bf16 %v5206_v34, %v5202_v43 }
 0x3bd   : > { %v3433_v37 = vadd.f32 %v3432_v4, %v3344_v59  ;;  %v3515_v42 = vadd.f32 %v3514_v18, %v3426_v56  ;;  %v3603_v21 = vpop.f32.mrf.mxu1 }
 0x3be   : > { %14349 = vst [vmem:[#allocation7_spill] sm:$0xff] %v11391_v32 }
 0x3bf   : > { %v3604_v48 = vadd.f32 %v3603_v21, %v3515_v42  ;;  %3661 = vmatmul.bf16.gmra.mxu2 %v14350_v47  ;;  %3829 = vmatmul.bf16.vlgmr.msra.gmra.mxu0 %v14351_v23  ;;  %v14411_v23 = vld [vmem:[#allocation50_spill] sm:$0xff] }
 0x3c0   : > { %3750 = vmatmul.bf16.gmra.mxu3 %v14352_v5  ;;  %3918 = vmatmul.bf16.vlgmr.msra.gmra.mxu1 %v14274_v25  ;;  %v14403_v5 = vld [vmem:[#allocation40_spill] sm:$0xff] }
 0x3c1   : > { %v5082_v39 = vmul.f32 0.2, %v3604_v48  ;;  %vm4954_vm0 = vcmp.gt.f32.partialorder %v3604_v48, 0.0 }
 0x3c2   : > { %v3346_v31 = vpop.f32.mrf.mxu2 }
 0x3c3   : > { %v3347_v50 = vadd.f32 %v3346_v31, %v11032_v51  ;;  %v3435_v41 = vpop.f32.mrf.mxu3  ;;  %v5210_v43 = vsel %vm4954_vm0, %v3604_v48, %v5082_v39 }
 0x3c4   : > { %v3516_v8 = vpop.f32.mrf.mxu0 }
 0x3c5   : > { %v3436_v20 = vadd.f32 %v3435_v41, %v3347_v50  ;;  %v3517_v49 = vadd.f32 %v3516_v8, %v3428_v16  ;;  %v3605_v53 = vpop.f32.mrf.mxu1  ;;  %v14354_v16 = vld [vmem:[#allocation15_spill] sm:$0xff]  ;;  %v14355_v41 = vld [vmem:[#allocation36_spill] sm:$0xff]  ;;  %v14356_v8 = vld [vmem:[#allocation17_spill] sm:$0xff] }
 0x3c7   : > { %v3606_v18 = vadd.f32 %v3605_v53, %v3517_v49  ;;  %v14357_v49 = vld [vmem:[#allocation38_spill] sm:$0xff] }
 0x3c9   : > { %vm4958_vm1 = vcmp.gt.f32.partialorder %v3606_v18, 0.0  ;;  %v5086_v56 = vmul.f32 0.2, %v3606_v18 }
 0x3ca   : > { %v3348_v21 = vpop.f32.mrf.mxu2 }
 0x3cb   : > { %v3349_v59 = vadd.f32 %v3348_v21, %v11042_v9  ;;  %v3437_v4 = vpop.f32.mrf.mxu3  ;;  %v5214_v34 = vsel %vm4958_vm1, %v3606_v18, %v5086_v56 }
 0x3cc   : > { %v3519_v42 = vpop.f32.mrf.mxu0  ;;  %v11399_v32 = vpack.c.bf16 %v5214_v34, %v5210_v43 }
 0x3cd   : > { %v3438_v51 = vadd.f32 %v3437_v4, %v3349_v59  ;;  %v3520_v31 = vadd.f32 %v3519_v42, %v3431_v22  ;;  %v3608_v25 = vpop.f32.mrf.mxu1 }
 0x3ce   : > { %14353 = vst [vmem:[#allocation11_spill] sm:$0xff] %v11399_v32 }
 0x3cf   : > { %v3609_v50 = vadd.f32 %v3608_v25, %v3520_v31  ;;  %3666 = vmatmul.bf16.gmra.mxu2 %v14354_v16  ;;  %3834 = vmatmul.bf16.gmra.mxu0 %v14355_v41  ;;  %v14405_v41 = vld [vmem:[#allocation98_spill] sm:$0xff] }
 0x3d0   : > { %3755 = vmatmul.bf16.gmra.mxu3 %v14356_v8  ;;  %3923 = vmatmul.bf16.gmra.mxu1 %v14357_v49 }
 0x3d1   : > { %v5090_v59 = vmul.f32 0.2, %v3609_v50  ;;  %vm4962_vm2 = vcmp.gt.f32.partialorder %v3609_v50, 0.0 }
 0x3d2   : > { %v3351_v53 = vpop.f32.mrf.mxu2 }
 0x3d3   : > { %v3352_v9 = vadd.f32 %v3351_v53, %v11046_v61  ;;  %v3440_v48 = vpop.f32.mrf.mxu3  ;;  %v5218_v42 = vsel %vm4962_vm2, %v3609_v50, %v5090_v59 }
 0x3d4   : > { %v3521_v39 = vpop.f32.mrf.mxu0 }
 0x3d5   : > { %v3441_v18 = vadd.f32 %v3440_v48, %v3352_v9  ;;  %v3522_v56 = vadd.f32 %v3521_v39, %v3433_v37  ;;  %v3610_v21 = vpop.f32.mrf.mxu1  ;;  %v14359_v37 = vld [vmem:[#allocation19_spill] sm:$0xff]  ;;  %v14361_v39 = vld [vmem:[#allocation21_spill] sm:$0xff] }
 0x3d6   : > { %v14360_v48 = vld [vmem:[#allocation39_spill] sm:$0xff] }
 0x3d7   : > { %v3611_v22 = vadd.f32 %v3610_v21, %v3522_v56 }
 0x3d9   : > { %vm4966_vm3 = vcmp.gt.f32.partialorder %v3611_v22, 0.0  ;;  %v5094_v25 = vmul.f32 0.2, %v3611_v22 }
 0x3da   : > { %v3353_v4 = vpop.f32.mrf.mxu2 }
 0x3db   : > { %v3354_v43 = vadd.f32 %v3353_v4, %v11056_v33  ;;  %v3442_v34 = vpop.f32.mrf.mxu3  ;;  %v5222_v31 = vsel %vm4966_vm3, %v3611_v22, %v5094_v25 }
 0x3dc   : > { %v3524_v32 = vpop.f32.mrf.mxu0  ;;  %v11407_v49 = vpack.c.bf16 %v5222_v31, %v5218_v42 }
 0x3dd   : > { %v3443_v61 = vadd.f32 %v3442_v34, %v3354_v43  ;;  %v3525_v53 = vadd.f32 %v3524_v32, %v3436_v20  ;;  %v3613_v8 = vpop.f32.mrf.mxu1 }
 0x3de   : > { %14358 = vst [vmem:[#allocation15_spill] sm:$0xff] %v11407_v49 }
 0x3df   : > { %v3614_v9 = vadd.f32 %v3613_v8, %v3525_v53  ;;  %3671 = vmatmul.bf16.gmra.mxu2 %v14359_v37  ;;  %3839 = vmatmul.bf16.gmra.mxu0 %v14360_v48  ;;  %v14402_v48 = vld [vmem:[#allocation94_spill] sm:$0xff] }
 0x3e0   : > { %3760 = vmatmul.bf16.gmra.mxu3 %v14361_v39  ;;  %3928 = vmatmul.bf16.gmra.mxu1 %v14283_v35  ;;  %v8430_v39 = vld [vmem:[%s13801_s1 + $0x628] sm:$0xf] }
 0x3e1   : > { %v5098_v4 = vmul.f32 0.2, %v3614_v9  ;;  %vm4970_vm4 = vcmp.gt.f32.partialorder %v3614_v9, 0.0 }
 0x3e2   : > { %v3356_v56 = vpop.f32.mrf.mxu2 }
 0x3e3   : > { %v3357_v33 = vadd.f32 %v3356_v56, %v11060_v27  ;;  %v3445_v50 = vpop.f32.mrf.mxu3  ;;  %v5226_v42 = vsel %vm4970_vm4, %v3614_v9, %v5098_v4 }
 0x3e4   : > { %v3526_v21 = vpop.f32.mrf.mxu0 }
 0x3e5   : > { %v3446_v59 = vadd.f32 %v3445_v50, %v3357_v33  ;;  %v3527_v22 = vadd.f32 %v3526_v21, %v3438_v51  ;;  %v3615_v25 = vpop.f32.mrf.mxu1  ;;  %v14363_v51 = vld [vmem:[#allocation23_spill] sm:$0xff]  ;;  %v14365_v21 = vld [vmem:[#allocation25_spill] sm:$0xff] }
 0x3e6   : > { %v14364_v50 = vld [vmem:[#allocation43_spill] sm:$0xff] }
 0x3e7   : > { %v3616_v32 = vadd.f32 %v3615_v25, %v3527_v22 }
 0x3e9   : > { %vm4974_vm5 = vcmp.gt.f32.partialorder %v3616_v32, 0.0  ;;  %v5102_v20 = vmul.f32 0.2, %v3616_v32 }
 0x3ea   : > { %v3358_v8 = vpop.f32.mrf.mxu2 }
 0x3eb   : > { %v3359_v43 = vadd.f32 %v3358_v8, %v11070_v36  ;;  %v3447_v34 = vpop.f32.mrf.mxu3  ;;  %v5230_v31 = vsel %vm4974_vm5, %v3616_v32, %v5102_v20 }
 0x3ec   : > { %v3529_v53 = vpop.f32.mrf.mxu0  ;;  %v11415_v49 = vpack.c.bf16 %v5230_v31, %v5226_v42 }
 0x3ed   : > { %v3448_v27 = vadd.f32 %v3447_v34, %v3359_v43  ;;  %v3530_v56 = vadd.f32 %v3529_v53, %v3441_v18  ;;  %v3618_v35 = vpop.f32.mrf.mxu1 }
 0x3ee   : > { %14362 = vst [vmem:[#allocation19_spill] sm:$0xff] %v11415_v49 }
 0x3ef   : > { %v3619_v33 = vadd.f32 %v3618_v35, %v3530_v56  ;;  %3676 = vmatmul.bf16.gmra.mxu2 %v14363_v51  ;;  %3844 = vmatmul.bf16.gmra.mxu0 %v14364_v50 }
 0x3f0   : > { %3765 = vmatmul.bf16.gmra.mxu3 %v14365_v21  ;;  %3933 = vmatmul.bf16.gmra.mxu1 %v14287_v19  ;;  %v8494_v21 = vld [vmem:[%s13801_s1 + $0x6a8] sm:$0xf] }
 0x3f1   : > { %v5106_v8 = vmul.f32 0.2, %v3619_v33  ;;  %vm4978_vm6 = vcmp.gt.f32.partialorder %v3619_v33, 0.0 }
 0x3f2   : > { %v3361_v22 = vpop.f32.mrf.mxu2 }
 0x3f3   : > { %v3362_v36 = vadd.f32 %v3361_v22, %v11074_v29  ;;  %v3450_v9 = vpop.f32.mrf.mxu3  ;;  %v5234_v31 = vsel %vm4978_vm6, %v3619_v33, %v5106_v8 }
 0x3f4   : > { %v3531_v25 = vpop.f32.mrf.mxu0 }
 0x3f5   : > { %v3451_v4 = vadd.f32 %v3450_v9, %v3362_v36  ;;  %v3532_v32 = vadd.f32 %v3531_v25, %v3443_v61  ;;  %v3620_v20 = vpop.f32.mrf.mxu1  ;;  %v14367_v61 = vld [vmem:[#allocation27_spill] sm:$0xff]  ;;  %v14369_v25 = vld [vmem:[#allocation29_spill] sm:$0xff] }
 0x3f6   : > { %v14368_v9 = vld [vmem:[#allocation47_spill] sm:$0xff] }
 0x3f7   : > { %v3621_v18 = vadd.f32 %v3620_v20, %v3532_v32 }
 0x3f9   : > { %vm4982_vm7 = vcmp.gt.f32.partialorder %v3621_v18, 0.0  ;;  %v5110_v35 = vmul.f32 0.2, %v3621_v18 }
 0x3fa   : > { %v3363_v43 = vpop.f32.mrf.mxu2 }
 0x3fb   : > { %v3364_v34 = vadd.f32 %v3363_v43, %v11084_v62  ;;  %v3452_v42 = vpop.f32.mrf.mxu3  ;;  %v5238_v53 = vsel %vm4982_vm7, %v3621_v18, %v5110_v35 }
 0x3fc   : > { %v3534_v56 = vpop.f32.mrf.mxu0  ;;  %v11423_v49 = vpack.c.bf16 %v5238_v53, %v5234_v31 }
 0x3fd   : > { %v3453_v29 = vadd.f32 %v3452_v42, %v3364_v34  ;;  %v3535_v22 = vadd.f32 %v3534_v56, %v3446_v59  ;;  %v3623_v19 = vpop.f32.mrf.mxu1 }
 0x3fe   : > { %14366 = vst [vmem:[#allocation23_spill] sm:$0xff] %v11423_v49 }
 0x3ff   : > { %v3624_v36 = vadd.f32 %v3623_v19, %v3535_v22  ;;  %3681 = vmatmul.bf16.gmra.mxu2 %v14367_v61  ;;  %3849 = vmatmul.bf16.gmra.mxu0 %v14368_v9  ;;  %v8462_v9 = vld [vmem:[%s13801_s1 + $0x668] sm:$0xf] }
 0x400   : > { %3770 = vmatmul.bf16.gmra.mxu3 %v14369_v25  ;;  %3938 = vmatmul.bf16.gmra.mxu1 %v14291_v14  ;;  %v8174_v25 = vld [vmem:[%s13801_s1 + $0x428] sm:$0xf] }
 0x401   : > { %v5114_v43 = vmul.f32 0.2, %v3624_v36  ;;  %vm4986_vm8 = vcmp.gt.f32.partialorder %v3624_v36, 0.0 }
 0x402   : > { %v3366_v32 = vpop.f32.mrf.mxu2 }
 0x403   : > { %v3367_v62 = vadd.f32 %v3366_v32, %v11088_v10  ;;  %v3455_v33 = vpop.f32.mrf.mxu3  ;;  %v5242_v53 = vsel %vm4986_vm8, %v3624_v36, %v5114_v43 }
 0x404   : > { %v3536_v20 = vpop.f32.mrf.mxu0 }
 0x405   : > { %v3456_v8 = vadd.f32 %v3455_v33, %v3367_v62  ;;  %v3537_v18 = vadd.f32 %v3536_v20, %v3448_v27  ;;  %v3625_v35 = vpop.f32.mrf.mxu1  ;;  %v14371_v27 = vld [vmem:[#allocation31_spill] sm:$0xff]  ;;  %v14373_v20 = vld [vmem:[#allocation33_spill] sm:$0xff] }
 0x406   : > { %v14372_v33 = vld [vmem:[#allocation51_spill] sm:$0xff] }
 0x407   : > { %v3626_v59 = vadd.f32 %v3625_v35, %v3537_v18 }
 0x409   : > { %vm4990_vm9 = vcmp.gt.f32.partialorder %v3626_v59, 0.0  ;;  %v5118_v19 = vmul.f32 0.2, %v3626_v59 }
 0x40a   : > { %v3368_v34 = vpop.f32.mrf.mxu2 }
 0x40b   : > { %v3369_v42 = vadd.f32 %v3368_v34, %v11098_v38  ;;  %v3457_v31 = vpop.f32.mrf.mxu3  ;;  %v5246_v56 = vsel %vm4990_vm9, %v3626_v59, %v5118_v19 }
 0x40c   : > { %v3539_v22 = vpop.f32.mrf.mxu0  ;;  %v11431_v49 = vpack.c.bf16 %v5246_v56, %v5242_v53 }
 0x40d   : > { %v3458_v10 = vadd.f32 %v3457_v31, %v3369_v42  ;;  %v3540_v32 = vadd.f32 %v3539_v22, %v3451_v4  ;;  %v3628_v14 = vpop.f32.mrf.mxu1 }
 0x40e   : > { %14370 = vst [vmem:[#allocation27_spill] sm:$0xff] %v11431_v49 }
 0x40f   : > { %v3629_v62 = vadd.f32 %v3628_v14, %v3540_v32  ;;  %3686 = vmatmul.bf16.gmra.mxu2 %v14371_v27  ;;  %3854 = vmatmul.bf16.gmra.mxu0 %v14372_v33  ;;  %v8526_v33 = vld [vmem:[%s13801_s1 + $0x6e8] sm:$0xf] }
 0x410   : > { %3775 = vmatmul.bf16.gmra.mxu3 %v14373_v20  ;;  %3943 = vmatmul.bf16.gmra.mxu1 %v14295_v40 }
 0x411   : > { %v5122_v34 = vmul.f32 0.2, %v3629_v62  ;;  %vm4994_vm10 = vcmp.gt.f32.partialorder %v3629_v62, 0.0 }
 0x412   : > { %v3371_v18 = vpop.f32.mrf.mxu2 }
 0x413   : > { %v3372_v38 = vadd.f32 %v3371_v18, %v11102_v58  ;;  %v3460_v36 = vpop.f32.mrf.mxu3  ;;  %v5250_v56 = vsel %vm4994_vm10, %v3629_v62, %v5122_v34 }
 0x414   : > { %v3541_v35 = vpop.f32.mrf.mxu0 }
 0x415   : > { %v3461_v43 = vadd.f32 %v3460_v36, %v3372_v38  ;;  %v3542_v59 = vadd.f32 %v3541_v35, %v3453_v29  ;;  %v3630_v19 = vpop.f32.mrf.mxu1  ;;  %v14375_v29 = vld [vmem:[#allocation35_spill] sm:$0xff] }
 0x416   : > { %v14376_v36 = vld [vmem:[#allocation55_spill] sm:$0xff] }
 0x417   : > { %v3631_v4 = vadd.f32 %v3630_v19, %v3542_v59  ;;  %v9299_v35 = vld [vmem:[%s13802_s2] sm:$0xf] }
 0x418   : > { %v11446_v59 = vperm.slane %v9299_v35, 2 }
 0x419   : > { %vm4998_vm11 = vcmp.gt.f32.partialorder %v3631_v4, 0.0  ;;  %v5126_v14 = vmul.f32 0.2, %v3631_v4 }
 0x41a   : > { %v3373_v42 = vpop.f32.mrf.mxu2 }
 0x41b   : > { %v3374_v31 = vadd.f32 %v3373_v42, %v11110_v26  ;;  %v3462_v53 = vpop.f32.mrf.mxu3  ;;  %v5254_v22 = vsel %vm4998_vm11, %v3631_v4, %v5126_v14  ;;  %v14377_v26 = vld [vmem:[#allocation37_spill] sm:$0xff] }
 0x41c   : > { %v3544_v32 = vpop.f32.mrf.mxu0  ;;  %v11439_v49 = vpack.c.bf16 %v5254_v22, %v5250_v56 }
 0x41d   : > { %v3463_v58 = vadd.f32 %v3462_v53, %v3374_v31  ;;  %v3545_v18 = vadd.f32 %v3544_v32, %v3456_v8  ;;  %v3633_v40 = vpop.f32.mrf.mxu1 }
 0x41e   : > { %14374 = vst [vmem:[#allocation31_spill] sm:$0xff] %v11439_v49 }
 0x41f   : > { %v3634_v38 = vadd.f32 %v3633_v40, %v3545_v18  ;;  %3691 = vmatmul.bf16.gmra.mxu2 %v14375_v29  ;;  %3859 = vmatmul.bf16.gmra.mxu0 %v14376_v36  ;;  %v14390_v36 = vld [vmem:[#allocation16_spill] sm:$0xff] }
 0x420   : > { %3780 = vmatmul.bf16.gmra.mxu3 %v14377_v26  ;;  %3948 = vmatmul.bf16.gmra.mxu1 %v14299_v46 }
 0x421   : > { %v5130_v42 = vmul.f32 0.2, %v3634_v38  ;;  %vm5002_vm12 = vcmp.gt.f32.partialorder %v3634_v38, 0.0 }
 0x422   : > { %v3652_v62 = vpop.f32.mrf.mxu2 }
 0x423   : > { %v3653_v19 = vadd.f32 %v3652_v62, %v11446_v59  ;;  %v3741_v8 = vpop.f32.mrf.mxu3  ;;  %v5258_v18 = vsel %vm5002_vm12, %v3634_v38, %v5130_v42 }
 0x424   : > { %v3546_v34 = vpop.f32.mrf.mxu0 }
 0x425   : > { %v3742_v40 = vadd.f32 %v3741_v8, %v3653_v19  ;;  %v3547_v4 = vadd.f32 %v3546_v34, %v3458_v10  ;;  %v3635_v14 = vpop.f32.mrf.mxu1  ;;  %v14379_v10 = vld [vmem:[#allocation4_spill] sm:$0xff]  ;;  %v14381_v34 = vld [vmem:[#allocation6_spill] sm:$0xff] }
 0x426   : > { %v14380_v8 = vld [vmem:[#allocation60_spill] sm:$0xff] }
 0x427   : > { %v3636_v31 = vadd.f32 %v3635_v14, %v3547_v4 }
 0x429   : > { %vm5006_vm13 = vcmp.gt.f32.partialorder %v3636_v31, 0.0  ;;  %v5134_v53 = vmul.f32 0.2, %v3636_v31 }
 0x42a   : > { %v3654_v56 = vpop.f32.mrf.mxu2 }
 0x42b   : > { %v3655_v22 = vadd.f32 %v3654_v56, %v11446_v59  ;;  %v3743_v32 = vpop.f32.mrf.mxu3  ;;  %v5262_v35 = vsel %vm5006_vm13, %v3636_v31, %v5134_v53 }
 0x42c   : > { %v3549_v49 = vpop.f32.mrf.mxu0  ;;  %v11452_v46 = vpack.c.bf16 %v5262_v35, %v5258_v18 }
 0x42d   : > { %v3744_v62 = vadd.f32 %v3743_v32, %v3655_v22  ;;  %v3550_v26 = vadd.f32 %v3549_v49, %v3461_v43  ;;  %v3638_v20 = vpop.f32.mrf.mxu1 }
 0x42e   : > { %14378 = vst [vmem:[#allocation35_spill] sm:$0xff] %v11452_v46 }
 0x42f   : > { %v3639_v19 = vadd.f32 %v3638_v20, %v3550_v26  ;;  %3696 = vmatmul.bf16.gmra.mxu2 %v14379_v10  ;;  %3864 = vmatmul.bf16.gmra.mxu0 %v14380_v8 }
 0x430   : > { %3785 = vmatmul.bf16.gmra.mxu3 %v14381_v34  ;;  %3953 = vmatmul.bf16.gmra.mxu1 %v14303_v30 }
 0x431   : > { %v5138_v22 = vmul.f32 0.2, %v3639_v19  ;;  %vm5010_vm14 = vcmp.gt.f32.partialorder %v3639_v19, 0.0 }
 0x432   : > { %v3657_v4 = vpop.f32.mrf.mxu2 }
 0x433   : > { %v3658_v14 = vadd.f32 %v3657_v4, %v11446_v59  ;;  %v3746_v38 = vpop.f32.mrf.mxu3  ;;  %v5266_v18 = vsel %vm5010_vm14, %v3639_v19, %v5138_v22  ;;  %v8270_v19 = vld [vmem:[%s13801_s1 + $0x4e8] sm:$0xf] }
 0x434   : > { %v3551_v42 = vpop.f32.mrf.mxu0 }
 0x435   : > { %v3747_v31 = vadd.f32 %v3746_v38, %v3658_v14  ;;  %v3552_v53 = vadd.f32 %v3551_v42, %v3463_v58  ;;  %v3640_v56 = vpop.f32.mrf.mxu1  ;;  %v14383_v58 = vld [vmem:[#allocation8_spill] sm:$0xff]  ;;  %v14384_v38 = vld [vmem:[#allocation66_spill] sm:$0xff] }
 0x436   : > { %v14385_v42 = vld [vmem:[#allocation10_spill] sm:$0xff] }
 0x437   : > { %v3641_v49 = vadd.f32 %v3640_v56, %v3552_v53  ;;  %v14386_v53 = vld [vmem:[#allocation68_spill] sm:$0xff]  ;;  %v9125_v56 = vld [vmem:[%s13801_s1 + $0x4f4] sm:$0xf0] }
 0x439   : > { %vm5014_vm15 = vcmp.gt.f32.partialorder %v3641_v49, 0.0  ;;  %v5142_v20 = vmul.f32 0.2, %v3641_v49 }
 0x43a   : > { %v3659_v43 = vpop.f32.mrf.mxu2 }
 0x43b   : > { %v3660_v26 = vadd.f32 %v3659_v43, %v11446_v59  ;;  %v3748_v32 = vpop.f32.mrf.mxu3  ;;  %v5270_v35 = vsel %vm5014_vm15, %v3641_v49, %v5142_v20 }
 0x43c   : > { %v3830_v46 = vpop.f32.mrf.mxu0  ;;  %v11460_v30 = vpack.c.bf16 %v5270_v35, %v5266_v18 }
 0x43d   : > { %v3749_v4 = vadd.f32 %v3748_v32, %v3660_v26  ;;  %v3831_v34 = vadd.f32 %v3830_v46, %v3742_v40  ;;  %v3919_v8 = vpop.f32.mrf.mxu1  ;;  %v8271_v46 = vor.u32 %v9125_v56, %v8270_v19  ;;  %v8398_v26 = vld [vmem:[%s13801_s1 + $0x5e8] sm:$0xf]  ;;  %v9157_v32 = vld [vmem:[%s13801_s1 + $0x5f4] sm:$0xf0] }
 0x43e   : > { %14382 = vst [vmem:[#allocation4_spill] sm:$0xff] %v11460_v30  ;;  %v8399_v18 = vor.u32 %v9157_v32, %v8398_v26  ;;  %v14387_v30 = vld [vmem:[#allocation12_spill] sm:$0xff] }
 0x43f   : > { %v11462_v14 = vadd.f32 %v3919_v8, %v3831_v34  ;;  %3701 = vmatmul.bf16.gmra.mxu2 %v14383_v58  ;;  %3869 = vmatmul.bf16.gmra.mxu0 %v14384_v38 }
 0x440   : > { %3790 = vmatmul.bf16.gmra.mxu3 %v14385_v42  ;;  %3958 = vmatmul.bf16.gmra.mxu1 %v14386_v53  ;;  %v14388_v53 = vld [vmem:[#allocation71_spill] sm:$0xff]  ;;  %v14389_v42 = vld [vmem:[#allocation14_spill] sm:$0xff] }
 0x441   : > { %3999 = vmatpush.bf16.msrb.mxu2 %v8271_v46  ;;  %4088 = vmatpush.bf16.msrb.mxu3 %v8399_v18 }
 0x442   : > { %v3662_v40 = vpop.f32.mrf.mxu2 }
 0x443   : > { %v3663_v8 = vadd.f32 %v3662_v40, %v11446_v59  ;;  %v3751_v34 = vpop.f32.mrf.mxu3 }
 0x444   : > { %v3832_v22 = vpop.f32.mrf.mxu0 }
 0x445   : > { %v3752_v49 = vadd.f32 %v3751_v34, %v3663_v8  ;;  %v3833_v20 = vadd.f32 %v3832_v22, %v3744_v62  ;;  %v3921_v43 = vpop.f32.mrf.mxu1 }
 0x447   : > { %v11481_v35 = vadd.f32 %v3921_v43, %v3833_v20 }
 0x44a   : > { %v3664_v19 = vpop.f32.mrf.mxu2 }
 0x44b   : > { %v3665_v56 = vadd.f32 %v3664_v19, %v11446_v59  ;;  %v3753_v46 = vpop.f32.mrf.mxu3 }
 0x44c   : > { %v3835_v40 = vpop.f32.mrf.mxu0 }
 0x44d   : > { %v3754_v8 = vadd.f32 %v3753_v46, %v3665_v56  ;;  %v3836_v62 = vadd.f32 %v3835_v40, %v3747_v31  ;;  %v3924_v34 = vpop.f32.mrf.mxu1 }
 0x44f   : > { %v11484_v22 = vadd.f32 %v3924_v34, %v3836_v62  ;;  %3706 = vmatmul.bf16.gmra.mxu2 %v14387_v30  ;;  %3874 = vmatmul.bf16.gmra.mxu0 %v14388_v53 }
 0x450   : > { %3795 = vmatmul.bf16.gmra.mxu3 %v14389_v42  ;;  %3963 = vmatmul.bf16.gmra.mxu1 %v14311_v7 }
 0x452   : > { %v3667_v20 = vpop.f32.mrf.mxu2 }
 0x453   : > { %v3668_v43 = vadd.f32 %v3667_v20, %v11446_v59  ;;  %v3756_v26 = vpop.f32.mrf.mxu3  ;;  %v14391_v20 = vld [vmem:[#allocation75_spill] sm:$0xff] }
 0x454   : > { %v3837_v32 = vpop.f32.mrf.mxu0 }
 0x455   : > { %v3757_v18 = vadd.f32 %v3756_v26, %v3668_v43  ;;  %v3838_v19 = vadd.f32 %v3837_v32, %v3749_v4  ;;  %v3926_v56 = vpop.f32.mrf.mxu1  ;;  %v14392_v43 = vld [vmem:[#allocation18_spill] sm:$0xff]  ;;  %v8254_v4 = vld [vmem:[%s13801_s1 + $0x4c8] sm:$0xf] }
 0x456   : > { %v9121_v26 = vld [vmem:[%s13801_s1 + $0x4d4] sm:$0xf0] }
 0x457   : > { %v11491_v31 = vadd.f32 %v3926_v56, %v3838_v19 }
 0x45a   : > { %v3669_v46 = vpop.f32.mrf.mxu2 }
 0x45b   : > { %v3670_v40 = vadd.f32 %v3669_v46, %v11446_v59  ;;  %v3758_v62 = vpop.f32.mrf.mxu3 }
 0x45c   : > { %v3840_v34 = vpop.f32.mrf.mxu0 }
 0x45d   : > { %v11494_v53 = vadd.f32 %v3758_v62, %v3670_v40  ;;  %v3841_v42 = vadd.f32 %v3840_v34, %v3752_v49  ;;  %v3929_v38 = vpop.f32.mrf.mxu1  ;;  %v8255_v49 = vor.u32 %v9121_v26, %v8254_v4  ;;  %v8238_v4 = vld [vmem:[%s13801_s1 + $0x4a8] sm:$0xf]  ;;  %v9117_v26 = vld [vmem:[%s13801_s1 + $0x4b4] sm:$0xf0] }
 0x45f   : > { %v11496_v7 = vadd.f32 %v3929_v38, %v3841_v42  ;;  %3711 = vmatmul.bf16.gmra.mxu2 %v14390_v36  ;;  %3879 = vmatmul.bf16.gmra.mxu0 %v14391_v20  ;;  %v8382_v38 = vld [vmem:[%s13801_s1 + $0x5c8] sm:$0xf]  ;;  %v9153_v42 = vld [vmem:[%s13801_s1 + $0x5d4] sm:$0xf0] }
 0x460   : > { %3800 = vmatmul.bf16.gmra.mxu3 %v14392_v43  ;;  %3968 = vmatmul.bf16.gmra.mxu1 %v14314_v60  ;;  %v8383_v46 = vor.u32 %v9153_v42, %v8382_v38  ;;  %v8239_v38 = vor.u32 %v9117_v26, %v8238_v4  ;;  %v9145_v26 = vld [vmem:[%s13801_s1 + $0x594] sm:$0xf0]  ;;  %v8206_v20 = vld [vmem:[%s13801_s1 + $0x468] sm:$0xf] }
 0x461   : > { %4000 = vmatpush.bf16.msrb.mxu2 %v8255_v49 }
 0x462   : > { %v3672_v32 = vpop.f32.mrf.mxu2  ;;  %4089 = vmatpush.bf16.msrb.mxu3 %v8383_v46  ;;  %v9113_v46 = vld [vmem:[%s13801_s1 + $0x494] sm:$0xf0] }
 0x463   : > { %v3673_v19 = vadd.f32 %v3672_v32, %v11446_v59  ;;  %v3761_v56 = vpop.f32.mrf.mxu3  ;;  %v8366_v32 = vld [vmem:[%s13801_s1 + $0x5a8] sm:$0xf] }
 0x464   : > { %v3842_v40 = vpop.f32.mrf.mxu0 }
 0x465   : > { %v11515_v62 = vadd.f32 %v3761_v56, %v3673_v19  ;;  %v3843_v34 = vadd.f32 %v3842_v40, %v3754_v8  ;;  %v3931_v60 = vpop.f32.mrf.mxu1  ;;  %v9149_v8 = vld [vmem:[%s13801_s1 + $0x5b4] sm:$0xf0]  ;;  %4001 = vmatpush.bf16.msrb.mxu2 %v8239_v38  ;;  %v8222_v56 = vld [vmem:[%s13801_s1 + $0x488] sm:$0xf] }
 0x466   : > { %v8367_v42 = vor.u32 %v9149_v8, %v8366_v32  ;;  %v8223_v4 = vor.u32 %v9113_v46, %v8222_v56  ;;  %v8334_v56 = vld [vmem:[%s13801_s1 + $0x568] sm:$0xf] }
 0x467   : > { %v11526_v49 = vadd.f32 %v3931_v60, %v3843_v34  ;;  %v8350_v60 = vld [vmem:[%s13801_s1 + $0x588] sm:$0xf] }
 0x468   : > { %4090 = vmatpush.bf16.msrb.mxu3 %v8367_v42  ;;  %v8351_v38 = vor.u32 %v9145_v26, %v8350_v60  ;;  %v14393_v60 = vld [vmem:[#allocation20_spill] sm:$0xff] }
 0x469   : > { %4002 = vmatpush.bf16.msrb.mxu2 %v8223_v4  ;;  %v14395_v4 = vld [vmem:[#allocation22_spill] sm:$0xff] }
 0x46a   : > { %v3674_v19 = vpop.f32.mrf.mxu2 }
 0x46b   : > { %v3675_v40 = vadd.f32 %v3674_v19, %v11446_v59  ;;  %v3763_v34 = vpop.f32.mrf.mxu3  ;;  %v9109_v19 = vld [vmem:[%s13801_s1 + $0x474] sm:$0xf0] }
 0x46c   : > { %v3845_v32 = vpop.f32.mrf.mxu0  ;;  %4091 = vmatpush.bf16.msrb.mxu3 %v8351_v38  ;;  %v8318_v38 = vld [vmem:[%s13801_s1 + $0x548] sm:$0xf] }
 0x46d   : > { %v11544_v8 = vadd.f32 %v3763_v34, %v3675_v40  ;;  %v3846_v42 = vadd.f32 %v3845_v32, %v3757_v18  ;;  %v3934_v43 = vpop.f32.mrf.mxu1  ;;  %v14394_v18 = vld [vmem:[#allocation79_spill] sm:$0xff]  ;;  %v8207_v40 = vor.u32 %v9109_v19, %v8206_v20  ;;  %v9141_v34 = vld [vmem:[%s13801_s1 + $0x574] sm:$0xf0] }
 0x46e   : > { %v8335_v26 = vor.u32 %v9141_v34, %v8334_v56  ;;  %v9105_v20 = vld [vmem:[%s13801_s1 + $0x454] sm:$0xf0] }
 0x46f   : > { %v11555_v46 = vadd.f32 %v3934_v43, %v3846_v42  ;;  %3716 = vmatmul.bf16.gmra.mxu2 %v14393_v60  ;;  %3884 = vmatmul.bf16.gmra.mxu0 %v14394_v18  ;;  %v8190_v43 = vld [vmem:[%s13801_s1 + $0x448] sm:$0xf]  ;;  %v9137_v56 = vld [vmem:[%s13801_s1 + $0x554] sm:$0xf0] }
 0x470   : > { %3805 = vmatmul.bf16.gmra.mxu3 %v14395_v4  ;;  %3973 = vmatmul.bf16.gmra.mxu1 %v14318_v15  ;;  %v8191_v15 = vor.u32 %v9105_v20, %v8190_v43  ;;  %v8319_v34 = vor.u32 %v9137_v56, %v8318_v38  ;;  %v8302_v43 = vld [vmem:[%s13801_s1 + $0x528] sm:$0xf]  ;;  %v9097_v56 = vld [vmem:[%s13801_s1 + $0x414] sm:$0xf0] }
 0x471   : > { %4003 = vmatpush.bf16.msrb.mxu2 %v8207_v40  ;;  %4092 = vmatpush.bf16.msrb.mxu3 %v8335_v26 }
 0x472   : > { %v3677_v32 = vpop.f32.mrf.mxu2 }
 0x473   : > { %v3678_v42 = vadd.f32 %v3677_v32, %v11446_v59  ;;  %v3766_v19 = vpop.f32.mrf.mxu3  ;;  %v9101_v32 = vld [vmem:[%s13801_s1 + $0x434] sm:$0xf0] }
 0x474   : > { %v3847_v40 = vpop.f32.mrf.mxu0  ;;  %v8175_v38 = vor.u32 %v9101_v32, %v8174_v25  ;;  %v8286_v25 = vld [vmem:[%s13801_s1 + $0x508] sm:$0xf] }
 0x475   : > { %v11577_v26 = vadd.f32 %v3766_v19, %v3678_v42  ;;  %v3848_v4 = vadd.f32 %v3847_v40, %v11494_v53  ;;  %v3936_v18 = vpop.f32.mrf.mxu1  ;;  %4004 = vmatpush.bf16.msrb.mxu2 %v8191_v15  ;;  %4093 = vmatpush.bf16.msrb.mxu3 %v8319_v34  ;;  %v9133_v15 = vld [vmem:[%s13801_s1 + $0x534] sm:$0xf0]  ;;  %v8158_v19 = vld [vmem:[%s13801_s1 + $0x408] sm:$0xf] }
 0x476   : > { %v8303_v53 = vor.u32 %v9133_v15, %v8302_v43  ;;  %v8159_v40 = vor.u32 %v9097_v56, %v8158_v19  ;;  %v9129_v34 = vld [vmem:[%s13801_s1 + $0x514] sm:$0xf0]  ;;  %v8995_v19 = vld [vmem:[%s13801_s1 + $0xec] sm:$0xf] }
 0x477   : > { %v11589_v20 = vadd.f32 %v3936_v18, %v3848_v4  ;;  %v8287_v43 = vor.u32 %v9129_v34, %v8286_v25  ;;  %v14396_v25 = vld [vmem:[#allocation24_spill] sm:$0xff] }
 0x479   : > { %4005 = vmatpush.bf16.msrb.mxu2 %v8175_v38  ;;  %4094 = vmatpush.bf16.msrb.mxu3 %v8303_v53 }
 0x47a   : > { %v3679_v42 = vpop.f32.mrf.mxu2 }
 0x47b   : > { %v3680_v18 = vadd.f32 %v3679_v42, %v11446_v59  ;;  %v3768_v4 = vpop.f32.mrf.mxu3  ;;  %v9189_v42 = vld [vmem:[%s13801_s1 + $0x6f4] sm:$0xf0] }
 0x47c   : > { %v3850_v32 = vpop.f32.mrf.mxu0 }
 0x47d   : > { %v11607_v38 = vadd.f32 %v3768_v4, %v3680_v18  ;;  %v3851_v15 = vadd.f32 %v3850_v32, %v11515_v62  ;;  %v3939_v53 = vpop.f32.mrf.mxu1  ;;  %4006 = vmatpush.bf16.msrb.mxu2 %v8159_v40  ;;  %4095 = vmatpush.bf16.msrb.mxu3 %v8287_v43  ;;  %v14397_v62 = vld [vmem:[#allocation84_spill] sm:$0xff]  ;;  %v8527_v18 = vor.u32 %v9189_v42, %v8526_v33  ;;  %v7760_v4 = vld [vmem:[%s13801_s1 + $0xf8] sm:$0xf0]  ;;  %v9185_v33 = vld [vmem:[%s13801_s1 + $0x6d4] sm:$0xf0] }
 0x47e   : > { %v14398_v40 = vld [vmem:[#allocation26_spill] sm:$0xff]  ;;  %v7763_v34 = vor.u32 %v8995_v19, %v7760_v4  ;;  %v8510_v43 = vld [vmem:[%s13801_s1 + $0x6c8] sm:$0xf] }
 0x47f   : > { %v11619_v56 = vadd.f32 %v3939_v53, %v3851_v15  ;;  %3721 = vmatmul.bf16.gmra.mxu2 %v14396_v25  ;;  %3889 = vmatmul.bf16.gmra.mxu0 %v14397_v62  ;;  %v8991_v15 = vld [vmem:[%s13801_s1 + $0xcc] sm:$0xf]  ;;  %v7744_v19 = vld [vmem:[%s13801_s1 + $0xd8] sm:$0xf0] }
 0x480   : > { %3810 = vmatmul.bf16.gmra.mxu3 %v14398_v40  ;;  %3978 = vmatmul.bf16.gmra.mxu1 %v14322_v24  ;;  %v8511_v24 = vor.u32 %v9185_v33, %v8510_v43  ;;  %v7747_v4 = vor.u32 %v8991_v15, %v7744_v19  ;;  %v8987_v43 = vld [vmem:[%s13801_s1 + $0xac] sm:$0xf]  ;;  %v9177_v19 = vld [vmem:[%s13801_s1 + $0x694] sm:$0xf0] }
 0x481   : > { %4177 = vmatpush.bf16.msrb.mxu0 %v8527_v18  ;;  %4266 = vmatpush.bf16.msrb.mxu1 %v7763_v34 }
 0x482   : > { %v3682_v32 = vpop.f32.mrf.mxu2 }
 0x483   : > { %v3683_v53 = vadd.f32 %v3682_v32, %v11446_v59  ;;  %v3771_v42 = vpop.f32.mrf.mxu3  ;;  %v9181_v32 = vld [vmem:[%s13801_s1 + $0x6b4] sm:$0xf0] }
 0x484   : > { %v3852_v18 = vpop.f32.mrf.mxu0  ;;  %v8495_v15 = vor.u32 %v9181_v32, %v8494_v21  ;;  %v8983_v21 = vld [vmem:[%s13801_s1 + $0x8c] sm:$0xf] }
 0x485   : > { %v11641_v34 = vadd.f32 %v3771_v42, %v3683_v53  ;;  %v3853_v40 = vadd.f32 %v3852_v18, %v11544_v8  ;;  %v3941_v62 = vpop.f32.mrf.mxu1  ;;  %4178 = vmatpush.bf16.msrb.mxu0 %v8511_v24  ;;  %4267 = vmatpush.bf16.msrb.mxu1 %v7747_v4  ;;  %v7728_v24 = vld [vmem:[%s13801_s1 + $0xb8] sm:$0xf0]  ;;  %v8478_v42 = vld [vmem:[%s13801_s1 + $0x688] sm:$0xf] }
 0x486   : > { %v7731_v8 = vor.u32 %v8987_v43, %v7728_v24  ;;  %v8479_v18 = vor.u32 %v9177_v19, %v8478_v42  ;;  %v7712_v4 = vld [vmem:[%s13801_s1 + $0x98] sm:$0xf0]  ;;  %v8979_v42 = vld [vmem:[%s13801_s1 + $0x6c] sm:$0xf] }
 0x487   : > { %v11653_v33 = vadd.f32 %v3941_v62, %v3853_v40  ;;  %v7715_v43 = vor.u32 %v8983_v21, %v7712_v4  ;;  %v14399_v21 = vld [vmem:[#allocation28_spill] sm:$0xff] }
 0x489   : > { %4179 = vmatpush.bf16.msrb.mxu0 %v8495_v15  ;;  %4268 = vmatpush.bf16.msrb.mxu1 %v7731_v8 }
 0x48a   : > { %v3684_v53 = vpop.f32.mrf.mxu2 }
 0x48b   : > { %v3685_v62 = vadd.f32 %v3684_v53, %v11446_v59  ;;  %v3773_v40 = vpop.f32.mrf.mxu3  ;;  %v9173_v53 = vld [vmem:[%s13801_s1 + $0x674] sm:$0xf0] }
 0x48c   : > { %v3855_v32 = vpop.f32.mrf.mxu0 }
 0x48d   : > { %v11671_v15 = vadd.f32 %v3773_v40, %v3685_v62  ;;  %v3856_v24 = vadd.f32 %v3855_v32, %v11577_v26  ;;  %v3944_v8 = vpop.f32.mrf.mxu1  ;;  %4180 = vmatpush.bf16.msrb.mxu0 %v8479_v18  ;;  %4269 = vmatpush.bf16.msrb.mxu1 %v7715_v43  ;;  %v14400_v26 = vld [vmem:[#allocation90_spill] sm:$0xff]  ;;  %v8463_v62 = vor.u32 %v9173_v53, %v8462_v9  ;;  %v8446_v43 = vld [vmem:[%s13801_s1 + $0x648] sm:$0xf] }
 0x48e   : > { %v7696_v40 = vld [vmem:[%s13801_s1 + $0x78] sm:$0xf0]  ;;  %v9169_v9 = vld [vmem:[%s13801_s1 + $0x654] sm:$0xf0] }
 0x48f   : > { %v11683_v19 = vadd.f32 %v3944_v8, %v3856_v24  ;;  %3726 = vmatmul.bf16.gmra.mxu2 %v14399_v21  ;;  %3894 = vmatmul.bf16.gmra.mxu0 %v14400_v26  ;;  %v14401_v18 = vld [vmem:[#allocation30_spill] sm:$0xff]  ;;  %v7699_v4 = vor.u32 %v8979_v42, %v7696_v40  ;;  %v8975_v24 = vld [vmem:[%s13801_s1 + $0x4c] sm:$0xf] }
 0x490   : > { %3815 = vmatmul.bf16.gmra.mxu3 %v14401_v18  ;;  %3983 = vmatmul.bf16.gmra.mxu1 %v14326_v1  ;;  %v8447_v1 = vor.u32 %v9169_v9, %v8446_v43  ;;  %v7680_v42 = vld [vmem:[%s13801_s1 + $0x58] sm:$0xf0]  ;;  %v8971_v43 = vld [vmem:[%s13801_s1 + $0x2c] sm:$0xf] }
 0x491   : > { %4181 = vmatpush.bf16.msrb.mxu0 %v8463_v62  ;;  %4270 = vmatpush.bf16.msrb.mxu1 %v7699_v4  ;;  %v7683_v40 = vor.u32 %v8975_v24, %v7680_v42  ;;  %v9161_v42 = vld [vmem:[%s13801_s1 + $0x614] sm:$0xf0] }
 0x492   : > { %v3687_v32 = vpop.f32.mrf.mxu2 }
 0x493   : > { %v3688_v8 = vadd.f32 %v3687_v32, %v11446_v59  ;;  %v3776_v53 = vpop.f32.mrf.mxu3  ;;  %v9165_v32 = vld [vmem:[%s13801_s1 + $0x634] sm:$0xf0] }
 0x494   : > { %v3857_v62 = vpop.f32.mrf.mxu0  ;;  %v8431_v24 = vor.u32 %v9165_v32, %v8430_v39  ;;  %v8967_v39 = vld [vmem:[%s13801_s1 + $0xc] sm:$0xf] }
 0x495   : > { %v3777_v4 = vadd.f32 %v3776_v53, %v3688_v8  ;;  %v3858_v18 = vadd.f32 %v3857_v62, %v11607_v38  ;;  %v3946_v26 = vpop.f32.mrf.mxu1  ;;  %4182 = vmatpush.bf16.msrb.mxu0 %v8447_v1  ;;  %4271 = vmatpush.bf16.msrb.mxu1 %v7683_v40  ;;  %v7664_v1 = vld [vmem:[%s13801_s1 + $0x38] sm:$0xf0]  ;;  %v8414_v53 = vld [vmem:[%s13801_s1 + $0x608] sm:$0xf] }
 0x496   : > { %v7667_v38 = vor.u32 %v8971_v43, %v7664_v1  ;;  %v8415_v62 = vor.u32 %v9161_v42, %v8414_v53  ;;  %v7648_v40 = vld [vmem:[%s13801_s1 + $0x18] sm:$0xf0] }
 0x497   : > { %v11715_v9 = vadd.f32 %v3946_v26, %v3858_v18  ;;  %v7651_v43 = vor.u32 %v8967_v39, %v7648_v40 }
 0x499   : > { %4183 = vmatpush.bf16.msrb.mxu0 %v8431_v24  ;;  %4272 = vmatpush.bf16.msrb.mxu1 %v7667_v38 }
 0x49a   : > { %v3689_v8 = vpop.f32.mrf.mxu2 }
 0x49b   : > { %v3690_v26 = vadd.f32 %v3689_v8, %v11446_v59  ;;  %v3778_v18 = vpop.f32.mrf.mxu3  ;;  %v14404_v8 = vld [vmem:[#allocation42_spill] sm:$0xff] }
 0x49c   : > { %v3860_v32 = vpop.f32.mrf.mxu0 }
 0x49d   : > { %v3779_v24 = vadd.f32 %v3778_v18, %v3690_v26  ;;  %v3861_v1 = vadd.f32 %v3860_v32, %v11641_v34  ;;  %v3949_v38 = vpop.f32.mrf.mxu1  ;;  %4184 = vmatpush.bf16.msrb.mxu0 %v8415_v62  ;;  %4273 = vmatpush.bf16.msrb.mxu1 %v7651_v43 }
 0x49f   : > { %v11734_v50 = vadd.f32 %v3949_v38, %v3861_v1  ;;  %3899 = vmatmul.bf16.gmra.mxu0 %v14402_v48  ;;  %4007 = vmatmul.bf16.vlgmr.msrb.gmra.mxu2 %v14403_v5 }
 0x4a0   : > { %3988 = vmatmul.bf16.gmra.mxu1 %v14330_v52  ;;  %4096 = vmatmul.bf16.vlgmr.msrb.gmra.mxu3 %v14404_v8 }
 0x4a2   : > { %v3692_v53 = vpop.f32.mrf.mxu2 }
 0x4a3   : > { %v3693_v42 = vadd.f32 %v3692_v53, %v11446_v59  ;;  %v3781_v39 = vpop.f32.mrf.mxu3  ;;  %v14406_v53 = vld [vmem:[#allocation44_spill] sm:$0xff] }
 0x4a4   : > { %v3862_v26 = vpop.f32.mrf.mxu0 }
 0x4a5   : > { %v3782_v18 = vadd.f32 %v3781_v39, %v3693_v42  ;;  %v3863_v34 = vadd.f32 %v3862_v26, %v11671_v15  ;;  %v3951_v62 = vpop.f32.mrf.mxu1  ;;  %v14407_v15 = vld [vmem:[#allocation46_spill] sm:$0xff] }
 0x4a7   : > { %v11742_v40 = vadd.f32 %v3951_v62, %v3863_v34 }
 0x4aa   : > { %v3694_v32 = vpop.f32.mrf.mxu2 }
 0x4ab   : > { %v3695_v43 = vadd.f32 %v3694_v32, %v11446_v59  ;;  %v3783_v1 = vpop.f32.mrf.mxu3 }
 0x4ac   : > { %v3865_v38 = vpop.f32.mrf.mxu0 }
 0x4ad   : > { %v3784_v48 = vadd.f32 %v3783_v1, %v3695_v43  ;;  %v3866_v52 = vadd.f32 %v3865_v38, %v3777_v4  ;;  %v3954_v5 = vpop.f32.mrf.mxu1 }
 0x4af   : > { %v11745_v8 = vadd.f32 %v3954_v5, %v3866_v52  ;;  %3904 = vmatmul.bf16.gmra.mxu0 %v14405_v41  ;;  %4012 = vmatmul.bf16.gmra.mxu2 %v14406_v53 }
 0x4b0   : > { %3993 = vmatmul.bf16.gmra.mxu1 %v14335_v0  ;;  %4101 = vmatmul.bf16.gmra.mxu3 %v14407_v15  ;;  %v14409_v15 = vld [vmem:[#allocation48_spill] sm:$0xff] }
 0x4b2   : > { %v3697_v42 = vpop.f32.mrf.mxu2 }
 0x4b3   : > { %v3698_v39 = vadd.f32 %v3697_v42, %v11446_v59  ;;  %v3786_v26 = vpop.f32.mrf.mxu3  ;;  %v14410_v42 = vld [vmem:[#allocation103_spill] sm:$0xff] }
 0x4b4   : > { %v3867_v34 = vpop.f32.mrf.mxu0 }
 0x4b5   : > { %v3787_v62 = vadd.f32 %v3786_v26, %v3698_v39  ;;  %v3868_v32 = vadd.f32 %v3867_v34, %v3779_v24  ;;  %v3956_v43 = vpop.f32.mrf.mxu1 }
 0x4b7   : > { %v11752_v4 = vadd.f32 %v3956_v43, %v3868_v32 }
 0x4ba   : > { %v3699_v52 = vpop.f32.mrf.mxu2 }
 0x4bb   : > { %v3700_v5 = vadd.f32 %v3699_v52, %v11446_v59  ;;  %v3788_v1 = vpop.f32.mrf.mxu3 }
 0x4bc   : > { %v3870_v38 = vpop.f32.mrf.mxu0 }
 0x4bd   : > { %v3789_v41 = vadd.f32 %v3788_v1, %v3700_v5  ;;  %v3871_v53 = vadd.f32 %v3870_v38, %v3782_v18  ;;  %v3959_v0 = vpop.f32.mrf.mxu1 }
 0x4bf   : > { %v11755_v21 = vadd.f32 %v3959_v0, %v3871_v53  ;;  %4017 = vmatmul.bf16.gmra.mxu2 %v14409_v15  ;;  %4185 = vmatmul.bf16.vlgmr.msrb.gmra.mxu0 %v14410_v42 }
 0x4c0   : > { %4106 = vmatmul.bf16.gmra.mxu3 %v14411_v23  ;;  %4274 = vmatmul.bf16.vlgmr.msrb.gmra.mxu1 %v14341_v63  ;;  %v14413_v63 = vld [vmem:[#allocation52_spill] sm:$0xff] }
 0x4c1   : > { %14408 = vst [vmem:[#allocation8_spill] sm:$0xff] %v11755_v21  ;;  %v14415_v21 = vld [vmem:[#allocation54_spill] sm:$0xff] }
 0x4c2   : > { %v3702_v24 = vpop.f32.mrf.mxu2 }
 0x4c3   : > { %v3703_v39 = vadd.f32 %v3702_v24, %v11446_v59  ;;  %v3791_v26 = vpop.f32.mrf.mxu3  ;;  %v14414_v24 = vld [vmem:[#allocation106_spill] sm:$0xff] }
 0x4c4   : > { %v3872_v34 = vpop.f32.mrf.mxu0 }
 0x4c5   : > { %v3792_v32 = vadd.f32 %v3791_v26, %v3703_v39  ;;  %v3873_v43 = vadd.f32 %v3872_v34, %v3784_v48  ;;  %v3961_v52 = vpop.f32.mrf.mxu1 }
 0x4c7   : > { %v11762_v18 = vadd.f32 %v3961_v52, %v3873_v43 }
 0x4ca   : > { %v3704_v0 = vpop.f32.mrf.mxu2 }
 0x4cb   : > { %v3705_v53 = vadd.f32 %v3704_v0, %v11446_v59  ;;  %v3793_v5 = vpop.f32.mrf.mxu3 }
 0x4cc   : > { %v3875_v1 = vpop.f32.mrf.mxu0 }
 0x4cd   : > { %v3794_v38 = vadd.f32 %v3793_v5, %v3705_v53  ;;  %v3876_v42 = vadd.f32 %v3875_v1, %v3787_v62  ;;  %v3964_v23 = vpop.f32.mrf.mxu1 }
 0x4cf   : > { %v11765_v15 = vadd.f32 %v3964_v23, %v3876_v42  ;;  %4022 = vmatmul.bf16.gmra.mxu2 %v14413_v63  ;;  %4190 = vmatmul.bf16.gmra.mxu0 %v14414_v24 }
 0x4d0   : > { %4111 = vmatmul.bf16.gmra.mxu3 %v14415_v21  ;;  %4279 = vmatmul.bf16.gmra.mxu1 %v14346_v6  ;;  %v14417_v6 = vld [vmem:[#allocation56_spill] sm:$0xff] }
 0x4d1   : > { %14412 = vst [vmem:[#allocation12_spill] sm:$0xff] %v11765_v15  ;;  %v14419_v15 = vld [vmem:[#allocation58_spill] sm:$0xff] }
 0x4d2   : > { %v3707_v48 = vpop.f32.mrf.mxu2 }
 0x4d3   : > { %v3708_v39 = vadd.f32 %v3707_v48, %v11446_v59  ;;  %v3796_v26 = vpop.f32.mrf.mxu3  ;;  %v14418_v48 = vld [vmem:[#allocation108_spill] sm:$0xff] }
 0x4d4   : > { %v3877_v34 = vpop.f32.mrf.mxu0 }
 0x4d5   : > { %v3797_v43 = vadd.f32 %v3796_v26, %v3708_v39  ;;  %v3878_v52 = vadd.f32 %v3877_v34, %v3789_v41  ;;  %v3966_v0 = vpop.f32.mrf.mxu1 }
 0x4d7   : > { %v11772_v62 = vadd.f32 %v3966_v0, %v3878_v52 }
 0x4da   : > { %v3709_v23 = vpop.f32.mrf.mxu2 }
 0x4db   : > { %v3710_v42 = vadd.f32 %v3709_v23, %v11446_v59  ;;  %v3798_v53 = vpop.f32.mrf.mxu3 }
 0x4dc   : > { %v3880_v5 = vpop.f32.mrf.mxu0 }
 0x4dd   : > { %v3799_v1 = vadd.f32 %v3798_v53, %v3710_v42  ;;  %v3881_v24 = vadd.f32 %v3880_v5, %v3792_v32  ;;  %v3969_v21 = vpop.f32.mrf.mxu1 }
 0x4df   : > { %v11775_v63 = vadd.f32 %v3969_v21, %v3881_v24  ;;  %4027 = vmatmul.bf16.gmra.mxu2 %v14417_v6  ;;  %4195 = vmatmul.bf16.gmra.mxu0 %v14418_v48 }
 0x4e0   : > { %4116 = vmatmul.bf16.gmra.mxu3 %v14419_v15  ;;  %4284 = vmatmul.bf16.gmra.mxu1 %v14350_v47  ;;  %v14420_v47 = vld [vmem:[#allocation61_spill] sm:$0xff] }
 0x4e1   : > { %14416 = vst [vmem:[#allocation16_spill] sm:$0xff] %v11775_v63  ;;  %v14422_v63 = vld [vmem:[#allocation63_spill] sm:$0xff] }
 0x4e2   : > { %v3712_v41 = vpop.f32.mrf.mxu2 }
 0x4e3   : > { %v3713_v39 = vadd.f32 %v3712_v41, %v11446_v59  ;;  %v3801_v26 = vpop.f32.mrf.mxu3  ;;  %v14421_v41 = vld [vmem:[#allocation109_spill] sm:$0xff] }
 0x4e4   : > { %v3882_v34 = vpop.f32.mrf.mxu0 }
 0x4e5   : > { %v3802_v52 = vadd.f32 %v3801_v26, %v3713_v39  ;;  %v3883_v0 = vadd.f32 %v3882_v34, %v3794_v38  ;;  %v3971_v23 = vpop.f32.mrf.mxu1 }
 0x4e7   : > { %v11782_v32 = vadd.f32 %v3971_v23, %v3883_v0 }
 0x4ea   : > { %v3714_v21 = vpop.f32.mrf.mxu2 }
 0x4eb   : > { %v3715_v24 = vadd.f32 %v3714_v21, %v11446_v59  ;;  %v3803_v42 = vpop.f32.mrf.mxu3 }
 0x4ec   : > { %v3885_v53 = vpop.f32.mrf.mxu0 }
 0x4ed   : > { %v3804_v5 = vadd.f32 %v3803_v42, %v3715_v24  ;;  %v3886_v48 = vadd.f32 %v3885_v53, %v3797_v43  ;;  %v3974_v15 = vpop.f32.mrf.mxu1 }
 0x4ef   : > { %v11785_v6 = vadd.f32 %v3974_v15, %v3886_v48  ;;  %4032 = vmatmul.bf16.gmra.mxu2 %v14420_v47  ;;  %4200 = vmatmul.bf16.gmra.mxu0 %v14421_v41 }
 0x4f0   : > { %4121 = vmatmul.bf16.gmra.mxu3 %v14422_v63  ;;  %4289 = vmatmul.bf16.gmra.mxu1 %v14354_v16  ;;  %v14424_v16 = vld [vmem:[#allocation67_spill] sm:$0xff] }
 0x4f2   : > { %v3717_v38 = vpop.f32.mrf.mxu2 }
 0x4f3   : > { %v3718_v39 = vadd.f32 %v3717_v38, %v11446_v59  ;;  %v3806_v26 = vpop.f32.mrf.mxu3  ;;  %v14425_v38 = vld [vmem:[#allocation110_spill] sm:$0xff] }
 0x4f4   : > { %v3887_v34 = vpop.f32.mrf.mxu0 }
 0x4f5   : > { %v3807_v0 = vadd.f32 %v3806_v26, %v3718_v39  ;;  %v3888_v23 = vadd.f32 %v3887_v34, %v3799_v1  ;;  %v3976_v21 = vpop.f32.mrf.mxu1 }
 0x4f7   : > { %v11792_v43 = vadd.f32 %v3976_v21, %v3888_v23 }
 0x4fa   : > { %v3719_v15 = vpop.f32.mrf.mxu2 }
 0x4fb   : > { %v3720_v48 = vadd.f32 %v3719_v15, %v11446_v59  ;;  %v3808_v24 = vpop.f32.mrf.mxu3 }
 0x4fc   : > { %v3890_v42 = vpop.f32.mrf.mxu0 }
 0x4fd   : > { %v3809_v53 = vadd.f32 %v3808_v24, %v3720_v48  ;;  %v3891_v41 = vadd.f32 %v3890_v42, %v3802_v52  ;;  %v3979_v63 = vpop.f32.mrf.mxu1 }
 0x4ff   : > { %v11795_v47 = vadd.f32 %v3979_v63, %v3891_v41  ;;  %4037 = vmatmul.bf16.gmra.mxu2 %v14424_v16  ;;  %4205 = vmatmul.bf16.gmra.mxu0 %v14425_v38 }
 0x500   : > { %4126 = vmatmul.bf16.gmra.mxu3 %v14308_v54  ;;  %4294 = vmatmul.bf16.gmra.mxu1 %v14359_v37  ;;  %v14426_v37 = vld [vmem:[#allocation72_spill] sm:$0xff] }
 0x501   : > { %14423 = vst [vmem:[#allocation20_spill] sm:$0xff] %v11795_v47  ;;  %v14428_v47 = vld [vmem:[#allocation74_spill] sm:$0xff] }
 0x502   : > { %v3722_v1 = vpop.f32.mrf.mxu2 }
 0x503   : > { %v3723_v39 = vadd.f32 %v3722_v1, %v11446_v59  ;;  %v3811_v26 = vpop.f32.mrf.mxu3  ;;  %v14427_v1 = vld [vmem:[#allocation111_spill] sm:$0xff] }
 0x504   : > { %v3892_v34 = vpop.f32.mrf.mxu0 }
 0x505   : > { %v3812_v23 = vadd.f32 %v3811_v26, %v3723_v39  ;;  %v3893_v21 = vadd.f32 %v3892_v34, %v3804_v5  ;;  %v3981_v15 = vpop.f32.mrf.mxu1 }
 0x507   : > { %v11802_v52 = vadd.f32 %v3981_v15, %v3893_v21 }
 0x50a   : > { %v3724_v63 = vpop.f32.mrf.mxu2 }
 0x50b   : > { %v3725_v41 = vadd.f32 %v3724_v63, %v11446_v59  ;;  %v3813_v48 = vpop.f32.mrf.mxu3 }
 0x50c   : > { %v3895_v24 = vpop.f32.mrf.mxu0 }
 0x50d   : > { %v3814_v42 = vadd.f32 %v3813_v48, %v3725_v41  ;;  %v3896_v38 = vadd.f32 %v3895_v24, %v3807_v0  ;;  %v3984_v54 = vpop.f32.mrf.mxu1 }
 0x50f   : > { %v11805_v16 = vadd.f32 %v3984_v54, %v3896_v38  ;;  %4042 = vmatmul.bf16.gmra.mxu2 %v14426_v37  ;;  %4210 = vmatmul.bf16.gmra.mxu0 %v14427_v1 }
 0x510   : > { %4131 = vmatmul.bf16.gmra.mxu3 %v14428_v47  ;;  %4299 = vmatmul.bf16.gmra.mxu1 %v14363_v51  ;;  %v14429_v51 = vld [vmem:[#allocation76_spill] sm:$0xff] }
 0x512   : > { %v3727_v5 = vpop.f32.mrf.mxu2 }
 0x513   : > { %v3728_v39 = vadd.f32 %v3727_v5, %v11446_v59  ;;  %v3816_v26 = vpop.f32.mrf.mxu3  ;;  %v14430_v5 = vld [vmem:[#allocation112_spill] sm:$0xff] }
 0x514   : > { %v3897_v34 = vpop.f32.mrf.mxu0 }
 0x515   : > { %v3817_v21 = vadd.f32 %v3816_v26, %v3728_v39  ;;  %v3898_v15 = vadd.f32 %v3897_v34, %v3809_v53  ;;  %v3986_v63 = vpop.f32.mrf.mxu1 }
 0x517   : > { %v11812_v0 = vadd.f32 %v3986_v63, %v3898_v15 }
 0x51a   : > { %v3729_v54 = vpop.f32.mrf.mxu2 }
 0x51b   : > { %v3730_v38 = vadd.f32 %v3729_v54, %v11446_v59  ;;  %v3818_v41 = vpop.f32.mrf.mxu3 }
 0x51c   : > { %v3900_v48 = vpop.f32.mrf.mxu0 }
 0x51d   : > { %v3819_v24 = vadd.f32 %v3818_v41, %v3730_v38  ;;  %v3901_v1 = vadd.f32 %v3900_v48, %v3812_v23  ;;  %v3989_v47 = vpop.f32.mrf.mxu1 }
 0x51f   : > { %v11815_v37 = vadd.f32 %v3989_v47, %v3901_v1  ;;  %4047 = vmatmul.bf16.gmra.mxu2 %v14429_v51  ;;  %4215 = vmatmul.bf16.gmra.mxu0 %v14430_v5 }
 0x520   : > { %4136 = vmatmul.bf16.gmra.mxu3 %v14315_v28  ;;  %4304 = vmatmul.bf16.gmra.mxu1 %v14367_v61  ;;  %v14431_v61 = vld [vmem:[#allocation80_spill] sm:$0xff] }
 0x522   : > { %v4008_v53 = vpop.f32.mrf.mxu2 }
 0x523   : > { %v4009_v39 = vadd.f32 %v4008_v53, %v11462_v14  ;;  %v4097_v26 = vpop.f32.mrf.mxu3  ;;  %v14432_v14 = vld [vmem:[#allocation59_spill] sm:$0xff] }
 0x524   : > { %v3902_v59 = vpop.f32.mrf.mxu0 }
 0x525   : > { %v4098_v34 = vadd.f32 %v4097_v26, %v4009_v39  ;;  %v3903_v15 = vadd.f32 %v3902_v59, %v3814_v42  ;;  %v3991_v63 = vpop.f32.mrf.mxu1 }
 0x527   : > { %v11822_v23 = vadd.f32 %v3991_v63, %v3903_v15 }
 0x52a   : > { %v4010_v47 = vpop.f32.mrf.mxu2 }
 0x52b   : > { %v4011_v1 = vadd.f32 %v4010_v47, %v11481_v35  ;;  %v4099_v54 = vpop.f32.mrf.mxu3 }
 0x52c   : > { %v3905_v38 = vpop.f32.mrf.mxu0 }
 0x52d   : > { %v4100_v41 = vadd.f32 %v4099_v54, %v4011_v1  ;;  %v3906_v48 = vadd.f32 %v3905_v38, %v3817_v21  ;;  %v3994_v28 = vpop.f32.mrf.mxu1 }
 0x52f   : > { %v11825_v5 = vadd.f32 %v3994_v28, %v3906_v48  ;;  %4052 = vmatmul.bf16.gmra.mxu2 %v14431_v61  ;;  %4220 = vmatmul.bf16.gmra.mxu0 %v14432_v14 }
 0x530   : > { %4141 = vmatmul.bf16.gmra.mxu3 %v14319_v2  ;;  %4309 = vmatmul.bf16.gmra.mxu1 %v14371_v27  ;;  %v14433_v27 = vld [vmem:[#allocation85_spill] sm:$0xff]  ;;  %v14434_v2 = vld [vmem:[#allocation64_spill] sm:$0xff] }
 0x532   : > { %v4013_v42 = vpop.f32.mrf.mxu2 }
 0x533   : > { %v4014_v53 = vadd.f32 %v4013_v42, %v11484_v22  ;;  %v4102_v39 = vpop.f32.mrf.mxu3  ;;  %v9027_v22 = vld [vmem:[%s13801_s1 + $0x1ec] sm:$0xf] }
 0x534   : > { %v3907_v35 = vpop.f32.mrf.mxu0 }
 0x535   : > { %v4103_v26 = vadd.f32 %v4102_v39, %v4014_v53  ;;  %v3908_v59 = vadd.f32 %v3907_v35, %v3819_v24  ;;  %v3996_v15 = vpop.f32.mrf.mxu1 }
 0x537   : > { %v11832_v21 = vadd.f32 %v3996_v15, %v3908_v59 }
 0x53a   : > { %v4015_v28 = vpop.f32.mrf.mxu2 }
 0x53b   : > { %v4016_v63 = vadd.f32 %v4015_v28, %v11491_v31  ;;  %v4104_v47 = vpop.f32.mrf.mxu3  ;;  %v7888_v31 = vld [vmem:[%s13801_s1 + $0x1f8] sm:$0xf0] }
 0x53c   : > { %v4186_v1 = vpop.f32.mrf.mxu0  ;;  %v7891_v24 = vor.u32 %v9027_v22, %v7888_v31 }
 0x53d   : > { %v4105_v54 = vadd.f32 %v4104_v47, %v4016_v63  ;;  %v4187_v38 = vadd.f32 %v4186_v1, %v4098_v34  ;;  %v11835_v48 = vpop.f32.mrf.mxu1  ;;  %v8016_v63 = vld [vmem:[%s13801_s1 + $0x2f8] sm:$0xf0] }
 0x53e   : > { %4355 = vmatpush.bf16.msra.mxu2 %v7891_v24 }
 0x53f   : > { %4057 = vmatmul.bf16.gmra.mxu2 %v14433_v27  ;;  %4225 = vmatmul.bf16.gmra.mxu0 %v14434_v2  ;;  %v5019_v35 = vmul.f32 0.2, %v4187_v38  ;;  %vm4891_vm0 = vcmp.gt.f32.partialorder %v4187_v38, 0.0 }
 0x540   : > { %4146 = vmatmul.bf16.gmra.mxu3 %v14323_v44  ;;  %4314 = vmatmul.bf16.gmra.mxu1 %v14375_v29  ;;  %v9059_v29 = vld [vmem:[%s13801_s1 + $0x2ec] sm:$0xf] }
 0x541   : > { %v8019_v47 = vor.u32 %v9059_v29, %v8016_v63  ;;  %v5147_v1 = vsel %vm4891_vm0, %v4187_v38, %v5019_v35 }
 0x542   : > { %v4018_v34 = vpop.f32.mrf.mxu2 }
 0x543   : > { %v4019_v42 = vadd.f32 %v4018_v34, %v11496_v7  ;;  %v4107_v53 = vpop.f32.mrf.mxu3  ;;  %4444 = vmatpush.bf16.msra.mxu3 %v8019_v47 }
 0x544   : > { %v4188_v39 = vpop.f32.mrf.mxu0 }
 0x545   : > { %v4108_v59 = vadd.f32 %v4107_v53, %v4019_v42  ;;  %v4189_v15 = vadd.f32 %v4188_v39, %v4100_v41  ;;  %v11848_v28 = vpop.f32.mrf.mxu1 }
 0x547   : > { %vm4895_vm1 = vcmp.gt.f32.partialorder %v4189_v15, 0.0  ;;  %v5023_v7 = vmul.f32 0.2, %v4189_v15 }
 0x549   : > { %v5151_v22 = vsel %vm4895_vm1, %v4189_v15, %v5023_v7 }
 0x54a   : > { %v11856_v31 = vpack.c.bf16 %v5151_v22, %v5147_v1  ;;  %v4020_v41 = vpop.f32.mrf.mxu2 }
 0x54b   : > { %v4021_v24 = vadd.f32 %v4020_v41, %v11526_v49  ;;  %v4109_v34 = vpop.f32.mrf.mxu3 }
 0x54c   : > { %14435 = vst [vmem:[#allocation24_spill] sm:$0xff] %v11856_v31  ;;  %v4191_v42 = vpop.f32.mrf.mxu0 }
 0x54d   : > { %v4110_v53 = vadd.f32 %v4109_v34, %v4021_v24  ;;  %v4192_v39 = vadd.f32 %v4191_v42, %v4103_v26  ;;  %v11859_v44 = vpop.f32.mrf.mxu1 }
 0x54f   : > { %4062 = vmatmul.bf16.gmra.mxu2 %v14320_v17  ;;  %4230 = vmatmul.bf16.gmra.mxu0 %v10631_v55  ;;  %v5027_v49 = vmul.f32 0.2, %v4192_v39  ;;  %vm4899_vm2 = vcmp.gt.f32.partialorder %v4192_v39, 0.0 }
 0x550   : > { %4151 = vmatmul.bf16.gmra.mxu3 %v14327_v12  ;;  %4319 = vmatmul.bf16.gmra.mxu1 %v14379_v10  ;;  %v14499_v12 = vld [vmem:[#allocation72_spill] sm:$0xff] }
 0x551   : > { %v5155_v1 = vsel %vm4899_vm2, %v4192_v39, %v5027_v49  ;;  %v9023_v39 = vld [vmem:[%s13801_s1 + $0x1cc] sm:$0xf]  ;;  %v8000_v49 = vld [vmem:[%s13801_s1 + $0x2d8] sm:$0xf0] }
 0x552   : > { %v4023_v38 = vpop.f32.mrf.mxu2 }
 0x553   : > { %v4024_v35 = vadd.f32 %v4023_v38, %v11555_v46  ;;  %v4112_v15 = vpop.f32.mrf.mxu3 }
 0x554   : > { %v4193_v29 = vpop.f32.mrf.mxu0 }
 0x555   : > { %v4113_v63 = vadd.f32 %v4112_v15, %v4024_v35  ;;  %v4194_v47 = vadd.f32 %v4193_v29, %v4105_v54  ;;  %v11866_v7 = vpop.f32.mrf.mxu1  ;;  %v14437_v54 = vld [vmem:[#allocation95_spill] sm:$0xff]  ;;  %v14438_v35 = vld [vmem:[#allocation70_spill] sm:$0xff]  ;;  %v9055_v29 = vld [vmem:[%s13801_s1 + $0x2cc] sm:$0xf] }
 0x557   : > { %vm4903_vm3 = vcmp.gt.f32.partialorder %v4194_v47, 0.0  ;;  %v5031_v26 = vmul.f32 0.2, %v4194_v47 }
 0x559   : > { %v5159_v22 = vsel %vm4903_vm3, %v4194_v47, %v5031_v26  ;;  %v8003_v26 = vor.u32 %v9055_v29, %v8000_v49 }
 0x55a   : > { %v4025_v41 = vpop.f32.mrf.mxu2  ;;  %v11868_v24 = vpack.c.bf16 %v5159_v22, %v5155_v1 }
 0x55b   : > { %v4026_v10 = vadd.f32 %v4025_v41, %v11589_v20  ;;  %v4114_v34 = vpop.f32.mrf.mxu3  ;;  %v7872_v20 = vld [vmem:[%s13801_s1 + $0x1d8] sm:$0xf0]  ;;  %4445 = vmatpush.bf16.msra.mxu3 %v8003_v26 }
 0x55c   : > { %14436 = vst [vmem:[#allocation76_spill] sm:$0xff] %v11868_v24  ;;  %v4196_v42 = vpop.f32.mrf.mxu0  ;;  %v7875_v15 = vor.u32 %v9023_v39, %v7872_v20  ;;  %v9051_v39 = vld [vmem:[%s13801_s1 + $0x2ac] sm:$0xf]  ;;  %v7840_v26 = vld [vmem:[%s13801_s1 + $0x198] sm:$0xf0] }
 0x55d   : > { %v11871_v46 = vadd.f32 %v4114_v34, %v4026_v10  ;;  %v4197_v38 = vadd.f32 %v4196_v42, %v4108_v59  ;;  %v11873_v31 = vpop.f32.mrf.mxu1  ;;  %v9019_v42 = vld [vmem:[%s13801_s1 + $0x1ac] sm:$0xf] }
 0x55e   : > { %4356 = vmatpush.bf16.msra.mxu2 %v7875_v15 }
 0x55f   : > { %4067 = vmatmul.bf16.gmra.mxu2 %v14437_v54  ;;  %4235 = vmatmul.bf16.gmra.mxu0 %v14438_v35  ;;  %vm4907_vm4 = vcmp.gt.f32.partialorder %v4197_v38, 0.0  ;;  %v5035_v22 = vmul.f32 0.2, %v4197_v38 }
 0x560   : > { %4156 = vmatmul.bf16.gmra.mxu3 %v14331_v13  ;;  %4324 = vmatmul.bf16.gmra.mxu1 %v14383_v58 }
 0x561   : > { %v5163_v29 = vsel %vm4907_vm4, %v4197_v38, %v5035_v22 }
 0x562   : > { %v4028_v59 = vpop.f32.mrf.mxu2 }
 0x563   : > { %v4029_v58 = vadd.f32 %v4028_v59, %v11619_v56  ;;  %v4117_v47 = vpop.f32.mrf.mxu3  ;;  %v7856_v56 = vld [vmem:[%s13801_s1 + $0x1b8] sm:$0xf0] }
 0x564   : > { %v4198_v1 = vpop.f32.mrf.mxu0  ;;  %v7859_v15 = vor.u32 %v9019_v42, %v7856_v56 }
 0x565   : > { %v11892_v41 = vadd.f32 %v4117_v47, %v4029_v58  ;;  %v4199_v10 = vadd.f32 %v4198_v1, %v4110_v53  ;;  %v11894_v34 = vpop.f32.mrf.mxu1  ;;  %v7984_v53 = vld [vmem:[%s13801_s1 + $0x2b8] sm:$0xf0]  ;;  %v9015_v47 = vld [vmem:[%s13801_s1 + $0x18c] sm:$0xf] }
 0x566   : > { %v7987_v59 = vor.u32 %v9051_v39, %v7984_v53  ;;  %4357 = vmatpush.bf16.msra.mxu2 %v7859_v15  ;;  %v9047_v1 = vld [vmem:[%s13801_s1 + $0x28c] sm:$0xf]  ;;  %v7843_v22 = vor.u32 %v9015_v47, %v7840_v26  ;;  %v7952_v47 = vld [vmem:[%s13801_s1 + $0x278] sm:$0xf0]  ;;  %v14441_v26 = vld [vmem:[#allocation101_spill] sm:$0xff] }
 0x567   : > { %vm4911_vm5 = vcmp.gt.f32.partialorder %v4199_v10, 0.0  ;;  %v5039_v20 = vmul.f32 0.2, %v4199_v10 }
 0x568   : > { %4446 = vmatpush.bf16.msra.mxu3 %v7987_v59 }
 0x569   : > { %v5167_v49 = vsel %vm4911_vm5, %v4199_v10, %v5039_v20  ;;  %v7968_v10 = vld [vmem:[%s13801_s1 + $0x298] sm:$0xf0] }
 0x56a   : > { %v4030_v58 = vpop.f32.mrf.mxu2  ;;  %v11917_v42 = vpack.c.bf16 %v5167_v49, %v5163_v29  ;;  %v7971_v20 = vor.u32 %v9047_v1, %v7968_v10  ;;  %4358 = vmatpush.bf16.msra.mxu2 %v7843_v22  ;;  %v9011_v29 = vld [vmem:[%s13801_s1 + $0x16c] sm:$0xf]  ;;  %v7808_v22 = vld [vmem:[%s13801_s1 + $0x158] sm:$0xf0] }
 0x56b   : > { %v4031_v56 = vadd.f32 %v4030_v58, %v11653_v33  ;;  %v4119_v38 = vpop.f32.mrf.mxu3  ;;  %v7824_v33 = vld [vmem:[%s13801_s1 + $0x178] sm:$0xf0]  ;;  %v9043_v49 = vld [vmem:[%s13801_s1 + $0x26c] sm:$0xf] }
 0x56c   : > { %14439 = vst [vmem:[#allocation80_spill] sm:$0xff] %v11917_v42  ;;  %v4201_v39 = vpop.f32.mrf.mxu0  ;;  %4447 = vmatpush.bf16.msra.mxu3 %v7971_v20  ;;  %v14440_v58 = vld [vmem:[#allocation88_spill] sm:$0xff]  ;;  %v7955_v1 = vor.u32 %v9043_v49, %v7952_v47 }
 0x56d   : > { %v11923_v15 = vadd.f32 %v4119_v38, %v4031_v56  ;;  %v4202_v53 = vadd.f32 %v4201_v39, %v4113_v63  ;;  %v11925_v59 = vpop.f32.mrf.mxu1  ;;  %v7827_v63 = vor.u32 %v9011_v29, %v7824_v33  ;;  %v9007_v38 = vld [vmem:[%s13801_s1 + $0x14c] sm:$0xf]  ;;  %v7936_v29 = vld [vmem:[%s13801_s1 + $0x258] sm:$0xf0] }
 0x56e   : > { %v9039_v10 = vld [vmem:[%s13801_s1 + $0x24c] sm:$0xf] }
 0x56f   : > { %4072 = vmatmul.bf16.gmra.mxu2 %v14328_v3  ;;  %4240 = vmatmul.bf16.gmra.mxu0 %v14440_v58  ;;  %v7939_v49 = vor.u32 %v9039_v10, %v7936_v29  ;;  %vm4915_vm6 = vcmp.gt.f32.partialorder %v4202_v53, 0.0 }
 0x570   : > { %4161 = vmatmul.bf16.gmra.mxu3 %v14441_v26  ;;  %4329 = vmatmul.bf16.gmra.mxu1 %v14387_v30  ;;  %v7811_v30 = vor.u32 %v9007_v38, %v7808_v22  ;;  %v9035_v38 = vld [vmem:[%s13801_s1 + $0x22c] sm:$0xf] }
 0x571   : > { %4359 = vmatpush.bf16.msra.mxu2 %v7827_v63  ;;  %4448 = vmatpush.bf16.msra.mxu3 %v7955_v1  ;;  %v5043_v63 = vmul.f32 0.2, %v4202_v53 }
 0x572   : > { %v4033_v56 = vpop.f32.mrf.mxu2 }
 0x573   : > { %v4034_v39 = vadd.f32 %v4033_v56, %v11683_v19  ;;  %v4122_v20 = vpop.f32.mrf.mxu3  ;;  %v9003_v19 = vld [vmem:[%s13801_s1 + $0x12c] sm:$0xf]  ;;  %v7792_v56 = vld [vmem:[%s13801_s1 + $0x138] sm:$0xf0] }
 0x574   : > { %v4203_v33 = vpop.f32.mrf.mxu0  ;;  %v7795_v10 = vor.u32 %v9003_v19, %v7792_v56  ;;  %v9031_v19 = vld [vmem:[%s13801_s1 + $0x20c] sm:$0xf] }
 0x575   : > { %v11956_v47 = vadd.f32 %v4122_v20, %v4034_v39  ;;  %v4204_v1 = vadd.f32 %v4203_v33, %v11871_v46  ;;  %v11959_v42 = vpop.f32.mrf.mxu1  ;;  %4360 = vmatpush.bf16.msra.mxu2 %v7811_v30  ;;  %4449 = vmatpush.bf16.msra.mxu3 %v7939_v49  ;;  %v7920_v46 = vld [vmem:[%s13801_s1 + $0x238] sm:$0xf0]  ;;  %v5171_v20 = vsel %vm4915_vm6, %v4202_v53, %v5043_v63  ;;  %v8999_v33 = vld [vmem:[%s13801_s1 + $0x10c] sm:$0xf] }
 0x576   : > { %v7923_v39 = vor.u32 %v9035_v38, %v7920_v46  ;;  %v7776_v49 = vld [vmem:[%s13801_s1 + $0x118] sm:$0xf0] }
 0x577   : > { %vm4919_vm7 = vcmp.gt.f32.partialorder %v4204_v1, 0.0  ;;  %v5047_v22 = vmul.f32 0.2, %v4204_v1  ;;  %v7779_v63 = vor.u32 %v8999_v33, %v7776_v49  ;;  %v14444_v33 = vld [vmem:[#allocation113_spill] sm:$0xff]  ;;  %v8272_v49 = vld [vmem:[%s13801_s1 + $0x4f8] sm:$0xf0] }
 0x579   : > { %4361 = vmatpush.bf16.msra.mxu2 %v7795_v10  ;;  %v5175_v30 = vsel %vm4919_vm7, %v4204_v1, %v5047_v22  ;;  %4450 = vmatpush.bf16.msra.mxu3 %v7923_v39  ;;  %v7904_v1 = vld [vmem:[%s13801_s1 + $0x218] sm:$0xf0] }
 0x57a   : > { %v4035_v29 = vpop.f32.mrf.mxu2  ;;  %v11983_v56 = vpack.c.bf16 %v5175_v30, %v5171_v20  ;;  %v7907_v10 = vor.u32 %v9031_v19, %v7904_v1  ;;  %v8144_v20 = vld [vmem:[%s13801_s1 + $0x3f8] sm:$0xf0]  ;;  %v9123_v30 = vld [vmem:[%s13801_s1 + $0x4ec] sm:$0xf] }
 0x57b   : > { %v4036_v38 = vadd.f32 %v4035_v29, %v11715_v9  ;;  %v4124_v53 = vpop.f32.mrf.mxu3  ;;  %v9091_v9 = vld [vmem:[%s13801_s1 + $0x3ec] sm:$0xf]  ;;  %v14443_v29 = vld [vmem:[#allocation102_spill] sm:$0xff]  ;;  %v8275_v19 = vor.u32 %v9123_v30, %v8272_v49 }
 0x57c   : > { %14442 = vst [vmem:[#allocation59_spill] sm:$0xff] %v11983_v56  ;;  %v4206_v22 = vpop.f32.mrf.mxu0  ;;  %v9119_v1 = vld [vmem:[%s13801_s1 + $0x4cc] sm:$0xf] }
 0x57d   : > { %v11989_v46 = vadd.f32 %v4124_v53, %v4036_v38  ;;  %v4207_v39 = vadd.f32 %v4206_v22, %v11892_v41  ;;  %v11992_v24 = vpop.f32.mrf.mxu1  ;;  %4362 = vmatpush.bf16.msra.mxu2 %v7779_v63  ;;  %4451 = vmatpush.bf16.msra.mxu3 %v7907_v10  ;;  %v8147_v41 = vor.u32 %v9091_v9, %v8144_v20  ;;  %v9087_v53 = vld [vmem:[%s13801_s1 + $0x3cc] sm:$0xf]  ;;  %v8128_v63 = vld [vmem:[%s13801_s1 + $0x3d8] sm:$0xf0] }
 0x57e   : > { %4622 = vmatpush.bf16.msra.mxu1 %v8275_v19  ;;  %v8256_v9 = vld [vmem:[%s13801_s1 + $0x4d8] sm:$0xf0] }
 0x57f   : > { %4077 = vmatmul.bf16.gmra.mxu2 %v14443_v29  ;;  %4245 = vmatmul.bf16.gmra.mxu0 %v14444_v33  ;;  %v8259_v30 = vor.u32 %v9119_v1, %v8256_v9  ;;  %vm4923_vm8 = vcmp.gt.f32.partialorder %v4207_v39, 0.0 }
 0x580   : > { %4166 = vmatmul.bf16.gmra.mxu3 %v14340_v45  ;;  %4334 = vmatmul.bf16.gmra.mxu1 %v14390_v36  ;;  %v8131_v36 = vor.u32 %v9087_v53, %v8128_v63  ;;  %v9115_v53 = vld [vmem:[%s13801_s1 + $0x4ac] sm:$0xf] }
 0x581   : > { %4533 = vmatpush.bf16.msra.mxu0 %v8147_v41  ;;  %v5051_v41 = vmul.f32 0.2, %v4207_v39 }
 0x582   : > { %v4038_v38 = vpop.f32.mrf.mxu2  ;;  %4623 = vmatpush.bf16.msra.mxu1 %v8259_v30  ;;  %v8096_v30 = vld [vmem:[%s13801_s1 + $0x398] sm:$0xf0] }
 0x583   : > { %v4039_v22 = vadd.f32 %v4038_v38, %v11734_v50  ;;  %v4127_v10 = vpop.f32.mrf.mxu3  ;;  %v9083_v50 = vld [vmem:[%s13801_s1 + $0x3ac] sm:$0xf]  ;;  %v8112_v38 = vld [vmem:[%s13801_s1 + $0x3b8] sm:$0xf0] }
 0x584   : > { %v4208_v20 = vpop.f32.mrf.mxu0  ;;  %v8115_v1 = vor.u32 %v9083_v50, %v8112_v38  ;;  %v9111_v50 = vld [vmem:[%s13801_s1 + $0x48c] sm:$0xf] }
 0x585   : > { %v12023_v49 = vadd.f32 %v4127_v10, %v4039_v22  ;;  %v4209_v19 = vadd.f32 %v4208_v20, %v11923_v15  ;;  %v12026_v56 = vpop.f32.mrf.mxu1  ;;  %4534 = vmatpush.bf16.msra.mxu0 %v8131_v36  ;;  %v8240_v15 = vld [vmem:[%s13801_s1 + $0x4b8] sm:$0xf0]  ;;  %v5179_v10 = vsel %vm4923_vm8, %v4207_v39, %v5051_v41  ;;  %v9079_v20 = vld [vmem:[%s13801_s1 + $0x38c] sm:$0xf] }
 0x586   : > { %v8243_v22 = vor.u32 %v9115_v53, %v8240_v15  ;;  %v8099_v41 = vor.u32 %v9079_v20, %v8096_v30  ;;  %v14447_v20 = vld [vmem:[#allocation115_spill] sm:$0xff]  ;;  %v8208_v30 = vld [vmem:[%s13801_s1 + $0x478] sm:$0xf0] }
 0x587   : > { %vm4927_vm9 = vcmp.gt.f32.partialorder %v4209_v19, 0.0  ;;  %v5055_v63 = vmul.f32 0.2, %v4209_v19 }
 0x588   : > { %4624 = vmatpush.bf16.msra.mxu1 %v8243_v22 }
 0x589   : > { %4535 = vmatpush.bf16.msra.mxu0 %v8115_v1  ;;  %v5183_v36 = vsel %vm4927_vm9, %v4209_v19, %v5055_v63  ;;  %v8224_v19 = vld [vmem:[%s13801_s1 + $0x498] sm:$0xf0] }
 0x58a   : > { %v4040_v9 = vpop.f32.mrf.mxu2  ;;  %v12050_v38 = vpack.c.bf16 %v5183_v36, %v5179_v10  ;;  %v8227_v1 = vor.u32 %v9111_v50, %v8224_v19  ;;  %v8080_v10 = vld [vmem:[%s13801_s1 + $0x378] sm:$0xf0]  ;;  %v9107_v36 = vld [vmem:[%s13801_s1 + $0x46c] sm:$0xf] }
 0x58b   : > { %v4041_v53 = vadd.f32 %v4040_v9, %v11742_v40  ;;  %v4129_v39 = vpop.f32.mrf.mxu3  ;;  %v9075_v40 = vld [vmem:[%s13801_s1 + $0x36c] sm:$0xf]  ;;  %v14446_v9 = vld [vmem:[#allocation105_spill] sm:$0xff]  ;;  %v8211_v50 = vor.u32 %v9107_v36, %v8208_v30 }
 0x58c   : > { %14445 = vst [vmem:[#allocation85_spill] sm:$0xff] %v12050_v38  ;;  %v4211_v63 = vpop.f32.mrf.mxu0  ;;  %4625 = vmatpush.bf16.msra.mxu1 %v8227_v1  ;;  %v9103_v19 = vld [vmem:[%s13801_s1 + $0x44c] sm:$0xf] }
 0x58d   : > { %v12056_v15 = vadd.f32 %v4129_v39, %v4041_v53  ;;  %v4212_v22 = vadd.f32 %v4211_v63, %v11956_v47  ;;  %v12059_v45 = vpop.f32.mrf.mxu1  ;;  %4536 = vmatpush.bf16.msra.mxu0 %v8099_v41  ;;  %v8083_v47 = vor.u32 %v9075_v40, %v8080_v10  ;;  %v9071_v39 = vld [vmem:[%s13801_s1 + $0x34c] sm:$0xf]  ;;  %v8064_v41 = vld [vmem:[%s13801_s1 + $0x358] sm:$0xf0] }
 0x58e   : > { %v8192_v40 = vld [vmem:[%s13801_s1 + $0x458] sm:$0xf0] }
 0x58f   : > { %4082 = vmatmul.bf16.gmra.mxu2 %v14446_v9  ;;  %4250 = vmatmul.bf16.gmra.mxu0 %v14447_v20  ;;  %v8195_v36 = vor.u32 %v9103_v19, %v8192_v40  ;;  %vm4931_vm10 = vcmp.gt.f32.partialorder %v4212_v22, 0.0 }
 0x590   : > { %4171 = vmatmul.bf16.gmra.mxu3 %v14345_v57  ;;  %4339 = vmatmul.bf16.gmra.mxu1 %v14393_v60  ;;  %v8067_v60 = vor.u32 %v9071_v39, %v8064_v41  ;;  %v9099_v39 = vld [vmem:[%s13801_s1 + $0x42c] sm:$0xf] }
 0x591   : > { %4537 = vmatpush.bf16.msra.mxu0 %v8083_v47  ;;  %4626 = vmatpush.bf16.msra.mxu1 %v8211_v50  ;;  %v5059_v47 = vmul.f32 0.2, %v4212_v22 }
 0x592   : > { %v4043_v53 = vpop.f32.mrf.mxu2 }
 0x593   : > { %v4044_v63 = vadd.f32 %v4043_v53, %v11745_v8  ;;  %v4132_v1 = vpop.f32.mrf.mxu3  ;;  %v9067_v8 = vld [vmem:[%s13801_s1 + $0x32c] sm:$0xf]  ;;  %v8048_v53 = vld [vmem:[%s13801_s1 + $0x338] sm:$0xf0] }
 0x594   : > { %v4213_v10 = vpop.f32.mrf.mxu0  ;;  %v8051_v19 = vor.u32 %v9067_v8, %v8048_v53  ;;  %v9095_v8 = vld [vmem:[%s13801_s1 + $0x40c] sm:$0xf] }
 0x595   : > { %v4133_v30 = vadd.f32 %v4132_v1, %v4044_v63  ;;  %v4214_v50 = vadd.f32 %v4213_v10, %v11989_v46  ;;  %v12091_v38 = vpop.f32.mrf.mxu1  ;;  %4538 = vmatpush.bf16.msra.mxu0 %v8067_v60  ;;  %4627 = vmatpush.bf16.msra.mxu1 %v8195_v36  ;;  %v8176_v46 = vld [vmem:[%s13801_s1 + $0x438] sm:$0xf0]  ;;  %v5187_v1 = vsel %vm4931_vm10, %v4212_v22, %v5059_v47  ;;  %v9063_v10 = vld [vmem:[%s13801_s1 + $0x30c] sm:$0xf] }
 0x596   : > { %v8179_v63 = vor.u32 %v9099_v39, %v8176_v46  ;;  %v8032_v36 = vld [vmem:[%s13801_s1 + $0x318] sm:$0xf0] }
 0x597   : > { %vm4935_vm11 = vcmp.gt.f32.partialorder %v4214_v50, 0.0  ;;  %v5063_v41 = vmul.f32 0.2, %v4214_v50  ;;  %v8035_v47 = vor.u32 %v9063_v10, %v8032_v36 }
 0x599   : > { %4539 = vmatpush.bf16.msra.mxu0 %v8051_v19  ;;  %v5191_v60 = vsel %vm4935_vm11, %v4214_v50, %v5063_v41  ;;  %4628 = vmatpush.bf16.msra.mxu1 %v8179_v63  ;;  %v8160_v50 = vld [vmem:[%s13801_s1 + $0x418] sm:$0xf0] }
 0x59a   : > { %v4045_v40 = vpop.f32.mrf.mxu2  ;;  %v12115_v53 = vpack.c.bf16 %v5191_v60, %v5187_v1  ;;  %v8163_v19 = vor.u32 %v9095_v8, %v8160_v50  ;;  %v14449_v1 = vld [vmem:[#allocation5_spill] sm:$0xff] }
 0x59b   : > { %v4046_v39 = vadd.f32 %v4045_v40, %v11752_v4  ;;  %v4134_v22 = vpop.f32.mrf.mxu3  ;;  %v14450_v4 = vld [vmem:[#allocation32_spill] sm:$0xff] }
 0x59c   : > { %14448 = vst [vmem:[#allocation64_spill] sm:$0xff] %v12115_v53  ;;  %v4216_v41 = vpop.f32.mrf.mxu0  ;;  %v14451_v40 = vld [vmem:[#allocation8_spill] sm:$0xff] }
 0x59d   : > { %v4135_v46 = vadd.f32 %v4134_v22, %v4046_v39  ;;  %v4217_v63 = vadd.f32 %v4216_v41, %v12023_v49  ;;  %v12122_v57 = vpop.f32.mrf.mxu1  ;;  %4540 = vmatpush.bf16.msra.mxu0 %v8035_v47  ;;  %4629 = vmatpush.bf16.msra.mxu1 %v8163_v19 }
 0x59f   : > { %4255 = vmatmul.bf16.gmra.mxu0 %v14342_v11  ;;  %4363 = vmatmul.bf16.vlgmr.msra.gmra.mxu2 %v14449_v1  ;;  %v5067_v39 = vmul.f32 0.2, %v4217_v63  ;;  %vm4939_vm12 = vcmp.gt.f32.partialorder %v4217_v63, 0.0 }
 0x5a0   : > { %4344 = vmatmul.bf16.gmra.mxu1 %v14396_v25  ;;  %4452 = vmatmul.bf16.vlgmr.msra.gmra.mxu3 %v14450_v4 }
 0x5a1   : > { %v5195_v41 = vsel %vm4939_vm12, %v4217_v63, %v5067_v39  ;;  %v14457_v39 = vld [vmem:[#allocation12_spill] sm:$0xff] }
 0x5a2   : > { %v4048_v60 = vpop.f32.mrf.mxu2 }
 0x5a3   : > { %v4049_v10 = vadd.f32 %v4048_v60, %v14451_v40  ;;  %v4137_v36 = vpop.f32.mrf.mxu3 }
 0x5a4   : > { %v4218_v8 = vpop.f32.mrf.mxu0 }
 0x5a5   : > { %v4138_v22 = vadd.f32 %v4137_v36, %v4049_v10  ;;  %v4219_v49 = vadd.f32 %v4218_v8, %v12056_v15  ;;  %v12130_v50 = vpop.f32.mrf.mxu1  ;;  %v14453_v10 = vld [vmem:[#allocation119_spill] sm:$0xff]  ;;  %v14454_v15 = vld [vmem:[#allocation9_spill] sm:$0xff]  ;;  %v14455_v36 = vld [vmem:[#allocation28_spill] sm:$0xff] }
 0x5a6   : > { %v14456_v8 = vld [vmem:[#allocation36_spill] sm:$0xff] }
 0x5a7   : > { %vm4943_vm13 = vcmp.gt.f32.partialorder %v4219_v49, 0.0  ;;  %v5071_v47 = vmul.f32 0.2, %v4219_v49 }
 0x5a9   : > { %v5199_v19 = vsel %vm4943_vm13, %v4219_v49, %v5071_v47 }
 0x5aa   : > { %v4050_v1 = vpop.f32.mrf.mxu2  ;;  %v12132_v25 = vpack.c.bf16 %v5199_v19, %v5195_v41 }
 0x5ab   : > { %v4051_v4 = vadd.f32 %v4050_v1, %v11762_v18  ;;  %v4139_v53 = vpop.f32.mrf.mxu3 }
 0x5ac   : > { %14452 = vst [vmem:[#allocation95_spill] sm:$0xff] %v12132_v25  ;;  %v4221_v60 = vpop.f32.mrf.mxu0 }
 0x5ad   : > { %v4140_v40 = vadd.f32 %v4139_v53, %v4051_v4  ;;  %v4222_v11 = vadd.f32 %v4221_v60, %v4133_v30  ;;  %v12135_v20 = vpop.f32.mrf.mxu1 }
 0x5af   : > { %4260 = vmatmul.bf16.gmra.mxu0 %v14453_v10  ;;  %4368 = vmatmul.bf16.gmra.mxu2 %v14454_v15  ;;  %v5075_v18 = vmul.f32 0.2, %v4222_v11  ;;  %vm4947_vm14 = vcmp.gt.f32.partialorder %v4222_v11, 0.0 }
 0x5b0   : > { %4349 = vmatmul.bf16.gmra.mxu1 %v14455_v36  ;;  %4457 = vmatmul.bf16.gmra.mxu3 %v14456_v8 }
 0x5b1   : > { %v5203_v4 = vsel %vm4947_vm14, %v4222_v11, %v5075_v18  ;;  %v14463_v18 = vld [vmem:[#allocation16_spill] sm:$0xff] }
 0x5b2   : > { %v4053_v63 = vpop.f32.mrf.mxu2 }
 0x5b3   : > { %v4054_v49 = vadd.f32 %v4053_v63, %v14457_v39  ;;  %v4142_v47 = vpop.f32.mrf.mxu3 }
 0x5b4   : > { %v4223_v41 = vpop.f32.mrf.mxu0 }
 0x5b5   : > { %v4143_v19 = vadd.f32 %v4142_v47, %v4054_v49  ;;  %v4224_v1 = vadd.f32 %v4223_v41, %v4135_v46  ;;  %v12142_v53 = vpop.f32.mrf.mxu1  ;;  %v14459_v49 = vld [vmem:[#allocation13_spill] sm:$0xff]  ;;  %v14460_v46 = vld [vmem:[#allocation34_spill] sm:$0xff]  ;;  %v14461_v47 = vld [vmem:[#allocation39_spill] sm:$0xff] }
 0x5b6   : > { %v14462_v41 = vld [vmem:[#allocation40_spill] sm:$0xff] }
 0x5b7   : > { %vm4951_vm15 = vcmp.gt.f32.partialorder %v4224_v1, 0.0  ;;  %v5079_v30 = vmul.f32 0.2, %v4224_v1 }
 0x5b9   : > { %v5207_v60 = vsel %vm4951_vm15, %v4224_v1, %v5079_v30 }
 0x5ba   : > { %v4055_v15 = vpop.f32.mrf.mxu2  ;;  %v12144_v25 = vpack.c.bf16 %v5207_v60, %v5203_v4 }
 0x5bb   : > { %v4056_v36 = vadd.f32 %v4055_v15, %v11772_v62  ;;  %v4144_v8 = vpop.f32.mrf.mxu3 }
 0x5bc   : > { %14458 = vst [vmem:[#allocation70_spill] sm:$0xff] %v12144_v25  ;;  %v4226_v10 = vpop.f32.mrf.mxu0 }
 0x5bd   : > { %v4145_v63 = vadd.f32 %v4144_v8, %v4056_v36  ;;  %v4227_v39 = vadd.f32 %v4226_v10, %v4138_v22  ;;  %v12147_v26 = vpop.f32.mrf.mxu1 }
 0x5bf   : > { %4373 = vmatmul.bf16.gmra.mxu2 %v14459_v49  ;;  %4541 = vmatmul.bf16.vlgmr.msra.gmra.mxu0 %v14460_v46  ;;  %v5083_v62 = vmul.f32 0.2, %v4227_v39  ;;  %vm4955_vm0 = vcmp.gt.f32.partialorder %v4227_v39, 0.0 }
 0x5c0   : > { %4462 = vmatmul.bf16.gmra.mxu3 %v14461_v47  ;;  %4630 = vmatmul.bf16.vlgmr.msra.gmra.mxu1 %v14462_v41 }
 0x5c1   : > { %v5211_v10 = vsel %vm4955_vm0, %v4227_v39, %v5083_v62 }
 0x5c2   : > { %v4058_v11 = vpop.f32.mrf.mxu2 }
 0x5c3   : > { %v4059_v1 = vadd.f32 %v4058_v11, %v14463_v18  ;;  %v4147_v30 = vpop.f32.mrf.mxu3 }
 0x5c4   : > { %v4228_v4 = vpop.f32.mrf.mxu0 }
 0x5c5   : > { %v4148_v60 = vadd.f32 %v4147_v30, %v4059_v1  ;;  %v4229_v15 = vadd.f32 %v4228_v4, %v4140_v40  ;;  %v12154_v36 = vpop.f32.mrf.mxu1  ;;  %v14465_v1 = vld [vmem:[#allocation17_spill] sm:$0xff]  ;;  %v14466_v40 = vld [vmem:[#allocation38_spill] sm:$0xff]  ;;  %v14467_v30 = vld [vmem:[#allocation43_spill] sm:$0xff] }
 0x5c6   : > { %v14468_v4 = vld [vmem:[#allocation44_spill] sm:$0xff] }
 0x5c7   : > { %vm4959_vm1 = vcmp.gt.f32.partialorder %v4229_v15, 0.0  ;;  %v5087_v22 = vmul.f32 0.2, %v4229_v15 }
 0x5c9   : > { %v5215_v8 = vsel %vm4959_vm1, %v4229_v15, %v5087_v22 }
 0x5ca   : > { %v4060_v49 = vpop.f32.mrf.mxu2  ;;  %v12156_v46 = vpack.c.bf16 %v5215_v8, %v5211_v10 }
 0x5cb   : > { %v4061_v47 = vadd.f32 %v4060_v49, %v11782_v32  ;;  %v4149_v41 = vpop.f32.mrf.mxu3 }
 0x5cc   : > { %14464 = vst [vmem:[#allocation102_spill] sm:$0xff] %v12156_v46  ;;  %v4231_v25 = vpop.f32.mrf.mxu0 }
 0x5cd   : > { %v4150_v11 = vadd.f32 %v4149_v41, %v4061_v47  ;;  %v4232_v18 = vadd.f32 %v4231_v25, %v4143_v19  ;;  %v12159_v33 = vpop.f32.mrf.mxu1 }
 0x5cf   : > { %4378 = vmatmul.bf16.gmra.mxu2 %v14465_v1  ;;  %4546 = vmatmul.bf16.gmra.mxu0 %v14466_v40  ;;  %v5091_v32 = vmul.f32 0.2, %v4232_v18  ;;  %vm4963_vm2 = vcmp.gt.f32.partialorder %v4232_v18, 0.0 }
 0x5d0   : > { %4467 = vmatmul.bf16.gmra.mxu3 %v14467_v30  ;;  %4635 = vmatmul.bf16.gmra.mxu1 %v14468_v4 }
 0x5d1   : > { %v5219_v19 = vsel %vm4963_vm2, %v4232_v18, %v5091_v32  ;;  %v14474_v32 = vld [vmem:[#allocation20_spill] sm:$0xff] }
 0x5d2   : > { %v4063_v39 = vpop.f32.mrf.mxu2 }
 0x5d3   : > { %v4064_v62 = vadd.f32 %v4063_v39, %v11785_v6  ;;  %v4152_v15 = vpop.f32.mrf.mxu3 }
 0x5d4   : > { %v4233_v22 = vpop.f32.mrf.mxu0 }
 0x5d5   : > { %v4153_v10 = vadd.f32 %v4152_v15, %v4064_v62  ;;  %v4234_v8 = vadd.f32 %v4233_v22, %v4145_v63  ;;  %v12166_v49 = vpop.f32.mrf.mxu1  ;;  %v14470_v62 = vld [vmem:[#allocation21_spill] sm:$0xff]  ;;  %v14472_v15 = vld [vmem:[#allocation47_spill] sm:$0xff]  ;;  %v14473_v22 = vld [vmem:[#allocation48_spill] sm:$0xff] }
 0x5d6   : > { %v14471_v63 = vld [vmem:[#allocation41_spill] sm:$0xff] }
 0x5d7   : > { %vm4967_vm3 = vcmp.gt.f32.partialorder %v4234_v8, 0.0  ;;  %v5095_v25 = vmul.f32 0.2, %v4234_v8 }
 0x5d9   : > { %v5223_v47 = vsel %vm4967_vm3, %v4234_v8, %v5095_v25 }
 0x5da   : > { %v4065_v41 = vpop.f32.mrf.mxu2  ;;  %v12168_v1 = vpack.c.bf16 %v5223_v47, %v5219_v19 }
 0x5db   : > { %v4066_v40 = vadd.f32 %v4065_v41, %v11792_v43  ;;  %v4154_v30 = vpop.f32.mrf.mxu3 }
 0x5dc   : > { %14469 = vst [vmem:[#allocation105_spill] sm:$0xff] %v12168_v1  ;;  %v4236_v4 = vpop.f32.mrf.mxu0 }
 0x5dd   : > { %v4155_v6 = vadd.f32 %v4154_v30, %v4066_v40  ;;  %v4237_v39 = vadd.f32 %v4236_v4, %v4148_v60  ;;  %v12171_v46 = vpop.f32.mrf.mxu1 }
 0x5df   : > { %4383 = vmatmul.bf16.gmra.mxu2 %v14470_v62  ;;  %4551 = vmatmul.bf16.gmra.mxu0 %v14471_v63  ;;  %v5099_v43 = vmul.f32 0.2, %v4237_v39  ;;  %vm4971_vm4 = vcmp.gt.f32.partialorder %v4237_v39, 0.0 }
 0x5e0   : > { %4472 = vmatmul.bf16.gmra.mxu3 %v14472_v15  ;;  %4640 = vmatmul.bf16.gmra.mxu1 %v14473_v22 }
 0x5e1   : > { %v5227_v30 = vsel %vm4971_vm4, %v4237_v39, %v5099_v43 }
 0x5e2   : > { %v4068_v18 = vpop.f32.mrf.mxu2 }
 0x5e3   : > { %v4069_v8 = vadd.f32 %v4068_v18, %v14474_v32  ;;  %v4157_v25 = vpop.f32.mrf.mxu3 }
 0x5e4   : > { %v4238_v19 = vpop.f32.mrf.mxu0 }
 0x5e5   : > { %v4158_v47 = vadd.f32 %v4157_v25, %v4069_v8  ;;  %v4239_v41 = vadd.f32 %v4238_v19, %v4150_v11  ;;  %v12178_v40 = vpop.f32.mrf.mxu1  ;;  %v14476_v8 = vld [vmem:[#allocation25_spill] sm:$0xff]  ;;  %v14478_v25 = vld [vmem:[#allocation51_spill] sm:$0xff]  ;;  %v14479_v19 = vld [vmem:[#allocation52_spill] sm:$0xff] }
 0x5e6   : > { %v14477_v11 = vld [vmem:[#allocation45_spill] sm:$0xff] }
 0x5e7   : > { %vm4975_vm5 = vcmp.gt.f32.partialorder %v4239_v41, 0.0  ;;  %v5103_v60 = vmul.f32 0.2, %v4239_v41 }
 0x5e9   : > { %v5231_v4 = vsel %vm4975_vm5, %v4239_v41, %v5103_v60 }
 0x5ea   : > { %v4070_v62 = vpop.f32.mrf.mxu2  ;;  %v12180_v63 = vpack.c.bf16 %v5231_v4, %v5227_v30 }
 0x5eb   : > { %v4071_v15 = vadd.f32 %v4070_v62, %v11802_v52  ;;  %v4159_v22 = vpop.f32.mrf.mxu3 }
 0x5ec   : > { %14475 = vst [vmem:[#allocation5_spill] sm:$0xff] %v12180_v63  ;;  %v4241_v1 = vpop.f32.mrf.mxu0 }
 0x5ed   : > { %v4160_v18 = vadd.f32 %v4159_v22, %v4071_v15  ;;  %v4242_v32 = vadd.f32 %v4241_v1, %v4153_v10  ;;  %v12183_v13 = vpop.f32.mrf.mxu1 }
 0x5ef   : > { %4388 = vmatmul.bf16.gmra.mxu2 %v14476_v8  ;;  %4556 = vmatmul.bf16.gmra.mxu0 %v14477_v11  ;;  %v5107_v52 = vmul.f32 0.2, %v4242_v32  ;;  %vm4979_vm6 = vcmp.gt.f32.partialorder %v4242_v32, 0.0 }
 0x5f0   : > { %4477 = vmatmul.bf16.gmra.mxu3 %v14478_v25  ;;  %4645 = vmatmul.bf16.gmra.mxu1 %v14479_v19 }
 0x5f1   : > { %v5235_v1 = vsel %vm4979_vm6, %v4242_v32, %v5107_v52 }
 0x5f2   : > { %v4073_v39 = vpop.f32.mrf.mxu2 }
 0x5f3   : > { %v4074_v43 = vadd.f32 %v4073_v39, %v11805_v16  ;;  %v4162_v41 = vpop.f32.mrf.mxu3 }
 0x5f4   : > { %v4243_v60 = vpop.f32.mrf.mxu0 }
 0x5f5   : > { %v4163_v30 = vadd.f32 %v4162_v41, %v4074_v43  ;;  %v4244_v4 = vadd.f32 %v4243_v60, %v4155_v6  ;;  %v12190_v62 = vpop.f32.mrf.mxu1  ;;  %v14481_v43 = vld [vmem:[#allocation29_spill] sm:$0xff]  ;;  %v14483_v41 = vld [vmem:[#allocation55_spill] sm:$0xff]  ;;  %v14484_v60 = vld [vmem:[#allocation56_spill] sm:$0xff] }
 0x5f6   : > { %v14482_v6 = vld [vmem:[#allocation49_spill] sm:$0xff] }
 0x5f7   : > { %vm4983_vm7 = vcmp.gt.f32.partialorder %v4244_v4, 0.0  ;;  %v5111_v10 = vmul.f32 0.2, %v4244_v4 }
 0x5f9   : > { %v5239_v15 = vsel %vm4983_vm7, %v4244_v4, %v5111_v10 }
 0x5fa   : > { %v4075_v22 = vpop.f32.mrf.mxu2  ;;  %v12192_v8 = vpack.c.bf16 %v5239_v15, %v5235_v1 }
 0x5fb   : > { %v4076_v11 = vadd.f32 %v4075_v22, %v11812_v0  ;;  %v4164_v25 = vpop.f32.mrf.mxu3 }
 0x5fc   : > { %14480 = vst [vmem:[#allocation32_spill] sm:$0xff] %v12192_v8  ;;  %v4246_v19 = vpop.f32.mrf.mxu0 }
 0x5fd   : > { %v4165_v16 = vadd.f32 %v4164_v25, %v4076_v11  ;;  %v4247_v39 = vadd.f32 %v4246_v19, %v4158_v47  ;;  %v12195_v63 = vpop.f32.mrf.mxu1 }
 0x5ff   : > { %4393 = vmatmul.bf16.gmra.mxu2 %v14481_v43  ;;  %4561 = vmatmul.bf16.gmra.mxu0 %v14482_v6  ;;  %v5115_v0 = vmul.f32 0.2, %v4247_v39  ;;  %vm4987_vm8 = vcmp.gt.f32.partialorder %v4247_v39, 0.0 }
 0x600   : > { %4482 = vmatmul.bf16.gmra.mxu3 %v14483_v41  ;;  %4650 = vmatmul.bf16.gmra.mxu1 %v14484_v60 }
 0x601   : > { %v5243_v11 = vsel %vm4987_vm8, %v4247_v39, %v5115_v0 }
 0x602   : > { %v4078_v32 = vpop.f32.mrf.mxu2 }
 0x603   : > { %v4079_v52 = vadd.f32 %v4078_v32, %v11815_v37  ;;  %v4167_v4 = vpop.f32.mrf.mxu3 }
 0x604   : > { %v4248_v10 = vpop.f32.mrf.mxu0 }
 0x605   : > { %v4168_v1 = vadd.f32 %v4167_v4, %v4079_v52  ;;  %v4249_v15 = vadd.f32 %v4248_v10, %v4160_v18  ;;  %v12202_v22 = vpop.f32.mrf.mxu1  ;;  %v14486_v52 = vld [vmem:[#allocation33_spill] sm:$0xff]  ;;  %v14488_v4 = vld [vmem:[#allocation60_spill] sm:$0xff] }
 0x606   : > { %v14487_v18 = vld [vmem:[#allocation53_spill] sm:$0xff] }
 0x607   : > { %vm4991_vm9 = vcmp.gt.f32.partialorder %v4249_v15, 0.0  ;;  %v5119_v47 = vmul.f32 0.2, %v4249_v15  ;;  %v14489_v10 = vld [vmem:[#allocation61_spill] sm:$0xff] }
 0x609   : > { %v5247_v25 = vsel %vm4991_vm9, %v4249_v15, %v5119_v47 }
 0x60a   : > { %v4080_v19 = vpop.f32.mrf.mxu2  ;;  %v12204_v43 = vpack.c.bf16 %v5247_v25, %v5243_v11 }
 0x60b   : > { %v4081_v6 = vadd.f32 %v4080_v19, %v11822_v23  ;;  %v4169_v41 = vpop.f32.mrf.mxu3 }
 0x60c   : > { %14485 = vst [vmem:[#allocation8_spill] sm:$0xff] %v12204_v43  ;;  %v4251_v60 = vpop.f32.mrf.mxu0 }
 0x60d   : > { %v4170_v37 = vadd.f32 %v4169_v41, %v4081_v6  ;;  %v4252_v32 = vadd.f32 %v4251_v60, %v4163_v30  ;;  %v12207_v8 = vpop.f32.mrf.mxu1 }
 0x60f   : > { %4398 = vmatmul.bf16.gmra.mxu2 %v14486_v52  ;;  %4566 = vmatmul.bf16.gmra.mxu0 %v14487_v18  ;;  %v5123_v23 = vmul.f32 0.2, %v4252_v32  ;;  %vm4995_vm10 = vcmp.gt.f32.partialorder %v4252_v32, 0.0 }
 0x610   : > { %4487 = vmatmul.bf16.gmra.mxu3 %v14488_v4  ;;  %4655 = vmatmul.bf16.gmra.mxu1 %v14489_v10 }
 0x611   : > { %v5251_v6 = vsel %vm4995_vm10, %v4252_v32, %v5123_v23  ;;  %v14492_v32 = vld [vmem:[#allocation57_spill] sm:$0xff]  ;;  %v14493_v23 = vld [vmem:[#allocation66_spill] sm:$0xff] }
 0x612   : > { %v4083_v39 = vpop.f32.mrf.mxu2 }
 0x613   : > { %v4084_v0 = vadd.f32 %v4083_v39, %v11825_v5  ;;  %v4172_v15 = vpop.f32.mrf.mxu3  ;;  %v9300_v5 = vld [vmem:[%s13802_s2] sm:$0xf] }
 0x614   : > { %v4253_v47 = vpop.f32.mrf.mxu0  ;;  %v12222_v39 = vperm.slane %v9300_v5, 3 }
 0x615   : > { %v4173_v11 = vadd.f32 %v4172_v15, %v4084_v0  ;;  %v4254_v25 = vadd.f32 %v4253_v47, %v4165_v16  ;;  %v12214_v19 = vpop.f32.mrf.mxu1  ;;  %v14491_v47 = vld [vmem:[#allocation37_spill] sm:$0xff] }
 0x617   : > { %vm4999_vm11 = vcmp.gt.f32.partialorder %v4254_v25, 0.0  ;;  %v5127_v30 = vmul.f32 0.2, %v4254_v25 }
 0x619   : > { %v5255_v41 = vsel %vm4999_vm11, %v4254_v25, %v5127_v30  ;;  %v14494_v25 = vld [vmem:[#allocation67_spill] sm:$0xff] }
 0x61a   : > { %v4085_v60 = vpop.f32.mrf.mxu2  ;;  %v12216_v52 = vpack.c.bf16 %v5255_v41, %v5251_v6 }
 0x61b   : > { %v4086_v18 = vadd.f32 %v4085_v60, %v11832_v21  ;;  %v4174_v4 = vpop.f32.mrf.mxu3  ;;  %v4276_v21 = vadd.f32 %v11835_v48, %v12222_v39 }
 0x61c   : > { %14490 = vst [vmem:[#allocation9_spill] sm:$0xff] %v12216_v52  ;;  %v4256_v10 = vpop.f32.mrf.mxu0 }
 0x61d   : > { %v4175_v16 = vadd.f32 %v4174_v4, %v4086_v18  ;;  %v4257_v0 = vadd.f32 %v4256_v10, %v4168_v1  ;;  %v12224_v15 = vpop.f32.mrf.mxu1 }
 0x61f   : > { %4403 = vmatmul.bf16.gmra.mxu2 %v14491_v47  ;;  %4571 = vmatmul.bf16.gmra.mxu0 %v14492_v32  ;;  %v5131_v5 = vmul.f32 0.2, %v4257_v0  ;;  %vm5003_vm12 = vcmp.gt.f32.partialorder %v4257_v0, 0.0  ;;  %v4278_v47 = vadd.f32 %v11848_v28, %v12222_v39  ;;  %v4281_v28 = vadd.f32 %v11859_v44, %v12222_v39 }
 0x620   : > { %4492 = vmatmul.bf16.gmra.mxu3 %v14493_v23  ;;  %4660 = vmatmul.bf16.gmra.mxu1 %v14494_v25 }
 0x621   : > { %v5259_v32 = vsel %vm5003_vm12, %v4257_v0, %v5131_v5 }
 0x622   : > { %v4364_v30 = vpop.f32.mrf.mxu2 }
 0x623   : > { %v4365_v6 = vadd.f32 %v4364_v30, %v4276_v21  ;;  %v4453_v41 = vpop.f32.mrf.mxu3 }
 0x624   : > { %v4258_v60 = vpop.f32.mrf.mxu0 }
 0x625   : > { %v4454_v18 = vadd.f32 %v4453_v41, %v4365_v6  ;;  %v4259_v1 = vadd.f32 %v4258_v60, %v4170_v37  ;;  %v12232_v4 = vpop.f32.mrf.mxu1  ;;  %v14496_v37 = vld [vmem:[#allocation6_spill] sm:$0xff]  ;;  %v14498_v60 = vld [vmem:[#allocation71_spill] sm:$0xff] }
 0x626   : > { %v14497_v41 = vld [vmem:[#allocation62_spill] sm:$0xff] }
 0x627   : > { %vm5007_vm13 = vcmp.gt.f32.partialorder %v4259_v1, 0.0  ;;  %v5135_v10 = vmul.f32 0.2, %v4259_v1 }
 0x629   : > { %v5263_v23 = vsel %vm5007_vm13, %v4259_v1, %v5135_v10 }
 0x62a   : > { %v4366_v25 = vpop.f32.mrf.mxu2  ;;  %v12236_v52 = vpack.c.bf16 %v5263_v23, %v5259_v32 }
 0x62b   : > { %v4367_v48 = vadd.f32 %v4366_v25, %v4278_v47  ;;  %v4455_v21 = vpop.f32.mrf.mxu3 }
 0x62c   : > { %14495 = vst [vmem:[#allocation28_spill] sm:$0xff] %v12236_v52  ;;  %v4261_v30 = vpop.f32.mrf.mxu0  ;;  %v14503_v52 = vld [vmem:[#allocation75_spill] sm:$0xff] }
 0x62d   : > { %v4456_v43 = vadd.f32 %v4455_v21, %v4367_v48  ;;  %v4262_v58 = vadd.f32 %v4261_v30, %v4173_v11  ;;  %v12238_v6 = vpop.f32.mrf.mxu1  ;;  %v4283_v48 = vadd.f32 %v11866_v7, %v12222_v39  ;;  %v9155_v7 = vld [vmem:[%s13801_s1 + $0x5ec] sm:$0xf] }
 0x62f   : > { %4408 = vmatmul.bf16.gmra.mxu2 %v14496_v37  ;;  %4576 = vmatmul.bf16.gmra.mxu0 %v14497_v41  ;;  %v5139_v47 = vmul.f32 0.2, %v4262_v58  ;;  %vm5011_vm14 = vcmp.gt.f32.partialorder %v4262_v58, 0.0 }
 0x630   : > { %4497 = vmatmul.bf16.gmra.mxu3 %v14498_v60  ;;  %4665 = vmatmul.bf16.gmra.mxu1 %v14499_v12 }
 0x631   : > { %v5267_v21 = vsel %vm5011_vm14, %v4262_v58, %v5139_v47  ;;  %v8400_v58 = vld [vmem:[%s13801_s1 + $0x5f8] sm:$0xf0] }
 0x632   : > { %v4369_v0 = vpop.f32.mrf.mxu2  ;;  %v8403_v47 = vor.u32 %v9155_v7, %v8400_v58 }
 0x633   : > { %v4370_v5 = vadd.f32 %v4369_v0, %v4281_v28  ;;  %v4458_v1 = vpop.f32.mrf.mxu3 }
 0x634   : > { %v4263_v10 = vpop.f32.mrf.mxu0  ;;  %4711 = vmatpush.bf16.msrb.mxu2 %v8403_v47  ;;  %v14504_v47 = vld [vmem:[#allocation14_spill] sm:$0xff] }
 0x635   : > { %v4459_v32 = vadd.f32 %v4458_v1, %v4370_v5  ;;  %v4264_v11 = vadd.f32 %v4263_v10, %v4175_v16  ;;  %v12246_v23 = vpop.f32.mrf.mxu1  ;;  %v14501_v1 = vld [vmem:[#allocation10_spill] sm:$0xff]  ;;  %v14502_v10 = vld [vmem:[#allocation68_spill] sm:$0xff] }
 0x637   : > { %vm5015_vm15 = vcmp.gt.f32.partialorder %v4264_v11, 0.0  ;;  %v5143_v25 = vmul.f32 0.2, %v4264_v11 }
 0x639   : > { %v5271_v12 = vsel %vm5015_vm15, %v4264_v11, %v5143_v25 }
 0x63a   : > { %v4371_v30 = vpop.f32.mrf.mxu2  ;;  %v12250_v37 = vpack.c.bf16 %v5271_v12, %v5267_v21 }
 0x63b   : > { %v4372_v44 = vadd.f32 %v4371_v30, %v4283_v48  ;;  %v4460_v41 = vpop.f32.mrf.mxu3  ;;  %v9187_v30 = vld [vmem:[%s13801_s1 + $0x6ec] sm:$0xf] }
 0x63c   : > { %14500 = vst [vmem:[#allocation36_spill] sm:$0xff] %v12250_v37  ;;  %v4542_v60 = vpop.f32.mrf.mxu0 }
 0x63d   : > { %v4461_v28 = vadd.f32 %v4460_v41, %v4372_v44  ;;  %v4543_v0 = vadd.f32 %v4542_v60, %v4454_v18  ;;  %v4631_v5 = vpop.f32.mrf.mxu1  ;;  %v4286_v18 = vadd.f32 %v11873_v31, %v12222_v39  ;;  %v8528_v44 = vld [vmem:[%s13801_s1 + $0x6f8] sm:$0xf0]  ;;  %v4288_v31 = vadd.f32 %v11894_v34, %v12222_v39 }
 0x63e   : > { %v8531_v41 = vor.u32 %v9187_v30, %v8528_v44  ;;  %v4291_v34 = vadd.f32 %v11925_v59, %v12222_v39 }
 0x63f   : > { %v12252_v16 = vadd.f32 %v4631_v5, %v4543_v0  ;;  %4413 = vmatmul.bf16.gmra.mxu2 %v14501_v1  ;;  %4581 = vmatmul.bf16.gmra.mxu0 %v14502_v10 }
 0x640   : > { %4502 = vmatmul.bf16.gmra.mxu3 %v14503_v52  ;;  %4670 = vmatmul.bf16.gmra.mxu1 %v14429_v51 }
 0x641   : > { %4800 = vmatpush.bf16.msrb.mxu3 %v8531_v41 }
 0x642   : > { %v4374_v11 = vpop.f32.mrf.mxu2 }
 0x643   : > { %v4375_v25 = vadd.f32 %v4374_v11, %v4286_v18  ;;  %v4463_v48 = vpop.f32.mrf.mxu3  ;;  %v14505_v11 = vld [vmem:[#allocation73_spill] sm:$0xff] }
 0x644   : > { %v4544_v21 = vpop.f32.mrf.mxu0 }
 0x645   : > { %v4464_v52 = vadd.f32 %v4463_v48, %v4375_v25  ;;  %v4545_v12 = vadd.f32 %v4544_v21, %v4456_v43  ;;  %v4633_v51 = vpop.f32.mrf.mxu1  ;;  %v14506_v25 = vld [vmem:[#allocation79_spill] sm:$0xff] }
 0x647   : > { %v12272_v60 = vadd.f32 %v4633_v51, %v4545_v12 }
 0x64a   : > { %v4376_v0 = vpop.f32.mrf.mxu2 }
 0x64b   : > { %v4377_v5 = vadd.f32 %v4376_v0, %v4288_v31  ;;  %v4465_v1 = vpop.f32.mrf.mxu3  ;;  %v4293_v31 = vadd.f32 %v11959_v42, %v12222_v39  ;;  %v9151_v42 = vld [vmem:[%s13801_s1 + $0x5cc] sm:$0xf] }
 0x64c   : > { %v4547_v43 = vpop.f32.mrf.mxu0 }
 0x64d   : > { %v4466_v10 = vadd.f32 %v4465_v1, %v4377_v5  ;;  %v4548_v7 = vadd.f32 %v4547_v43, %v4459_v32  ;;  %v4636_v58 = vpop.f32.mrf.mxu1 }
 0x64f   : > { %v12276_v18 = vadd.f32 %v4636_v58, %v4548_v7  ;;  %4418 = vmatmul.bf16.gmra.mxu2 %v14504_v47  ;;  %4586 = vmatmul.bf16.gmra.mxu0 %v14505_v11  ;;  %v14507_v47 = vld [vmem:[#allocation18_spill] sm:$0xff]  ;;  %v14508_v11 = vld [vmem:[#allocation77_spill] sm:$0xff] }
 0x650   : > { %4507 = vmatmul.bf16.gmra.mxu3 %v14506_v25  ;;  %4675 = vmatmul.bf16.gmra.mxu1 %v14431_v61  ;;  %v8384_v25 = vld [vmem:[%s13801_s1 + $0x5d8] sm:$0xf0] }
 0x652   : > { %v4379_v48 = vpop.f32.mrf.mxu2 }
 0x653   : > { %v4380_v21 = vadd.f32 %v4379_v48, %v4291_v34  ;;  %v4468_v12 = vpop.f32.mrf.mxu3  ;;  %v8387_v34 = vor.u32 %v9151_v42, %v8384_v25  ;;  %v9143_v42 = vld [vmem:[%s13801_s1 + $0x58c] sm:$0xf]  ;;  %v8352_v25 = vld [vmem:[%s13801_s1 + $0x598] sm:$0xf0] }
 0x654   : > { %v4549_v51 = vpop.f32.mrf.mxu0 }
 0x655   : > { %v4469_v30 = vadd.f32 %v4468_v12, %v4380_v21  ;;  %v4550_v32 = vadd.f32 %v4549_v51, %v4461_v28  ;;  %v4638_v44 = vpop.f32.mrf.mxu1  ;;  %v14509_v28 = vld [vmem:[#allocation84_spill] sm:$0xff]  ;;  %4712 = vmatpush.bf16.msrb.mxu2 %v8387_v34 }
 0x656   : > { %v9183_v21 = vld [vmem:[%s13801_s1 + $0x6cc] sm:$0xf] }
 0x657   : > { %v12284_v41 = vadd.f32 %v4638_v44, %v4550_v32 }
 0x65a   : > { %v4381_v0 = vpop.f32.mrf.mxu2 }
 0x65b   : > { %v4382_v5 = vadd.f32 %v4381_v0, %v4293_v31  ;;  %v4470_v1 = vpop.f32.mrf.mxu3 }
 0x65c   : > { %v4552_v43 = vpop.f32.mrf.mxu0 }
 0x65d   : > { %v12288_v61 = vadd.f32 %v4470_v1, %v4382_v5  ;;  %v4553_v7 = vadd.f32 %v4552_v43, %v4464_v52  ;;  %v4641_v59 = vpop.f32.mrf.mxu1  ;;  %v4296_v52 = vadd.f32 %v11992_v24, %v12222_v39  ;;  %v9147_v24 = vld [vmem:[%s13801_s1 + $0x5ac] sm:$0xf]  ;;  %v8368_v1 = vld [vmem:[%s13801_s1 + $0x5b8] sm:$0xf0] }
 0x65e   : > { %v9179_v43 = vld [vmem:[%s13801_s1 + $0x6ac] sm:$0xf] }
 0x65f   : > { %v12290_v58 = vadd.f32 %v4641_v59, %v4553_v7  ;;  %4423 = vmatmul.bf16.gmra.mxu2 %v14507_v47  ;;  %4591 = vmatmul.bf16.gmra.mxu0 %v14508_v11  ;;  %v8371_v59 = vor.u32 %v9147_v24, %v8368_v1  ;;  %v4298_v11 = vadd.f32 %v12026_v56, %v12222_v39  ;;  %v8480_v56 = vld [vmem:[%s13801_s1 + $0x698] sm:$0xf0]  ;;  %v9171_v24 = vld [vmem:[%s13801_s1 + $0x66c] sm:$0xf] }
 0x660   : > { %4512 = vmatmul.bf16.gmra.mxu3 %v14509_v28  ;;  %4680 = vmatmul.bf16.gmra.mxu1 %v14433_v27  ;;  %v8512_v27 = vld [vmem:[%s13801_s1 + $0x6d8] sm:$0xf0] }
 0x661   : > { %v8515_v32 = vor.u32 %v9183_v21, %v8512_v27  ;;  %4713 = vmatpush.bf16.msrb.mxu2 %v8371_v59  ;;  %v8355_v21 = vor.u32 %v9143_v42, %v8352_v25  ;;  %v9135_v25 = vld [vmem:[%s13801_s1 + $0x54c] sm:$0xf] }
 0x662   : > { %v4384_v48 = vpop.f32.mrf.mxu2 }
 0x663   : > { %v4385_v12 = vadd.f32 %v4384_v48, %v4296_v52  ;;  %v4473_v51 = vpop.f32.mrf.mxu3  ;;  %4801 = vmatpush.bf16.msrb.mxu3 %v8515_v32  ;;  %v9175_v52 = vld [vmem:[%s13801_s1 + $0x68c] sm:$0xf] }
 0x664   : > { %v4554_v44 = vpop.f32.mrf.mxu0 }
 0x665   : > { %v12310_v31 = vadd.f32 %v4473_v51, %v4385_v12  ;;  %v4555_v0 = vadd.f32 %v4554_v44, %v4466_v10  ;;  %v4643_v5 = vpop.f32.mrf.mxu1  ;;  %v8496_v10 = vld [vmem:[%s13801_s1 + $0x6b8] sm:$0xf0]  ;;  %v8483_v12 = vor.u32 %v9175_v52, %v8480_v56  ;;  %4714 = vmatpush.bf16.msrb.mxu2 %v8355_v21 }
 0x666   : > { %v8499_v47 = vor.u32 %v9179_v43, %v8496_v10  ;;  %v14510_v43 = vld [vmem:[#allocation22_spill] sm:$0xff] }
 0x667   : > { %v12321_v7 = vadd.f32 %v4643_v5, %v4555_v0  ;;  %v9139_v0 = vld [vmem:[%s13801_s1 + $0x56c] sm:$0xf]  ;;  %v8336_v5 = vld [vmem:[%s13801_s1 + $0x578] sm:$0xf0] }
 0x668   : > { %4802 = vmatpush.bf16.msrb.mxu3 %v8499_v47  ;;  %v8339_v59 = vor.u32 %v9139_v0, %v8336_v5  ;;  %v8464_v10 = vld [vmem:[%s13801_s1 + $0x678] sm:$0xf0]  ;;  %v9131_v0 = vld [vmem:[%s13801_s1 + $0x52c] sm:$0xf] }
 0x669   : > { %v14512_v47 = vld [vmem:[#allocation90_spill] sm:$0xff] }
 0x66a   : > { %v4386_v28 = vpop.f32.mrf.mxu2  ;;  %4715 = vmatpush.bf16.msrb.mxu2 %v8339_v59  ;;  %v8320_v52 = vld [vmem:[%s13801_s1 + $0x558] sm:$0xf0] }
 0x66b   : > { %v4387_v34 = vadd.f32 %v4386_v28, %v4298_v11  ;;  %v4475_v48 = vpop.f32.mrf.mxu3  ;;  %v8467_v11 = vor.u32 %v9171_v24, %v8464_v10  ;;  %v4301_v28 = vadd.f32 %v12059_v45, %v12222_v39  ;;  %v8323_v21 = vor.u32 %v9135_v25, %v8320_v52  ;;  %v8448_v45 = vld [vmem:[%s13801_s1 + $0x658] sm:$0xf0]  ;;  %v9163_v24 = vld [vmem:[%s13801_s1 + $0x62c] sm:$0xf] }
 0x66c   : > { %v4557_v27 = vpop.f32.mrf.mxu0  ;;  %4803 = vmatpush.bf16.msrb.mxu3 %v8483_v12  ;;  %v8304_v5 = vld [vmem:[%s13801_s1 + $0x538] sm:$0xf0]  ;;  %v4303_v10 = vadd.f32 %v12091_v38, %v12222_v39 }
 0x66d   : > { %v12340_v51 = vadd.f32 %v4475_v48, %v4387_v34  ;;  %v4558_v32 = vadd.f32 %v4557_v27, %v4469_v30  ;;  %v4646_v44 = vpop.f32.mrf.mxu1  ;;  %v14511_v30 = vld [vmem:[#allocation81_spill] sm:$0xff]  ;;  %v9167_v34 = vld [vmem:[%s13801_s1 + $0x64c] sm:$0xf]  ;;  %v8416_v38 = vld [vmem:[%s13801_s1 + $0x618] sm:$0xf0] }
 0x66e   : > { %v8451_v27 = vor.u32 %v9167_v34, %v8448_v45  ;;  %4716 = vmatpush.bf16.msrb.mxu2 %v8323_v21 }
 0x66f   : > { %v12351_v1 = vadd.f32 %v4646_v44, %v4558_v32  ;;  %4428 = vmatmul.bf16.gmra.mxu2 %v14510_v43  ;;  %4596 = vmatmul.bf16.gmra.mxu0 %v14511_v30  ;;  %v8307_v30 = vor.u32 %v9131_v0, %v8304_v5  ;;  %v14513_v5 = vld [vmem:[#allocation26_spill] sm:$0xff] }
 0x670   : > { %4517 = vmatmul.bf16.gmra.mxu3 %v14512_v47  ;;  %4685 = vmatmul.bf16.gmra.mxu1 %v14320_v17 }
 0x671   : > { %4804 = vmatpush.bf16.msrb.mxu3 %v8467_v11  ;;  %v9127_v11 = vld [vmem:[%s13801_s1 + $0x50c] sm:$0xf] }
 0x672   : > { %v4389_v42 = vpop.f32.mrf.mxu2  ;;  %4717 = vmatpush.bf16.msrb.mxu2 %v8307_v30  ;;  %v9221_v30 = vld [vmem:[%s13803_s3 + $0xf4] sm:$0xf0] }
 0x673   : > { %v4390_v17 = vadd.f32 %v4389_v42, %v4301_v28  ;;  %v4478_v48 = vpop.f32.mrf.mxu3  ;;  %v8288_v28 = vld [vmem:[%s13801_s1 + $0x518] sm:$0xf0]  ;;  %v9159_v42 = vld [vmem:[%s13801_s1 + $0x60c] sm:$0xf] }
 0x674   : > { %v4559_v56 = vpop.f32.mrf.mxu0  ;;  %v8291_v34 = vor.u32 %v9127_v11, %v8288_v28  ;;  %v8582_v11 = vld [vmem:[%s13803_s3 + $0x60] sm:$0xf]  ;;  %v9203_v28 = vld [vmem:[%s13803_s3 + $0x64] sm:$0xf0] }
 0x675   : > { %v12374_v12 = vadd.f32 %v4478_v48, %v4390_v17  ;;  %v4560_v32 = vadd.f32 %v4559_v56, %v12288_v61  ;;  %v4648_v44 = vpop.f32.mrf.mxu1  ;;  %4805 = vmatpush.bf16.msrb.mxu3 %v8451_v27  ;;  %v8432_v61 = vld [vmem:[%s13801_s1 + $0x638] sm:$0xf0]  ;;  %v8419_v48 = vor.u32 %v9159_v42, %v8416_v38  ;;  %v8590_v27 = vld [vmem:[%s13803_s3 + $0x70] sm:$0xf]  ;;  %v8646_v42 = vld [vmem:[%s13803_s3 + $0xe0] sm:$0xf] }
 0x676   : > { %v8435_v59 = vor.u32 %v9163_v24, %v8432_v61  ;;  %4718 = vmatpush.bf16.msrb.mxu2 %v8291_v34  ;;  %v14515_v61 = vld [vmem:[#allocation94_spill] sm:$0xff] }
 0x677   : > { %v12386_v43 = vadd.f32 %v4648_v44, %v4560_v32  ;;  %v9205_v32 = vld [vmem:[%s13803_s3 + $0x74] sm:$0xf0]  ;;  %v8654_v44 = vld [vmem:[%s13803_s3 + $0xf0] sm:$0xf] }
 0x678   : > { %v8591_v24 = vor.u32 %v9205_v32, %v8590_v27  ;;  %v9201_v27 = vld [vmem:[%s13803_s3 + $0x54] sm:$0xf0]  ;;  %v8638_v32 = vld [vmem:[%s13803_s3 + $0xd0] sm:$0xf] }
 0x679   : > { %4806 = vmatpush.bf16.msrb.mxu3 %v8435_v59  ;;  %v8655_v59 = vor.u32 %v9221_v30, %v8654_v44 }
 0x67a   : > { %v4391_v47 = vpop.f32.mrf.mxu2  ;;  %5727 = vmatpush.bf16.msrb.mxu0 %v8591_v24  ;;  %v4308_v24 = vadd.f32 %v12130_v50, %v12222_v39  ;;  %v9215_v50 = vld [vmem:[%s13803_s3 + $0xc4] sm:$0xf0] }
 0x67b   : > { %v4392_v25 = vadd.f32 %v4391_v47, %v4303_v10  ;;  %v4480_v52 = vpop.f32.mrf.mxu3  ;;  %v4306_v10 = vadd.f32 %v12122_v57, %v12222_v39  ;;  %5816 = vmatpush.bf16.msrb.mxu1 %v8655_v59  ;;  %v9219_v57 = vld [vmem:[%s13803_s3 + $0xe4] sm:$0xf0] }
 0x67c   : > { %v4562_v17 = vpop.f32.mrf.mxu0  ;;  %v8647_v38 = vor.u32 %v9219_v57, %v8646_v42  ;;  %v9199_v59 = vld [vmem:[%s13803_s3 + $0x44] sm:$0xf0] }
 0x67d   : > { %v12405_v21 = vadd.f32 %v4480_v52, %v4392_v25  ;;  %v4563_v45 = vadd.f32 %v4562_v17, %v12310_v31  ;;  %v4651_v56 = vpop.f32.mrf.mxu1  ;;  %4807 = vmatpush.bf16.msrb.mxu3 %v8419_v48  ;;  %v14514_v31 = vld [vmem:[#allocation86_spill] sm:$0xff]  ;;  %v8583_v52 = vor.u32 %v9203_v28, %v8582_v11 }
 0x67f   : > { %v12417_v0 = vadd.f32 %v4651_v56, %v4563_v45  ;;  %4433 = vmatmul.bf16.gmra.mxu2 %v14513_v5  ;;  %4601 = vmatmul.bf16.gmra.mxu0 %v14514_v31  ;;  %v8574_v56 = vld [vmem:[%s13803_s3 + $0x50] sm:$0xf] }
 0x680   : > { %4522 = vmatmul.bf16.gmra.mxu3 %v14515_v61  ;;  %4690 = vmatmul.bf16.gmra.mxu1 %v14437_v54  ;;  %v8575_v5 = vor.u32 %v9201_v27, %v8574_v56  ;;  %v8566_v61 = vld [vmem:[%s13803_s3 + $0x40] sm:$0xf] }
 0x681   : > { %5728 = vmatpush.bf16.msrb.mxu0 %v8583_v52  ;;  %5817 = vmatpush.bf16.msrb.mxu1 %v8647_v38  ;;  %v8567_v28 = vor.u32 %v9199_v59, %v8566_v61  ;;  %v9197_v38 = vld [vmem:[%s13803_s3 + $0x34] sm:$0xf0]  ;;  %v9195_v61 = vld [vmem:[%s13803_s3 + $0x24] sm:$0xf0]  ;;  %v8614_v59 = vld [vmem:[%s13803_s3 + $0xa0] sm:$0xf] }
 0x682   : > { %v4394_v47 = vpop.f32.mrf.mxu2  ;;  %v14516_v56 = vld [vmem:[#allocation30_spill] sm:$0xff] }
 0x683   : > { %v4395_v54 = vadd.f32 %v4394_v47, %v4306_v10  ;;  %v4483_v25 = vpop.f32.mrf.mxu3  ;;  %v8630_v10 = vld [vmem:[%s13803_s3 + $0xc0] sm:$0xf] }
 0x684   : > { %v4564_v34 = vpop.f32.mrf.mxu0 }
 0x685   : > { %v12440_v17 = vadd.f32 %v4483_v25, %v4395_v54  ;;  %v4565_v48 = vadd.f32 %v4564_v34, %v12340_v51  ;;  %v4653_v45 = vpop.f32.mrf.mxu1  ;;  %v9217_v51 = vld [vmem:[%s13803_s3 + $0xd4] sm:$0xf0]  ;;  %5729 = vmatpush.bf16.msrb.mxu0 %v8575_v5  ;;  %v8631_v54 = vor.u32 %v9215_v50, %v8630_v10  ;;  %v8558_v34 = vld [vmem:[%s13803_s3 + $0x30] sm:$0xf] }
 0x686   : > { %v8639_v31 = vor.u32 %v9217_v51, %v8638_v32  ;;  %v8559_v27 = vor.u32 %v9197_v38, %v8558_v34  ;;  %v9213_v32 = vld [vmem:[%s13803_s3 + $0xb4] sm:$0xf0]  ;;  %v8606_v34 = vld [vmem:[%s13803_s3 + $0x90] sm:$0xf] }
 0x687   : > { %v12452_v44 = vadd.f32 %v4653_v45, %v4565_v48  ;;  %v8622_v48 = vld [vmem:[%s13803_s3 + $0xb0] sm:$0xf]  ;;  %v14518_v5 = vld [vmem:[#allocation98_spill] sm:$0xff] }
 0x688   : > { %5818 = vmatpush.bf16.msrb.mxu1 %v8639_v31  ;;  %v8623_v51 = vor.u32 %v9213_v32, %v8622_v48  ;;  %v4311_v31 = vadd.f32 %v12135_v20, %v12222_v39  ;;  %v9211_v20 = vld [vmem:[%s13803_s3 + $0xa4] sm:$0xf0]  ;;  %v8534_v32 = vld [vmem:[%s13803_s3] sm:$0xf] }
 0x689   : > { %5730 = vmatpush.bf16.msrb.mxu0 %v8567_v28  ;;  %v8615_v28 = vor.u32 %v9211_v20, %v8614_v59 }
 0x68a   : > { %v4396_v30 = vpop.f32.mrf.mxu2 }
 0x68b   : > { %v4397_v47 = vadd.f32 %v4396_v30, %v4308_v24  ;;  %v4485_v11 = vpop.f32.mrf.mxu3  ;;  %v8550_v30 = vld [vmem:[%s13803_s3 + $0x20] sm:$0xf] }
 0x68c   : > { %v4567_v42 = vpop.f32.mrf.mxu0  ;;  %5819 = vmatpush.bf16.msrb.mxu1 %v8631_v54 }
 0x68d   : > { %v12471_v25 = vadd.f32 %v4485_v11, %v4397_v47  ;;  %v4568_v52 = vadd.f32 %v4567_v42, %v12374_v12  ;;  %v4656_v57 = vpop.f32.mrf.mxu1  ;;  %v14517_v12 = vld [vmem:[#allocation92_spill] sm:$0xff]  ;;  %5731 = vmatpush.bf16.msrb.mxu0 %v8559_v27  ;;  %v8551_v47 = vor.u32 %v9195_v61, %v8550_v30 }
 0x68f   : > { %v12483_v45 = vadd.f32 %v4656_v57, %v4568_v52  ;;  %4438 = vmatmul.bf16.gmra.mxu2 %v14516_v56  ;;  %4606 = vmatmul.bf16.gmra.mxu0 %v14517_v12  ;;  %v8542_v52 = vld [vmem:[%s13803_s3 + $0x10] sm:$0xf]  ;;  %v9193_v57 = vld [vmem:[%s13803_s3 + $0x14] sm:$0xf0]  ;;  %v4313_v12 = vadd.f32 %v12142_v53, %v12222_v39  ;;  %v9207_v53 = vld [vmem:[%s13803_s3 + $0x84] sm:$0xf0] }
 0x690   : > { %4527 = vmatmul.bf16.gmra.mxu3 %v14518_v5  ;;  %4695 = vmatmul.bf16.gmra.mxu1 %v14328_v3  ;;  %v8543_v48 = vor.u32 %v9193_v57, %v8542_v52  ;;  %v9191_v5 = vld [vmem:[%s13803_s3 + $0x4] sm:$0xf0] }
 0x691   : > { %5820 = vmatpush.bf16.msrb.mxu1 %v8623_v51  ;;  %5732 = vmatpush.bf16.msrb.mxu0 %v8551_v47  ;;  %v8598_v51 = vld [vmem:[%s13803_s3 + $0x80] sm:$0xf]  ;;  %v8535_v30 = vor.u32 %v9191_v5, %v8534_v32 }
 0x692   : > { %v4399_v24 = vpop.f32.mrf.mxu2  ;;  %v8599_v59 = vor.u32 %v9207_v53, %v8598_v51  ;;  %v14522_v53 = vld [vmem:[#allocation100_spill] sm:$0xff] }
 0x693   : > { %v4400_v3 = vadd.f32 %v4399_v24, %v4311_v31  ;;  %v4488_v10 = vpop.f32.mrf.mxu3 }
 0x694   : > { %v4569_v11 = vpop.f32.mrf.mxu0 }
 0x695   : > { %v4489_v50 = vadd.f32 %v4488_v10, %v4400_v3  ;;  %v4570_v42 = vadd.f32 %v4569_v11, %v12405_v21  ;;  %v4658_v54 = vpop.f32.mrf.mxu1  ;;  %5821 = vmatpush.bf16.msrb.mxu1 %v8615_v28  ;;  %v9209_v21 = vld [vmem:[%s13803_s3 + $0x94] sm:$0xf0]  ;;  %5733 = vmatpush.bf16.msrb.mxu0 %v8543_v48  ;;  %v14519_v11 = vld [vmem:[#allocation96_spill] sm:$0xff] }
 0x696   : > { %v8607_v56 = vor.u32 %v9209_v21, %v8606_v34  ;;  %v14520_v28 = vld [vmem:[#allocation42_spill] sm:$0xff] }
 0x697   : > { %v12516_v38 = vadd.f32 %v4658_v54, %v4570_v42  ;;  %v14521_v42 = vld [vmem:[#allocation103_spill] sm:$0xff]  ;;  %v4316_v54 = vadd.f32 %v12147_v26, %v12222_v39 }
 0x699   : > { %5822 = vmatpush.bf16.msrb.mxu1 %v8607_v56  ;;  %5734 = vmatpush.bf16.msrb.mxu0 %v8535_v30 }
 0x69a   : > { %v4401_v27 = vpop.f32.mrf.mxu2 }
 0x69b   : > { %v4402_v31 = vadd.f32 %v4401_v27, %v4313_v12  ;;  %v4490_v24 = vpop.f32.mrf.mxu3  ;;  %v4318_v27 = vadd.f32 %v12154_v36, %v12222_v39  ;;  %v4321_v36 = vadd.f32 %v12159_v33, %v12222_v39 }
 0x69c   : > { %v4572_v61 = vpop.f32.mrf.mxu0 }
 0x69d   : > { %v4491_v3 = vadd.f32 %v4490_v24, %v4402_v31  ;;  %v4573_v10 = vadd.f32 %v4572_v61, %v12440_v17  ;;  %v4661_v47 = vpop.f32.mrf.mxu1  ;;  %5823 = vmatpush.bf16.msrb.mxu1 %v8599_v59  ;;  %v14523_v61 = vld [vmem:[#allocation46_spill] sm:$0xff] }
 0x69f   : > { %v12536_v20 = vadd.f32 %v4661_v47, %v4573_v10  ;;  %4611 = vmatmul.bf16.gmra.mxu0 %v14519_v11  ;;  %4719 = vmatmul.bf16.vlgmr.msrb.gmra.mxu2 %v14520_v28 }
 0x6a0   : > { %4700 = vmatmul.bf16.gmra.mxu1 %v14443_v29  ;;  %4808 = vmatmul.bf16.vlgmr.msrb.gmra.mxu3 %v14521_v42 }
 0x6a2   : > { %v4404_v52 = vpop.f32.mrf.mxu2 }
 0x6a3   : > { %v4405_v57 = vadd.f32 %v4404_v52, %v4316_v54  ;;  %v4493_v34 = vpop.f32.mrf.mxu3  ;;  %v4323_v52 = vadd.f32 %v12166_v49, %v12222_v39  ;;  %v4326_v49 = vadd.f32 %v12171_v46, %v12222_v39 }
 0x6a4   : > { %v4574_v17 = vpop.f32.mrf.mxu0 }
 0x6a5   : > { %v4494_v48 = vadd.f32 %v4493_v34, %v4405_v57  ;;  %v4575_v21 = vadd.f32 %v4574_v17, %v12471_v25  ;;  %v4663_v56 = vpop.f32.mrf.mxu1  ;;  %v14524_v25 = vld [vmem:[#allocation106_spill] sm:$0xff] }
 0x6a7   : > { %v12545_v12 = vadd.f32 %v4663_v56, %v4575_v21 }
 0x6aa   : > { %v4406_v32 = vpop.f32.mrf.mxu2 }
 0x6ab   : > { %v4407_v29 = vadd.f32 %v4406_v32, %v4318_v27  ;;  %v4495_v5 = vpop.f32.mrf.mxu3  ;;  %v14525_v32 = vld [vmem:[#allocation50_spill] sm:$0xff] }
 0x6ac   : > { %v4577_v51 = vpop.f32.mrf.mxu0 }
 0x6ad   : > { %v4496_v31 = vadd.f32 %v4495_v5, %v4407_v29  ;;  %v4578_v24 = vadd.f32 %v4577_v51, %v4489_v50  ;;  %v4666_v26 = vpop.f32.mrf.mxu1  ;;  %v14526_v29 = vld [vmem:[#allocation65_spill] sm:$0xff]  ;;  %v14528_v5 = vld [vmem:[#allocation130_spill] sm:$0xff] }
 0x6af   : > { %v12549_v30 = vadd.f32 %v4666_v26, %v4578_v24  ;;  %4616 = vmatmul.bf16.gmra.mxu0 %v14522_v53  ;;  %4724 = vmatmul.bf16.gmra.mxu2 %v14523_v61 }
 0x6b0   : > { %4705 = vmatmul.bf16.gmra.mxu1 %v14446_v9  ;;  %4813 = vmatmul.bf16.gmra.mxu3 %v14524_v25 }
 0x6b2   : > { %v4409_v59 = vpop.f32.mrf.mxu2 }
 0x6b3   : > { %v4410_v10 = vadd.f32 %v4409_v59, %v4321_v36  ;;  %v4498_v47 = vpop.f32.mrf.mxu3  ;;  %v4328_v59 = vadd.f32 %v12178_v40, %v12222_v39  ;;  %v4331_v40 = vadd.f32 %v12183_v13, %v12222_v39 }
 0x6b4   : > { %v4579_v11 = vpop.f32.mrf.mxu0 }
 0x6b5   : > { %v4499_v28 = vadd.f32 %v4498_v47, %v4410_v10  ;;  %v4580_v50 = vadd.f32 %v4579_v11, %v4491_v3  ;;  %v4668_v42 = vpop.f32.mrf.mxu1  ;;  %v14527_v3 = vld [vmem:[#allocation108_spill] sm:$0xff] }
 0x6b7   : > { %v12557_v54 = vadd.f32 %v4668_v42, %v4580_v50 }
 0x6ba   : > { %v4411_v57 = vpop.f32.mrf.mxu2 }
 0x6bb   : > { %v4412_v34 = vadd.f32 %v4411_v57, %v4323_v52  ;;  %v4500_v9 = vpop.f32.mrf.mxu3 }
 0x6bc   : > { %v4582_v17 = vpop.f32.mrf.mxu0 }
 0x6bd   : > { %v4501_v21 = vadd.f32 %v4500_v9, %v4412_v34  ;;  %v4583_v56 = vadd.f32 %v4582_v17, %v4494_v48  ;;  %v4671_v27 = vpop.f32.mrf.mxu1  ;;  %v14529_v34 = vld [vmem:[#allocation54_spill] sm:$0xff]  ;;  %v14530_v9 = vld [vmem:[#allocation83_spill] sm:$0xff] }
 0x6be   : > { %v14532_v17 = vld [vmem:[#allocation91_spill] sm:$0xff] }
 0x6bf   : > { %v12561_v33 = vadd.f32 %v4671_v27, %v4583_v56  ;;  %4729 = vmatmul.bf16.gmra.mxu2 %v14525_v32  ;;  %5735 = vmatmul.bf16.vlgmr.msrb.gmra.mxu0 %v14526_v29 }
 0x6c0   : > { %4818 = vmatmul.bf16.gmra.mxu3 %v14527_v3  ;;  %5824 = vmatmul.bf16.vlgmr.msrb.gmra.mxu1 %v14528_v5 }
 0x6c2   : > { %v4414_v51 = vpop.f32.mrf.mxu2 }
 0x6c3   : > { %v4415_v24 = vadd.f32 %v4414_v51, %v4326_v49  ;;  %v4503_v26 = vpop.f32.mrf.mxu3 }
 0x6c4   : > { %v4584_v53 = vpop.f32.mrf.mxu0 }
 0x6c5   : > { %v4504_v61 = vadd.f32 %v4503_v26, %v4415_v24  ;;  %v4585_v48 = vadd.f32 %v4584_v53, %v4496_v31  ;;  %v4673_v25 = vpop.f32.mrf.mxu1  ;;  %v14531_v31 = vld [vmem:[#allocation109_spill] sm:$0xff]  ;;  %v4333_v26 = vadd.f32 %v12190_v62, %v12222_v39  ;;  %v4336_v62 = vadd.f32 %v12195_v63, %v12222_v39 }
 0x6c7   : > { %v12569_v36 = vadd.f32 %v4673_v25, %v4585_v48 }
 0x6ca   : > { %v4416_v10 = vpop.f32.mrf.mxu2 }
 0x6cb   : > { %v4417_v47 = vadd.f32 %v4416_v10, %v4328_v59  ;;  %v4505_v11 = vpop.f32.mrf.mxu3 }
 0x6cc   : > { %v4587_v50 = vpop.f32.mrf.mxu0 }
 0x6cd   : > { %v4506_v42 = vadd.f32 %v4505_v11, %v4417_v47  ;;  %v4588_v52 = vadd.f32 %v4587_v50, %v4499_v28  ;;  %v4676_v57 = vpop.f32.mrf.mxu1  ;;  %v14533_v50 = vld [vmem:[#allocation58_spill] sm:$0xff] }
 0x6cf   : > { %v12573_v46 = vadd.f32 %v4676_v57, %v4588_v52  ;;  %4734 = vmatmul.bf16.gmra.mxu2 %v14529_v34  ;;  %5740 = vmatmul.bf16.gmra.mxu0 %v14530_v9  ;;  %v14534_v52 = vld [vmem:[#allocation89_spill] sm:$0xff]  ;;  %v14536_v57 = vld [vmem:[#allocation131_spill] sm:$0xff] }
 0x6d0   : > { %4823 = vmatmul.bf16.gmra.mxu3 %v14531_v31  ;;  %5829 = vmatmul.bf16.gmra.mxu1 %v14532_v17 }
 0x6d2   : > { %v4419_v56 = vpop.f32.mrf.mxu2 }
 0x6d3   : > { %v4420_v27 = vadd.f32 %v4419_v56, %v4331_v40  ;;  %v4508_v32 = vpop.f32.mrf.mxu3 }
 0x6d4   : > { %v4589_v3 = vpop.f32.mrf.mxu0 }
 0x6d5   : > { %v4509_v49 = vadd.f32 %v4508_v32, %v4420_v27  ;;  %v4590_v28 = vadd.f32 %v4589_v3, %v4501_v21  ;;  %v4678_v51 = vpop.f32.mrf.mxu1  ;;  %v14535_v21 = vld [vmem:[#allocation110_spill] sm:$0xff] }
 0x6d7   : > { %v12581_v24 = vadd.f32 %v4678_v51, %v4590_v28  ;;  %v4338_v28 = vadd.f32 %v12202_v22, %v12222_v39  ;;  %v4341_v22 = vadd.f32 %v12207_v8, %v12222_v39 }
 0x6da   : > { %v4421_v53 = vpop.f32.mrf.mxu2 }
 0x6db   : > { %v4422_v48 = vadd.f32 %v4421_v53, %v4333_v26  ;;  %v4510_v25 = vpop.f32.mrf.mxu3 }
 0x6dc   : > { %v4592_v59 = vpop.f32.mrf.mxu0 }
 0x6dd   : > { %v4511_v10 = vadd.f32 %v4510_v25, %v4422_v48  ;;  %v4593_v47 = vadd.f32 %v4592_v59, %v4504_v61  ;;  %v4681_v11 = vpop.f32.mrf.mxu1 }
 0x6df   : > { %v12585_v13 = vadd.f32 %v4681_v11, %v4593_v47  ;;  %4739 = vmatmul.bf16.gmra.mxu2 %v14533_v50  ;;  %5745 = vmatmul.bf16.gmra.mxu0 %v14534_v52  ;;  %v14537_v11 = vld [vmem:[#allocation63_spill] sm:$0xff]  ;;  %v14538_v50 = vld [vmem:[#allocation114_spill] sm:$0xff] }
 0x6e0   : > { %4828 = vmatmul.bf16.gmra.mxu3 %v14535_v21  ;;  %5834 = vmatmul.bf16.gmra.mxu1 %v14536_v57  ;;  %v14540_v21 = vld [vmem:[#allocation99_spill] sm:$0xff] }
 0x6e2   : > { %v4424_v34 = vpop.f32.mrf.mxu2 }
 0x6e3   : > { %v4425_v31 = vadd.f32 %v4424_v34, %v4336_v62  ;;  %v4513_v40 = vpop.f32.mrf.mxu3 }
 0x6e4   : > { %v4594_v56 = vpop.f32.mrf.mxu0 }
 0x6e5   : > { %v4514_v27 = vadd.f32 %v4513_v40, %v4425_v31  ;;  %v4595_v61 = vadd.f32 %v4594_v56, %v4506_v42  ;;  %v4683_v32 = vpop.f32.mrf.mxu1  ;;  %v14539_v42 = vld [vmem:[#allocation111_spill] sm:$0xff] }
 0x6e7   : > { %v12593_v3 = vadd.f32 %v4683_v32, %v4595_v61 }
 0x6ea   : > { %v4426_v51 = vpop.f32.mrf.mxu2 }
 0x6eb   : > { %v4427_v26 = vadd.f32 %v4426_v51, %v4338_v28  ;;  %v4515_v53 = vpop.f32.mrf.mxu3  ;;  %v4343_v28 = vadd.f32 %v12214_v19, %v12222_v39  ;;  %v4346_v19 = vadd.f32 %v12224_v15, %v12222_v39 }
 0x6ec   : > { %v4597_v48 = vpop.f32.mrf.mxu0 }
 0x6ed   : > { %v4516_v25 = vadd.f32 %v4515_v53, %v4427_v26  ;;  %v4598_v59 = vadd.f32 %v4597_v48, %v4509_v49  ;;  %v4686_v47 = vpop.f32.mrf.mxu1 }
 0x6ef   : > { %v12597_v63 = vadd.f32 %v4686_v47, %v4598_v59  ;;  %4744 = vmatmul.bf16.gmra.mxu2 %v14537_v11  ;;  %5750 = vmatmul.bf16.gmra.mxu0 %v14538_v50 }
 0x6f0   : > { %4833 = vmatmul.bf16.gmra.mxu3 %v14539_v42  ;;  %5839 = vmatmul.bf16.gmra.mxu1 %v14540_v21  ;;  %v14541_v42 = vld [vmem:[#allocation69_spill] sm:$0xff] }
 0x6f2   : > { %v4429_v62 = vpop.f32.mrf.mxu2 }
 0x6f3   : > { %v4430_v34 = vadd.f32 %v4429_v62, %v4341_v22  ;;  %v4518_v31 = vpop.f32.mrf.mxu3  ;;  %v14542_v22 = vld [vmem:[#allocation116_spill] sm:$0xff] }
 0x6f4   : > { %v4599_v40 = vpop.f32.mrf.mxu0  ;;  %v14544_v62 = vld [vmem:[#allocation132_spill] sm:$0xff] }
 0x6f5   : > { %v4519_v56 = vadd.f32 %v4518_v31, %v4430_v34  ;;  %v4600_v49 = vadd.f32 %v4599_v40, %v4511_v10  ;;  %v4688_v61 = vpop.f32.mrf.mxu1  ;;  %v14543_v10 = vld [vmem:[#allocation112_spill] sm:$0xff] }
 0x6f7   : > { %v12605_v32 = vadd.f32 %v4688_v61, %v4600_v49 }
 0x6fa   : > { %v4431_v51 = vpop.f32.mrf.mxu2 }
 0x6fb   : > { %v4432_v26 = vadd.f32 %v4431_v51, %v4343_v28  ;;  %v4520_v53 = vpop.f32.mrf.mxu3 }
 0x6fc   : > { %v4602_v48 = vpop.f32.mrf.mxu0 }
 0x6fd   : > { %v4521_v59 = vadd.f32 %v4520_v53, %v4432_v26  ;;  %v4603_v47 = vadd.f32 %v4602_v48, %v4514_v27  ;;  %v4691_v11 = vpop.f32.mrf.mxu1  ;;  %v4348_v26 = vadd.f32 %v12232_v4, %v12222_v39  ;;  %v4351_v4 = vadd.f32 %v12238_v6, %v12222_v39 }
 0x6ff   : > { %v12609_v8 = vadd.f32 %v4691_v11, %v4603_v47  ;;  %4749 = vmatmul.bf16.gmra.mxu2 %v14541_v42  ;;  %5755 = vmatmul.bf16.gmra.mxu0 %v14542_v22 }
 0x700   : > { %4838 = vmatmul.bf16.gmra.mxu3 %v14543_v10  ;;  %5844 = vmatmul.bf16.gmra.mxu1 %v14544_v62 }
 0x702   : > { %v4434_v34 = vpop.f32.mrf.mxu2 }
 0x703   : > { %v4435_v31 = vadd.f32 %v4434_v34, %v4346_v19  ;;  %v4523_v40 = vpop.f32.mrf.mxu3  ;;  %v14545_v19 = vld [vmem:[#allocation74_spill] sm:$0xff] }
 0x704   : > { %v4604_v49 = vpop.f32.mrf.mxu0  ;;  %v14546_v34 = vld [vmem:[#allocation118_spill] sm:$0xff] }
 0x705   : > { %v4524_v61 = vadd.f32 %v4523_v40, %v4435_v31  ;;  %v4605_v27 = vadd.f32 %v4604_v49, %v4516_v25  ;;  %v4693_v28 = vpop.f32.mrf.mxu1  ;;  %v14547_v25 = vld [vmem:[#allocation133_spill] sm:$0xff] }
 0x707   : > { %v12617_v51 = vadd.f32 %v4693_v28, %v4605_v27 }
 0x70a   : > { %v4436_v53 = vpop.f32.mrf.mxu2 }
 0x70b   : > { %v4437_v48 = vadd.f32 %v4436_v53, %v4348_v26  ;;  %v4525_v47 = vpop.f32.mrf.mxu3  ;;  %v4353_v53 = vadd.f32 %v12246_v23, %v12222_v39 }
 0x70c   : > { %v4607_v11 = vpop.f32.mrf.mxu0 }
 0x70d   : > { %v4526_v42 = vadd.f32 %v4525_v47, %v4437_v48  ;;  %v4608_v10 = vadd.f32 %v4607_v11, %v4519_v56  ;;  %v4696_v37 = vpop.f32.mrf.mxu1 }
 0x70f   : > { %v12621_v15 = vadd.f32 %v4696_v37, %v4608_v10  ;;  %4754 = vmatmul.bf16.gmra.mxu2 %v14545_v19  ;;  %5760 = vmatmul.bf16.gmra.mxu0 %v14546_v34 }
 0x710   : > { %4843 = vmatmul.bf16.gmra.mxu3 %v14432_v14  ;;  %5849 = vmatmul.bf16.gmra.mxu1 %v14547_v25 }
 0x712   : > { %v4439_v31 = vpop.f32.mrf.mxu2 }
 0x713   : > { %v4440_v40 = vadd.f32 %v4439_v31, %v4351_v4  ;;  %v4528_v49 = vpop.f32.mrf.mxu3  ;;  %v14548_v4 = vld [vmem:[#allocation78_spill] sm:$0xff]  ;;  %v14549_v31 = vld [vmem:[#allocation120_spill] sm:$0xff] }
 0x714   : > { %v4609_v27 = vpop.f32.mrf.mxu0 }
 0x715   : > { %v4529_v28 = vadd.f32 %v4528_v49, %v4440_v40  ;;  %v4610_v56 = vadd.f32 %v4609_v27, %v4521_v59  ;;  %v4698_v26 = vpop.f32.mrf.mxu1  ;;  %v14550_v59 = vld [vmem:[#allocation3_spill] sm:$0xff] }
 0x717   : > { %v12629_v37 = vadd.f32 %v4698_v26, %v4610_v56 }
 0x71a   : > { %v4441_v48 = vpop.f32.mrf.mxu2 }
 0x71b   : > { %v4442_v47 = vadd.f32 %v4441_v48, %v4353_v53  ;;  %v4530_v14 = vpop.f32.mrf.mxu3 }
 0x71c   : > { %v4612_v11 = vpop.f32.mrf.mxu0 }
 0x71d   : > { %v4531_v10 = vadd.f32 %v4530_v14, %v4442_v47  ;;  %v4613_v19 = vadd.f32 %v4612_v11, %v4524_v61  ;;  %v4701_v25 = vpop.f32.mrf.mxu1 }
 0x71f   : > { %v12633_v6 = vadd.f32 %v4701_v25, %v4613_v19  ;;  %4759 = vmatmul.bf16.gmra.mxu2 %v14548_v4  ;;  %5765 = vmatmul.bf16.gmra.mxu0 %v14549_v31 }
 0x720   : > { %4848 = vmatmul.bf16.gmra.mxu3 %v14434_v2  ;;  %5854 = vmatmul.bf16.gmra.mxu1 %v14550_v59 }
 0x722   : > { %v4720_v40 = vpop.f32.mrf.mxu2 }
 0x723   : > { %v4721_v39 = vadd.f32 %v4720_v40, %v12252_v16  ;;  %v4809_v23 = vpop.f32.mrf.mxu3  ;;  %v14551_v40 = vld [vmem:[#allocation82_spill] sm:$0xff] }
 0x724   : > { %v4614_v49 = vpop.f32.mrf.mxu0 }
 0x725   : > { %v4810_v27 = vadd.f32 %v4809_v23, %v4721_v39  ;;  %v4615_v56 = vadd.f32 %v4614_v49, %v4526_v42  ;;  %v4703_v26 = vpop.f32.mrf.mxu1  ;;  %v14552_v42 = vld [vmem:[#allocation121_spill] sm:$0xff]  ;;  %v14553_v39 = vld [vmem:[#allocation7_spill] sm:$0xff] }
 0x727   : > { %v12640_v61 = vadd.f32 %v4703_v26, %v4615_v56  ;;  %v5020_v14 = vmul.f32 0.2, %v4810_v27  ;;  %vm4892_vm0 = vcmp.gt.f32.partialorder %v4810_v27, 0.0 }
 0x72a   : > { %v4722_v25 = vpop.f32.mrf.mxu2 }
 0x72b   : > { %v4723_v53 = vadd.f32 %v4722_v25, %v12272_v60  ;;  %v4811_v48 = vpop.f32.mrf.mxu3  ;;  %v5148_v60 = vsel %vm4892_vm0, %v4810_v27, %v5020_v14 }
 0x72c   : > { %v4617_v47 = vpop.f32.mrf.mxu0 }
 0x72d   : > { %v4812_v11 = vadd.f32 %v4811_v48, %v4723_v53  ;;  %v4618_v2 = vadd.f32 %v4617_v47, %v4529_v28  ;;  %v4706_v19 = vpop.f32.mrf.mxu1 }
 0x72f   : > { %vm4896_vm1 = vcmp.gt.f32.partialorder %v4812_v11, 0.0  ;;  %v5024_v4 = vmul.f32 0.2, %v4812_v11  ;;  %v12643_v16 = vadd.f32 %v4706_v19, %v4618_v2  ;;  %4764 = vmatmul.bf16.gmra.mxu2 %v14551_v40  ;;  %5770 = vmatmul.bf16.gmra.mxu0 %v14552_v42  ;;  %v5401_v2 = vld [vmem:[%s13804_s4] sm:$0x3] }
 0x730   : > { %4853 = vmatmul.bf16.gmra.mxu3 %v10631_v55  ;;  %5859 = vmatmul.bf16.gmra.mxu1 %v14553_v39  ;;  %v12657_v55 = vperm.slane %v5401_v2, 0 }
 0x731   : > { %v5152_v23 = vsel %vm4896_vm1, %v4812_v11, %v5024_v4 }
 0x732   : > { %v12649_v49 = vpack.c.bf16 %v5152_v23, %v5148_v60  ;;  %v4725_v56 = vpop.f32.mrf.mxu2 }
 0x733   : > { %v4726_v28 = vadd.f32 %v4725_v56, %v12276_v18  ;;  %v4814_v26 = vpop.f32.mrf.mxu3 }
 0x734   : > { %14554 = vst [vmem:[#allocation12_spill] sm:$0xff] %v12649_v49  ;;  %v4619_v25 = vpop.f32.mrf.mxu0 }
 0x735   : > { %v4815_v53 = vadd.f32 %v4814_v26, %v4726_v28  ;;  %v4620_v48 = vadd.f32 %v4619_v25, %v4531_v10  ;;  %v4708_v47 = vpop.f32.mrf.mxu1  ;;  %v14555_v28 = vld [vmem:[#allocation87_spill] sm:$0xff]  ;;  %v14556_v26 = vld [vmem:[#allocation122_spill] sm:$0xff] }
 0x736   : > { %v14557_v25 = vld [vmem:[#allocation11_spill] sm:$0xff] }
 0x737   : > { %v12655_v19 = vadd.f32 %v4708_v47, %v4620_v48  ;;  %v5028_v40 = vmul.f32 0.2, %v4815_v53  ;;  %vm4900_vm2 = vcmp.gt.f32.partialorder %v4815_v53, 0.0  ;;  %v9237_v48 = vld [vmem:[%s13803_s3 + $0x174] sm:$0xf0] }
 0x739   : > { %v5156_v2 = vsel %vm4900_vm2, %v4815_v53, %v5028_v40  ;;  %v9253_v53 = vld [vmem:[%s13803_s3 + $0x1f4] sm:$0xf0] }
 0x73a   : > { %v4727_v27 = vpop.f32.mrf.mxu2 }
 0x73b   : > { %v4728_v14 = vadd.f32 %v4727_v27, %v12284_v41  ;;  %v4816_v11 = vpop.f32.mrf.mxu3  ;;  %v8718_v41 = vld [vmem:[%s13803_s3 + $0x170] sm:$0xf] }
 0x73c   : > { %v5736_v4 = vpop.f32.mrf.mxu0  ;;  %v8719_v47 = vor.u32 %v9237_v48, %v8718_v41  ;;  %v8782_v41 = vld [vmem:[%s13803_s3 + $0x1f0] sm:$0xf] }
 0x73d   : > { %v4817_v18 = vadd.f32 %v4816_v11, %v4728_v14  ;;  %v5737_v60 = vadd.f32 %v5736_v4, %v12657_v55  ;;  %v5825_v23 = vpop.f32.mrf.mxu1  ;;  %v8783_v40 = vor.u32 %v9253_v53, %v8782_v41 }
 0x73e   : > { %5905 = vmatpush.bf16.msra.mxu2 %v8719_v47 }
 0x73f   : > { %vm4904_vm3 = vcmp.gt.f32.partialorder %v4817_v18, 0.0  ;;  %v5032_v10 = vmul.f32 0.2, %v4817_v18  ;;  %v12661_v56 = vadd.f32 %v5825_v23, %v5737_v60  ;;  %4769 = vmatmul.bf16.gmra.mxu2 %v14555_v28  ;;  %5775 = vmatmul.bf16.gmra.mxu0 %v14556_v26 }
 0x740   : > { %4858 = vmatmul.bf16.gmra.mxu3 %v14438_v35  ;;  %5864 = vmatmul.bf16.gmra.mxu1 %v14557_v25 }
 0x741   : > { %v5160_v27 = vsel %vm4904_vm3, %v4817_v18, %v5032_v10  ;;  %5994 = vmatpush.bf16.msra.mxu3 %v8783_v40 }
 0x742   : > { %v4730_v14 = vpop.f32.mrf.mxu2  ;;  %v12673_v11 = vpack.c.bf16 %v5160_v27, %v5156_v2 }
 0x743   : > { %v4731_v4 = vadd.f32 %v4730_v14, %v12290_v58  ;;  %v4819_v60 = vpop.f32.mrf.mxu3 }
 0x744   : > { %14558 = vst [vmem:[#allocation13_spill] sm:$0xff] %v12673_v11  ;;  %v5738_v35 = vpop.f32.mrf.mxu0 }
 0x745   : > { %v4820_v23 = vadd.f32 %v4819_v60, %v4731_v4  ;;  %v5739_v28 = vadd.f32 %v5738_v35, %v12657_v55  ;;  %v5827_v25 = vpop.f32.mrf.mxu1  ;;  %v14560_v60 = vld [vmem:[#allocation93_spill] sm:$0xff]  ;;  %v14561_v35 = vld [vmem:[#allocation123_spill] sm:$0xff] }
 0x747   : > { %v12677_v26 = vadd.f32 %v5827_v25, %v5739_v28  ;;  %v5036_v47 = vmul.f32 0.2, %v4820_v23  ;;  %vm4908_vm4 = vcmp.gt.f32.partialorder %v4820_v23, 0.0  ;;  %v14562_v28 = vld [vmem:[#allocation88_spill] sm:$0xff] }
 0x749   : > { %v5164_v41 = vsel %vm4908_vm4, %v4820_v23, %v5036_v47 }
 0x74a   : > { %v4732_v18 = vpop.f32.mrf.mxu2 }
 0x74b   : > { %v4733_v58 = vadd.f32 %v4732_v18, %v12321_v7  ;;  %v4821_v10 = vpop.f32.mrf.mxu3  ;;  %v14563_v7 = vld [vmem:[#allocation15_spill] sm:$0xff] }
 0x74c   : > { %v5741_v48 = vpop.f32.mrf.mxu0 }
 0x74d   : > { %v4822_v2 = vadd.f32 %v4821_v10, %v4733_v58  ;;  %v5742_v25 = vadd.f32 %v5741_v48, %v12657_v55  ;;  %v5830_v27 = vpop.f32.mrf.mxu1 }
 0x74f   : > { %vm4912_vm5 = vcmp.gt.f32.partialorder %v4822_v2, 0.0  ;;  %v5040_v14 = vmul.f32 0.2, %v4822_v2  ;;  %v12687_v4 = vadd.f32 %v5830_v27, %v5742_v25  ;;  %4774 = vmatmul.bf16.gmra.mxu2 %v14560_v60  ;;  %5780 = vmatmul.bf16.gmra.mxu0 %v14561_v35 }
 0x750   : > { %4863 = vmatmul.bf16.gmra.mxu3 %v14562_v28  ;;  %5869 = vmatmul.bf16.gmra.mxu1 %v14563_v7 }
 0x751   : > { %14559 = vst [vmem:[#allocation34_spill] sm:$0xff] %v12687_v4  ;;  %v5168_v53 = vsel %vm4912_vm5, %v4822_v2, %v5040_v14 }
 0x752   : > { %v4735_v40 = vpop.f32.mrf.mxu2  ;;  %v12693_v18 = vpack.c.bf16 %v5168_v53, %v5164_v41  ;;  %v14564_v53 = vld [vmem:[#allocation97_spill] sm:$0xff] }
 0x753   : > { %v4736_v58 = vadd.f32 %v4735_v40, %v12351_v1  ;;  %v4824_v10 = vpop.f32.mrf.mxu3  ;;  %v14565_v40 = vld [vmem:[#allocation124_spill] sm:$0xff] }
 0x754   : > { %v5743_v48 = vpop.f32.mrf.mxu0 }
 0x755   : > { %v4825_v39 = vadd.f32 %v4824_v10, %v4736_v58  ;;  %v5744_v25 = vadd.f32 %v5743_v48, %v12657_v55  ;;  %v5832_v27 = vpop.f32.mrf.mxu1  ;;  %v14566_v58 = vld [vmem:[#allocation113_spill] sm:$0xff]  ;;  %v14567_v10 = vld [vmem:[#allocation19_spill] sm:$0xff] }
 0x757   : > { %v12697_v60 = vadd.f32 %v5832_v27, %v5744_v25  ;;  %v5044_v23 = vmul.f32 0.2, %v4825_v39  ;;  %vm4916_vm6 = vcmp.gt.f32.partialorder %v4825_v39, 0.0  ;;  %v8774_v27 = vld [vmem:[%s13803_s3 + $0x1e0] sm:$0xf] }
 0x75a   : > { %v4737_v35 = vpop.f32.mrf.mxu2 }
 0x75b   : > { %v4738_v28 = vadd.f32 %v4737_v35, %v12386_v43  ;;  %v4826_v4 = vpop.f32.mrf.mxu3  ;;  %v8710_v43 = vld [vmem:[%s13803_s3 + $0x160] sm:$0xf] }
 0x75c   : > { %v5746_v7 = vpop.f32.mrf.mxu0 }
 0x75d   : > { %v4827_v47 = vadd.f32 %v4826_v4, %v4738_v28  ;;  %v5747_v2 = vadd.f32 %v5746_v7, %v12657_v55  ;;  %v5835_v14 = vpop.f32.mrf.mxu1  ;;  %v9235_v4 = vld [vmem:[%s13803_s3 + $0x164] sm:$0xf0]  ;;  %v5172_v7 = vsel %vm4916_vm6, %v4825_v39, %v5044_v23 }
 0x75e   : > { %v8711_v35 = vor.u32 %v9235_v4, %v8710_v43  ;;  %v9251_v28 = vld [vmem:[%s13803_s3 + $0x1e4] sm:$0xf0] }
 0x75f   : > { %vm4920_vm7 = vcmp.gt.f32.partialorder %v4827_v47, 0.0  ;;  %v5048_v1 = vmul.f32 0.2, %v4827_v47  ;;  %v12701_v41 = vadd.f32 %v5835_v14, %v5747_v2  ;;  %4779 = vmatmul.bf16.gmra.mxu2 %v14564_v53  ;;  %5785 = vmatmul.bf16.gmra.mxu0 %v14565_v40 }
 0x760   : > { %4868 = vmatmul.bf16.gmra.mxu3 %v14566_v58  ;;  %5874 = vmatmul.bf16.gmra.mxu1 %v14567_v10  ;;  %v8775_v58 = vor.u32 %v9251_v28, %v8774_v27  ;;  %v9231_v27 = vld [vmem:[%s13803_s3 + $0x144] sm:$0xf0]  ;;  %v8758_v28 = vld [vmem:[%s13803_s3 + $0x1c0] sm:$0xf] }
 0x761   : > { %v5176_v48 = vsel %vm4920_vm7, %v4827_v47, %v5048_v1  ;;  %5906 = vmatpush.bf16.msra.mxu2 %v8711_v35  ;;  %v8702_v47 = vld [vmem:[%s13803_s3 + $0x150] sm:$0xf]  ;;  %v9233_v1 = vld [vmem:[%s13803_s3 + $0x154] sm:$0xf0] }
 0x762   : > { %v4740_v25 = vpop.f32.mrf.mxu2  ;;  %v12719_v2 = vpack.c.bf16 %v5176_v48, %v5172_v7  ;;  %5995 = vmatpush.bf16.msra.mxu3 %v8775_v58  ;;  %v8703_v35 = vor.u32 %v9233_v1, %v8702_v47 }
 0x763   : > { %v4741_v14 = vadd.f32 %v4740_v25, %v12417_v0  ;;  %v4829_v53 = vpop.f32.mrf.mxu3  ;;  %v8766_v0 = vld [vmem:[%s13803_s3 + $0x1d0] sm:$0xf]  ;;  %v8694_v25 = vld [vmem:[%s13803_s3 + $0x140] sm:$0xf] }
 0x764   : > { %v5748_v10 = vpop.f32.mrf.mxu0  ;;  %v8695_v58 = vor.u32 %v9231_v27, %v8694_v25 }
 0x765   : > { %v4830_v43 = vadd.f32 %v4829_v53, %v4741_v14  ;;  %v5749_v39 = vadd.f32 %v5748_v10, %v12657_v55  ;;  %v5837_v23 = vpop.f32.mrf.mxu1  ;;  %v9249_v10 = vld [vmem:[%s13803_s3 + $0x1d4] sm:$0xf0]  ;;  %5907 = vmatpush.bf16.msra.mxu2 %v8703_v35 }
 0x766   : > { %v8767_v7 = vor.u32 %v9249_v10, %v8766_v0 }
 0x767   : > { %v12732_v4 = vadd.f32 %v5837_v23, %v5749_v39  ;;  %v9247_v39 = vld [vmem:[%s13803_s3 + $0x1c4] sm:$0xf0]  ;;  %vm4924_vm8 = vcmp.gt.f32.partialorder %v4830_v43, 0.0  ;;  %v5052_v1 = vmul.f32 0.2, %v4830_v43 }
 0x768   : > { %5996 = vmatpush.bf16.msra.mxu3 %v8767_v7  ;;  %v8759_v47 = vor.u32 %v9247_v39, %v8758_v28  ;;  %v9229_v7 = vld [vmem:[%s13803_s3 + $0x134] sm:$0xf0]  ;;  %v14571_v39 = vld [vmem:[#allocation115_spill] sm:$0xff] }
 0x769   : > { %14568 = vst [vmem:[#allocation39_spill] sm:$0xff] %v12732_v4  ;;  %5908 = vmatpush.bf16.msra.mxu2 %v8695_v58  ;;  %v14569_v28 = vld [vmem:[#allocation101_spill] sm:$0xff]  ;;  %v5180_v40 = vsel %vm4924_vm8, %v4830_v43, %v5052_v1 }
 0x76a   : > { %v4742_v48 = vpop.f32.mrf.mxu2  ;;  %v9245_v58 = vld [vmem:[%s13803_s3 + $0x1b4] sm:$0xf0] }
 0x76b   : > { %v4743_v14 = vadd.f32 %v4742_v48, %v12452_v44  ;;  %v4831_v53 = vpop.f32.mrf.mxu3  ;;  %v8686_v44 = vld [vmem:[%s13803_s3 + $0x130] sm:$0xf] }
 0x76c   : > { %v5751_v23 = vpop.f32.mrf.mxu0  ;;  %5997 = vmatpush.bf16.msra.mxu3 %v8759_v47  ;;  %v8750_v48 = vld [vmem:[%s13803_s3 + $0x1b0] sm:$0xf] }
 0x76d   : > { %v4832_v0 = vadd.f32 %v4831_v53, %v4743_v14  ;;  %v5752_v35 = vadd.f32 %v5751_v23, %v12657_v55  ;;  %v5840_v10 = vpop.f32.mrf.mxu1  ;;  %v14570_v14 = vld [vmem:[#allocation125_spill] sm:$0xff]  ;;  %v8687_v53 = vor.u32 %v9229_v7, %v8686_v44  ;;  %v14572_v23 = vld [vmem:[#allocation23_spill] sm:$0xff]  ;;  %v8751_v47 = vor.u32 %v9245_v58, %v8750_v48 }
 0x76e   : > { %v9227_v44 = vld [vmem:[%s13803_s3 + $0x124] sm:$0xf0]  ;;  %v8742_v7 = vld [vmem:[%s13803_s3 + $0x1a0] sm:$0xf] }
 0x76f   : > { %vm4928_vm9 = vcmp.gt.f32.partialorder %v4832_v0, 0.0  ;;  %v5056_v25 = vmul.f32 0.2, %v4832_v0  ;;  %v12760_v27 = vadd.f32 %v5840_v10, %v5752_v35  ;;  %4784 = vmatmul.bf16.gmra.mxu2 %v14569_v28  ;;  %5790 = vmatmul.bf16.gmra.mxu0 %v14570_v14  ;;  %v8678_v10 = vld [vmem:[%s13803_s3 + $0x120] sm:$0xf] }
 0x770   : > { %4873 = vmatmul.bf16.gmra.mxu3 %v14571_v39  ;;  %5879 = vmatmul.bf16.gmra.mxu1 %v14572_v23  ;;  %v8679_v1 = vor.u32 %v9227_v44, %v8678_v10  ;;  %v9241_v44 = vld [vmem:[%s13803_s3 + $0x194] sm:$0xf0] }
 0x771   : > { %5909 = vmatpush.bf16.msra.mxu2 %v8687_v53  ;;  %v5184_v4 = vsel %vm4928_vm9, %v4832_v0, %v5056_v25  ;;  %5998 = vmatpush.bf16.msra.mxu3 %v8751_v47  ;;  %v9243_v0 = vld [vmem:[%s13803_s3 + $0x1a4] sm:$0xf0] }
 0x772   : > { %v4745_v35 = vpop.f32.mrf.mxu2  ;;  %v12779_v28 = vpack.c.bf16 %v5184_v4, %v5180_v40  ;;  %v8743_v53 = vor.u32 %v9243_v0, %v8742_v7  ;;  %v8670_v40 = vld [vmem:[%s13803_s3 + $0x110] sm:$0xf]  ;;  %v8726_v0 = vld [vmem:[%s13803_s3 + $0x180] sm:$0xf] }
 0x773   : > { %v4746_v48 = vadd.f32 %v4745_v35, %v12483_v45  ;;  %v4834_v43 = vpop.f32.mrf.mxu3  ;;  %v9225_v45 = vld [vmem:[%s13803_s3 + $0x114] sm:$0xf0]  ;;  %v8734_v4 = vld [vmem:[%s13803_s3 + $0x190] sm:$0xf] }
 0x774   : > { %v5753_v25 = vpop.f32.mrf.mxu0  ;;  %v8671_v10 = vor.u32 %v9225_v45, %v8670_v40  ;;  %v8735_v7 = vor.u32 %v9241_v44, %v8734_v4 }
 0x775   : > { %v4835_v58 = vadd.f32 %v4834_v43, %v4746_v48  ;;  %v5754_v39 = vadd.f32 %v5753_v25, %v12657_v55  ;;  %v5842_v47 = vpop.f32.mrf.mxu1  ;;  %5910 = vmatpush.bf16.msra.mxu2 %v8679_v1  ;;  %5999 = vmatpush.bf16.msra.mxu3 %v8743_v53  ;;  %v8662_v43 = vld [vmem:[%s13803_s3 + $0x100] sm:$0xf]  ;;  %v9223_v1 = vld [vmem:[%s13803_s3 + $0x104] sm:$0xf0] }
 0x777   : > { %v12795_v35 = vadd.f32 %v5842_v47, %v5754_v39  ;;  %v8663_v39 = vor.u32 %v9223_v1, %v8662_v43  ;;  %v9239_v47 = vld [vmem:[%s13803_s3 + $0x184] sm:$0xf0]  ;;  %vm4932_vm10 = vcmp.gt.f32.partialorder %v4835_v58, 0.0  ;;  %v5060_v4 = vmul.f32 0.2, %v4835_v58 }
 0x778   : > { %v8727_v45 = vor.u32 %v9239_v47, %v8726_v0  ;;  %v9220_v43 = vld [vmem:[%s13803_s3 + $0xf4] sm:$0xf]  ;;  %v8656_v47 = vld [vmem:[%s13803_s3 + $0xf8] sm:$0xf0] }
 0x779   : > { %14573 = vst [vmem:[#allocation40_spill] sm:$0xff] %v12795_v35  ;;  %5911 = vmatpush.bf16.msra.mxu2 %v8671_v10  ;;  %6000 = vmatpush.bf16.msra.mxu3 %v8735_v7  ;;  %v8659_v23 = vor.u32 %v9220_v43, %v8656_v47  ;;  %v5188_v14 = vsel %vm4932_vm10, %v4835_v58, %v5060_v4 }
 0x77a   : > { %v4747_v48 = vpop.f32.mrf.mxu2 }
 0x77b   : > { %v4748_v25 = vadd.f32 %v4747_v48, %v12516_v38  ;;  %v4836_v53 = vpop.f32.mrf.mxu3  ;;  %v9204_v38 = vld [vmem:[%s13803_s3 + $0x74] sm:$0xf]  ;;  %v8592_v48 = vld [vmem:[%s13803_s3 + $0x78] sm:$0xf0]  ;;  %6172 = vmatpush.bf16.msra.mxu1 %v8659_v23  ;;  %v8648_v23 = vld [vmem:[%s13803_s3 + $0xe8] sm:$0xf0] }
 0x77c   : > { %v5756_v40 = vpop.f32.mrf.mxu0 }
 0x77d   : > { %v4837_v10 = vadd.f32 %v4836_v53, %v4748_v25  ;;  %v5757_v44 = vadd.f32 %v5756_v40, %v12657_v55  ;;  %v5845_v7 = vpop.f32.mrf.mxu1  ;;  %5912 = vmatpush.bf16.msra.mxu2 %v8663_v39  ;;  %6001 = vmatpush.bf16.msra.mxu3 %v8727_v45  ;;  %v14574_v25 = vld [vmem:[#allocation104_spill] sm:$0xff]  ;;  %v14575_v53 = vld [vmem:[#allocation126_spill] sm:$0xff]  ;;  %v8595_v39 = vor.u32 %v9204_v38, %v8592_v48  ;;  %v14576_v40 = vld [vmem:[#allocation117_spill] sm:$0xff] }
 0x77e   : > { %v14577_v45 = vld [vmem:[#allocation27_spill] sm:$0xff]  ;;  %v8584_v38 = vld [vmem:[%s13803_s3 + $0x68] sm:$0xf0] }
 0x77f   : > { %vm4936_vm11 = vcmp.gt.f32.partialorder %v4837_v10, 0.0  ;;  %v5064_v1 = vmul.f32 0.2, %v4837_v10  ;;  %v12823_v0 = vadd.f32 %v5845_v7, %v5757_v44  ;;  %4789 = vmatmul.bf16.gmra.mxu2 %v14574_v25  ;;  %5795 = vmatmul.bf16.gmra.mxu0 %v14575_v53  ;;  %v9202_v7 = vld [vmem:[%s13803_s3 + $0x64] sm:$0xf] }
 0x780   : > { %4878 = vmatmul.bf16.gmra.mxu3 %v14576_v40  ;;  %5884 = vmatmul.bf16.gmra.mxu1 %v14577_v45  ;;  %v9218_v48 = vld [vmem:[%s13803_s3 + $0xe4] sm:$0xf]  ;;  %v8587_v4 = vor.u32 %v9202_v7, %v8584_v38  ;;  %v8640_v38 = vld [vmem:[%s13803_s3 + $0xd8] sm:$0xf0] }
 0x781   : > { %6083 = vmatpush.bf16.msra.mxu0 %v8595_v39  ;;  %v5192_v35 = vsel %vm4936_vm11, %v4837_v10, %v5064_v1  ;;  %v8651_v1 = vor.u32 %v9218_v48, %v8648_v23  ;;  %v9214_v23 = vld [vmem:[%s13803_s3 + $0xc4] sm:$0xf] }
 0x782   : > { %v4750_v44 = vpop.f32.mrf.mxu2  ;;  %v12842_v25 = vpack.c.bf16 %v5192_v35, %v5188_v14  ;;  %v9200_v14 = vld [vmem:[%s13803_s3 + $0x54] sm:$0xf] }
 0x783   : > { %v4751_v43 = vadd.f32 %v4750_v44, %v12536_v20  ;;  %v4839_v58 = vpop.f32.mrf.mxu3  ;;  %6173 = vmatpush.bf16.msra.mxu1 %v8651_v1  ;;  %v8576_v20 = vld [vmem:[%s13803_s3 + $0x58] sm:$0xf0]  ;;  %v9216_v35 = vld [vmem:[%s13803_s3 + $0xd4] sm:$0xf] }
 0x784   : > { %v5758_v10 = vpop.f32.mrf.mxu0  ;;  %v8579_v7 = vor.u32 %v9200_v14, %v8576_v20  ;;  %v8643_v48 = vor.u32 %v9216_v35, %v8640_v38 }
 0x785   : > { %v4840_v39 = vadd.f32 %v4839_v58, %v4751_v43  ;;  %v5759_v47 = vadd.f32 %v5758_v10, %v12657_v55  ;;  %v5847_v40 = vpop.f32.mrf.mxu1  ;;  %6084 = vmatpush.bf16.msra.mxu0 %v8587_v4  ;;  %v9198_v58 = vld [vmem:[%s13803_s3 + $0x44] sm:$0xf]  ;;  %v8568_v4 = vld [vmem:[%s13803_s3 + $0x48] sm:$0xf0] }
 0x787   : > { %v12858_v44 = vadd.f32 %v5847_v40, %v5759_v47  ;;  %6174 = vmatpush.bf16.msra.mxu1 %v8643_v48  ;;  %v8571_v47 = vor.u32 %v9198_v58, %v8568_v4  ;;  %v8632_v40 = vld [vmem:[%s13803_s3 + $0xc8] sm:$0xf0]  ;;  %vm4940_vm12 = vcmp.gt.f32.partialorder %v4840_v39, 0.0  ;;  %v5068_v35 = vmul.f32 0.2, %v4840_v39 }
 0x788   : > { %v8635_v20 = vor.u32 %v9214_v23, %v8632_v40  ;;  %v9212_v58 = vld [vmem:[%s13803_s3 + $0xb4] sm:$0xf]  ;;  %v8624_v40 = vld [vmem:[%s13803_s3 + $0xb8] sm:$0xf0] }
 0x789   : > { %14578 = vst [vmem:[#allocation16_spill] sm:$0xff] %v12858_v44  ;;  %6085 = vmatpush.bf16.msra.mxu0 %v8579_v7  ;;  %v8627_v45 = vor.u32 %v9212_v58, %v8624_v40  ;;  %v5196_v53 = vsel %vm4940_vm12, %v4840_v39, %v5068_v35 }
 0x78a   : > { %v4752_v43 = vpop.f32.mrf.mxu2 }
 0x78b   : > { %v4753_v10 = vadd.f32 %v4752_v43, %v12545_v12  ;;  %v4841_v1 = vpop.f32.mrf.mxu3  ;;  %6175 = vmatpush.bf16.msra.mxu1 %v8635_v20  ;;  %v9196_v12 = vld [vmem:[%s13803_s3 + $0x34] sm:$0xf]  ;;  %v8560_v43 = vld [vmem:[%s13803_s3 + $0x38] sm:$0xf0]  ;;  %v14582_v20 = vld [vmem:[#allocation31_spill] sm:$0xff] }
 0x78c   : > { %v5761_v14 = vpop.f32.mrf.mxu0 }
 0x78d   : > { %v4842_v7 = vadd.f32 %v4841_v1, %v4753_v10  ;;  %v5762_v38 = vadd.f32 %v5761_v14, %v12657_v55  ;;  %v5850_v48 = vpop.f32.mrf.mxu1  ;;  %6086 = vmatpush.bf16.msra.mxu0 %v8571_v47  ;;  %v14579_v10 = vld [vmem:[#allocation107_spill] sm:$0xff]  ;;  %v8563_v47 = vor.u32 %v9196_v12, %v8560_v43  ;;  %v8552_v12 = vld [vmem:[%s13803_s3 + $0x28] sm:$0xf0] }
 0x78e   : > { %v14580_v1 = vld [vmem:[#allocation127_spill] sm:$0xff] }
 0x78f   : > { %vm4944_vm13 = vcmp.gt.f32.partialorder %v4842_v7, 0.0  ;;  %v5072_v4 = vmul.f32 0.2, %v4842_v7  ;;  %v12886_v23 = vadd.f32 %v5850_v48, %v5762_v38  ;;  %4794 = vmatmul.bf16.gmra.mxu2 %v14579_v10  ;;  %5800 = vmatmul.bf16.gmra.mxu0 %v14580_v1  ;;  %v14581_v14 = vld [vmem:[#allocation119_spill] sm:$0xff] }
 0x790   : > { %4883 = vmatmul.bf16.gmra.mxu3 %v14581_v14  ;;  %5889 = vmatmul.bf16.gmra.mxu1 %v14582_v20  ;;  %v9194_v48 = vld [vmem:[%s13803_s3 + $0x24] sm:$0xf] }
 0x791   : > { %6087 = vmatpush.bf16.msra.mxu0 %v8563_v47  ;;  %v5200_v44 = vsel %vm4944_vm13, %v4842_v7, %v5072_v4  ;;  %6176 = vmatpush.bf16.msra.mxu1 %v8627_v45  ;;  %v9210_v43 = vld [vmem:[%s13803_s3 + $0xa4] sm:$0xf]  ;;  %v8555_v35 = vor.u32 %v9194_v48, %v8552_v12  ;;  %v8616_v45 = vld [vmem:[%s13803_s3 + $0xa8] sm:$0xf0]  ;;  %v8608_v12 = vld [vmem:[%s13803_s3 + $0x98] sm:$0xf0] }
 0x792   : > { %v4755_v38 = vpop.f32.mrf.mxu2  ;;  %v12905_v10 = vpack.c.bf16 %v5200_v44, %v5196_v53  ;;  %v8619_v4 = vor.u32 %v9210_v43, %v8616_v45  ;;  %v9192_v53 = vld [vmem:[%s13803_s3 + $0x14] sm:$0xf]  ;;  %v9206_v45 = vld [vmem:[%s13803_s3 + $0x84] sm:$0xf] }
 0x793   : > { %v4756_v58 = vadd.f32 %v4755_v38, %v12549_v30  ;;  %v4844_v39 = vpop.f32.mrf.mxu3  ;;  %v8544_v30 = vld [vmem:[%s13803_s3 + $0x18] sm:$0xf0]  ;;  %v9208_v44 = vld [vmem:[%s13803_s3 + $0x94] sm:$0xf] }
 0x794   : > { %v5763_v7 = vpop.f32.mrf.mxu0  ;;  %v8547_v48 = vor.u32 %v9192_v53, %v8544_v30  ;;  %v8611_v43 = vor.u32 %v9208_v44, %v8608_v12 }
 0x795   : > { %v4845_v47 = vadd.f32 %v4844_v39, %v4756_v58  ;;  %v5764_v40 = vadd.f32 %v5763_v7, %v12657_v55  ;;  %v5852_v14 = vpop.f32.mrf.mxu1  ;;  %6088 = vmatpush.bf16.msra.mxu0 %v8555_v35  ;;  %6177 = vmatpush.bf16.msra.mxu1 %v8619_v4  ;;  %v9190_v39 = vld [vmem:[%s13803_s3 + $0x4] sm:$0xf]  ;;  %v8536_v35 = vld [vmem:[%s13803_s3 + $0x8] sm:$0xf0] }
 0x797   : > { %v12921_v38 = vadd.f32 %v5852_v14, %v5764_v40  ;;  %v8539_v40 = vor.u32 %v9190_v39, %v8536_v35  ;;  %v8600_v14 = vld [vmem:[%s13803_s3 + $0x88] sm:$0xf0]  ;;  %v5076_v44 = vmul.f32 0.2, %v4845_v47  ;;  %vm4948_vm14 = vcmp.gt.f32.partialorder %v4845_v47, 0.0  ;;  %v14586_v39 = vld [vmem:[#allocation35_spill] sm:$0xff] }
 0x798   : > { %v8603_v30 = vor.u32 %v9206_v45, %v8600_v14 }
 0x799   : > { %6089 = vmatpush.bf16.msra.mxu0 %v8547_v48  ;;  %6178 = vmatpush.bf16.msra.mxu1 %v8611_v43  ;;  %v5204_v35 = vsel %vm4948_vm14, %v4845_v47, %v5076_v44 }
 0x79a   : > { %v4757_v58 = vpop.f32.mrf.mxu2 }
 0x79b   : > { %v4758_v7 = vadd.f32 %v4757_v58, %v12557_v54  ;;  %v4846_v4 = vpop.f32.mrf.mxu3  ;;  %v14584_v54 = vld [vmem:[#allocation128_spill] sm:$0xff] }
 0x79c   : > { %v5766_v53 = vpop.f32.mrf.mxu0  ;;  %v14585_v58 = vld [vmem:[#allocation24_spill] sm:$0xff] }
 0x79d   : > { %v4847_v48 = vadd.f32 %v4846_v4, %v4758_v7  ;;  %v5767_v12 = vadd.f32 %v5766_v53, %v12657_v55  ;;  %v5855_v43 = vpop.f32.mrf.mxu1  ;;  %6090 = vmatpush.bf16.msra.mxu0 %v8539_v40  ;;  %6179 = vmatpush.bf16.msra.mxu1 %v8603_v30 }
 0x79f   : > { %vm4952_vm15 = vcmp.gt.f32.partialorder %v4847_v48, 0.0  ;;  %v5080_v20 = vmul.f32 0.2, %v4847_v48  ;;  %v12940_v1 = vadd.f32 %v5855_v43, %v5767_v12  ;;  %5805 = vmatmul.bf16.gmra.mxu0 %v14584_v54  ;;  %5913 = vmatmul.bf16.vlgmr.msra.gmra.mxu2 %v14585_v58 }
 0x7a0   : > { %5894 = vmatmul.bf16.gmra.mxu1 %v14586_v39  ;;  %6002 = vmatmul.bf16.vlgmr.msra.gmra.mxu3 %v12649_v49 }
 0x7a1   : > { %14583 = vst [vmem:[#allocation17_spill] sm:$0xff] %v12940_v1  ;;  %v5208_v45 = vsel %vm4952_vm15, %v4847_v48, %v5080_v20 }
 0x7a2   : > { %v4760_v7 = vpop.f32.mrf.mxu2  ;;  %v12946_v4 = vpack.c.bf16 %v5208_v45, %v5204_v35  ;;  %v14588_v45 = vld [vmem:[#allocation129_spill] sm:$0xff] }
 0x7a3   : > { %v4761_v40 = vadd.f32 %v4760_v7, %v12561_v33  ;;  %v4849_v14 = vpop.f32.mrf.mxu3  ;;  %v14589_v7 = vld [vmem:[#allocation76_spill] sm:$0xff] }
 0x7a4   : > { %14587 = vst [vmem:[#allocation38_spill] sm:$0xff] %v12946_v4  ;;  %v5768_v53 = vpop.f32.mrf.mxu0 }
 0x7a5   : > { %v4850_v30 = vadd.f32 %v4849_v14, %v4761_v40  ;;  %v5769_v12 = vadd.f32 %v5768_v53, %v12657_v55  ;;  %v5857_v43 = vpop.f32.mrf.mxu1  ;;  %v14590_v40 = vld [vmem:[#allocation4_spill] sm:$0xff] }
 0x7a7   : > { %v12950_v54 = vadd.f32 %v5857_v43, %v5769_v12  ;;  %v5084_v47 = vmul.f32 0.2, %v4850_v30  ;;  %vm4956_vm0 = vcmp.gt.f32.partialorder %v4850_v30, 0.0 }
 0x7aa   : > { %v4762_v58 = vpop.f32.mrf.mxu2 }
 0x7ab   : > { %v4763_v39 = vadd.f32 %v4762_v58, %v12569_v36  ;;  %v4851_v1 = vpop.f32.mrf.mxu3  ;;  %v5212_v36 = vsel %vm4956_vm0, %v4850_v30, %v5084_v47 }
 0x7ac   : > { %v5771_v49 = vpop.f32.mrf.mxu0 }
 0x7ad   : > { %v4852_v20 = vadd.f32 %v4851_v1, %v4763_v39  ;;  %v5772_v44 = vadd.f32 %v5771_v49, %v12657_v55  ;;  %v5860_v48 = vpop.f32.mrf.mxu1 }
 0x7af   : > { %vm4960_vm1 = vcmp.gt.f32.partialorder %v4852_v20, 0.0  ;;  %v5088_v33 = vmul.f32 0.2, %v4852_v20  ;;  %v12954_v35 = vadd.f32 %v5860_v48, %v5772_v44  ;;  %5810 = vmatmul.bf16.gmra.mxu0 %v14588_v45  ;;  %5918 = vmatmul.bf16.gmra.mxu2 %v14589_v7 }
 0x7b0   : > { %5899 = vmatmul.bf16.gmra.mxu1 %v14590_v40  ;;  %6007 = vmatmul.bf16.gmra.mxu3 %v12673_v11 }
 0x7b1   : > { %v5216_v58 = vsel %vm4960_vm1, %v4852_v20, %v5088_v33 }
 0x7b2   : > { %v4765_v14 = vpop.f32.mrf.mxu2  ;;  %v12960_v1 = vpack.c.bf16 %v5216_v58, %v5212_v36  ;;  %v14591_v58 = vld [vmem:[#allocation80_spill] sm:$0xff] }
 0x7b3   : > { %v4766_v49 = vadd.f32 %v4765_v14, %v12573_v46  ;;  %v4854_v39 = vpop.f32.mrf.mxu3 }
 0x7b4   : > { %v5773_v53 = vpop.f32.mrf.mxu0 }
 0x7b5   : > { %v4855_v12 = vadd.f32 %v4854_v39, %v4766_v49  ;;  %v5774_v43 = vadd.f32 %v5773_v53, %v12657_v55  ;;  %v5862_v44 = vpop.f32.mrf.mxu1 }
 0x7b7   : > { %v12964_v48 = vadd.f32 %v5862_v44, %v5774_v43  ;;  %v5092_v30 = vmul.f32 0.2, %v4855_v12  ;;  %vm4964_vm2 = vcmp.gt.f32.partialorder %v4855_v12, 0.0 }
 0x7ba   : > { %v4767_v7 = vpop.f32.mrf.mxu2 }
 0x7bb   : > { %v4768_v40 = vadd.f32 %v4767_v7, %v12581_v24  ;;  %v4856_v45 = vpop.f32.mrf.mxu3  ;;  %v5220_v24 = vsel %vm4964_vm2, %v4855_v12, %v5092_v30 }
 0x7bc   : > { %v5776_v11 = vpop.f32.mrf.mxu0 }
 0x7bd   : > { %v4857_v47 = vadd.f32 %v4856_v45, %v4768_v40  ;;  %v5777_v20 = vadd.f32 %v5776_v11, %v12657_v55  ;;  %v5865_v33 = vpop.f32.mrf.mxu1 }
 0x7bf   : > { %vm4968_vm3 = vcmp.gt.f32.partialorder %v4857_v47, 0.0  ;;  %v5096_v46 = vmul.f32 0.2, %v4857_v47  ;;  %v12968_v36 = vadd.f32 %v5865_v33, %v5777_v20  ;;  %5923 = vmatmul.bf16.gmra.mxu2 %v14591_v58  ;;  %6091 = vmatmul.bf16.vlgmr.msra.gmra.mxu0 %v14526_v29 }
 0x7c0   : > { %6012 = vmatmul.bf16.gmra.mxu3 %v12693_v18  ;;  %6180 = vmatmul.bf16.vlgmr.msra.gmra.mxu1 %v14528_v5 }
 0x7c1   : > { %v5224_v7 = vsel %vm4968_vm3, %v4857_v47, %v5096_v46 }
 0x7c2   : > { %v4770_v14 = vpop.f32.mrf.mxu2  ;;  %v12974_v45 = vpack.c.bf16 %v5224_v7, %v5220_v24  ;;  %v14593_v7 = vld [vmem:[#allocation59_spill] sm:$0xff] }
 0x7c3   : > { %v4771_v11 = vadd.f32 %v4770_v14, %v12585_v13  ;;  %v4859_v40 = vpop.f32.mrf.mxu3 }
 0x7c4   : > { %14592 = vst [vmem:[#allocation43_spill] sm:$0xff] %v12974_v45  ;;  %v5778_v49 = vpop.f32.mrf.mxu0 }
 0x7c5   : > { %v4860_v39 = vadd.f32 %v4859_v40, %v4771_v11  ;;  %v5779_v53 = vadd.f32 %v5778_v49, %v12657_v55  ;;  %v5867_v43 = vpop.f32.mrf.mxu1 }
 0x7c7   : > { %v12978_v44 = vadd.f32 %v5867_v43, %v5779_v53  ;;  %v5100_v12 = vmul.f32 0.2, %v4860_v39  ;;  %vm4972_vm4 = vcmp.gt.f32.partialorder %v4860_v39, 0.0 }
 0x7ca   : > { %v4772_v29 = vpop.f32.mrf.mxu2 }
 0x7cb   : > { %v4773_v20 = vadd.f32 %v4772_v29, %v12593_v3  ;;  %v4861_v33 = vpop.f32.mrf.mxu3  ;;  %v5228_v3 = vsel %vm4972_vm4, %v4860_v39, %v5100_v12 }
 0x7cc   : > { %v5781_v5 = vpop.f32.mrf.mxu0 }
 0x7cd   : > { %v4862_v30 = vadd.f32 %v4861_v33, %v4773_v20  ;;  %v5782_v47 = vadd.f32 %v5781_v5, %v12657_v55  ;;  %v5870_v46 = vpop.f32.mrf.mxu1 }
 0x7cf   : > { %vm4976_vm5 = vcmp.gt.f32.partialorder %v4862_v30, 0.0  ;;  %v5104_v13 = vmul.f32 0.2, %v4862_v30  ;;  %v12982_v24 = vadd.f32 %v5870_v46, %v5782_v47  ;;  %5928 = vmatmul.bf16.gmra.mxu2 %v14593_v7  ;;  %6096 = vmatmul.bf16.gmra.mxu0 %v14530_v9 }
 0x7d0   : > { %6017 = vmatmul.bf16.gmra.mxu3 %v12719_v2  ;;  %6185 = vmatmul.bf16.gmra.mxu1 %v14532_v17 }
 0x7d1   : > { %v5232_v14 = vsel %vm4976_vm5, %v4862_v30, %v5104_v13 }
 0x7d2   : > { %v4775_v11 = vpop.f32.mrf.mxu2  ;;  %v12988_v40 = vpack.c.bf16 %v5232_v14, %v5228_v3  ;;  %v14595_v14 = vld [vmem:[#allocation85_spill] sm:$0xff] }
 0x7d3   : > { %v4776_v49 = vadd.f32 %v4775_v11, %v12597_v63  ;;  %v4864_v53 = vpop.f32.mrf.mxu3 }
 0x7d4   : > { %14594 = vst [vmem:[#allocation44_spill] sm:$0xff] %v12988_v40  ;;  %v5783_v43 = vpop.f32.mrf.mxu0 }
 0x7d5   : > { %v4865_v29 = vadd.f32 %v4864_v53, %v4776_v49  ;;  %v5784_v20 = vadd.f32 %v5783_v43, %v12657_v55  ;;  %v5872_v33 = vpop.f32.mrf.mxu1 }
 0x7d7   : > { %v12992_v5 = vadd.f32 %v5872_v33, %v5784_v20  ;;  %v5108_v39 = vmul.f32 0.2, %v4865_v29  ;;  %vm4980_vm6 = vcmp.gt.f32.partialorder %v4865_v29, 0.0 }
 0x7da   : > { %v4777_v9 = vpop.f32.mrf.mxu2 }
 0x7db   : > { %v4778_v47 = vadd.f32 %v4777_v9, %v12605_v32  ;;  %v4866_v46 = vpop.f32.mrf.mxu3  ;;  %v5236_v32 = vsel %vm4980_vm6, %v4865_v29, %v5108_v39 }
 0x7dc   : > { %v5786_v17 = vpop.f32.mrf.mxu0 }
 0x7dd   : > { %v4867_v12 = vadd.f32 %v4866_v46, %v4778_v47  ;;  %v5787_v30 = vadd.f32 %v5786_v17, %v12657_v55  ;;  %v5875_v13 = vpop.f32.mrf.mxu1 }
 0x7df   : > { %vm4984_vm7 = vcmp.gt.f32.partialorder %v4867_v12, 0.0  ;;  %v5112_v63 = vmul.f32 0.2, %v4867_v12  ;;  %v12996_v3 = vadd.f32 %v5875_v13, %v5787_v30  ;;  %5933 = vmatmul.bf16.gmra.mxu2 %v14595_v14  ;;  %6101 = vmatmul.bf16.gmra.mxu0 %v14534_v52 }
 0x7e0   : > { %6022 = vmatmul.bf16.gmra.mxu3 %v12779_v28  ;;  %6190 = vmatmul.bf16.gmra.mxu1 %v14536_v57 }
 0x7e1   : > { %v5240_v11 = vsel %vm4984_vm7, %v4867_v12, %v5112_v63 }
 0x7e2   : > { %v4780_v49 = vpop.f32.mrf.mxu2  ;;  %v13002_v53 = vpack.c.bf16 %v5240_v11, %v5236_v32  ;;  %v14597_v11 = vld [vmem:[#allocation64_spill] sm:$0xff] }
 0x7e3   : > { %v4781_v43 = vadd.f32 %v4780_v49, %v12609_v8  ;;  %v4869_v20 = vpop.f32.mrf.mxu3 }
 0x7e4   : > { %14596 = vst [vmem:[#allocation21_spill] sm:$0xff] %v13002_v53  ;;  %v5788_v33 = vpop.f32.mrf.mxu0 }
 0x7e5   : > { %v4870_v9 = vadd.f32 %v4869_v20, %v4781_v43  ;;  %v5789_v47 = vadd.f32 %v5788_v33, %v12657_v55  ;;  %v5877_v46 = vpop.f32.mrf.mxu1 }
 0x7e7   : > { %v13006_v17 = vadd.f32 %v5877_v46, %v5789_v47  ;;  %v5116_v29 = vmul.f32 0.2, %v4870_v9  ;;  %vm4988_vm8 = vcmp.gt.f32.partialorder %v4870_v9, 0.0 }
 0x7ea   : > { %v4782_v52 = vpop.f32.mrf.mxu2 }
 0x7eb   : > { %v4783_v30 = vadd.f32 %v4782_v52, %v12617_v51  ;;  %v4871_v13 = vpop.f32.mrf.mxu3  ;;  %v5244_v51 = vsel %vm4988_vm8, %v4870_v9, %v5116_v29 }
 0x7ec   : > { %v5791_v57 = vpop.f32.mrf.mxu0 }
 0x7ed   : > { %v4872_v39 = vadd.f32 %v4871_v13, %v4783_v30  ;;  %v5792_v12 = vadd.f32 %v5791_v57, %v12657_v55  ;;  %v5880_v63 = vpop.f32.mrf.mxu1 }
 0x7ef   : > { %vm4992_vm9 = vcmp.gt.f32.partialorder %v4872_v39, 0.0  ;;  %v5120_v8 = vmul.f32 0.2, %v4872_v39  ;;  %v13010_v32 = vadd.f32 %v5880_v63, %v5792_v12  ;;  %5938 = vmatmul.bf16.gmra.mxu2 %v14597_v11  ;;  %6106 = vmatmul.bf16.gmra.mxu0 %v14538_v50 }
 0x7f0   : > { %6027 = vmatmul.bf16.gmra.mxu3 %v12842_v25  ;;  %6195 = vmatmul.bf16.gmra.mxu1 %v14540_v21 }
 0x7f1   : > { %v5248_v49 = vsel %vm4992_vm9, %v4872_v39, %v5120_v8 }
 0x7f2   : > { %v4785_v43 = vpop.f32.mrf.mxu2  ;;  %v13016_v20 = vpack.c.bf16 %v5248_v49, %v5244_v51  ;;  %v14599_v49 = vld [vmem:[#allocation95_spill] sm:$0xff] }
 0x7f3   : > { %v4786_v33 = vadd.f32 %v4785_v43, %v12621_v15  ;;  %v4874_v47 = vpop.f32.mrf.mxu3 }
 0x7f4   : > { %14598 = vst [vmem:[#allocation41_spill] sm:$0xff] %v13016_v20  ;;  %v5793_v46 = vpop.f32.mrf.mxu0 }
 0x7f5   : > { %v4875_v52 = vadd.f32 %v4874_v47, %v4786_v33  ;;  %v5794_v30 = vadd.f32 %v5793_v46, %v12657_v55  ;;  %v5882_v13 = vpop.f32.mrf.mxu1 }
 0x7f7   : > { %v13020_v57 = vadd.f32 %v5882_v13, %v5794_v30  ;;  %v5124_v9 = vmul.f32 0.2, %v4875_v52  ;;  %vm4996_vm10 = vcmp.gt.f32.partialorder %v4875_v52, 0.0 }
 0x7fa   : > { %v4787_v50 = vpop.f32.mrf.mxu2 }
 0x7fb   : > { %v4788_v12 = vadd.f32 %v4787_v50, %v12629_v37  ;;  %v4876_v63 = vpop.f32.mrf.mxu3  ;;  %v5252_v37 = vsel %vm4996_vm10, %v4875_v52, %v5124_v9 }
 0x7fc   : > { %v5796_v21 = vpop.f32.mrf.mxu0 }
 0x7fd   : > { %v4877_v29 = vadd.f32 %v4876_v63, %v4788_v12  ;;  %v5797_v39 = vadd.f32 %v5796_v21, %v12657_v55  ;;  %v5885_v8 = vpop.f32.mrf.mxu1 }
 0x7ff   : > { %vm5000_vm11 = vcmp.gt.f32.partialorder %v4877_v29, 0.0  ;;  %v5128_v15 = vmul.f32 0.2, %v4877_v29  ;;  %v13024_v51 = vadd.f32 %v5885_v8, %v5797_v39  ;;  %5943 = vmatmul.bf16.gmra.mxu2 %v14599_v49  ;;  %6111 = vmatmul.bf16.gmra.mxu0 %v14542_v22 }
 0x800   : > { %6032 = vmatmul.bf16.gmra.mxu3 %v12905_v10  ;;  %6200 = vmatmul.bf16.gmra.mxu1 %v14544_v62 }
 0x801   : > { %v5256_v43 = vsel %vm5000_vm11, %v4877_v29, %v5128_v15 }
 0x802   : > { %v4790_v33 = vpop.f32.mrf.mxu2  ;;  %v13030_v47 = vpack.c.bf16 %v5256_v43, %v5252_v37  ;;  %v14601_v43 = vld [vmem:[#allocation70_spill] sm:$0xff] }
 0x803   : > { %v4791_v46 = vadd.f32 %v4790_v33, %v12633_v6  ;;  %v4879_v30 = vpop.f32.mrf.mxu3  ;;  %v14602_v33 = vld [vmem:[#allocation133_spill] sm:$0xff] }
 0x804   : > { %14600 = vst [vmem:[#allocation47_spill] sm:$0xff] %v13030_v47  ;;  %v5798_v13 = vpop.f32.mrf.mxu0 }
 0x805   : > { %v4880_v50 = vadd.f32 %v4879_v30, %v4791_v46  ;;  %v5799_v12 = vadd.f32 %v5798_v13, %v12657_v55  ;;  %v5887_v63 = vpop.f32.mrf.mxu1 }
 0x807   : > { %v13034_v21 = vadd.f32 %v5887_v63, %v5799_v12  ;;  %v5132_v52 = vmul.f32 0.2, %v4880_v50  ;;  %vm5004_vm12 = vcmp.gt.f32.partialorder %v4880_v50, 0.0 }
 0x80a   : > { %v4792_v22 = vpop.f32.mrf.mxu2 }
 0x80b   : > { %v4793_v39 = vadd.f32 %v4792_v22, %v12640_v61  ;;  %v4881_v8 = vpop.f32.mrf.mxu3  ;;  %v5260_v61 = vsel %vm5004_vm12, %v4880_v50, %v5132_v52 }
 0x80c   : > { %v5801_v62 = vpop.f32.mrf.mxu0 }
 0x80d   : > { %v4882_v9 = vadd.f32 %v4881_v8, %v4793_v39  ;;  %v5802_v29 = vadd.f32 %v5801_v62, %v12657_v55  ;;  %v5890_v15 = vpop.f32.mrf.mxu1 }
 0x80f   : > { %vm5008_vm13 = vcmp.gt.f32.partialorder %v4882_v9, 0.0  ;;  %v5136_v6 = vmul.f32 0.2, %v4882_v9  ;;  %v13038_v37 = vadd.f32 %v5890_v15, %v5802_v29  ;;  %5948 = vmatmul.bf16.gmra.mxu2 %v14601_v43  ;;  %6116 = vmatmul.bf16.gmra.mxu0 %v14546_v34 }
 0x810   : > { %6037 = vmatmul.bf16.gmra.mxu3 %v12946_v4  ;;  %6205 = vmatmul.bf16.gmra.mxu1 %v14602_v33 }
 0x811   : > { %v5264_v46 = vsel %vm5008_vm13, %v4882_v9, %v5136_v6 }
 0x812   : > { %v4795_v30 = vpop.f32.mrf.mxu2  ;;  %v13044_v13 = vpack.c.bf16 %v5264_v46, %v5260_v61  ;;  %v14604_v46 = vld [vmem:[#allocation102_spill] sm:$0xff] }
 0x813   : > { %v4796_v12 = vadd.f32 %v4795_v30, %v12643_v16  ;;  %v4884_v63 = vpop.f32.mrf.mxu3 }
 0x814   : > { %14603 = vst [vmem:[#allocation48_spill] sm:$0xff] %v13044_v13  ;;  %v5803_v22 = vpop.f32.mrf.mxu0 }
 0x815   : > { %v4885_v39 = vadd.f32 %v4884_v63, %v4796_v12  ;;  %v5804_v8 = vadd.f32 %v5803_v22, %v12657_v55  ;;  %v5892_v62 = vpop.f32.mrf.mxu1 }
 0x817   : > { %v13048_v29 = vadd.f32 %v5892_v62, %v5804_v8  ;;  %v5140_v50 = vmul.f32 0.2, %v4885_v39  ;;  %vm5012_vm14 = vcmp.gt.f32.partialorder %v4885_v39, 0.0 }
 0x81a   : > { %v4797_v34 = vpop.f32.mrf.mxu2 }
 0x81b   : > { %v4798_v15 = vadd.f32 %v4797_v34, %v12655_v19  ;;  %v4886_v4 = vpop.f32.mrf.mxu3  ;;  %v5268_v19 = vsel %vm5012_vm14, %v4885_v39, %v5140_v50 }
 0x81c   : > { %v5806_v33 = vpop.f32.mrf.mxu0 }
 0x81d   : > { %v4887_v52 = vadd.f32 %v4886_v4, %v4798_v15  ;;  %v5807_v9 = vadd.f32 %v5806_v33, %v12657_v55  ;;  %v5895_v6 = vpop.f32.mrf.mxu1 }
 0x81f   : > { %vm5016_vm15 = vcmp.gt.f32.partialorder %v4887_v52, 0.0  ;;  %v5144_v16 = vmul.f32 0.2, %v4887_v52  ;;  %v13052_v61 = vadd.f32 %v5895_v6, %v5807_v9  ;;  %5953 = vmatmul.bf16.gmra.mxu2 %v14604_v46  ;;  %6121 = vmatmul.bf16.gmra.mxu0 %v14549_v31 }
 0x820   : > { %6042 = vmatmul.bf16.gmra.mxu3 %v12960_v1  ;;  %6210 = vmatmul.bf16.gmra.mxu1 %v14550_v59 }
 0x821   : > { %v5272_v30 = vsel %vm5016_vm15, %v4887_v52, %v5144_v16 }
 0x822   : > { %v5914_v12 = vpop.f32.mrf.mxu2  ;;  %v13058_v4 = vpack.c.bf16 %v5272_v30, %v5268_v19  ;;  %v14606_v30 = vld [vmem:[#allocation105_spill] sm:$0xff] }
 0x823   : > { %v5915_v63 = vadd.f32 %v5914_v12, %v12661_v56  ;;  %v6003_v22 = vpop.f32.mrf.mxu3  ;;  %v14607_v12 = vld [vmem:[#allocation7_spill] sm:$0xff] }
 0x824   : > { %14605 = vst [vmem:[#allocation20_spill] sm:$0xff] %v13058_v4  ;;  %v5808_v8 = vpop.f32.mrf.mxu0 }
 0x825   : > { %v6004_v62 = vadd.f32 %v6003_v22, %v5915_v63  ;;  %v5809_v34 = vadd.f32 %v5808_v8, %v12657_v55  ;;  %v5897_v15 = vpop.f32.mrf.mxu1 }
 0x827   : > { %v13062_v33 = vadd.f32 %v5897_v15, %v5809_v34  ;;  %v6503_v39 = vmul.f32 0.2, %v6004_v62  ;;  %vm6439_vm0 = vcmp.gt.f32.partialorder %v6004_v62, 0.0  ;;  %v14608_v34 = vld [vmem:[#allocation34_spill] sm:$0xff] }
 0x82a   : > { %v5916_v31 = vpop.f32.mrf.mxu2 }
 0x82b   : > { %v5917_v9 = vadd.f32 %v5916_v31, %v12677_v26  ;;  %v6005_v6 = vpop.f32.mrf.mxu3  ;;  %v13072_v26 = vsel %vm6439_vm0, %v6004_v62, %v6503_v39  ;;  %v9301_v62 = vld [vmem:[%s13804_s4] sm:$0x3] }
 0x82c   : > { %v5811_v59 = vpop.f32.mrf.mxu0  ;;  %v13085_v39 = vperm.slane %v9301_v62, 1  ;;  %v14612_v62 = vld [vmem:[#allocation11_spill] sm:$0xff] }
 0x82d   : > { %v6006_v50 = vadd.f32 %v6005_v6, %v5917_v9  ;;  %v5812_v52 = vadd.f32 %v5811_v59, %v12657_v55  ;;  %v5900_v16 = vpop.f32.mrf.mxu1 }
 0x82f   : > { %vm6441_vm1 = vcmp.gt.f32.partialorder %v6006_v50, 0.0  ;;  %v6505_v56 = vmul.f32 0.2, %v6006_v50  ;;  %v13066_v19 = vadd.f32 %v5900_v16, %v5812_v52  ;;  %5958 = vmatmul.bf16.gmra.mxu2 %v14606_v30  ;;  %6126 = vmatmul.bf16.gmra.mxu0 %v14552_v42 }
 0x830   : > { %6047 = vmatmul.bf16.gmra.mxu3 %v12974_v45  ;;  %6215 = vmatmul.bf16.gmra.mxu1 %v14607_v12 }
 0x831   : > { %v13074_v63 = vsel %vm6441_vm1, %v6006_v50, %v6505_v56 }
 0x832   : > { %v5919_v8 = vpop.f32.mrf.mxu2 }
 0x833   : > { %v5920_v15 = vadd.f32 %v5919_v8, %v14608_v34  ;;  %v6008_v31 = vpop.f32.mrf.mxu3 }
 0x834   : > { %v5813_v9 = vpop.f32.mrf.mxu0 }
 0x835   : > { %v6009_v6 = vadd.f32 %v6008_v31, %v5920_v15  ;;  %v5814_v59 = vadd.f32 %v5813_v9, %v12657_v55  ;;  %v5902_v42 = vpop.f32.mrf.mxu1 }
 0x837   : > { %v13080_v52 = vadd.f32 %v5902_v42, %v5814_v59  ;;  %v6507_v8 = vmul.f32 0.2, %v6009_v6  ;;  %vm6443_vm2 = vcmp.gt.f32.partialorder %v6009_v6, 0.0  ;;  %v14610_v59 = vld [vmem:[#allocation5_spill] sm:$0xff]  ;;  %v14611_v42 = vld [vmem:[#allocation122_spill] sm:$0xff] }
 0x83a   : > { %v5921_v50 = vpop.f32.mrf.mxu2 }
 0x83b   : > { %v5922_v16 = vadd.f32 %v5921_v50, %v12697_v60  ;;  %v6010_v56 = vpop.f32.mrf.mxu3  ;;  %v9236_v60 = vld [vmem:[%s13803_s3 + $0x174] sm:$0xf]  ;;  %v8720_v50 = vld [vmem:[%s13803_s3 + $0x178] sm:$0xf0] }
 0x83c   : > { %v6092_v12 = vpop.f32.mrf.mxu0 }
 0x83d   : > { %v6011_v34 = vadd.f32 %v6010_v56, %v5922_v16  ;;  %v6093_v15 = vadd.f32 %v6092_v12, %v13085_v39  ;;  %v6181_v31 = vpop.f32.mrf.mxu1  ;;  %v8723_v16 = vor.u32 %v9236_v60, %v8720_v50  ;;  %v13101_v56 = vsel %vm6443_vm2, %v6009_v6, %v6507_v8  ;;  %v9252_v6 = vld [vmem:[%s13803_s3 + $0x1f4] sm:$0xf]  ;;  %v8784_v8 = vld [vmem:[%s13803_s3 + $0x1f8] sm:$0xf0] }
 0x83f   : > { %vm6445_vm3 = vcmp.gt.f32.partialorder %v6011_v34, 0.0  ;;  %v6509_v55 = vmul.f32 0.2, %v6011_v34  ;;  %v13089_v9 = vadd.f32 %v6181_v31, %v6093_v15  ;;  %5963 = vmatmul.bf16.gmra.mxu2 %v14610_v59  ;;  %6131 = vmatmul.bf16.gmra.mxu0 %v14611_v42  ;;  %v14616_v31 = vld [vmem:[#allocation32_spill] sm:$0xff] }
 0x840   : > { %6052 = vmatmul.bf16.gmra.mxu3 %v12988_v40  ;;  %6220 = vmatmul.bf16.gmra.mxu1 %v14612_v62 }
 0x841   : > { %14609 = vst [vmem:[#allocation25_spill] sm:$0xff] %v13089_v9  ;;  %v13103_v12 = vsel %vm6445_vm3, %v6011_v34, %v6509_v55  ;;  %6261 = vmatpush.bf16.msrb.mxu2 %v8723_v16  ;;  %v8787_v34 = vor.u32 %v9252_v6, %v8784_v8  ;;  %v14618_v6 = vld [vmem:[#allocation15_spill] sm:$0xff] }
 0x842   : > { %v5924_v15 = vpop.f32.mrf.mxu2 }
 0x843   : > { %v5925_v42 = vadd.f32 %v5924_v15, %v12701_v41  ;;  %v6013_v62 = vpop.f32.mrf.mxu3  ;;  %v14614_v41 = vld [vmem:[#allocation39_spill] sm:$0xff]  ;;  %6350 = vmatpush.bf16.msrb.mxu3 %v8787_v34 }
 0x844   : > { %v6094_v22 = vpop.f32.mrf.mxu0 }
 0x845   : > { %v6014_v40 = vadd.f32 %v6013_v62, %v5925_v42  ;;  %v6095_v59 = vadd.f32 %v6094_v22, %v13085_v39  ;;  %v6183_v45 = vpop.f32.mrf.mxu1 }
 0x847   : > { %v13109_v30 = vadd.f32 %v6183_v45, %v6095_v59  ;;  %v6511_v15 = vmul.f32 0.2, %v6014_v40  ;;  %vm6447_vm4 = vcmp.gt.f32.partialorder %v6014_v40, 0.0 }
 0x849   : > { %14613 = vst [vmem:[#allocation45_spill] sm:$0xff] %v13109_v30  ;;  %v14617_v30 = vld [vmem:[#allocation123_spill] sm:$0xff]  ;;  %v13125_v8 = vsel %vm6447_vm4, %v6014_v40, %v6511_v15 }
 0x84a   : > { %v5926_v55 = vpop.f32.mrf.mxu2 }
 0x84b   : > { %v5927_v60 = vadd.f32 %v5926_v55, %v14614_v41  ;;  %v6015_v50 = vpop.f32.mrf.mxu3 }
 0x84c   : > { %v6097_v16 = vpop.f32.mrf.mxu0 }
 0x84d   : > { %v6016_v22 = vadd.f32 %v6015_v50, %v5927_v60  ;;  %v6098_v45 = vadd.f32 %v6097_v16, %v13085_v39  ;;  %v6186_v59 = vpop.f32.mrf.mxu1 }
 0x84f   : > { %vm6449_vm5 = vcmp.gt.f32.partialorder %v6016_v22, 0.0  ;;  %v6513_v42 = vmul.f32 0.2, %v6016_v22  ;;  %v13119_v62 = vadd.f32 %v6186_v59, %v6098_v45  ;;  %5968 = vmatmul.bf16.gmra.mxu2 %v14616_v31  ;;  %6136 = vmatmul.bf16.gmra.mxu0 %v14617_v30 }
 0x850   : > { %6057 = vmatmul.bf16.gmra.mxu3 %v13002_v53  ;;  %6225 = vmatmul.bf16.gmra.mxu1 %v14618_v6  ;;  %v14619_v6 = vld [vmem:[#allocation40_spill] sm:$0xff] }
 0x851   : > { %14615 = vst [vmem:[#allocation51_spill] sm:$0xff] %v13119_v62  ;;  %v13127_v34 = vsel %vm6449_vm5, %v6016_v22, %v6513_v42 }
 0x852   : > { %v5929_v55 = vpop.f32.mrf.mxu2 }
 0x853   : > { %v5930_v60 = vadd.f32 %v5929_v55, %v12760_v27  ;;  %v6018_v50 = vpop.f32.mrf.mxu3 }
 0x854   : > { %v6099_v16 = vpop.f32.mrf.mxu0 }
 0x855   : > { %v6019_v45 = vadd.f32 %v6018_v50, %v5930_v60  ;;  %v6100_v59 = vadd.f32 %v6099_v16, %v13085_v39  ;;  %v6188_v30 = vpop.f32.mrf.mxu1  ;;  %v14621_v60 = vld [vmem:[#allocation8_spill] sm:$0xff]  ;;  %v14623_v16 = vld [vmem:[#allocation19_spill] sm:$0xff] }
 0x856   : > { %v14622_v50 = vld [vmem:[#allocation124_spill] sm:$0xff] }
 0x857   : > { %v13133_v31 = vadd.f32 %v6188_v30, %v6100_v59  ;;  %v6515_v42 = vmul.f32 0.2, %v6019_v45  ;;  %vm6451_vm6 = vcmp.gt.f32.partialorder %v6019_v45, 0.0  ;;  %v8712_v59 = vld [vmem:[%s13803_s3 + $0x168] sm:$0xf0] }
 0x85a   : > { %v5931_v53 = vpop.f32.mrf.mxu2 }
 0x85b   : > { %v5932_v40 = vadd.f32 %v5931_v53, %v14619_v6  ;;  %v6020_v15 = vpop.f32.mrf.mxu3  ;;  %v9234_v53 = vld [vmem:[%s13803_s3 + $0x164] sm:$0xf]  ;;  %v13149_v6 = vsel %vm6451_vm6, %v6019_v45, %v6515_v42 }
 0x85c   : > { %v6102_v22 = vpop.f32.mrf.mxu0  ;;  %v8715_v30 = vor.u32 %v9234_v53, %v8712_v59  ;;  %v9232_v59 = vld [vmem:[%s13803_s3 + $0x154] sm:$0xf] }
 0x85d   : > { %v6021_v62 = vadd.f32 %v6020_v15, %v5932_v40  ;;  %v6103_v9 = vadd.f32 %v6102_v22, %v13085_v39  ;;  %v6191_v41 = vpop.f32.mrf.mxu1  ;;  %v9250_v40 = vld [vmem:[%s13803_s3 + $0x1e4] sm:$0xf]  ;;  %v8776_v15 = vld [vmem:[%s13803_s3 + $0x1e8] sm:$0xf0] }
 0x85e   : > { %6262 = vmatpush.bf16.msrb.mxu2 %v8715_v30  ;;  %v8779_v45 = vor.u32 %v9250_v40, %v8776_v15  ;;  %v8768_v40 = vld [vmem:[%s13803_s3 + $0x1d8] sm:$0xf0] }
 0x85f   : > { %vm6453_vm7 = vcmp.gt.f32.partialorder %v6021_v62, 0.0  ;;  %v6517_v27 = vmul.f32 0.2, %v6021_v62  ;;  %v13137_v55 = vadd.f32 %v6191_v41, %v6103_v9  ;;  %5973 = vmatmul.bf16.gmra.mxu2 %v14621_v60  ;;  %6141 = vmatmul.bf16.gmra.mxu0 %v14622_v50 }
 0x860   : > { %6062 = vmatmul.bf16.gmra.mxu3 %v13016_v20  ;;  %6230 = vmatmul.bf16.gmra.mxu1 %v14623_v16  ;;  %v8704_v20 = vld [vmem:[%s13803_s3 + $0x158] sm:$0xf0] }
 0x861   : > { %14620 = vst [vmem:[#allocation52_spill] sm:$0xff] %v13137_v55  ;;  %v13151_v9 = vsel %vm6453_vm7, %v6021_v62, %v6517_v27  ;;  %6351 = vmatpush.bf16.msrb.mxu3 %v8779_v45  ;;  %v8696_v45 = vld [vmem:[%s13803_s3 + $0x148] sm:$0xf0] }
 0x862   : > { %v5934_v41 = vpop.f32.mrf.mxu2 }
 0x863   : > { %v5935_v50 = vadd.f32 %v5934_v41, %v12823_v0  ;;  %v6023_v16 = vpop.f32.mrf.mxu3  ;;  %v9248_v0 = vld [vmem:[%s13803_s3 + $0x1d4] sm:$0xf]  ;;  %v8707_v41 = vor.u32 %v9232_v59, %v8704_v20  ;;  %v9246_v20 = vld [vmem:[%s13803_s3 + $0x1c4] sm:$0xf] }
 0x864   : > { %v6104_v42 = vpop.f32.mrf.mxu0  ;;  %v8771_v15 = vor.u32 %v9248_v0, %v8768_v40  ;;  %v8760_v0 = vld [vmem:[%s13803_s3 + $0x1c8] sm:$0xf0] }
 0x865   : > { %v6024_v62 = vadd.f32 %v6023_v16, %v5935_v50  ;;  %v6105_v27 = vadd.f32 %v6104_v42, %v13085_v39  ;;  %v6193_v53 = vpop.f32.mrf.mxu1  ;;  %6263 = vmatpush.bf16.msrb.mxu2 %v8707_v41  ;;  %v9230_v16 = vld [vmem:[%s13803_s3 + $0x144] sm:$0xf]  ;;  %v14625_v42 = vld [vmem:[#allocation16_spill] sm:$0xff]  ;;  %v8763_v40 = vor.u32 %v9246_v20, %v8760_v0  ;;  %v8752_v0 = vld [vmem:[%s13803_s3 + $0x1b8] sm:$0xf0] }
 0x866   : > { %6352 = vmatpush.bf16.msrb.mxu3 %v8771_v15  ;;  %v8699_v59 = vor.u32 %v9230_v16, %v8696_v45  ;;  %v8688_v16 = vld [vmem:[%s13803_s3 + $0x138] sm:$0xf0]  ;;  %v9244_v45 = vld [vmem:[%s13803_s3 + $0x1b4] sm:$0xf] }
 0x867   : > { %v13172_v30 = vadd.f32 %v6193_v53, %v6105_v27  ;;  %vm6455_vm8 = vcmp.gt.f32.partialorder %v6024_v62, 0.0  ;;  %v6519_v15 = vmul.f32 0.2, %v6024_v62 }
 0x869   : > { %14624 = vst [vmem:[#allocation29_spill] sm:$0xff] %v13172_v30  ;;  %6264 = vmatpush.bf16.msrb.mxu2 %v8699_v59  ;;  %v13210_v55 = vsel %vm6455_vm8, %v6024_v62, %v6519_v15  ;;  %v9224_v62 = vld [vmem:[%s13803_s3 + $0x114] sm:$0xf] }
 0x86a   : > { %v5936_v50 = vpop.f32.mrf.mxu2  ;;  %6353 = vmatpush.bf16.msrb.mxu3 %v8763_v40  ;;  %v8755_v40 = vor.u32 %v9244_v45, %v8752_v0  ;;  %v9242_v45 = vld [vmem:[%s13803_s3 + $0x1a4] sm:$0xf] }
 0x86b   : > { %v5937_v27 = vadd.f32 %v5936_v50, %v14625_v42  ;;  %v6025_v53 = vpop.f32.mrf.mxu3  ;;  %v9228_v50 = vld [vmem:[%s13803_s3 + $0x134] sm:$0xf] }
 0x86c   : > { %v6107_v41 = vpop.f32.mrf.mxu0  ;;  %v8691_v59 = vor.u32 %v9228_v50, %v8688_v16  ;;  %v9226_v50 = vld [vmem:[%s13803_s3 + $0x124] sm:$0xf]  ;;  %v8680_v16 = vld [vmem:[%s13803_s3 + $0x128] sm:$0xf0] }
 0x86d   : > { %v6026_v22 = vadd.f32 %v6025_v53, %v5937_v27  ;;  %v6108_v60 = vadd.f32 %v6107_v41, %v13085_v39  ;;  %v6196_v30 = vpop.f32.mrf.mxu1  ;;  %v14627_v27 = vld [vmem:[#allocation9_spill] sm:$0xff]  ;;  %v14629_v41 = vld [vmem:[#allocation23_spill] sm:$0xff] }
 0x86e   : > { %v14628_v53 = vld [vmem:[#allocation125_spill] sm:$0xff]  ;;  %6265 = vmatpush.bf16.msrb.mxu2 %v8691_v59  ;;  %6354 = vmatpush.bf16.msrb.mxu3 %v8755_v40 }
 0x86f   : > { %vm6457_vm9 = vcmp.gt.f32.partialorder %v6026_v22, 0.0  ;;  %v6521_v20 = vmul.f32 0.2, %v6026_v22  ;;  %v13200_v42 = vadd.f32 %v6196_v30, %v6108_v60  ;;  %5978 = vmatmul.bf16.gmra.mxu2 %v14627_v27  ;;  %6146 = vmatmul.bf16.gmra.mxu0 %v14628_v53  ;;  %v8744_v53 = vld [vmem:[%s13803_s3 + $0x1a8] sm:$0xf0] }
 0x870   : > { %6067 = vmatmul.bf16.gmra.mxu3 %v13030_v47  ;;  %6235 = vmatmul.bf16.gmra.mxu1 %v14629_v41  ;;  %v8747_v0 = vor.u32 %v9242_v45, %v8744_v53  ;;  %v8736_v45 = vld [vmem:[%s13803_s3 + $0x198] sm:$0xf0]  ;;  %v8664_v53 = vld [vmem:[%s13803_s3 + $0x108] sm:$0xf0] }
 0x871   : > { %14626 = vst [vmem:[#allocation49_spill] sm:$0xff] %v13200_v42  ;;  %v13212_v60 = vsel %vm6457_vm9, %v6026_v22, %v6521_v20  ;;  %v8683_v20 = vor.u32 %v9226_v50, %v8680_v16 }
 0x872   : > { %v5939_v30 = vpop.f32.mrf.mxu2  ;;  %6355 = vmatpush.bf16.msrb.mxu3 %v8747_v0 }
 0x873   : > { %v5940_v22 = vadd.f32 %v5939_v30, %v12886_v23  ;;  %v6028_v15 = vpop.f32.mrf.mxu3  ;;  %6266 = vmatpush.bf16.msrb.mxu2 %v8683_v20  ;;  %v8672_v23 = vld [vmem:[%s13803_s3 + $0x118] sm:$0xf0]  ;;  %v9240_v30 = vld [vmem:[%s13803_s3 + $0x194] sm:$0xf]  ;;  %v9222_v20 = vld [vmem:[%s13803_s3 + $0x104] sm:$0xf] }
 0x874   : > { %v6109_v59 = vpop.f32.mrf.mxu0  ;;  %v8675_v16 = vor.u32 %v9224_v62, %v8672_v23  ;;  %v8667_v0 = vor.u32 %v9222_v20, %v8664_v53  ;;  %v9261_v20 = vld [vmem:[%s13805_s5 + $0x38] sm:$0xff]  ;;  %v14633_v53 = vld [vmem:[#allocation27_spill] sm:$0xff] }
 0x875   : > { %v6029_v41 = vadd.f32 %v6028_v15, %v5940_v22  ;;  %v6110_v40 = vadd.f32 %v6109_v59, %v13085_v39  ;;  %v6198_v47 = vpop.f32.mrf.mxu1  ;;  %v8739_v22 = vor.u32 %v9240_v30, %v8736_v45  ;;  %6795 = vmatpush.bf16.msrb.mxu0 %v9261_v20  ;;  %v9258_v20 = vld [vmem:[%s13805_s5 + $0x20] sm:$0xff] }
 0x877   : > { %v13239_v50 = vadd.f32 %v6198_v47, %v6110_v40  ;;  %6267 = vmatpush.bf16.msrb.mxu2 %v8675_v16  ;;  %6356 = vmatpush.bf16.msrb.mxu3 %v8739_v22  ;;  %v9238_v47 = vld [vmem:[%s13803_s3 + $0x184] sm:$0xf]  ;;  %v8728_v40 = vld [vmem:[%s13803_s3 + $0x188] sm:$0xf0]  ;;  %v6523_v16 = vmul.f32 0.2, %v6029_v41 }
 0x878   : > { %v8731_v30 = vor.u32 %v9238_v47, %v8728_v40  ;;  %vm6459_vm10 = vcmp.gt.f32.partialorder %v6029_v41, 0.0 }
 0x879   : > { %14630 = vst [vmem:[#allocation55_spill] sm:$0xff] %v13239_v50  ;;  %v13267_v47 = vsel %vm6459_vm10, %v6029_v41, %v6523_v16  ;;  %v9259_v41 = vld [vmem:[%s13805_s5 + $0x28] sm:$0xff] }
 0x87a   : > { %v5941_v15 = vpop.f32.mrf.mxu2 }
 0x87b   : > { %v5942_v62 = vadd.f32 %v5941_v15, %v12921_v38  ;;  %v6030_v59 = vpop.f32.mrf.mxu3  ;;  %6268 = vmatpush.bf16.msrb.mxu2 %v8667_v0  ;;  %6357 = vmatpush.bf16.msrb.mxu3 %v8731_v30  ;;  %v14631_v38 = vld [vmem:[#allocation28_spill] sm:$0xff]  ;;  %v14632_v15 = vld [vmem:[#allocation126_spill] sm:$0xff]  ;;  %v14634_v0 = vld [vmem:[#allocation17_spill] sm:$0xff] }
 0x87c   : > { %v6112_v23 = vpop.f32.mrf.mxu0  ;;  %v9260_v30 = vld [vmem:[%s13805_s5 + $0x30] sm:$0xff] }
 0x87d   : > { %v6031_v45 = vadd.f32 %v6030_v59, %v5942_v62  ;;  %v6113_v22 = vadd.f32 %v6112_v23, %v13085_v39  ;;  %v6201_v27 = vpop.f32.mrf.mxu1  ;;  %6796 = vmatpush.bf16.msrb.mxu0 %v9260_v30 }
 0x87f   : > { %vm6461_vm11 = vcmp.gt.f32.partialorder %v6031_v45, 0.0  ;;  %v6525_v50 = vmul.f32 0.2, %v6031_v45  ;;  %v13258_v42 = vadd.f32 %v6201_v27, %v6113_v22  ;;  %5983 = vmatmul.bf16.gmra.mxu2 %v14631_v38  ;;  %6151 = vmatmul.bf16.gmra.mxu0 %v14632_v15 }
 0x880   : > { %6072 = vmatmul.bf16.gmra.mxu3 %v13044_v13  ;;  %6240 = vmatmul.bf16.gmra.mxu1 %v14633_v53 }
 0x881   : > { %v13269_v62 = vsel %vm6461_vm11, %v6031_v45, %v6525_v50  ;;  %6797 = vmatpush.bf16.msrb.mxu0 %v9259_v41  ;;  %v14637_v41 = vld [vmem:[#allocation36_spill] sm:$0xff] }
 0x882   : > { %v5944_v59 = vpop.f32.mrf.mxu2 }
 0x883   : > { %v5945_v40 = vadd.f32 %v5944_v59, %v14634_v0  ;;  %v6033_v23 = vpop.f32.mrf.mxu3 }
 0x884   : > { %v13277_v22 = vpop.f32.mrf.mxu0 }
 0x885   : > { %v6034_v15 = vadd.f32 %v6033_v23, %v5945_v40  ;;  %v13279_v53 = vpop.f32.mrf.mxu1  ;;  %6798 = vmatpush.bf16.msrb.mxu0 %v9258_v20 }
 0x886   : > { %14635 = vst [vmem:[#allocation56_spill] sm:$0xff] %v13279_v53 }
 0x887   : > { %v6527_v0 = vmul.f32 0.2, %v6034_v15  ;;  %vm6463_vm12 = vcmp.gt.f32.partialorder %v6034_v15, 0.0 }
 0x88a   : > { %v5946_v50 = vpop.f32.mrf.mxu2 }
 0x88b   : > { %v5947_v16 = vadd.f32 %v5946_v50, %v12950_v54  ;;  %v6035_v45 = vpop.f32.mrf.mxu3  ;;  %v14638_v54 = vld [vmem:[#allocation127_spill] sm:$0xff]  ;;  %v9257_v50 = vld [vmem:[%s13805_s5 + $0x18] sm:$0xff] }
 0x88c   : > { %v6117_v59 = vpop.f32.mrf.mxu0  ;;  %6799 = vmatpush.bf16.msrb.mxu0 %v9257_v50 }
 0x88d   : > { %v6036_v27 = vadd.f32 %v6035_v45, %v5947_v16  ;;  %v6118_v40 = vadd.f32 %v6117_v59, %v13085_v39  ;;  %v6206_v23 = vpop.f32.mrf.mxu1  ;;  %v14639_v16 = vld [vmem:[#allocation31_spill] sm:$0xff]  ;;  %v13298_v45 = vsel %vm6463_vm12, %v6034_v15, %v6527_v0 }
 0x88f   : > { %vm6465_vm13 = vcmp.gt.f32.partialorder %v6036_v27, 0.0  ;;  %v6529_v30 = vmul.f32 0.2, %v6036_v27  ;;  %v13289_v13 = vadd.f32 %v6206_v23, %v6118_v40  ;;  %5988 = vmatmul.bf16.gmra.mxu2 %v14637_v41  ;;  %6156 = vmatmul.bf16.gmra.mxu0 %v14638_v54  ;;  %v9256_v41 = vld [vmem:[%s13805_s5 + $0x10] sm:$0xff] }
 0x890   : > { %6077 = vmatmul.bf16.gmra.mxu3 %v13058_v4  ;;  %6245 = vmatmul.bf16.gmra.mxu1 %v14639_v16 }
 0x891   : > { %14636 = vst [vmem:[#allocation33_spill] sm:$0xff] %v13289_v13  ;;  %v13300_v20 = vsel %vm6465_vm13, %v6036_v27, %v6529_v30  ;;  %6800 = vmatpush.bf16.msrb.mxu0 %v9256_v41  ;;  %v9255_v27 = vld [vmem:[%s13805_s5 + $0x8] sm:$0xff]  ;;  %v9254_v30 = vld [vmem:[%s13805_s5] sm:$0xff] }
 0x892   : > { %v5949_v59 = vpop.f32.mrf.mxu2  ;;  %v14646_v13 = vld [vmem:[#allocation12_spill] sm:$0xff] }
 0x893   : > { %v5950_v23 = vadd.f32 %v5949_v59, %v12954_v35  ;;  %v6038_v54 = vpop.f32.mrf.mxu3 }
 0x894   : > { %v13308_v38 = vpop.f32.mrf.mxu0 }
 0x895   : > { %14640 = vst [vmem:[#allocation53_spill] sm:$0xff] %v13308_v38  ;;  %v6039_v4 = vadd.f32 %v6038_v54, %v5950_v23  ;;  %v13310_v16 = vpop.f32.mrf.mxu1  ;;  %6801 = vmatpush.bf16.msrb.mxu0 %v9255_v27  ;;  %v14643_v27 = vld [vmem:[#allocation128_spill] sm:$0xff] }
 0x896   : > { %14641 = vst [vmem:[#allocation60_spill] sm:$0xff] %v13310_v16 }
 0x897   : > { %v6531_v59 = vmul.f32 0.2, %v6039_v4  ;;  %vm6467_vm14 = vcmp.gt.f32.partialorder %v6039_v4, 0.0 }
 0x899   : > { %6802 = vmatpush.bf16.msrb.mxu0 %v9254_v30  ;;  %v13326_v38 = vsel %vm6467_vm14, %v6039_v4, %v6531_v59 }
 0x89a   : > { %v5951_v15 = vpop.f32.mrf.mxu2 }
 0x89b   : > { %v5952_v0 = vadd.f32 %v5951_v15, %v12964_v48  ;;  %v6040_v35 = vpop.f32.mrf.mxu3  ;;  %v14644_v48 = vld [vmem:[#allocation24_spill] sm:$0xff]  ;;  %v14645_v15 = vld [vmem:[#allocation35_spill] sm:$0xff] }
 0x89c   : > { %v6122_v50 = vpop.f32.mrf.mxu0 }
 0x89d   : > { %v6041_v40 = vadd.f32 %v6040_v35, %v5952_v0  ;;  %v6123_v23 = vadd.f32 %v6122_v50, %v13085_v39  ;;  %v6211_v54 = vpop.f32.mrf.mxu1 }
 0x89f   : > { %vm6469_vm15 = vcmp.gt.f32.partialorder %v6041_v40, 0.0  ;;  %v6533_v41 = vmul.f32 0.2, %v6041_v40  ;;  %v13320_v16 = vadd.f32 %v6211_v54, %v6123_v23  ;;  %6161 = vmatmul.bf16.gmra.mxu0 %v14643_v27  ;;  %6269 = vmatmul.bf16.vlgmr.msrb.gmra.mxu2 %v14644_v48 }
 0x8a0   : > { %6250 = vmatmul.bf16.gmra.mxu1 %v14645_v15  ;;  %6358 = vmatmul.bf16.vlgmr.msrb.gmra.mxu3 %v14646_v13 }
 0x8a1   : > { %14642 = vst [vmem:[#allocation61_spill] sm:$0xff] %v13320_v16  ;;  %v13328_v0 = vsel %vm6469_vm15, %v6041_v40, %v6533_v41 }
 0x8a2   : > { %v5954_v35 = vpop.f32.mrf.mxu2 }
 0x8a3   : > { %v5955_v50 = vadd.f32 %v5954_v35, %v12968_v36  ;;  %v6043_v23 = vpop.f32.mrf.mxu3  ;;  %v14650_v35 = vld [vmem:[#allocation129_spill] sm:$0xff] }
 0x8a4   : > { %v13333_v54 = vpop.f32.mrf.mxu0 }
 0x8a5   : > { %14647 = vst [vmem:[#allocation37_spill] sm:$0xff] %v13333_v54  ;;  %v6044_v27 = vadd.f32 %v6043_v23, %v5955_v50  ;;  %v13335_v16 = vpop.f32.mrf.mxu1  ;;  %v14651_v50 = vld [vmem:[#allocation76_spill] sm:$0xff] }
 0x8a6   : > { %14648 = vst [vmem:[#allocation57_spill] sm:$0xff] %v13335_v16  ;;  %v14652_v23 = vld [vmem:[#allocation4_spill] sm:$0xff]  ;;  %v14653_v16 = vld [vmem:[#allocation13_spill] sm:$0xff] }
 0x8a7   : > { %v6535_v59 = vmul.f32 0.2, %v6044_v27  ;;  %vm6471_vm0 = vcmp.gt.f32.partialorder %v6044_v27, 0.0 }
 0x8aa   : > { %v5956_v48 = vpop.f32.mrf.mxu2 }
 0x8ab   : > { %v5957_v15 = vadd.f32 %v5956_v48, %v12978_v44  ;;  %v6045_v13 = vpop.f32.mrf.mxu3  ;;  %v13345_v44 = vsel %vm6471_vm0, %v6044_v27, %v6535_v59 }
 0x8ac   : > { %v6127_v4 = vpop.f32.mrf.mxu0 }
 0x8ad   : > { %v6046_v40 = vadd.f32 %v6045_v13, %v5957_v15  ;;  %v6128_v41 = vadd.f32 %v6127_v4, %v13085_v39  ;;  %v6216_v53 = vpop.f32.mrf.mxu1 }
 0x8af   : > { %vm6473_vm1 = vcmp.gt.f32.partialorder %v6046_v40, 0.0  ;;  %v6537_v30 = vmul.f32 0.2, %v6046_v40  ;;  %v13339_v36 = vadd.f32 %v6216_v53, %v6128_v41  ;;  %6166 = vmatmul.bf16.gmra.mxu0 %v14650_v35  ;;  %6274 = vmatmul.bf16.gmra.mxu2 %v14651_v50 }
 0x8b0   : > { %6255 = vmatmul.bf16.gmra.mxu1 %v14652_v23  ;;  %6363 = vmatmul.bf16.gmra.mxu3 %v14653_v16 }
 0x8b1   : > { %14649 = vst [vmem:[#allocation66_spill] sm:$0xff] %v13339_v36  ;;  %v13347_v48 = vsel %vm6473_vm1, %v6046_v40, %v6537_v30 }
 0x8b2   : > { %v5959_v15 = vpop.f32.mrf.mxu2 }
 0x8b3   : > { %v5960_v4 = vadd.f32 %v5959_v15, %v12982_v24  ;;  %v6048_v53 = vpop.f32.mrf.mxu3  ;;  %v14654_v15 = vpack.c.bf16 %v13074_v63, %v13072_v26 }
 0x8b4   : > { %v13352_v41 = vpop.f32.mrf.mxu0 }
 0x8b5   : > { %v6049_v35 = vadd.f32 %v6048_v53, %v5960_v4  ;;  %v13354_v36 = vpop.f32.mrf.mxu1 }
 0x8b7   : > { %v6539_v59 = vmul.f32 0.2, %v6049_v35  ;;  %vm6475_vm2 = vcmp.gt.f32.partialorder %v6049_v35, 0.0 }
 0x8ba   : > { %v5961_v50 = vpop.f32.mrf.mxu2 }
 0x8bb   : > { %v5962_v23 = vadd.f32 %v5961_v50, %v12992_v5  ;;  %v6050_v16 = vpop.f32.mrf.mxu3  ;;  %v13365_v5 = vsel %vm6475_vm2, %v6049_v35, %v6539_v59 }
 0x8bc   : > { %v6132_v27 = vpop.f32.mrf.mxu0 }
 0x8bd   : > { %v6051_v30 = vadd.f32 %v6050_v16, %v5962_v23  ;;  %v6133_v40 = vadd.f32 %v6132_v27, %v13085_v39  ;;  %v6221_v54 = vpop.f32.mrf.mxu1 }
 0x8bf   : > { %vm6477_vm3 = vcmp.gt.f32.partialorder %v6051_v30, 0.0  ;;  %v6541_v13 = vmul.f32 0.2, %v6051_v30  ;;  %v13358_v24 = vadd.f32 %v6221_v54, %v6133_v40  ;;  %6279 = vmatmul.bf16.gmra.mxu2 %v14591_v58  ;;  %6803 = vmatmul.bf16.vlgmr.msrb.gmra.mxu0 %v14654_v15 }
 0x8c0   : > { %6368 = vmatmul.bf16.gmra.mxu3 %v12693_v18 }
 0x8c1   : > { %v13367_v4 = vsel %vm6477_vm3, %v6051_v30, %v6541_v13 }
 0x8c2   : > { %v5964_v53 = vpop.f32.mrf.mxu2 }
 0x8c3   : > { %v5965_v23 = vadd.f32 %v5964_v53, %v12996_v3  ;;  %v6053_v54 = vpop.f32.mrf.mxu3  ;;  %v14655_v53 = vpack.c.bf16 %v13103_v12, %v13101_v56 }
 0x8c4   : > { %v13372_v16 = vpop.f32.mrf.mxu0 }
 0x8c5   : > { %v6054_v58 = vadd.f32 %v6053_v54, %v5965_v23  ;;  %v13374_v27 = vpop.f32.mrf.mxu1 }
 0x8c7   : > { %v6543_v59 = vmul.f32 0.2, %v6054_v58  ;;  %vm6479_vm4 = vcmp.gt.f32.partialorder %v6054_v58, 0.0 }
 0x8ca   : > { %v5966_v26 = vpop.f32.mrf.mxu2 }
 0x8cb   : > { %v5967_v63 = vadd.f32 %v5966_v26, %v13006_v17  ;;  %v6055_v18 = vpop.f32.mrf.mxu3  ;;  %v13385_v17 = vsel %vm6479_vm4, %v6054_v58, %v6543_v59 }
 0x8cc   : > { %v6137_v35 = vpop.f32.mrf.mxu0 }
 0x8cd   : > { %v6056_v13 = vadd.f32 %v6055_v18, %v5967_v63  ;;  %v6138_v30 = vadd.f32 %v6137_v35, %v13085_v39  ;;  %v6226_v40 = vpop.f32.mrf.mxu1 }
 0x8cf   : > { %vm6481_vm5 = vcmp.gt.f32.partialorder %v6056_v13, 0.0  ;;  %v6545_v15 = vmul.f32 0.2, %v6056_v13  ;;  %v13378_v3 = vadd.f32 %v6226_v40, %v6138_v30  ;;  %6284 = vmatmul.bf16.gmra.mxu2 %v14593_v7  ;;  %6808 = vmatmul.bf16.gmra.mxu0 %v14655_v53 }
 0x8d0   : > { %6373 = vmatmul.bf16.gmra.mxu3 %v12719_v2  ;;  %v9269_v2 = vld [vmem:[%s13805_s5 + $0x78] sm:$0xff] }
 0x8d1   : > { %v13387_v23 = vsel %vm6481_vm5, %v6056_v13, %v6545_v15  ;;  %6884 = vmatpush.bf16.msrb.mxu1 %v9269_v2 }
 0x8d2   : > { %v5969_v54 = vpop.f32.mrf.mxu2 }
 0x8d3   : > { %v5970_v63 = vadd.f32 %v5969_v54, %v13010_v32  ;;  %v6058_v18 = vpop.f32.mrf.mxu3 }
 0x8d4   : > { %v13392_v35 = vpop.f32.mrf.mxu0 }
 0x8d5   : > { %v6059_v7 = vadd.f32 %v6058_v18, %v5970_v63  ;;  %v13394_v30 = vpop.f32.mrf.mxu1  ;;  %v14656_v63 = vpack.c.bf16 %v13127_v34, %v13125_v8 }
 0x8d7   : > { %v6547_v13 = vmul.f32 0.2, %v6059_v7  ;;  %vm6483_vm6 = vcmp.gt.f32.partialorder %v6059_v7, 0.0 }
 0x8da   : > { %v5971_v56 = vpop.f32.mrf.mxu2 }
 0x8db   : > { %v5972_v12 = vadd.f32 %v5971_v56, %v13020_v57  ;;  %v6060_v58 = vpop.f32.mrf.mxu3  ;;  %v13408_v57 = vsel %vm6483_vm6, %v6059_v7, %v6547_v13  ;;  %v14665_v56 = vld [vmem:[#allocation105_spill] sm:$0xff] }
 0x8dc   : > { %v6142_v59 = vpop.f32.mrf.mxu0 }
 0x8dd   : > { %v6061_v40 = vadd.f32 %v6060_v58, %v5972_v12  ;;  %v6143_v32 = vadd.f32 %v6142_v59, %v13085_v39  ;;  %v6231_v15 = vpop.f32.mrf.mxu1 }
 0x8df   : > { %vm6485_vm7 = vcmp.gt.f32.partialorder %v6061_v40, 0.0  ;;  %v6549_v53 = vmul.f32 0.2, %v6061_v40  ;;  %v13401_v54 = vadd.f32 %v6231_v15, %v6143_v32  ;;  %6289 = vmatmul.bf16.gmra.mxu2 %v14595_v14  ;;  %6813 = vmatmul.bf16.gmra.mxu0 %v14656_v63 }
 0x8e0   : > { %6378 = vmatmul.bf16.gmra.mxu3 %v12779_v28 }
 0x8e1   : > { %v13410_v18 = vsel %vm6485_vm7, %v6061_v40, %v6549_v53 }
 0x8e2   : > { %v5974_v2 = vpop.f32.mrf.mxu2 }
 0x8e3   : > { %v5975_v12 = vadd.f32 %v5974_v2, %v13024_v51  ;;  %v6063_v58 = vpop.f32.mrf.mxu3  ;;  %v14657_v2 = vpack.c.bf16 %v13151_v9, %v13149_v6 }
 0x8e4   : > { %v13415_v59 = vpop.f32.mrf.mxu0 }
 0x8e5   : > { %v6064_v14 = vadd.f32 %v6063_v58, %v5975_v12  ;;  %v13417_v32 = vpop.f32.mrf.mxu1 }
 0x8e7   : > { %v6551_v13 = vmul.f32 0.2, %v6064_v14  ;;  %vm6487_vm8 = vcmp.gt.f32.partialorder %v6064_v14, 0.0 }
 0x8ea   : > { %v5976_v8 = vpop.f32.mrf.mxu2 }
 0x8eb   : > { %v5977_v34 = vadd.f32 %v5976_v8, %v13034_v21  ;;  %v6065_v28 = vpop.f32.mrf.mxu3  ;;  %v13428_v21 = vsel %vm6487_vm8, %v6064_v14, %v6551_v13 }
 0x8ec   : > { %v6147_v7 = vpop.f32.mrf.mxu0 }
 0x8ed   : > { %v6066_v40 = vadd.f32 %v6065_v28, %v5977_v34  ;;  %v6148_v15 = vadd.f32 %v6147_v7, %v13085_v39  ;;  %v6236_v53 = vpop.f32.mrf.mxu1 }
 0x8ef   : > { %vm6489_vm9 = vcmp.gt.f32.partialorder %v6066_v40, 0.0  ;;  %v6553_v63 = vmul.f32 0.2, %v6066_v40  ;;  %v13421_v51 = vadd.f32 %v6236_v53, %v6148_v15  ;;  %6294 = vmatmul.bf16.gmra.mxu2 %v14597_v11  ;;  %6818 = vmatmul.bf16.gmra.mxu0 %v14657_v2 }
 0x8f0   : > { %6383 = vmatmul.bf16.gmra.mxu3 %v12842_v25  ;;  %v9268_v25 = vld [vmem:[%s13805_s5 + $0x70] sm:$0xff] }
 0x8f1   : > { %v13430_v12 = vsel %vm6489_vm9, %v6066_v40, %v6553_v63  ;;  %6885 = vmatpush.bf16.msrb.mxu1 %v9268_v25 }
 0x8f2   : > { %v5979_v58 = vpop.f32.mrf.mxu2 }
 0x8f3   : > { %v5980_v34 = vadd.f32 %v5979_v58, %v13038_v37  ;;  %v6068_v28 = vpop.f32.mrf.mxu3  ;;  %v9267_v37 = vld [vmem:[%s13805_s5 + $0x68] sm:$0xff] }
 0x8f4   : > { %v13435_v7 = vpop.f32.mrf.mxu0 }
 0x8f5   : > { %v6069_v11 = vadd.f32 %v6068_v28, %v5980_v34  ;;  %v13437_v15 = vpop.f32.mrf.mxu1  ;;  %6886 = vmatpush.bf16.msrb.mxu1 %v9267_v37  ;;  %v9266_v28 = vld [vmem:[%s13805_s5 + $0x60] sm:$0xff] }
 0x8f7   : > { %v6555_v40 = vmul.f32 0.2, %v6069_v11  ;;  %vm6491_vm10 = vcmp.gt.f32.partialorder %v6069_v11, 0.0 }
 0x8f9   : > { %v13457_v25 = vsel %vm6491_vm10, %v6069_v11, %v6555_v40  ;;  %6887 = vmatpush.bf16.msrb.mxu1 %v9266_v28  ;;  %v9264_v11 = vld [vmem:[%s13805_s5 + $0x50] sm:$0xff] }
 0x8fa   : > { %v5981_v6 = vpop.f32.mrf.mxu2 }
 0x8fb   : > { %v5982_v9 = vadd.f32 %v5981_v6, %v13048_v29  ;;  %v6070_v14 = vpop.f32.mrf.mxu3  ;;  %v14658_v29 = vpack.c.bf16 %v13212_v60, %v13210_v55 }
 0x8fc   : > { %v6152_v13 = vpop.f32.mrf.mxu0 }
 0x8fd   : > { %v6071_v53 = vadd.f32 %v6070_v14, %v5982_v9  ;;  %v6153_v63 = vadd.f32 %v6152_v13, %v13085_v39  ;;  %v6241_v2 = vpop.f32.mrf.mxu1 }
 0x8ff   : > { %vm6493_vm11 = vcmp.gt.f32.partialorder %v6071_v53, 0.0  ;;  %v6557_v58 = vmul.f32 0.2, %v6071_v53  ;;  %v13447_v34 = vadd.f32 %v6241_v2, %v6153_v63  ;;  %6299 = vmatmul.bf16.gmra.mxu2 %v14599_v49  ;;  %6823 = vmatmul.bf16.gmra.mxu0 %v14658_v29  ;;  %v9263_v2 = vld [vmem:[%s13805_s5 + $0x48] sm:$0xff] }
 0x900   : > { %6388 = vmatmul.bf16.gmra.mxu3 %v12905_v10  ;;  %v9265_v10 = vld [vmem:[%s13805_s5 + $0x58] sm:$0xff] }
 0x901   : > { %v13459_v6 = vsel %vm6493_vm11, %v6071_v53, %v6557_v58  ;;  %6888 = vmatpush.bf16.msrb.mxu1 %v9265_v10  ;;  %v14660_v10 = vld [vmem:[#allocation38_spill] sm:$0xff] }
 0x902   : > { %v5984_v9 = vpop.f32.mrf.mxu2 }
 0x903   : > { %v5985_v49 = vadd.f32 %v5984_v9, %v13052_v61  ;;  %v6073_v13 = vpop.f32.mrf.mxu3 }
 0x904   : > { %v13464_v55 = vpop.f32.mrf.mxu0 }
 0x905   : > { %v6074_v60 = vadd.f32 %v6073_v13, %v5985_v49  ;;  %v13469_v37 = vpop.f32.mrf.mxu1  ;;  %6889 = vmatpush.bf16.msrb.mxu1 %v9264_v11  ;;  %v9262_v11 = vld [vmem:[%s13805_s5 + $0x40] sm:$0xff] }
 0x907   : > { %v6559_v58 = vmul.f32 0.2, %v6074_v60  ;;  %vm6495_vm12 = vcmp.gt.f32.partialorder %v6074_v60, 0.0 }
 0x909   : > { %6890 = vmatpush.bf16.msrb.mxu1 %v9263_v2 }
 0x90a   : > { %v5986_v40 = vpop.f32.mrf.mxu2 }
 0x90b   : > { %v5987_v53 = vadd.f32 %v5986_v40, %v13062_v33  ;;  %v6075_v61 = vpop.f32.mrf.mxu3  ;;  %v14659_v33 = vpack.c.bf16 %v13269_v62, %v13267_v47  ;;  %v13489_v40 = vsel %vm6495_vm12, %v6074_v60, %v6559_v58 }
 0x90c   : > { %v6157_v63 = vpop.f32.mrf.mxu0 }
 0x90d   : > { %v6076_v29 = vadd.f32 %v6075_v61, %v5987_v53  ;;  %v6158_v28 = vadd.f32 %v6157_v63, %v13085_v39  ;;  %v6246_v9 = vpop.f32.mrf.mxu1  ;;  %6891 = vmatpush.bf16.msrb.mxu1 %v9262_v11 }
 0x90f   : > { %vm6497_vm13 = vcmp.gt.f32.partialorder %v6076_v29, 0.0  ;;  %v6561_v49 = vmul.f32 0.2, %v6076_v29  ;;  %v13479_v13 = vadd.f32 %v6246_v9, %v6158_v28  ;;  %6304 = vmatmul.bf16.gmra.mxu2 %v14601_v43  ;;  %6828 = vmatmul.bf16.gmra.mxu0 %v14659_v33 }
 0x910   : > { %6393 = vmatmul.bf16.gmra.mxu3 %v14660_v10 }
 0x911   : > { %v13491_v53 = vsel %vm6497_vm13, %v6076_v29, %v6561_v49 }
 0x912   : > { %v5989_v61 = vpop.f32.mrf.mxu2 }
 0x913   : > { %v5990_v43 = vadd.f32 %v5989_v61, %v13066_v19  ;;  %v6078_v2 = vpop.f32.mrf.mxu3  ;;  %v14661_v61 = vpack.c.bf16 %v13300_v20, %v13298_v45  ;;  %v14663_v20 = vld [vmem:[#allocation45_spill] sm:$0xff] }
 0x914   : > { %v13496_v47 = vpop.f32.mrf.mxu0 }
 0x915   : > { %v6079_v62 = vadd.f32 %v6078_v2, %v5990_v43  ;;  %v13498_v28 = vpop.f32.mrf.mxu1 }
 0x917   : > { %v6563_v29 = vmul.f32 0.2, %v6079_v62  ;;  %vm6499_vm14 = vcmp.gt.f32.partialorder %v6079_v62, 0.0 }
 0x91a   : > { %v5991_v9 = vpop.f32.mrf.mxu2 }
 0x91b   : > { %v5992_v33 = vadd.f32 %v5991_v9, %v13080_v52  ;;  %v6080_v60 = vpop.f32.mrf.mxu3  ;;  %v13509_v52 = vsel %vm6499_vm14, %v6079_v62, %v6563_v29 }
 0x91c   : > { %v6162_v58 = vpop.f32.mrf.mxu0 }
 0x91d   : > { %v6081_v49 = vadd.f32 %v6080_v60, %v5992_v33  ;;  %v6163_v10 = vadd.f32 %v6162_v58, %v13085_v39  ;;  %v6251_v11 = vpop.f32.mrf.mxu1  ;;  %v14662_v58 = vld [vmem:[#allocation25_spill] sm:$0xff] }
 0x91f   : > { %vm6501_vm15 = vcmp.gt.f32.partialorder %v6081_v49, 0.0  ;;  %v6565_v63 = vmul.f32 0.2, %v6081_v49  ;;  %v13502_v19 = vadd.f32 %v6251_v11, %v6163_v10  ;;  %6309 = vmatmul.bf16.gmra.mxu2 %v14604_v46  ;;  %6833 = vmatmul.bf16.gmra.mxu0 %v14661_v61 }
 0x920   : > { %6398 = vmatmul.bf16.gmra.mxu3 %v12960_v1 }
 0x921   : > { %v13511_v43 = vsel %vm6501_vm15, %v6081_v49, %v6565_v63 }
 0x922   : > { %v6270_v2 = vpop.f32.mrf.mxu2 }
 0x923   : > { %v6359_v33 = vpop.f32.mrf.mxu3  ;;  %v6271_v10 = vadd.f32 %v6270_v2, %v14662_v58  ;;  %v14666_v2 = vpack.c.bf16 %v13328_v0, %v13326_v38  ;;  %v14669_v0 = vld [vmem:[#allocation5_spill] sm:$0xff] }
 0x924   : > { %v13515_v60 = vpop.f32.mrf.mxu0 }
 0x925   : > { %v13518_v46 = vpop.f32.mrf.mxu1  ;;  %v6360_v11 = vadd.f32 %v6359_v33, %v6271_v10  ;;  %v14667_v33 = vld [vmem:[#allocation43_spill] sm:$0xff] }
 0x927   : > { %v6504_v29 = vmul.f32 0.2, %v6360_v11  ;;  %vm6440_vm0 = vcmp.gt.f32.partialorder %v6360_v11, 0.0 }
 0x929   : > { %v6568_v58 = vsel %vm6440_vm0, %v6360_v11, %v6504_v29  ;;  %v14671_v11 = vld [vmem:[#allocation44_spill] sm:$0xff] }
 0x92a   : > { %v6272_v45 = vpop.f32.mrf.mxu2 }
 0x92b   : > { %v6273_v61 = vadd.f32 %v6272_v45, %v14663_v20  ;;  %v6361_v1 = vpop.f32.mrf.mxu3 }
 0x92c   : > { %v6167_v62 = vpop.f32.mrf.mxu0 }
 0x92d   : > { %v6362_v63 = vadd.f32 %v6361_v1, %v6273_v61  ;;  %v6168_v49 = vadd.f32 %v6167_v62, %v13085_v39  ;;  %v6256_v14 = vpop.f32.mrf.mxu1  ;;  %v14668_v1 = vld [vmem:[#allocation51_spill] sm:$0xff] }
 0x92f   : > { %vm6442_vm1 = vcmp.gt.f32.partialorder %v6362_v63, 0.0  ;;  %v6506_v9 = vmul.f32 0.2, %v6362_v63  ;;  %v13522_v8 = vadd.f32 %v6256_v14, %v6168_v49  ;;  %6314 = vmatmul.bf16.gmra.mxu2 %v14665_v56  ;;  %6838 = vmatmul.bf16.gmra.mxu0 %v14666_v2 }
 0x930   : > { %6403 = vmatmul.bf16.gmra.mxu3 %v14667_v33 }
 0x931   : > { %14664 = vst [vmem:[#allocation67_spill] sm:$0xff] %v13522_v8  ;;  %v6570_v10 = vsel %vm6442_vm1, %v6362_v63, %v6506_v9  ;;  %v14670_v9 = vpack.c.bf16 %v13347_v48, %v13345_v44  ;;  %v14674_v48 = vld [vmem:[#allocation32_spill] sm:$0xff] }
 0x932   : > { %v6632_v45 = vpack.c.bf16 %v6570_v10, %v6568_v58  ;;  %v6275_v20 = vpop.f32.mrf.mxu2 }
 0x933   : > { %v6364_v61 = vpop.f32.mrf.mxu3  ;;  %v6276_v62 = vadd.f32 %v6275_v20, %v14668_v1  ;;  %v14673_v20 = vld [vmem:[#allocation29_spill] sm:$0xff] }
 0x934   : > { %6892 = vmatmul.bf16.vlgmr.msrb.gmra.mxu1 %v6632_v45 }
 0x935   : > { %v6365_v26 = vadd.f32 %v6364_v61, %v6276_v62 }
 0x937   : > { %v6508_v56 = vmul.f32 0.2, %v6365_v26  ;;  %vm6444_vm2 = vcmp.gt.f32.partialorder %v6365_v26, 0.0 }
 0x939   : > { %v6572_v29 = vsel %vm6444_vm2, %v6365_v26, %v6508_v56  ;;  %v14675_v26 = vpack.c.bf16 %v13367_v4, %v13365_v5  ;;  %v13545_v5 = vpop.f32.mrf.mxu0 }
 0x93a   : > { %v6277_v50 = vpop.f32.mrf.mxu2 }
 0x93b   : > { %v6278_v14 = vadd.f32 %v6277_v50, %v13133_v31  ;;  %v6366_v49 = vpop.f32.mrf.mxu3  ;;  %v14672_v31 = vld [vmem:[#allocation52_spill] sm:$0xff] }
 0x93d   : > { %v6367_v8 = vadd.f32 %v6366_v49, %v6278_v14 }
 0x93f   : > { %vm6446_vm3 = vcmp.gt.f32.partialorder %v6367_v8, 0.0  ;;  %v6510_v38 = vmul.f32 0.2, %v6367_v8  ;;  %6319 = vmatmul.bf16.gmra.mxu2 %v14669_v0  ;;  %6843 = vmatmul.bf16.gmra.mxu0 %v14670_v9 }
 0x940   : > { %6408 = vmatmul.bf16.gmra.mxu3 %v14671_v11  ;;  %v14677_v11 = vld [vmem:[#allocation49_spill] sm:$0xff] }
 0x941   : > { %v6574_v63 = vsel %vm6446_vm3, %v6367_v8, %v6510_v38  ;;  %v14676_v8 = vld [vmem:[#allocation21_spill] sm:$0xff] }
 0x942   : > { %v6280_v2 = vpop.f32.mrf.mxu2  ;;  %v6634_v33 = vpack.c.bf16 %v6574_v63, %v6572_v29 }
 0x943   : > { %v6369_v58 = vpop.f32.mrf.mxu3  ;;  %v6281_v50 = vadd.f32 %v6280_v2, %v14672_v31 }
 0x944   : > { %6897 = vmatmul.bf16.gmra.mxu1 %v6634_v33  ;;  %v14678_v33 = vld [vmem:[#allocation55_spill] sm:$0xff] }
 0x945   : > { %v6370_v10 = vadd.f32 %v6369_v58, %v6281_v50 }
 0x947   : > { %v6512_v62 = vmul.f32 0.2, %v6370_v10  ;;  %vm6448_vm4 = vcmp.gt.f32.partialorder %v6370_v10, 0.0 }
 0x949   : > { %v6576_v49 = vsel %vm6448_vm4, %v6370_v10, %v6512_v62  ;;  %v14679_v10 = vld [vmem:[#allocation8_spill] sm:$0xff] }
 0x94a   : > { %v6282_v45 = vpop.f32.mrf.mxu2 }
 0x94b   : > { %v6283_v61 = vadd.f32 %v6282_v45, %v14673_v20  ;;  %v6371_v1 = vpop.f32.mrf.mxu3  ;;  %v14680_v20 = vpack.c.bf16 %v13387_v23, %v13385_v17 }
 0x94d   : > { %v6372_v14 = vadd.f32 %v6371_v1, %v6283_v61  ;;  %v14681_v61 = vld [vmem:[#allocation41_spill] sm:$0xff] }
 0x94f   : > { %vm6450_vm5 = vcmp.gt.f32.partialorder %v6372_v14, 0.0  ;;  %v6514_v44 = vmul.f32 0.2, %v6372_v14  ;;  %6324 = vmatmul.bf16.gmra.mxu2 %v14674_v48  ;;  %6848 = vmatmul.bf16.gmra.mxu0 %v14675_v26  ;;  %v6115_v26 = vadd.f32 %v13277_v22, %v13085_v39  ;;  %v14684_v22 = vpack.c.bf16 %v13410_v18, %v13408_v57 }
 0x950   : > { %6413 = vmatmul.bf16.gmra.mxu3 %v14676_v8 }
 0x951   : > { %v6578_v56 = vsel %vm6450_vm5, %v6372_v14, %v6514_v44 }
 0x952   : > { %v6285_v38 = vpop.f32.mrf.mxu2  ;;  %v6636_v0 = vpack.c.bf16 %v6578_v56, %v6576_v49  ;;  %v14682_v49 = vld [vmem:[#allocation56_spill] sm:$0xff] }
 0x953   : > { %v6374_v9 = vpop.f32.mrf.mxu3  ;;  %v6286_v29 = vadd.f32 %v6285_v38, %v14677_v11  ;;  %v6204_v56 = vadd.f32 %v14682_v49, %v6115_v26  ;;  %v13556_v38 = vpop.f32.mrf.mxu0 }
 0x954   : > { %6902 = vmatmul.bf16.gmra.mxu1 %v6636_v0 }
 0x955   : > { %v6375_v63 = vadd.f32 %v6374_v9, %v6286_v29 }
 0x957   : > { %v6516_v50 = vmul.f32 0.2, %v6375_v63  ;;  %vm6452_vm6 = vcmp.gt.f32.partialorder %v6375_v63, 0.0 }
 0x959   : > { %v6580_v1 = vsel %vm6452_vm6, %v6375_v63, %v6516_v50 }
 0x95a   : > { %v6287_v2 = vpop.f32.mrf.mxu2 }
 0x95b   : > { %v6288_v58 = vadd.f32 %v6287_v2, %v14678_v33  ;;  %v6376_v31 = vpop.f32.mrf.mxu3  ;;  %v14683_v2 = vld [vmem:[#allocation9_spill] sm:$0xff] }
 0x95d   : > { %v6377_v45 = vadd.f32 %v6376_v31, %v6288_v58 }
 0x95f   : > { %vm6454_vm7 = vcmp.gt.f32.partialorder %v6377_v45, 0.0  ;;  %v6518_v4 = vmul.f32 0.2, %v6377_v45  ;;  %6329 = vmatmul.bf16.gmra.mxu2 %v14679_v10  ;;  %6853 = vmatmul.bf16.gmra.mxu0 %v14680_v20  ;;  %v14686_v10 = vld [vmem:[#allocation53_spill] sm:$0xff] }
 0x960   : > { %6418 = vmatmul.bf16.gmra.mxu3 %v14681_v61  ;;  %v6120_v20 = vadd.f32 %v14686_v10, %v13085_v39  ;;  %v14687_v61 = vld [vmem:[#allocation33_spill] sm:$0xff] }
 0x961   : > { %v6582_v62 = vsel %vm6454_vm7, %v6377_v45, %v6518_v4  ;;  %v13563_v45 = vpop.f32.mrf.mxu0 }
 0x962   : > { %v6290_v14 = vpop.f32.mrf.mxu2  ;;  %v6638_v44 = vpack.c.bf16 %v6582_v62, %v6580_v1  ;;  %v14688_v62 = vld [vmem:[#allocation60_spill] sm:$0xff] }
 0x963   : > { %v6379_v48 = vpop.f32.mrf.mxu3  ;;  %v6291_v8 = vadd.f32 %v6290_v14, %v13258_v42  ;;  %v14685_v42 = vld [vmem:[#allocation47_spill] sm:$0xff]  ;;  %v6209_v14 = vadd.f32 %v14688_v62, %v6120_v20 }
 0x964   : > { %6907 = vmatmul.bf16.gmra.mxu1 %v6638_v44 }
 0x965   : > { %v6380_v0 = vadd.f32 %v6379_v48, %v6291_v8 }
 0x967   : > { %v6520_v11 = vmul.f32 0.2, %v6380_v0  ;;  %vm6456_vm8 = vcmp.gt.f32.partialorder %v6380_v0, 0.0 }
 0x969   : > { %v6584_v33 = vsel %vm6456_vm8, %v6380_v0, %v6520_v11  ;;  %v13569_v26 = vpop.f32.mrf.mxu0  ;;  %v14689_v0 = vld [vmem:[#allocation28_spill] sm:$0xff] }
 0x96a   : > { %v6292_v17 = vpop.f32.mrf.mxu2 }
 0x96b   : > { %v6293_v23 = vadd.f32 %v6292_v17, %v6204_v56  ;;  %v6381_v9 = vpop.f32.mrf.mxu3  ;;  %v14690_v17 = vpack.c.bf16 %v13430_v12, %v13428_v21 }
 0x96d   : > { %v6382_v29 = vadd.f32 %v6381_v9, %v6293_v23  ;;  %v14691_v23 = vld [vmem:[#allocation48_spill] sm:$0xff] }
 0x96f   : > { %vm6458_vm9 = vcmp.gt.f32.partialorder %v6382_v29, 0.0  ;;  %v6522_v63 = vmul.f32 0.2, %v6382_v29  ;;  %6334 = vmatmul.bf16.gmra.mxu2 %v14683_v2  ;;  %6858 = vmatmul.bf16.gmra.mxu0 %v14684_v22  ;;  %v14692_v22 = vld [vmem:[#allocation37_spill] sm:$0xff] }
 0x970   : > { %6423 = vmatmul.bf16.gmra.mxu3 %v14685_v42  ;;  %v6125_v42 = vadd.f32 %v14692_v22, %v13085_v39 }
 0x971   : > { %v6586_v58 = vsel %vm6458_vm9, %v6382_v29, %v6522_v63 }
 0x972   : > { %v6295_v31 = vpop.f32.mrf.mxu2  ;;  %v6640_v50 = vpack.c.bf16 %v6586_v58, %v6584_v33  ;;  %v14693_v33 = vld [vmem:[#allocation61_spill] sm:$0xff] }
 0x973   : > { %v6384_v4 = vpop.f32.mrf.mxu3  ;;  %v6296_v1 = vadd.f32 %v6295_v31, %v14687_v61  ;;  %v13579_v31 = vpop.f32.mrf.mxu0 }
 0x974   : > { %6912 = vmatmul.bf16.gmra.mxu1 %v6640_v50  ;;  %v14694_v50 = vld [vmem:[#allocation57_spill] sm:$0xff] }
 0x975   : > { %v6385_v44 = vadd.f32 %v6384_v4, %v6296_v1  ;;  %v6214_v4 = vadd.f32 %v14694_v50, %v6125_v42 }
 0x977   : > { %v6524_v8 = vmul.f32 0.2, %v6385_v44  ;;  %vm6460_vm10 = vcmp.gt.f32.partialorder %v6385_v44, 0.0 }
 0x979   : > { %v6588_v9 = vsel %vm6460_vm10, %v6385_v44, %v6524_v8  ;;  %v14696_v44 = vpack.c.bf16 %v13459_v6, %v13457_v25 }
 0x97a   : > { %v6297_v57 = vpop.f32.mrf.mxu2 }
 0x97b   : > { %v6298_v18 = vadd.f32 %v6297_v57, %v6209_v14  ;;  %v6386_v48 = vpop.f32.mrf.mxu3  ;;  %v14695_v14 = vld [vmem:[#allocation36_spill] sm:$0xff] }
 0x97c   : > { %v14697_v57 = vld [vmem:[#allocation20_spill] sm:$0xff] }
 0x97d   : > { %v6387_v49 = vadd.f32 %v6386_v48, %v6298_v18  ;;  %v13587_v18 = vpop.f32.mrf.mxu0 }
 0x97f   : > { %vm6462_vm11 = vcmp.gt.f32.partialorder %v6387_v49, 0.0  ;;  %v6526_v56 = vmul.f32 0.2, %v6387_v49  ;;  %6339 = vmatmul.bf16.gmra.mxu2 %v14689_v0  ;;  %6863 = vmatmul.bf16.gmra.mxu0 %v14690_v17  ;;  %v6130_v17 = vadd.f32 %v13352_v41, %v13085_v39 }
 0x980   : > { %6428 = vmatmul.bf16.gmra.mxu3 %v14691_v23  ;;  %v14698_v23 = vld [vmem:[#allocation66_spill] sm:$0xff] }
 0x981   : > { %v6590_v11 = vsel %vm6462_vm11, %v6387_v49, %v6526_v56 }
 0x982   : > { %v6300_v29 = vpop.f32.mrf.mxu2  ;;  %v6642_v63 = vpack.c.bf16 %v6590_v11, %v6588_v9  ;;  %v6219_v11 = vadd.f32 %v13354_v36, %v6130_v17 }
 0x983   : > { %v6389_v2 = vpop.f32.mrf.mxu3  ;;  %v6301_v58 = vadd.f32 %v6300_v29, %v14693_v33 }
 0x984   : > { %6917 = vmatmul.bf16.gmra.mxu1 %v6642_v63 }
 0x985   : > { %v6390_v10 = vadd.f32 %v6389_v2, %v6301_v58  ;;  %v13593_v6 = vpop.f32.mrf.mxu0  ;;  %v14699_v58 = vpack.c.bf16 %v13491_v53, %v13489_v40 }
 0x987   : > { %v6528_v61 = vmul.f32 0.2, %v6390_v10  ;;  %vm6464_vm12 = vcmp.gt.f32.partialorder %v6390_v10, 0.0 }
 0x989   : > { %v6592_v48 = vsel %vm6464_vm12, %v6390_v10, %v6528_v61 }
 0x98a   : > { %v6302_v21 = vpop.f32.mrf.mxu2 }
 0x98b   : > { %v6303_v12 = vadd.f32 %v6302_v21, %v6214_v4  ;;  %v6391_v20 = vpop.f32.mrf.mxu3  ;;  %v6135_v21 = vadd.f32 %v13372_v16, %v13085_v39 }
 0x98d   : > { %v6392_v1 = vadd.f32 %v6391_v20, %v6303_v12  ;;  %v13600_v12 = vpop.f32.mrf.mxu0  ;;  %v6224_v61 = vadd.f32 %v13374_v27, %v6135_v21  ;;  %v14700_v27 = vpack.c.bf16 %v13511_v43, %v13509_v52 }
 0x98f   : > { %vm6466_vm13 = vcmp.gt.f32.partialorder %v6392_v1, 0.0  ;;  %v6530_v62 = vmul.f32 0.2, %v6392_v1  ;;  %6344 = vmatmul.bf16.gmra.mxu2 %v14695_v14  ;;  %6868 = vmatmul.bf16.gmra.mxu0 %v14696_v44  ;;  %v13609_v44 = vld [vmem:[%s13806_s6] ss:$0 sm:$0xff] }
 0x990   : > { %6433 = vmatmul.bf16.gmra.mxu3 %v14697_v57  ;;  %v6807_v52 = vadd.f32 %v13609_v44, %v13563_v45 }
 0x991   : > { %v6594_v8 = vsel %vm6466_vm13, %v6392_v1, %v6530_v62  ;;  %v13604_v1 = vpop.f32.mrf.mxu1 }
 0x992   : > { %v6305_v49 = vpop.f32.mrf.mxu2  ;;  %v6644_v56 = vpack.c.bf16 %v6594_v8, %v6592_v48  ;;  %v6805_v8 = vadd.f32 %v13609_v44, %v13556_v38 }
 0x993   : > { %v6394_v0 = vpop.f32.mrf.mxu3  ;;  %v6306_v9 = vadd.f32 %v6305_v49, %v14698_v23 }
 0x994   : > { %6922 = vmatmul.bf16.gmra.mxu1 %v6644_v56 }
 0x995   : > { %v6395_v29 = vadd.f32 %v6394_v0, %v6306_v9  ;;  %v13611_v16 = vpop.f32.mrf.mxu0 }
 0x997   : > { %v6532_v22 = vmul.f32 0.2, %v6395_v29  ;;  %vm6468_vm14 = vcmp.gt.f32.partialorder %v6395_v29, 0.0 }
 0x999   : > { %v6596_v41 = vsel %vm6468_vm14, %v6395_v29, %v6532_v22  ;;  %v6140_v29 = vadd.f32 %v13392_v35, %v13085_v39 }
 0x99a   : > { %v6307_v25 = vpop.f32.mrf.mxu2 }
 0x99b   : > { %v6308_v63 = vadd.f32 %v6307_v25, %v6219_v11  ;;  %v6396_v2 = vpop.f32.mrf.mxu3  ;;  %v6229_v43 = vadd.f32 %v13394_v30, %v6140_v29 }
 0x99d   : > { %v6397_v42 = vadd.f32 %v6396_v2, %v6308_v63  ;;  %v13628_v45 = vpop.f32.mrf.mxu0 }
 0x99f   : > { %vm6470_vm15 = vcmp.gt.f32.partialorder %v6397_v42, 0.0  ;;  %v6534_v33 = vmul.f32 0.2, %v6397_v42  ;;  %6873 = vmatmul.bf16.gmra.mxu0 %v14699_v58 }
 0x9a1   : > { %v6598_v50 = vsel %vm6470_vm15, %v6397_v42, %v6534_v33 }
 0x9a2   : > { %v6310_v4 = vpop.f32.mrf.mxu2  ;;  %v6646_v10 = vpack.c.bf16 %v6598_v50, %v6596_v41 }
 0x9a3   : > { %v6399_v36 = vpop.f32.mrf.mxu3  ;;  %v6311_v20 = vadd.f32 %v6310_v4, %v13358_v24 }
 0x9a4   : > { %6927 = vmatmul.bf16.gmra.mxu1 %v6646_v10 }
 0x9a5   : > { %v6400_v62 = vadd.f32 %v6399_v36, %v6311_v20  ;;  %v6810_v36 = vadd.f32 %v13609_v44, %v13569_v26 }
 0x9a7   : > { %v6536_v57 = vmul.f32 0.2, %v6400_v62  ;;  %vm6472_vm0 = vcmp.gt.f32.partialorder %v6400_v62, 0.0 }
 0x9a9   : > { %v6600_v56 = vsel %vm6472_vm0, %v6400_v62, %v6536_v57  ;;  %v6145_v57 = vadd.f32 %v13415_v59, %v13085_v39 }
 0x9aa   : > { %v6312_v40 = vpop.f32.mrf.mxu2 }
 0x9ab   : > { %v6313_v53 = vadd.f32 %v6312_v40, %v6224_v61  ;;  %v6401_v14 = vpop.f32.mrf.mxu3 }
 0x9ad   : > { %v6402_v48 = vadd.f32 %v6401_v14, %v6313_v53 }
 0x9af   : > { %vm6474_vm1 = vcmp.gt.f32.partialorder %v6402_v48, 0.0  ;;  %v6538_v24 = vmul.f32 0.2, %v6402_v48  ;;  %6878 = vmatmul.bf16.gmra.mxu0 %v14700_v27  ;;  %v6234_v27 = vadd.f32 %v13417_v32, %v6145_v57 }
 0x9b1   : > { %v6893_v49 = vpop.f32.mrf.mxu1  ;;  %v6602_v0 = vsel %vm6474_vm1, %v6402_v48, %v6538_v24  ;;  %v6812_v24 = vadd.f32 %v13609_v44, %v13579_v31 }
 0x9b2   : > { %v6894_v17 = vadd.f32 %v6893_v49, %v6805_v8  ;;  %v6315_v23 = vpop.f32.mrf.mxu2  ;;  %v6648_v9 = vpack.c.bf16 %v6602_v0, %v6600_v56  ;;  %v13640_v8 = vpop.f32.mrf.mxu0 }
 0x9b3   : > { %v6404_v11 = vpop.f32.mrf.mxu3  ;;  %v6316_v25 = vadd.f32 %v6315_v23, %v13378_v3 }
 0x9b4   : > { %6932 = vmatmul.bf16.gmra.mxu1 %v6648_v9  ;;  %v7005_v2 = vmul.f32 0.2, %v6894_v17  ;;  %vm6973_vm2 = vcmp.gt.f32.partialorder %v6894_v17, 0.0 }
 0x9b5   : > { %v6405_v63 = vadd.f32 %v6404_v11, %v6316_v25 }
 0x9b6   : > { %v13624_v35 = vsel %vm6973_vm2, %v6894_v17, %v7005_v2 }
 0x9b7   : > { %v6540_v50 = vmul.f32 0.2, %v6405_v63  ;;  %vm6476_vm4 = vcmp.gt.f32.partialorder %v6405_v63, 0.0 }
 0x9b9   : > { %v6895_v38 = vpop.f32.mrf.mxu1  ;;  %v6604_v20 = vsel %vm6476_vm4, %v6405_v63, %v6540_v50 }
 0x9ba   : > { %v6896_v22 = vadd.f32 %v6895_v38, %v6807_v52  ;;  %v6317_v42 = vpop.f32.mrf.mxu2  ;;  %v6815_v52 = vadd.f32 %v13609_v44, %v13587_v18 }
 0x9bb   : > { %v6318_v33 = vadd.f32 %v6317_v42, %v6229_v43  ;;  %v6406_v58 = vpop.f32.mrf.mxu3 }
 0x9bc   : > { %vm6974_vm3 = vcmp.gt.f32.partialorder %v6896_v22, 0.0  ;;  %v7006_v41 = vmul.f32 0.2, %v6896_v22 }
 0x9bd   : > { %v6407_v4 = vadd.f32 %v6406_v58, %v6318_v33  ;;  %v13650_v33 = vpop.f32.mrf.mxu0 }
 0x9be   : > { %v13626_v3 = vsel %vm6974_vm3, %v6896_v22, %v7006_v41  ;;  %v6150_v41 = vadd.f32 %v13435_v7, %v13085_v39 }
 0x9bf   : > { %vm6478_vm5 = vcmp.gt.f32.partialorder %v6407_v4, 0.0  ;;  %v6542_v30 = vmul.f32 0.2, %v6407_v4  ;;  %v7069_v10 = vpack.c.bf16 %v13626_v3, %v13624_v35 }
 0x9c0   : > { %v6239_v18 = vadd.f32 %v13437_v15, %v6150_v41 }
 0x9c1   : > { %v6898_v21 = vpop.f32.mrf.mxu1  ;;  %v6606_v61 = vsel %vm6478_vm5, %v6407_v4, %v6542_v30  ;;  %v6817_v4 = vadd.f32 %v13609_v44, %v13593_v6 }
 0x9c2   : > { %v6899_v62 = vadd.f32 %v6898_v21, %v6810_v36  ;;  %v6320_v40 = vpop.f32.mrf.mxu2  ;;  %v6650_v53 = vpack.c.bf16 %v6606_v61, %v6604_v20 }
 0x9c3   : > { %v6409_v14 = vpop.f32.mrf.mxu3  ;;  %v6321_v48 = vadd.f32 %v6320_v40, %v13401_v54 }
 0x9c4   : > { %6937 = vmatmul.bf16.gmra.mxu1 %v6650_v53  ;;  %v7007_v56 = vmul.f32 0.2, %v6899_v62  ;;  %vm6975_vm6 = vcmp.gt.f32.partialorder %v6899_v62, 0.0 }
 0x9c5   : > { %v6410_v26 = vadd.f32 %v6409_v14, %v6321_v48  ;;  %v13658_v14 = vpop.f32.mrf.mxu0 }
 0x9c6   : > { %v13642_v54 = vsel %vm6975_vm6, %v6899_v62, %v7007_v56 }
 0x9c7   : > { %v6544_v59 = vmul.f32 0.2, %v6410_v26  ;;  %vm6480_vm8 = vcmp.gt.f32.partialorder %v6410_v26, 0.0 }
 0x9c9   : > { %v6900_v49 = vpop.f32.mrf.mxu1  ;;  %v6608_v63 = vsel %vm6480_vm8, %v6410_v26, %v6544_v59 }
 0x9ca   : > { %v6901_v0 = vadd.f32 %v6900_v49, %v6812_v24  ;;  %v6322_v17 = vpop.f32.mrf.mxu2  ;;  %v6820_v24 = vadd.f32 %v13609_v44, %v13600_v12 }
 0x9cb   : > { %v6323_v23 = vadd.f32 %v6322_v17, %v6234_v27  ;;  %v6411_v9 = vpop.f32.mrf.mxu3 }
 0x9cc   : > { %vm6976_vm7 = vcmp.gt.f32.partialorder %v6901_v0, 0.0  ;;  %v7008_v11 = vmul.f32 0.2, %v6901_v0 }
 0x9cd   : > { %v6412_v29 = vadd.f32 %v6411_v9, %v6323_v23  ;;  %v6155_v9 = vadd.f32 %v13464_v55, %v13085_v39  ;;  %v13671_v59 = vpop.f32.mrf.mxu0 }
 0x9ce   : > { %v13644_v31 = vsel %vm6976_vm7, %v6901_v0, %v7008_v11 }
 0x9cf   : > { %vm6482_vm9 = vcmp.gt.f32.partialorder %v6412_v29, 0.0  ;;  %v6546_v32 = vmul.f32 0.2, %v6412_v29  ;;  %v7070_v25 = vpack.c.bf16 %v13644_v31, %v13642_v54  ;;  %v6244_v12 = vadd.f32 %v13469_v37, %v6155_v9 }
 0x9d1   : > { %v6903_v43 = vpop.f32.mrf.mxu1  ;;  %v6610_v38 = vsel %vm6482_vm9, %v6412_v29, %v6546_v32  ;;  %v6822_v29 = vadd.f32 %v13609_v44, %v13611_v16 }
 0x9d2   : > { %v6904_v2 = vadd.f32 %v6903_v43, %v6815_v52  ;;  %v6325_v22 = vpop.f32.mrf.mxu2  ;;  %v6652_v42 = vpack.c.bf16 %v6610_v38, %v6608_v63 }
 0x9d3   : > { %v6414_v58 = vpop.f32.mrf.mxu3  ;;  %v6326_v50 = vadd.f32 %v6325_v22, %v13421_v51 }
 0x9d4   : > { %6942 = vmatmul.bf16.gmra.mxu1 %v6652_v42  ;;  %v7009_v21 = vmul.f32 0.2, %v6904_v2  ;;  %vm6977_vm10 = vcmp.gt.f32.partialorder %v6904_v2, 0.0 }
 0x9d5   : > { %v6415_v30 = vadd.f32 %v6414_v58, %v6326_v50  ;;  %v6825_v50 = vadd.f32 %v13609_v44, %v13628_v45 }
 0x9d6   : > { %v13660_v51 = vsel %vm6977_vm10, %v6904_v2, %v7009_v21 }
 0x9d7   : > { %v6548_v7 = vmul.f32 0.2, %v6415_v30  ;;  %vm6484_vm12 = vcmp.gt.f32.partialorder %v6415_v30, 0.0 }
 0x9d9   : > { %v6905_v36 = vpop.f32.mrf.mxu1  ;;  %v6612_v26 = vsel %vm6484_vm12, %v6415_v30, %v6548_v7  ;;  %v6827_v7 = vadd.f32 %v13609_v44, %v13640_v8 }
 0x9da   : > { %v6906_v20 = vadd.f32 %v6905_v36, %v6817_v4  ;;  %v6327_v61 = vpop.f32.mrf.mxu2  ;;  %v13684_v4 = vpop.f32.mrf.mxu0 }
 0x9db   : > { %v6328_v62 = vadd.f32 %v6327_v61, %v6239_v18  ;;  %v6416_v40 = vpop.f32.mrf.mxu3 }
 0x9dc   : > { %vm6978_vm11 = vcmp.gt.f32.partialorder %v6906_v20, 0.0  ;;  %v7010_v53 = vmul.f32 0.2, %v6906_v20 }
 0x9dd   : > { %v6417_v57 = vadd.f32 %v6416_v40, %v6328_v62  ;;  %v6160_v40 = vadd.f32 %v13496_v47, %v13085_v39 }
 0x9de   : > { %v13662_v6 = vsel %vm6978_vm11, %v6906_v20, %v7010_v53 }
 0x9df   : > { %vm6486_vm13 = vcmp.gt.f32.partialorder %v6417_v57, 0.0  ;;  %v6550_v15 = vmul.f32 0.2, %v6417_v57  ;;  %v7071_v48 = vpack.c.bf16 %v13662_v6, %v13660_v51  ;;  %v6249_v45 = vadd.f32 %v13498_v28, %v6160_v40 }
 0x9e1   : > { %v6908_v27 = vpop.f32.mrf.mxu1  ;;  %v6614_v49 = vsel %vm6486_vm13, %v6417_v57, %v6550_v15 }
 0x9e2   : > { %v6909_v56 = vadd.f32 %v6908_v27, %v6820_v24  ;;  %v6330_v0 = vpop.f32.mrf.mxu2  ;;  %v6654_v17 = vpack.c.bf16 %v6614_v49, %v6612_v26  ;;  %v6839_v49 = vpop.f32.mrf.mxu0 }
 0x9e3   : > { %v6419_v23 = vpop.f32.mrf.mxu3  ;;  %v6331_v11 = vadd.f32 %v6330_v0, %v13447_v34 }
 0x9e4   : > { %6947 = vmatmul.bf16.gmra.mxu1 %v6654_v17  ;;  %v7011_v43 = vmul.f32 0.2, %v6909_v56  ;;  %vm6979_vm14 = vcmp.gt.f32.partialorder %v6909_v56, 0.0 }
 0x9e5   : > { %v6420_v32 = vadd.f32 %v6419_v23, %v6331_v11 }
 0x9e6   : > { %v13676_v34 = vsel %vm6979_vm14, %v6909_v56, %v7011_v43 }
 0x9e7   : > { %v6552_v55 = vmul.f32 0.2, %v6420_v32  ;;  %vm6488_vm0 = vcmp.gt.f32.partialorder %v6420_v32, 0.0 }
 0x9e9   : > { %v6910_v52 = vpop.f32.mrf.mxu1  ;;  %v6616_v30 = vsel %vm6488_vm0, %v6420_v32, %v6552_v55 }
 0x9ea   : > { %v6911_v63 = vadd.f32 %v6910_v52, %v6822_v29  ;;  %v6332_v38 = vpop.f32.mrf.mxu2 }
 0x9eb   : > { %v6333_v2 = vadd.f32 %v6332_v38, %v6244_v12  ;;  %v6421_v22 = vpop.f32.mrf.mxu3  ;;  %v6841_v38 = vpop.f32.mrf.mxu0 }
 0x9ec   : > { %vm6980_vm15 = vcmp.gt.f32.partialorder %v6911_v63, 0.0  ;;  %v7012_v42 = vmul.f32 0.2, %v6911_v63 }
 0x9ed   : > { %v6422_v58 = vadd.f32 %v6421_v22, %v6333_v2 }
 0x9ee   : > { %v13678_v41 = vsel %vm6980_vm15, %v6911_v63, %v7012_v42  ;;  %v6165_v63 = vadd.f32 %v13515_v60, %v13085_v39 }
 0x9ef   : > { %vm6490_vm1 = vcmp.gt.f32.partialorder %v6422_v58, 0.0  ;;  %v6554_v16 = vmul.f32 0.2, %v6422_v58  ;;  %v7072_v37 = vpack.c.bf16 %v13678_v41, %v13676_v34 }
 0x9f0   : > { %v6254_v22 = vadd.f32 %v13518_v46, %v6165_v63  ;;  %v6170_v46 = vadd.f32 %v13545_v5, %v13085_v39  ;;  %v6840_v5 = vadd.f32 %v13609_v44, %v6839_v49 }
 0x9f1   : > { %v6913_v18 = vpop.f32.mrf.mxu1  ;;  %v6618_v36 = vsel %vm6490_vm1, %v6422_v58, %v6554_v16 }
 0x9f2   : > { %v6914_v21 = vadd.f32 %v6913_v18, %v6825_v50  ;;  %v6335_v20 = vpop.f32.mrf.mxu2  ;;  %v6656_v61 = vpack.c.bf16 %v6618_v36, %v6616_v30 }
 0x9f3   : > { %v6424_v62 = vpop.f32.mrf.mxu3  ;;  %v6336_v53 = vadd.f32 %v6335_v20, %v13479_v13  ;;  %v6844_v36 = vpop.f32.mrf.mxu0 }
 0x9f4   : > { %6952 = vmatmul.bf16.gmra.mxu1 %v6656_v61  ;;  %v7013_v24 = vmul.f32 0.2, %v6914_v21  ;;  %vm6981_vm2 = vcmp.gt.f32.partialorder %v6914_v21, 0.0 }
 0x9f5   : > { %v6425_v57 = vadd.f32 %v6424_v62, %v6336_v53  ;;  %v14701_v53 = vld [vmem:[#allocation67_spill] sm:$0xff] }
 0x9f6   : > { %v13692_v13 = vsel %vm6981_vm2, %v6914_v21, %v7013_v24 }
 0x9f7   : > { %v6556_v23 = vmul.f32 0.2, %v6425_v57  ;;  %vm6492_vm4 = vcmp.gt.f32.partialorder %v6425_v57, 0.0 }
 0x9f9   : > { %v6915_v15 = vpop.f32.mrf.mxu1  ;;  %v6620_v29 = vsel %vm6492_vm4, %v6425_v57, %v6556_v23 }
 0x9fa   : > { %v6916_v27 = vadd.f32 %v6915_v15, %v6827_v7  ;;  %v6337_v26 = vpop.f32.mrf.mxu2 }
 0x9fb   : > { %v6338_v56 = vadd.f32 %v6337_v26, %v6249_v45  ;;  %v6426_v0 = vpop.f32.mrf.mxu3  ;;  %v6259_v45 = vadd.f32 %v13604_v1, %v6170_v46  ;;  %v6846_v57 = vpop.f32.mrf.mxu0 }
 0x9fc   : > { %vm6982_vm3 = vcmp.gt.f32.partialorder %v6916_v27, 0.0  ;;  %v7014_v17 = vmul.f32 0.2, %v6916_v27 }
 0x9fd   : > { %v6427_v47 = vadd.f32 %v6426_v0, %v6338_v56 }
 0x9fe   : > { %v13694_v9 = vsel %vm6982_vm3, %v6916_v27, %v7014_v17 }
 0x9ff   : > { %vm6494_vm5 = vcmp.gt.f32.partialorder %v6427_v47, 0.0  ;;  %v6558_v28 = vmul.f32 0.2, %v6427_v47  ;;  %v7073_v8 = vpack.c.bf16 %v13694_v9, %v13692_v13 }
 0xa01   : > { %v13698_v11 = vpop.f32.mrf.mxu1  ;;  %v6622_v12 = vsel %vm6494_vm5, %v6427_v47, %v6558_v28 }
 0xa02   : > { %v6340_v32 = vpop.f32.mrf.mxu2  ;;  %v6658_v52 = vpack.c.bf16 %v6622_v12, %v6620_v29 }
 0xa03   : > { %v6429_v43 = vpop.f32.mrf.mxu3  ;;  %v6341_v2 = vadd.f32 %v6340_v32, %v13502_v19  ;;  %v6849_v39 = vpop.f32.mrf.mxu0  ;;  %v6842_v32 = vadd.f32 %v13609_v44, %v6841_v38  ;;  %v6845_v38 = vadd.f32 %v13609_v44, %v6844_v36 }
 0xa04   : > { %6957 = vmatmul.bf16.gmra.mxu1 %v6658_v52 }
 0xa05   : > { %v6430_v42 = vadd.f32 %v6429_v43, %v6341_v2  ;;  %v6837_v43 = vadd.f32 %v13609_v44, %v13684_v4  ;;  %v6832_v4 = vadd.f32 %v13609_v44, %v13658_v14 }
 0xa07   : > { %v6560_v18 = vmul.f32 0.2, %v6430_v42  ;;  %vm6496_vm6 = vcmp.gt.f32.partialorder %v6430_v42, 0.0 }
 0xa09   : > { %v13704_v55 = vpop.f32.mrf.mxu1  ;;  %v6624_v61 = vsel %vm6496_vm6, %v6430_v42, %v6560_v18 }
 0xa0a   : > { %v6342_v58 = vpop.f32.mrf.mxu2 }
 0xa0b   : > { %v6343_v16 = vadd.f32 %v6342_v58, %v6254_v22  ;;  %v6431_v50 = vpop.f32.mrf.mxu3  ;;  %v6835_v22 = vadd.f32 %v13609_v44, %v13671_v59  ;;  %v6830_v59 = vadd.f32 %v13609_v44, %v13650_v33 }
 0xa0d   : > { %v6432_v30 = vadd.f32 %v6431_v50, %v6343_v16  ;;  %v6851_v16 = vpop.f32.mrf.mxu0 }
 0xa0f   : > { %vm6498_vm7 = vcmp.gt.f32.partialorder %v6432_v30, 0.0  ;;  %v6562_v21 = vmul.f32 0.2, %v6432_v30 }
 0xa11   : > { %v6923_v20 = vpop.f32.mrf.mxu1  ;;  %v6626_v60 = vsel %vm6498_vm7, %v6432_v30, %v6562_v21 }
 0xa12   : > { %v6345_v62 = vpop.f32.mrf.mxu2  ;;  %v6660_v40 = vpack.c.bf16 %v6626_v60, %v6624_v61  ;;  %v6924_v50 = vadd.f32 %v6923_v20, %v6835_v22  ;;  %v6921_v20 = vadd.f32 %v13704_v55, %v6832_v4 }
 0xa13   : > { %v6434_v19 = vpop.f32.mrf.mxu3  ;;  %v6346_v7 = vadd.f32 %v6345_v62, %v14701_v53 }
 0xa14   : > { %6962 = vmatmul.bf16.gmra.mxu1 %v6660_v40  ;;  %v7017_v60 = vmul.f32 0.2, %v6924_v50  ;;  %vm6985_vm13 = vcmp.gt.f32.partialorder %v6924_v50, 0.0  ;;  %vm6984_vm14 = vcmp.gt.f32.partialorder %v6921_v20, 0.0 }
 0xa15   : > { %v6435_v15 = vadd.f32 %v6434_v19, %v6346_v7  ;;  %v6919_v19 = vadd.f32 %v13698_v11, %v6830_v59  ;;  %v6854_v36 = vpop.f32.mrf.mxu0  ;;  %v6847_v7 = vadd.f32 %v13609_v44, %v6846_v57 }
 0xa16   : > { %v7049_v46 = vsel %vm6985_vm13, %v6924_v50, %v7017_v60 }
 0xa17   : > { %v6564_v0 = vmul.f32 0.2, %v6435_v15  ;;  %vm6500_vm8 = vcmp.gt.f32.partialorder %v6435_v15, 0.0  ;;  %v7015_v14 = vmul.f32 0.2, %v6919_v19  ;;  %vm6983_vm15 = vcmp.gt.f32.partialorder %v6919_v19, 0.0 }
 0xa19   : > { %v6925_v24 = vpop.f32.mrf.mxu1  ;;  %v6628_v28 = vsel %vm6500_vm8, %v6435_v15, %v6564_v0 }
 0xa1a   : > { %v6347_v27 = vpop.f32.mrf.mxu2  ;;  %v6926_v42 = vadd.f32 %v6925_v24, %v6837_v43 }
 0xa1b   : > { %v6348_v26 = vadd.f32 %v6347_v27, %v6259_v45  ;;  %v6436_v56 = vpop.f32.mrf.mxu3  ;;  %v7016_v45 = vmul.f32 0.2, %v6921_v20 }
 0xa1c   : > { %v7018_v21 = vmul.f32 0.2, %v6926_v42  ;;  %vm6986_vm12 = vcmp.gt.f32.partialorder %v6926_v42, 0.0 }
 0xa1d   : > { %v6437_v17 = vadd.f32 %v6436_v56, %v6348_v26  ;;  %v7048_v55 = vsel %vm6984_vm14, %v6921_v20, %v7016_v45  ;;  %v7047_v26 = vsel %vm6983_vm15, %v6919_v19, %v7015_v14 }
 0xa1e   : > { %v7050_v40 = vsel %vm6986_vm12, %v6926_v42, %v7018_v21  ;;  %v7074_v0 = vpack.c.bf16 %v7048_v55, %v7047_v26 }
 0xa1f   : > { %vm6502_vm9 = vcmp.gt.f32.partialorder %v6437_v17, 0.0  ;;  %v6566_v23 = vmul.f32 0.2, %v6437_v17  ;;  %v7075_v53 = vpack.c.bf16 %v7050_v40, %v7049_v46 }
 0xa21   : > { %v6928_v47 = vpop.f32.mrf.mxu1  ;;  %v6630_v29 = vsel %vm6502_vm9, %v6437_v17, %v6566_v23  ;;  %v6850_v17 = vadd.f32 %v13609_v44, %v6849_v39  ;;  %v6856_v23 = vpop.f32.mrf.mxu0 }
 0xa22   : > { %v6662_v12 = vpack.c.bf16 %v6630_v29, %v6628_v28  ;;  %v6929_v1 = vadd.f32 %v6928_v47, %v6840_v5  ;;  %v6852_v29 = vadd.f32 %v13609_v44, %v6851_v16 }
 0xa24   : > { %6967 = vmatmul.bf16.gmra.mxu1 %v6662_v12  ;;  %v7019_v63 = vmul.f32 0.2, %v6929_v1  ;;  %vm6987_vm10 = vcmp.gt.f32.partialorder %v6929_v1, 0.0 }
 0xa26   : > { %v7051_v49 = vsel %vm6987_vm10, %v6929_v1, %v7019_v63 }
 0xa29   : > { %v6930_v52 = vpop.f32.mrf.mxu1 }
 0xa2a   : > { %v6931_v2 = vadd.f32 %v6930_v52, %v6842_v32  ;;  %v6859_v32 = vpop.f32.mrf.mxu0 }
 0xa2c   : > { %vm6988_vm11 = vcmp.gt.f32.partialorder %v6931_v2, 0.0  ;;  %v7020_v58 = vmul.f32 0.2, %v6931_v2 }
 0xa2e   : > { %v7052_v18 = vsel %vm6988_vm11, %v6931_v2, %v7020_v58  ;;  %v6855_v2 = vadd.f32 %v13609_v44, %v6854_v36 }
 0xa2f   : > { %v7076_v30 = vpack.c.bf16 %v7052_v18, %v7051_v49 }
 0xa31   : > { %v6933_v61 = vpop.f32.mrf.mxu1  ;;  %7093 = vmatpush.bf16.xpose.msra.mxu2 %v7076_v30 }
 0xa32   : > { %v6934_v62 = vadd.f32 %v6933_v61, %v6845_v38  ;;  %v6861_v9 = vpop.f32.mrf.mxu0 }
 0xa33   : > { %v6862_v6 = vadd.f32 %v13609_v44, %v6861_v9 }
 0xa34   : > { %v7021_v24 = vmul.f32 0.2, %v6934_v62  ;;  %vm6989_vm0 = vcmp.gt.f32.partialorder %v6934_v62, 0.0 }
 0xa36   : > { %v13724_v56 = vsel %vm6989_vm0, %v6934_v62, %v7021_v24  ;;  %vm7122_vm0 = vcmask 1040384  }
 0xa39   : > { %v6935_v15 = vpop.f32.mrf.mxu1  ;;  %7094 = vmatpush.bf16.xpose.msra.mxu2 %v7075_v53 }
 0xa3a   : > { %v6936_v27 = vadd.f32 %v6935_v15, %v6847_v7  ;;  %v6864_v34 = vpop.f32.mrf.mxu0 }
 0xa3b   : > { %v6865_v31 = vadd.f32 %v13609_v44, %v6864_v34 }
 0xa3c   : > { %vm6990_vm1 = vcmp.gt.f32.partialorder %v6936_v27, 0.0  ;;  %v7022_v33 = vmul.f32 0.2, %v6936_v27 }
 0xa3e   : > { %v13726_v11 = vsel %vm6990_vm1, %v6936_v27, %v7022_v33 }
 0xa3f   : > { %v7077_v57 = vpack.c.bf16 %v13726_v11, %v13724_v56 }
 0xa41   : > { %v6938_v47 = vpop.f32.mrf.mxu1  ;;  %7095 = vmatpush.bf16.xpose.msra.mxu2 %v7074_v0 }
 0xa42   : > { %v6939_v28 = vadd.f32 %v6938_v47, %v6850_v17 }
 0xa44   : > { %v7023_v5 = vmul.f32 0.2, %v6939_v28  ;;  %vm6991_vm2 = vcmp.gt.f32.partialorder %v6939_v28, 0.0 }
 0xa46   : > { %v13735_v43 = vsel %vm6991_vm2, %v6939_v28, %v7023_v5 }
 0xa49   : > { %v6940_v12 = vpop.f32.mrf.mxu1  ;;  %7096 = vmatpush.bf16.xpose.msra.mxu2 %v7073_v8  ;;  %v6857_v8 = vadd.f32 %v13609_v44, %v6856_v23 }
 0xa4a   : > { %v6941_v1 = vadd.f32 %v6940_v12, %v6852_v29 }
 0xa4c   : > { %vm6992_vm3 = vcmp.gt.f32.partialorder %v6941_v1, 0.0  ;;  %v7024_v52 = vmul.f32 0.2, %v6941_v1 }
 0xa4e   : > { %v13737_v39 = vsel %vm6992_vm3, %v6941_v1, %v7024_v52 }
 0xa4f   : > { %v7078_v63 = vpack.c.bf16 %v13737_v39, %v13735_v43 }
 0xa51   : > { %v6943_v22 = vpop.f32.mrf.mxu1  ;;  %7097 = vmatpush.bf16.xpose.msra.mxu2 %v7072_v37  ;;  %v6860_v37 = vadd.f32 %v13609_v44, %v6859_v32 }
 0xa52   : > { %v6944_v13 = vadd.f32 %v6943_v22, %v6855_v2 }
 0xa54   : > { %v7025_v58 = vmul.f32 0.2, %v6944_v13  ;;  %vm6993_vm4 = vcmp.gt.f32.partialorder %v6944_v13, 0.0 }
 0xa56   : > { %v13749_v49 = vsel %vm6993_vm4, %v6944_v13, %v7025_v58 }
 0xa59   : > { %v6945_v42 = vpop.f32.mrf.mxu1  ;;  %7098 = vmatpush.bf16.xpose.msra.mxu2 %v7071_v48  ;;  %v6866_v48 = vpop.f32.mrf.mxu0 }
 0xa5a   : > { %v6946_v16 = vadd.f32 %v6945_v42, %v6857_v8  ;;  %v6867_v35 = vadd.f32 %v13609_v44, %v6866_v48 }
 0xa5c   : > { %vm6994_vm5 = vcmp.gt.f32.partialorder %v6946_v16, 0.0  ;;  %v7026_v50 = vmul.f32 0.2, %v6946_v16 }
 0xa5e   : > { %v13751_v18 = vsel %vm6994_vm5, %v6946_v16, %v7026_v50 }
 0xa5f   : > { %v7079_v41 = vpack.c.bf16 %v13751_v18, %v13749_v49 }
 0xa61   : > { %v6948_v30 = vpop.f32.mrf.mxu1  ;;  %7099 = vmatpush.bf16.xpose.msra.mxu2 %v7070_v25  ;;  %v6869_v20 = vpop.f32.mrf.mxu0 }
 0xa62   : > { %v6949_v51 = vadd.f32 %v6948_v30, %v6860_v37  ;;  %v6870_v16 = vadd.f32 %v13609_v44, %v6869_v20 }
 0xa64   : > { %v7027_v21 = vmul.f32 0.2, %v6949_v51  ;;  %vm6995_vm6 = vcmp.gt.f32.partialorder %v6949_v51, 0.0 }
 0xa66   : > { %v13763_v60 = vsel %vm6995_vm6, %v6949_v51, %v7027_v21 }
 0xa69   : > { %v6950_v38 = vpop.f32.mrf.mxu1  ;;  %7100 = vmatpush.bf16.xpose.msra.mxu2 %v7069_v10  ;;  %v6871_v46 = vpop.f32.mrf.mxu0 }
 0xa6a   : > { %v6951_v61 = vadd.f32 %v6950_v38, %v6862_v6  ;;  %v6872_v42 = vadd.f32 %v13609_v44, %v6871_v46 }
 0xa6c   : > { %vm6996_vm7 = vcmp.gt.f32.partialorder %v6951_v61, 0.0  ;;  %v7028_v4 = vmul.f32 0.2, %v6951_v61 }
 0xa6e   : > { %v13765_v62 = vsel %vm6996_vm7, %v6951_v61, %v7028_v4  ;;  %v7085_v4 = vld [vmem:[%s13807_s7] sm:$0x1] }
 0xa6f   : > { %v7080_v54 = vpack.c.bf16 %v13765_v62, %v13763_v60 }
 0xa70   : > { %7101 = vmatmul.bf16.vlgmr.msra.gmra.mxu2 %v7085_v4 }
 0xa71   : > { %v6953_v25 = vpop.f32.mrf.mxu1  ;;  %v6874_v15 = vpop.f32.mrf.mxu0 }
 0xa72   : > { %v6954_v59 = vadd.f32 %v6953_v25, %v6865_v31  ;;  %v6875_v1 = vadd.f32 %v13609_v44, %v6874_v15  ;;  %v9310_v31 = vmov 0  }
 0xa73   : > { %9296 = vset.pattern.permute.xlu0 %v9310_v31 }
 0xa74   : > { %v7029_v10 = vmul.f32 0.2, %v6954_v59  ;;  %vm6997_vm8 = vcmp.gt.f32.partialorder %v6954_v59, 0.0 }
 0xa76   : > { %v7061_v36 = vsel %vm6997_vm8, %v6954_v59, %v7029_v10 }
 0xa79   : > { %v6955_v3 = vpop.f32.mrf.mxu1  ;;  %v6876_v24 = vpop.f32.mrf.mxu0 }
 0xa7a   : > { %v6956_v40 = vadd.f32 %v6955_v3, %v6867_v35  ;;  %v6877_v29 = vadd.f32 %v13609_v44, %v6876_v24 }
 0xa7c   : > { %vm6998_vm9 = vcmp.gt.f32.partialorder %v6956_v40, 0.0  ;;  %v7030_v19 = vmul.f32 0.2, %v6956_v40 }
 0xa7e   : > { %v7062_v53 = vsel %vm6998_vm9, %v6956_v40, %v7030_v19 }
 0xa7f   : > { %v7081_v7 = vpack.c.bf16 %v7062_v53, %v7061_v36 }
 0xa81   : > { %v6958_v45 = vpop.f32.mrf.mxu1  ;;  %v6879_v55 = vpop.f32.mrf.mxu0 }
 0xa82   : > { %v6880_v0 = vadd.f32 %v13609_v44, %v6879_v55  ;;  %v6959_v37 = vadd.f32 %v6958_v45, %v6870_v16 }
 0xa84   : > { %v7031_v48 = vmul.f32 0.2, %v6959_v37  ;;  %vm6999_vm15 = vcmp.gt.f32.partialorder %v6959_v37, 0.0 }
 0xa86   : > { %v7063_v21 = vsel %vm6999_vm15, %v6959_v37, %v7031_v48 }
 0xa89   : > { %v6960_v14 = vpop.f32.mrf.mxu1  ;;  %v6881_v17 = vpop.f32.mrf.mxu0 }
 0xa8a   : > { %v6882_v47 = vadd.f32 %v13609_v44, %v6881_v17  ;;  %v6961_v50 = vadd.f32 %v6960_v14, %v6872_v42  ;;  %v7086_v44 = vld [vmem:[#allocation2] sm:$0x1] }
 0xa8b   : > { %7089 = vperm.xlu0 %9296, %v7086_v44  }
 0xa8c   : > { %v7032_v6 = vmul.f32 0.2, %v6961_v50  ;;  %vm7000_vm14 = vcmp.gt.f32.partialorder %v6961_v50, 0.0 }
 0xa8e   : > { %v7064_v38 = vsel %vm7000_vm14, %v6961_v50, %v7032_v6 }
 0xa8f   : > { %v7082_v61 = vpack.c.bf16 %v7064_v38, %v7063_v21 }
 0xa91   : > { %v6963_v27 = vpop.f32.mrf.mxu1 }
 0xa92   : > { %v6964_v2 = vadd.f32 %v6963_v27, %v6875_v1 }
 0xa94   : > { %v7033_v58 = vmul.f32 0.2, %v6964_v2  ;;  %vm7001_vm13 = vcmp.gt.f32.partialorder %v6964_v2, 0.0 }
 0xa96   : > { %v7065_v30 = vsel %vm7001_vm13, %v6964_v2, %v7033_v58 }
 0xa99   : > { %v6965_v33 = vpop.f32.mrf.mxu1 }
 0xa9a   : > { %v6966_v32 = vadd.f32 %v6965_v33, %v6877_v29 }
 0xa9c   : > { %v7034_v8 = vmul.f32 0.2, %v6966_v32  ;;  %vm7002_vm12 = vcmp.gt.f32.partialorder %v6966_v32, 0.0 }
 0xa9e   : > { %v7066_v34 = vsel %vm7002_vm12, %v6966_v32, %v7034_v8 }
 0xa9f   : > { %v7083_v51 = vpack.c.bf16 %v7066_v34, %v7065_v30 }
 0xaa1   : > { %v6968_v26 = vpop.f32.mrf.mxu1 }
 0xaa2   : > { %v6969_v23 = vadd.f32 %v6968_v26, %v6880_v0 }
 0xaa4   : > { %v7035_v12 = vmul.f32 0.2, %v6969_v23  ;;  %vm7003_vm10 = vcmp.gt.f32.partialorder %v6969_v23, 0.0 }
 0xaa6   : > { %v7067_v22 = vsel %vm7003_vm10, %v6969_v23, %v7035_v12 }
 0xaa9   : > { %v6970_v28 = vpop.f32.mrf.mxu1 }
 0xaaa   : > { %v6971_v5 = vadd.f32 %v6970_v28, %v6882_v47 }
 0xaac   : > { %vm7004_vm11 = vcmp.gt.f32.partialorder %v6971_v5, 0.0  ;;  %v7036_v52 = vmul.f32 0.2, %v6971_v5 }
 0xaae   : > { %v7068_v13 = vsel %vm7004_vm11, %v6971_v5, %v7036_v52 }
 0xaaf   : > { %v7084_v9 = vpack.c.bf16 %v7068_v13, %v7067_v22 }
 0xab1   : > { %7106 = vmatpush.bf16.xpose.msra.mxu3 %v7084_v9 }
 0xab9   : > { %7107 = vmatpush.bf16.xpose.msra.mxu3 %v7083_v51 }
 0xac1   : > { %7108 = vmatpush.bf16.xpose.msra.mxu3 %v7082_v61 }
 0xac9   : > { %7109 = vmatpush.bf16.xpose.msra.mxu3 %v7081_v7 }
 0xad1   : > { %7110 = vmatpush.bf16.xpose.msra.mxu3 %v7080_v54  ;;  %v7125_v54 = vlaneseq }
 0xad3   : > { %vm7127_vm1 = vcmp.lt.s32.totalorder %v7125_v54, 256 }
 0xad9   : > { %7111 = vmatpush.bf16.xpose.msra.mxu3 %v7079_v41 }
 0xae1   : > { %7112 = vmatpush.bf16.xpose.msra.mxu3 %v7078_v63 }
 0xae9   : > { %7113 = vmatpush.bf16.xpose.msra.mxu3 %v7077_v57 }
 0xaf0   : > { %7114 = vmatmul.bf16.vlgmr.msra.gmra.mxu3 %v7085_v4 }
 0xaf3   : > { %v7102_v25 = vpop.f32.mrf.mxu2 }
 0xafb   : > { %v7104_v59 = vpop.f32.mrf.mxu2 }
 0xafd   : > { %v7090_v60 = vpop.permute.xlu0 %7089 }
 0xafe   : > { %v7092_v62 = vperm.slane %v7090_v60, 0 }
 0xb00   : > { %v7103_v56 = vadd.f32 %v7102_v25, %v7092_v62 }
 0xb73   : > { %v7115_v49 = vpop.f32.mrf.mxu3 }
 0xb74   : > { %v7116_v18 = vadd.f32 %v7115_v49, %v7092_v62 }
 0xb76   : > { %v7121_v11 = vrot.slane %v7116_v18, 7 }
 0xb78   : > { %v7123_v57 = vsel %vm7122_vm0, %v7103_v56, %v7121_v11 }
 0xb79   : > { %7129 = vst.msk [vmem:[%s337_s18] sm:$0x3] %vm7127_vm1, %v7123_v57 }
 0xb7b   : > { %v7117_v43 = vpop.f32.mrf.mxu3 }
 0xb7c PF: > { %s21_s11 = sadd.s32 1, %s9308_s11  }
 0xb7d   : > { %p18_p5 = scmp.ge.s32.totalorder %s21_s11, 4  }
 0xb7f   :  { %20 = sbr.rel (!%p18_p5) target bundleno = 3 (0x3), region = 86 }

</bundles_post_ra>
